<compile_context>
chip_gen: v7x
topology: tpu7x:2x2x1
jax: 0.10.0
libtpu: 0.0.40
codegen_flags: <defaults>
</compile_context>

<pallas_src>
import jax
import jax.numpy as jnp
from jax.experimental import pallas as pl
from jax.experimental.pallas import tpu as pltpu

# Encoder / decoder layer widths (mirrors the nn.Sequential definitions).
ENC_DIMS = [28 * 28, 128, 64, 36, 18, 9]
DEC_DIMS = [9, 18, 36, 64, 128, 28 * 28]

LANE = 128


def _round_up(n, m):
    return ((n + m - 1) // m) * m


IN_PAD = _round_up(28 * 28, LANE)   # 896 = 7 * 128 (lane-dense image width)
ENC_PAD = LANE                      # bottleneck slab width (9 -> 128)


def ae_kernel(*refs):
    """refs = (x, we0,be0,...,we4,be4, wd0,bd0,...,wd4,bd4, enc_out, dec_out).

    All weights are zero-padded to lane multiples and stored bf16; biases are
    f32 (1, Np).  Activations stay f32 between layers; only the MXU operands
    are bf16, accumulation is f32.
    """
    x_ref = refs[0]
    wb = refs[1:21]                 # 10 (weight, bias) pairs, interleaved
    enc_ref, dec_ref = refs[21], refs[22]

    h = x_ref[...]                  # (TB, 896) f32
    for i in range(10):
        w = wb[2 * i][...]          # bf16, (Kp, Np)
        b = wb[2 * i + 1][...]      # f32,  (1, Np)
        h = jnp.dot(h.astype(jnp.bfloat16), w,
                    preferred_element_type=jnp.float32) + b
        if i == 4:
            enc_ref[...] = h        # bottleneck (no activation), lane-dense slab
        elif i == 9:
            # Stable sigmoid: exp on the EUP, one reciprocal, no inf intermediate.
            e = jnp.exp(-jnp.abs(h))
            r = 1.0 / (1.0 + e)
            h = jnp.where(h >= 0, r, e * r)
        else:
            h = jnp.maximum(h, 0.0)
    dec_ref[...] = h                # (TB, 896) f32


def _pack_params(params):
    """Zero-pad every (w, b) to lane multiples; weights -> bf16, biases -> f32 (1, Np)."""
    packed = []
    for w, b in zip(params[0::2], params[1::2]):
        din, dout = w.shape
        kp, np_ = _round_up(din, LANE), _round_up(dout, LANE)
        wp = jnp.zeros((kp, np_), jnp.float32).at[:din, :dout].set(w)
        bp = jnp.zeros((1, np_), jnp.float32).at[:, :dout].set(b.reshape(1, dout))
        packed.append(wp.astype(jnp.bfloat16))
        packed.append(bp)
    return packed


@jax.jit
def ae_forward(x, params):
    """params: flat list [w_e0, b_e0, ..., w_e4, b_e4, w_d0, b_d0, ..., w_d4, b_d4]."""
    B = x.shape[0]
    TB = 256 if B >= 256 else _round_up(B, 8)   # batch tile (MXU-friendly)
    Bp = _round_up(B, TB)
    grid = (Bp // TB,)

    # Lane-dense, batch-padded input slab (zeros are sliced away at the end).
    xp = jnp.pad(x.astype(jnp.float32),
                 ((0, Bp - B), (0, IN_PAD - x.shape[1])))
    packed = _pack_params(params)

    def _const_spec(shape):
        # Full-extent block, same block every grid step => stays VMEM-resident.
        return pl.BlockSpec(shape, lambda i: (0,) * len(shape))

    in_specs = [pl.BlockSpec((TB, IN_PAD), lambda i: (i, 0))]
    in_specs += [_const_spec(p.shape) for p in packed]
    out_specs = (
        pl.BlockSpec((TB, ENC_PAD), lambda i: (i, 0)),
        pl.BlockSpec((TB, IN_PAD), lambda i: (i, 0)),
    )
    out_shape = (
        jax.ShapeDtypeStruct((Bp, ENC_PAD), jnp.float32),
        jax.ShapeDtypeStruct((Bp, IN_PAD), jnp.float32),
    )

    enc_pad, dec_pad = pl.pallas_call(
        ae_kernel,
        grid=grid,
        in_specs=in_specs,
        out_specs=out_specs,
        out_shape=out_shape,
        compiler_params=pltpu.CompilerParams(
            dimension_semantics=("parallel",),     # v7x: shard batch across 2 TCs
            vmem_limit_bytes=16 * 1024 * 1024,
        ),
    )(xp, *packed)

    encoded = enc_pad[:B, :ENC_DIMS[-1]]   # (B, 9)
    decoded = dec_pad[:B, :DEC_DIMS[-1]]   # (B, 784)
    return encoded, decoded


def init_params(key):
    """Deterministic PyTorch-style init: U(-1/sqrt(fan_in), 1/sqrt(fan_in))."""
    params = []
    for dims in (ENC_DIMS, DEC_DIMS):
        for din, dout in zip(dims[:-1], dims[1:]):
            key, kw, kb = jax.random.split(key, 3)
            bound = 1.0 / (din ** 0.5)
            params.append(jax.random.uniform(kw, (din, dout), jnp.float32, -bound, bound))
            params.append(jax.random.uniform(kb, (1, dout), jnp.float32, -bound, bound))
    return params


def ae_reference(x, params):
    """Pure-JAX reference mirroring the kernel's bf16-weight / f32-accumulate numerics."""
    h = x.astype(jnp.float32)
    enc = None
    for i in range(10):
        w = params[2 * i].astype(jnp.bfloat16)
        b = params[2 * i + 1].reshape(1, -1)
        h = jnp.dot(h.astype(jnp.bfloat16), w, preferred_element_type=jnp.float32) + b
        if i == 4:
            enc = h
        elif i == 9:
            h = jax.nn.sigmoid(h)
        else:
            h = jnp.maximum(h, 0.0)
    return enc, h


if __name__ == "__main__":
    key = jax.random.PRNGKey(0)
    k_params, k_x = jax.random.split(key)

    params = init_params(k_params)
    B = 384                                   # exercises TB=256 grid (2 steps) + batch padding
    x = jax.random.uniform(k_x, (B, 28 * 28), jnp.float32)   # "image" in [0, 1)

    encoded, decoded = ae_forward(x, params)
    jax.block_until_ready((encoded, decoded))

    enc_ref, dec_ref = ae_reference(x, params)
    assert encoded.shape == (B, 9) and decoded.shape == (B, 784)
    assert jnp.allclose(encoded, enc_ref, atol=2e-3, rtol=2e-3), \
        float(jnp.max(jnp.abs(encoded - enc_ref)))
    assert jnp.allclose(decoded, dec_ref, atol=2e-3, rtol=2e-3), \
        float(jnp.max(jnp.abs(decoded - dec_ref)))

    print("KERNEL_OK")
</pallas_src>

<mosaic_0001>
module attributes {stable_mosaic.version = 11 : i64} {
  func.func @ae_kernel(%arg0: i32, %arg1: memref<256x896xf32, #tpu.memory_space<vmem>>, %arg2: memref<896x128xbf16, #tpu.memory_space<vmem>>, %arg3: memref<1x128xf32, #tpu.memory_space<vmem>>, %arg4: memref<128x128xbf16, #tpu.memory_space<vmem>>, %arg5: memref<1x128xf32, #tpu.memory_space<vmem>>, %arg6: memref<128x128xbf16, #tpu.memory_space<vmem>>, %arg7: memref<1x128xf32, #tpu.memory_space<vmem>>, %arg8: memref<128x128xbf16, #tpu.memory_space<vmem>>, %arg9: memref<1x128xf32, #tpu.memory_space<vmem>>, %arg10: memref<128x128xbf16, #tpu.memory_space<vmem>>, %arg11: memref<1x128xf32, #tpu.memory_space<vmem>>, %arg12: memref<128x128xbf16, #tpu.memory_space<vmem>>, %arg13: memref<1x128xf32, #tpu.memory_space<vmem>>, %arg14: memref<128x128xbf16, #tpu.memory_space<vmem>>, %arg15: memref<1x128xf32, #tpu.memory_space<vmem>>, %arg16: memref<128x128xbf16, #tpu.memory_space<vmem>>, %arg17: memref<1x128xf32, #tpu.memory_space<vmem>>, %arg18: memref<128x128xbf16, #tpu.memory_space<vmem>>, %arg19: memref<1x128xf32, #tpu.memory_space<vmem>>, %arg20: memref<128x896xbf16, #tpu.memory_space<vmem>>, %arg21: memref<1x896xf32, #tpu.memory_space<vmem>>, %arg22: memref<256x128xf32, #tpu.memory_space<vmem>>, %arg23: memref<256x896xf32, #tpu.memory_space<vmem>>) attributes {dimension_semantics = [#tpu.dimension_semantics<parallel>], iteration_bounds = array<i64: 2>, scalar_prefetch = 0 : i64, scratch_operands = 0 : i64, tpu.core_type = #tpu.core_type<tc>, window_params = [{transform_indices = @transform_0, window_bounds = array<i64: 256, 896>}, {pipeline_mode = #tpu.pipeline_mode<synchronous>, transform_indices = @transform_1, window_bounds = array<i64: 896, 128>}, {pipeline_mode = #tpu.pipeline_mode<synchronous>, transform_indices = @transform_2, window_bounds = array<i64: 1, 128>}, {pipeline_mode = #tpu.pipeline_mode<synchronous>, transform_indices = @transform_3, window_bounds = array<i64: 128, 128>}, {pipeline_mode = #tpu.pipeline_mode<synchronous>, transform_indices = @transform_4, window_bounds = array<i64: 1, 128>}, {pipeline_mode = #tpu.pipeline_mode<synchronous>, transform_indices = @transform_5, window_bounds = array<i64: 128, 128>}, {pipeline_mode = #tpu.pipeline_mode<synchronous>, transform_indices = @transform_6, window_bounds = array<i64: 1, 128>}, {pipeline_mode = #tpu.pipeline_mode<synchronous>, transform_indices = @transform_7, window_bounds = array<i64: 128, 128>}, {pipeline_mode = #tpu.pipeline_mode<synchronous>, transform_indices = @transform_8, window_bounds = array<i64: 1, 128>}, {pipeline_mode = #tpu.pipeline_mode<synchronous>, transform_indices = @transform_9, window_bounds = array<i64: 128, 128>}, {pipeline_mode = #tpu.pipeline_mode<synchronous>, transform_indices = @transform_10, window_bounds = array<i64: 1, 128>}, {pipeline_mode = #tpu.pipeline_mode<synchronous>, transform_indices = @transform_11, window_bounds = array<i64: 128, 128>}, {pipeline_mode = #tpu.pipeline_mode<synchronous>, transform_indices = @transform_12, window_bounds = array<i64: 1, 128>}, {pipeline_mode = #tpu.pipeline_mode<synchronous>, transform_indices = @transform_13, window_bounds = array<i64: 128, 128>}, {pipeline_mode = #tpu.pipeline_mode<synchronous>, transform_indices = @transform_14, window_bounds = array<i64: 1, 128>}, {pipeline_mode = #tpu.pipeline_mode<synchronous>, transform_indices = @transform_15, window_bounds = array<i64: 128, 128>}, {pipeline_mode = #tpu.pipeline_mode<synchronous>, transform_indices = @transform_16, window_bounds = array<i64: 1, 128>}, {pipeline_mode = #tpu.pipeline_mode<synchronous>, transform_indices = @transform_17, window_bounds = array<i64: 128, 128>}, {pipeline_mode = #tpu.pipeline_mode<synchronous>, transform_indices = @transform_18, window_bounds = array<i64: 1, 128>}, {pipeline_mode = #tpu.pipeline_mode<synchronous>, transform_indices = @transform_19, window_bounds = array<i64: 128, 896>}, {pipeline_mode = #tpu.pipeline_mode<synchronous>, transform_indices = @transform_20, window_bounds = array<i64: 1, 896>}, {transform_indices = @transform_21, window_bounds = array<i64: 256, 128>}, {transform_indices = @transform_22, window_bounds = array<i64: 256, 896>}]} {
    %c0 = arith.constant 0 : index
    %c0_0 = arith.constant 0 : index
    %0 = vector.load %arg1[%c0, %c0_0] : memref<256x896xf32, #tpu.memory_space<vmem>>, vector<256x896xf32>
    %c0_1 = arith.constant 0 : index
    %c0_2 = arith.constant 0 : index
    %1 = vector.load %arg2[%c0_1, %c0_2] : memref<896x128xbf16, #tpu.memory_space<vmem>>, vector<896x128xbf16>
    %c0_3 = arith.constant 0 : index
    %c0_4 = arith.constant 0 : index
    %2 = vector.load %arg3[%c0_3, %c0_4] : memref<1x128xf32, #tpu.memory_space<vmem>>, vector<1x128xf32>
    %3 = arith.truncf %0 : vector<256x896xf32> to vector<256x896xbf16>
    %cst = arith.constant dense<0.000000e+00> : vector<256x128xf32>
    %4 = tpu.matmul %3, %1, %cst {dimension_numbers = #tpu.dot_dimension_numbers<[1], [0], [0], [1], [0, 0, 1, 1], [], []>} : vector<256x896xbf16>, vector<896x128xbf16>, vector<256x128xf32> -> vector<256x128xf32>
    %5 = vector.broadcast %2 : vector<1x128xf32> to vector<256x128xf32>
    %6 = arith.addf %4, %5 : vector<256x128xf32>
    %cst_5 = arith.constant 0.000000e+00 : f32
    %7 = vector.broadcast %cst_5 : f32 to vector<256x128xf32>
    %8 = arith.maximumf %6, %7 : vector<256x128xf32>
    %c0_6 = arith.constant 0 : index
    %c0_7 = arith.constant 0 : index
    %9 = vector.load %arg4[%c0_6, %c0_7] : memref<128x128xbf16, #tpu.memory_space<vmem>>, vector<128x128xbf16>
    %c0_8 = arith.constant 0 : index
    %c0_9 = arith.constant 0 : index
    %10 = vector.load %arg5[%c0_8, %c0_9] : memref<1x128xf32, #tpu.memory_space<vmem>>, vector<1x128xf32>
    %11 = arith.truncf %8 : vector<256x128xf32> to vector<256x128xbf16>
    %cst_10 = arith.constant dense<0.000000e+00> : vector<256x128xf32>
    %12 = tpu.matmul %11, %9, %cst_10 {dimension_numbers = #tpu.dot_dimension_numbers<[1], [0], [0], [1], [0, 0, 1, 1], [], []>} : vector<256x128xbf16>, vector<128x128xbf16>, vector<256x128xf32> -> vector<256x128xf32>
    %13 = vector.broadcast %10 : vector<1x128xf32> to vector<256x128xf32>
    %14 = arith.addf %12, %13 : vector<256x128xf32>
    %cst_11 = arith.constant 0.000000e+00 : f32
    %15 = vector.broadcast %cst_11 : f32 to vector<256x128xf32>
    %16 = arith.maximumf %14, %15 : vector<256x128xf32>
    %c0_12 = arith.constant 0 : index
    %c0_13 = arith.constant 0 : index
    %17 = vector.load %arg6[%c0_12, %c0_13] : memref<128x128xbf16, #tpu.memory_space<vmem>>, vector<128x128xbf16>
    %c0_14 = arith.constant 0 : index
    %c0_15 = arith.constant 0 : index
    %18 = vector.load %arg7[%c0_14, %c0_15] : memref<1x128xf32, #tpu.memory_space<vmem>>, vector<1x128xf32>
    %19 = arith.truncf %16 : vector<256x128xf32> to vector<256x128xbf16>
    %cst_16 = arith.constant dense<0.000000e+00> : vector<256x128xf32>
    %20 = tpu.matmul %19, %17, %cst_16 {dimension_numbers = #tpu.dot_dimension_numbers<[1], [0], [0], [1], [0, 0, 1, 1], [], []>} : vector<256x128xbf16>, vector<128x128xbf16>, vector<256x128xf32> -> vector<256x128xf32>
    %21 = vector.broadcast %18 : vector<1x128xf32> to vector<256x128xf32>
    %22 = arith.addf %20, %21 : vector<256x128xf32>
    %cst_17 = arith.constant 0.000000e+00 : f32
    %23 = vector.broadcast %cst_17 : f32 to vector<256x128xf32>
    %24 = arith.maximumf %22, %23 : vector<256x128xf32>
    %c0_18 = arith.constant 0 : index
    %c0_19 = arith.constant 0 : index
    %25 = vector.load %arg8[%c0_18, %c0_19] : memref<128x128xbf16, #tpu.memory_space<vmem>>, vector<128x128xbf16>
    %c0_20 = arith.constant 0 : index
    %c0_21 = arith.constant 0 : index
    %26 = vector.load %arg9[%c0_20, %c0_21] : memref<1x128xf32, #tpu.memory_space<vmem>>, vector<1x128xf32>
    %27 = arith.truncf %24 : vector<256x128xf32> to vector<256x128xbf16>
    %cst_22 = arith.constant dense<0.000000e+00> : vector<256x128xf32>
    %28 = tpu.matmul %27, %25, %cst_22 {dimension_numbers = #tpu.dot_dimension_numbers<[1], [0], [0], [1], [0, 0, 1, 1], [], []>} : vector<256x128xbf16>, vector<128x128xbf16>, vector<256x128xf32> -> vector<256x128xf32>
    %29 = vector.broadcast %26 : vector<1x128xf32> to vector<256x128xf32>
    %30 = arith.addf %28, %29 : vector<256x128xf32>
    %cst_23 = arith.constant 0.000000e+00 : f32
    %31 = vector.broadcast %cst_23 : f32 to vector<256x128xf32>
    %32 = arith.maximumf %30, %31 : vector<256x128xf32>
    %c0_24 = arith.constant 0 : index
    %c0_25 = arith.constant 0 : index
    %33 = vector.load %arg10[%c0_24, %c0_25] : memref<128x128xbf16, #tpu.memory_space<vmem>>, vector<128x128xbf16>
    %c0_26 = arith.constant 0 : index
    %c0_27 = arith.constant 0 : index
    %34 = vector.load %arg11[%c0_26, %c0_27] : memref<1x128xf32, #tpu.memory_space<vmem>>, vector<1x128xf32>
    %35 = arith.truncf %32 : vector<256x128xf32> to vector<256x128xbf16>
    %cst_28 = arith.constant dense<0.000000e+00> : vector<256x128xf32>
    %36 = tpu.matmul %35, %33, %cst_28 {dimension_numbers = #tpu.dot_dimension_numbers<[1], [0], [0], [1], [0, 0, 1, 1], [], []>} : vector<256x128xbf16>, vector<128x128xbf16>, vector<256x128xf32> -> vector<256x128xf32>
    %37 = vector.broadcast %34 : vector<1x128xf32> to vector<256x128xf32>
    %38 = arith.addf %36, %37 : vector<256x128xf32>
    %c0_29 = arith.constant 0 : index
    %c0_30 = arith.constant 0 : index
    %39 = vector.load %arg22[%c0_29, %c0_30] : memref<256x128xf32, #tpu.memory_space<vmem>>, vector<256x128xf32>
    tpu.vector_store %arg22[%c0_29, %c0_30], %38 {strides = array<i32>} : memref<256x128xf32, #tpu.memory_space<vmem>>, vector<256x128xf32>,
    %c0_31 = arith.constant 0 : index
    %c0_32 = arith.constant 0 : index
    %40 = vector.load %arg12[%c0_31, %c0_32] : memref<128x128xbf16, #tpu.memory_space<vmem>>, vector<128x128xbf16>
    %c0_33 = arith.constant 0 : index
    %c0_34 = arith.constant 0 : index
    %41 = vector.load %arg13[%c0_33, %c0_34] : memref<1x128xf32, #tpu.memory_space<vmem>>, vector<1x128xf32>
    %42 = arith.truncf %38 : vector<256x128xf32> to vector<256x128xbf16>
    %cst_35 = arith.constant dense<0.000000e+00> : vector<256x128xf32>
    %43 = tpu.matmul %42, %40, %cst_35 {dimension_numbers = #tpu.dot_dimension_numbers<[1], [0], [0], [1], [0, 0, 1, 1], [], []>} : vector<256x128xbf16>, vector<128x128xbf16>, vector<256x128xf32> -> vector<256x128xf32>
    %44 = vector.broadcast %41 : vector<1x128xf32> to vector<256x128xf32>
    %45 = arith.addf %43, %44 : vector<256x128xf32>
    %cst_36 = arith.constant 0.000000e+00 : f32
    %46 = vector.broadcast %cst_36 : f32 to vector<256x128xf32>
    %47 = arith.maximumf %45, %46 : vector<256x128xf32>
    %c0_37 = arith.constant 0 : index
    %c0_38 = arith.constant 0 : index
    %48 = vector.load %arg14[%c0_37, %c0_38] : memref<128x128xbf16, #tpu.memory_space<vmem>>, vector<128x128xbf16>
    %c0_39 = arith.constant 0 : index
    %c0_40 = arith.constant 0 : index
    %49 = vector.load %arg15[%c0_39, %c0_40] : memref<1x128xf32, #tpu.memory_space<vmem>>, vector<1x128xf32>
    %50 = arith.truncf %47 : vector<256x128xf32> to vector<256x128xbf16>
    %cst_41 = arith.constant dense<0.000000e+00> : vector<256x128xf32>
    %51 = tpu.matmul %50, %48, %cst_41 {dimension_numbers = #tpu.dot_dimension_numbers<[1], [0], [0], [1], [0, 0, 1, 1], [], []>} : vector<256x128xbf16>, vector<128x128xbf16>, vector<256x128xf32> -> vector<256x128xf32>
    %52 = vector.broadcast %49 : vector<1x128xf32> to vector<256x128xf32>
    %53 = arith.addf %51, %52 : vector<256x128xf32>
    %cst_42 = arith.constant 0.000000e+00 : f32
    %54 = vector.broadcast %cst_42 : f32 to vector<256x128xf32>
    %55 = arith.maximumf %53, %54 : vector<256x128xf32>
    %c0_43 = arith.constant 0 : index
    %c0_44 = arith.constant 0 : index
    %56 = vector.load %arg16[%c0_43, %c0_44] : memref<128x128xbf16, #tpu.memory_space<vmem>>, vector<128x128xbf16>
    %c0_45 = arith.constant 0 : index
    %c0_46 = arith.constant 0 : index
    %57 = vector.load %arg17[%c0_45, %c0_46] : memref<1x128xf32, #tpu.memory_space<vmem>>, vector<1x128xf32>
    %58 = arith.truncf %55 : vector<256x128xf32> to vector<256x128xbf16>
    %cst_47 = arith.constant dense<0.000000e+00> : vector<256x128xf32>
    %59 = tpu.matmul %58, %56, %cst_47 {dimension_numbers = #tpu.dot_dimension_numbers<[1], [0], [0], [1], [0, 0, 1, 1], [], []>} : vector<256x128xbf16>, vector<128x128xbf16>, vector<256x128xf32> -> vector<256x128xf32>
    %60 = vector.broadcast %57 : vector<1x128xf32> to vector<256x128xf32>
    %61 = arith.addf %59, %60 : vector<256x128xf32>
    %cst_48 = arith.constant 0.000000e+00 : f32
    %62 = vector.broadcast %cst_48 : f32 to vector<256x128xf32>
    %63 = arith.maximumf %61, %62 : vector<256x128xf32>
    %c0_49 = arith.constant 0 : index
    %c0_50 = arith.constant 0 : index
    %64 = vector.load %arg18[%c0_49, %c0_50] : memref<128x128xbf16, #tpu.memory_space<vmem>>, vector<128x128xbf16>
    %c0_51 = arith.constant 0 : index
    %c0_52 = arith.constant 0 : index
    %65 = vector.load %arg19[%c0_51, %c0_52] : memref<1x128xf32, #tpu.memory_space<vmem>>, vector<1x128xf32>
    %66 = arith.truncf %63 : vector<256x128xf32> to vector<256x128xbf16>
    %cst_53 = arith.constant dense<0.000000e+00> : vector<256x128xf32>
    %67 = tpu.matmul %66, %64, %cst_53 {dimension_numbers = #tpu.dot_dimension_numbers<[1], [0], [0], [1], [0, 0, 1, 1], [], []>} : vector<256x128xbf16>, vector<128x128xbf16>, vector<256x128xf32> -> vector<256x128xf32>
    %68 = vector.broadcast %65 : vector<1x128xf32> to vector<256x128xf32>
    %69 = arith.addf %67, %68 : vector<256x128xf32>
    %cst_54 = arith.constant 0.000000e+00 : f32
    %70 = vector.broadcast %cst_54 : f32 to vector<256x128xf32>
    %71 = arith.maximumf %69, %70 : vector<256x128xf32>
    %c0_55 = arith.constant 0 : index
    %c0_56 = arith.constant 0 : index
    %72 = vector.load %arg20[%c0_55, %c0_56] : memref<128x896xbf16, #tpu.memory_space<vmem>>, vector<128x896xbf16>
    %c0_57 = arith.constant 0 : index
    %c0_58 = arith.constant 0 : index
    %73 = vector.load %arg21[%c0_57, %c0_58] : memref<1x896xf32, #tpu.memory_space<vmem>>, vector<1x896xf32>
    %74 = arith.truncf %71 : vector<256x128xf32> to vector<256x128xbf16>
    %cst_59 = arith.constant dense<0.000000e+00> : vector<256x896xf32>
    %75 = tpu.matmul %74, %72, %cst_59 {dimension_numbers = #tpu.dot_dimension_numbers<[1], [0], [0], [1], [0, 0, 1, 1], [], []>} : vector<256x128xbf16>, vector<128x896xbf16>, vector<256x896xf32> -> vector<256x896xf32>
    %76 = vector.broadcast %73 : vector<1x896xf32> to vector<256x896xf32>
    %77 = arith.addf %75, %76 : vector<256x896xf32>
    %78 = math.absf %77 : vector<256x896xf32>
    %cst_60 = arith.constant 0.000000e+00 : f32
    %79 = vector.broadcast %cst_60 : f32 to vector<256x896xf32>
    %80 = arith.subf %79, %78 : vector<256x896xf32>
    %81 = math.exp %80 : vector<256x896xf32>
    %cst_61 = arith.constant 1.000000e+00 : f32
    %82 = vector.broadcast %cst_61 : f32 to vector<256x896xf32>
    %83 = arith.addf %82, %81 : vector<256x896xf32>
    %cst_62 = arith.constant 1.000000e+00 : f32
    %84 = vector.broadcast %cst_62 : f32 to vector<256x896xf32>
    %85 = arith.divf %84, %83 : vector<256x896xf32>
    %cst_63 = arith.constant 0.000000e+00 : f32
    %86 = vector.broadcast %cst_63 : f32 to vector<256x896xf32>
    %87 = arith.cmpf oge, %77, %86 : vector<256x896xf32>
    %88 = arith.mulf %81, %85 : vector<256x896xf32>
    %89 = arith.select %87, %85, %88 : vector<256x896xi1>, vector<256x896xf32>
    %c0_64 = arith.constant 0 : index
    %c0_65 = arith.constant 0 : index
    %90 = vector.load %arg23[%c0_64, %c0_65] : memref<256x896xf32, #tpu.memory_space<vmem>>, vector<256x896xf32>
    tpu.vector_store %arg23[%c0_64, %c0_65], %89 {strides = array<i32>} : memref<256x896xf32, #tpu.memory_space<vmem>>, vector<256x896xf32>,
    return
  }
  func.func @transform_0(%arg0: i32) -> (i32, i32) {
    %c0_i32 = arith.constant 0 : i32
    %c0_i32_0 = arith.constant 0 : i32
    return %arg0, %c0_i32 : i32, i32
  }
  func.func @transform_1(%arg0: i32) -> (i32, i32) {
    %c0_i32 = arith.constant 0 : i32
    %c0_i32_0 = arith.constant 0 : i32
    %c0_i32_1 = arith.constant 0 : i32
    return %c0_i32, %c0_i32_0 : i32, i32
  }
  func.func @transform_2(%arg0: i32) -> (i32, i32) {
    %c0_i32 = arith.constant 0 : i32
    %c0_i32_0 = arith.constant 0 : i32
    %c0_i32_1 = arith.constant 0 : i32
    return %c0_i32, %c0_i32_0 : i32, i32
  }
  func.func @transform_3(%arg0: i32) -> (i32, i32) {
    %c0_i32 = arith.constant 0 : i32
    %c0_i32_0 = arith.constant 0 : i32
    %c0_i32_1 = arith.constant 0 : i32
    return %c0_i32, %c0_i32_0 : i32, i32
  }
  func.func @transform_4(%arg0: i32) -> (i32, i32) {
    %c0_i32 = arith.constant 0 : i32
    %c0_i32_0 = arith.constant 0 : i32
    %c0_i32_1 = arith.constant 0 : i32
    return %c0_i32, %c0_i32_0 : i32, i32
  }
  func.func @transform_5(%arg0: i32) -> (i32, i32) {
    %c0_i32 = arith.constant 0 : i32
    %c0_i32_0 = arith.constant 0 : i32
    %c0_i32_1 = arith.constant 0 : i32
    return %c0_i32, %c0_i32_0 : i32, i32
  }
  func.func @transform_6(%arg0: i32) -> (i32, i32) {
    %c0_i32 = arith.constant 0 : i32
    %c0_i32_0 = arith.constant 0 : i32
    %c0_i32_1 = arith.constant 0 : i32
    return %c0_i32, %c0_i32_0 : i32, i32
  }
  func.func @transform_7(%arg0: i32) -> (i32, i32) {
    %c0_i32 = arith.constant 0 : i32
    %c0_i32_0 = arith.constant 0 : i32
    %c0_i32_1 = arith.constant 0 : i32
    return %c0_i32, %c0_i32_0 : i32, i32
  }
  func.func @transform_8(%arg0: i32) -> (i32, i32) {
    %c0_i32 = arith.constant 0 : i32
    %c0_i32_0 = arith.constant 0 : i32
    %c0_i32_1 = arith.constant 0 : i32
    return %c0_i32, %c0_i32_0 : i32, i32
  }
  func.func @transform_9(%arg0: i32) -> (i32, i32) {
    %c0_i32 = arith.constant 0 : i32
    %c0_i32_0 = arith.constant 0 : i32
    %c0_i32_1 = arith.constant 0 : i32
    return %c0_i32, %c0_i32_0 : i32, i32
  }
  func.func @transform_10(%arg0: i32) -> (i32, i32) {
    %c0_i32 = arith.constant 0 : i32
    %c0_i32_0 = arith.constant 0 : i32
    %c0_i32_1 = arith.constant 0 : i32
    return %c0_i32, %c0_i32_0 : i32, i32
  }
  func.func @transform_11(%arg0: i32) -> (i32, i32) {
    %c0_i32 = arith.constant 0 : i32
    %c0_i32_0 = arith.constant 0 : i32
    %c0_i32_1 = arith.constant 0 : i32
    return %c0_i32, %c0_i32_0 : i32, i32
  }
  func.func @transform_12(%arg0: i32) -> (i32, i32) {
    %c0_i32 = arith.constant 0 : i32
    %c0_i32_0 = arith.constant 0 : i32
    %c0_i32_1 = arith.constant 0 : i32
    return %c0_i32, %c0_i32_0 : i32, i32
  }
  func.func @transform_13(%arg0: i32) -> (i32, i32) {
    %c0_i32 = arith.constant 0 : i32
    %c0_i32_0 = arith.constant 0 : i32
    %c0_i32_1 = arith.constant 0 : i32
    return %c0_i32, %c0_i32_0 : i32, i32
  }
  func.func @transform_14(%arg0: i32) -> (i32, i32) {
    %c0_i32 = arith.constant 0 : i32
    %c0_i32_0 = arith.constant 0 : i32
    %c0_i32_1 = arith.constant 0 : i32
    return %c0_i32, %c0_i32_0 : i32, i32
  }
  func.func @transform_15(%arg0: i32) -> (i32, i32) {
    %c0_i32 = arith.constant 0 : i32
    %c0_i32_0 = arith.constant 0 : i32
    %c0_i32_1 = arith.constant 0 : i32
    return %c0_i32, %c0_i32_0 : i32, i32
  }
  func.func @transform_16(%arg0: i32) -> (i32, i32) {
    %c0_i32 = arith.constant 0 : i32
    %c0_i32_0 = arith.constant 0 : i32
    %c0_i32_1 = arith.constant 0 : i32
    return %c0_i32, %c0_i32_0 : i32, i32
  }
  func.func @transform_17(%arg0: i32) -> (i32, i32) {
    %c0_i32 = arith.constant 0 : i32
    %c0_i32_0 = arith.constant 0 : i32
    %c0_i32_1 = arith.constant 0 : i32
    return %c0_i32, %c0_i32_0 : i32, i32
  }
  func.func @transform_18(%arg0: i32) -> (i32, i32) {
    %c0_i32 = arith.constant 0 : i32
    %c0_i32_0 = arith.constant 0 : i32
    %c0_i32_1 = arith.constant 0 : i32
    return %c0_i32, %c0_i32_0 : i32, i32
  }
  func.func @transform_19(%arg0: i32) -> (i32, i32) {
    %c0_i32 = arith.constant 0 : i32
    %c0_i32_0 = arith.constant 0 : i32
    %c0_i32_1 = arith.constant 0 : i32
    return %c0_i32, %c0_i32_0 : i32, i32
  }
  func.func @transform_20(%arg0: i32) -> (i32, i32) {
    %c0_i32 = arith.constant 0 : i32
    %c0_i32_0 = arith.constant 0 : i32
    %c0_i32_1 = arith.constant 0 : i32
    return %c0_i32, %c0_i32_0 : i32, i32
  }
  func.func @transform_21(%arg0: i32) -> (i32, i32) {
    %c0_i32 = arith.constant 0 : i32
    %c0_i32_0 = arith.constant 0 : i32
    return %arg0, %c0_i32 : i32, i32
  }
  func.func @transform_22(%arg0: i32) -> (i32, i32) {
    %c0_i32 = arith.constant 0 : i32
    %c0_i32_0 = arith.constant 0 : i32
    return %arg0, %c0_i32 : i32, i32
  }
}

</mosaic_0001>

<bundles_post_ra>
// kernel: ae_forward.1
= control target key start
LH: loop header
LB: loop body
LE: loop exit
PB: predicated region body
PF: predicated region fallthrough
CT: control target
= control target key end

     0   :  { %s15215_s0 = inlined_call_operand.vmem [shape: f32[512,896], index: 0, kind: input, shape index: {}]   ;;  %s15216_s1 = inlined_call_operand.vmem [shape: bf16[896,128], index: 1, kind: input, shape index: {}]   ;;  %s15217_s2 = inlined_call_operand.vmem [shape: f32[1,128], index: 2, kind: input, shape index: {}]   ;;  %s15218_s3 = inlined_call_operand.vmem [shape: bf16[128,128], index: 3, kind: input, shape index: {}]   ;;  %s15219_s4 = inlined_call_operand.vmem [shape: f32[1,128], index: 4, kind: input, shape index: {}]   ;;  %s15220_s5 = inlined_call_operand.vmem [shape: bf16[128,128], index: 5, kind: input, shape index: {}]   ;;  %s15221_s6 = inlined_call_operand.vmem [shape: f32[1,128], index: 6, kind: input, shape index: {}]   ;;  %s15222_s7 = inlined_call_operand.vmem [shape: bf16[128,128], index: 7, kind: input, shape index: {}]   ;;  %s15223_s8 = inlined_call_operand.vmem [shape: f32[1,128], index: 8, kind: input, shape index: {}]   ;;  %s15224_s9 = inlined_call_operand.vmem [shape: bf16[128,128], index: 9, kind: input, shape index: {}]   ;;  %s15225_s10 = inlined_call_operand.vmem [shape: f32[1,128], index: 10, kind: input, shape index: {}]   ;;  %s15226_s11 = inlined_call_operand.vmem [shape: bf16[128,128], index: 11, kind: input, shape index: {}]   ;;  %s15227_s12 = inlined_call_operand.vmem [shape: f32[1,128], index: 12, kind: input, shape index: {}]   ;;  %s15228_s13 = inlined_call_operand.vmem [shape: bf16[128,128], index: 13, kind: input, shape index: {}]   ;;  %s15229_s14 = inlined_call_operand.vmem [shape: f32[1,128], index: 14, kind: input, shape index: {}]   ;;  %s15230_s15 = inlined_call_operand.vmem [shape: bf16[128,128], index: 15, kind: input, shape index: {}]   ;;  %s15231_s16 = inlined_call_operand.vmem [shape: f32[1,128], index: 16, kind: input, shape index: {}]   ;;  %s15232_s17 = inlined_call_operand.vmem [shape: bf16[128,128], index: 17, kind: input, shape index: {}]   ;;  %s15233_s18 = inlined_call_operand.vmem [shape: f32[1,128], index: 18, kind: input, shape index: {}]   ;;  %s15234_s19 = inlined_call_operand.vmem [shape: bf16[128,896], index: 19, kind: input, shape index: {}]   ;;  %s15235_s20 = inlined_call_operand.vmem [shape: f32[1,896], index: 20, kind: input, shape index: {}]   ;;  %s15236_s21 = inlined_call_operand.vmem [shape: f32[512,128], index: 21, kind: output, shape index: {0}]   ;;  %s15237_s22 = inlined_call_operand.vmem [shape: f32[512,896], index: 22, kind: output, shape index: {1}]  }
   0x1   :  { %15244 = sst [smem:[#allocation36_spill]] %s15215_s0 }
   0x2   :  { %15245 = sst [smem:[#allocation37_spill]] %s15216_s1 }
   0x3   :  { %15246 = sst [smem:[#allocation38_spill]] %s15217_s2 }
   0x4   :  { %15247 = sst [smem:[#allocation39_spill]] %s15218_s3  ;;  %s10600_s3 = smov 0  }
   0x5   :  { %15248 = sst [smem:[#allocation40_spill]] %s15219_s4 }
   0x6   :  { %15249 = sst [smem:[#allocation41_spill]] %s15220_s5 }
   0x7   :  { %15250 = sst [smem:[#allocation42_spill]] %s15221_s6 }
   0x8 LB: > { %s8115_s28 = sadd.s32 4294967295, %s10482_s3   ;;  %p8119_p0 = scmp.ge.s32.totalorder %s10482_s3, 1  ;;  %s10482_s3 = sphi %s10600_s3, %s33_s3  }
   0x9   : > { %p617_p1 = scmp.lt.s32.totalorder %s10482_s3, 3 }
   0xb   : > { %p618_p2 = pnand %p8119_p0, %p617_p1 }
   0xd   : > { %621 = sbr.rel (%p618_p2) target bundleno = 2991 (0xbaf), region = 104 }
  0x14   : > { %s15251_s4 = sld [smem:[#allocation37_spill]]  ;;  %s8120_s1 = sshll.u32 %s8115_s28, 5 }
  0x15   : > { %p687_p3 = scmp.lt.s32.totalorder %s8120_s1, 63  ;;  %s15252_s30 = sld [smem:[#allocation36_spill]] }
  0x16   : > { %s15253_s27 = sld [smem:[#allocation39_spill]]  ;;  %s15254_s5 = sld [smem:[#allocation38_spill]] }
  0x17   : > { %s15472_s1 = smov (!%p687_p3, %s8120_s1), 63  ;;  %s15255_s29 = sld [smem:[#allocation41_spill]] }
  0x18   : > { %s15241_s0 = smul.u32 56, %s15472_s1  ;;  %s15257_s24 = sld [smem:[#allocation42_spill]] }
  0x19   : > { %s15263_s6 = smul.u32 56, %s15472_s1 }
  0x1a   : > { %v9379_v0 = vld [vmem:[%s15251_s4 + $0x40] sm:$0xff]   ;;  %v9383_v4 = vld [vmem:[%s15251_s4 + $0x48] sm:$0xff]   ;;  %v9387_v8 = vld [vmem:[%s15251_s4 + $0x50] sm:$0xff]  }
  0x1b   : > { %v9380_v1 = vld [vmem:[%s15251_s4] sm:$0xff]   ;;  %8313 = vmatprep.subr.bf16.mxu0 %v9379_v0  ;;  %v9384_v5 = vld [vmem:[%s15251_s4 + $0x8] sm:$0xff]   ;;  %v9388_v9 = vld [vmem:[%s15251_s4 + $0x10] sm:$0xff]   ;;  %s10705_s23 = scalar_lea.vmem %s15252_s30, %s15241_s0  ;;  %s12206_s26 = scalar_lea.vmem %s15237_s22, %s15263_s6 }
  0x1c   : > { %v9381_v2 = vld [vmem:[%s15251_s4 + $0xc0] sm:$0xff]   ;;  %8314 = vmatpush3.bf16.msra.mxu0 %v9380_v1  ;;  %v9385_v6 = vld [vmem:[%s15251_s4 + $0xc8] sm:$0xff]   ;;  %v9389_v10 = vld [vmem:[%s15251_s4 + $0xd0] sm:$0xff]  }
  0x1d   : > { %v9382_v3 = vld [vmem:[%s15251_s4 + $0x80] sm:$0xff]   ;;  %8425 = vmatprep.subr.bf16.mxu1 %v9381_v2  ;;  %8315 = vmatprep.subr.bf16.mxu0 %v9383_v4  ;;  %v9386_v7 = vld [vmem:[%s15251_s4 + $0x88] sm:$0xff]   ;;  %v9390_v11 = vld [vmem:[%s15251_s4 + $0x90] sm:$0xff]  }
  0x1e   : > { %8426 = vmatpush3.bf16.msra.mxu1 %v9382_v3  ;;  %v9391_v12 = vld [vmem:[%s15251_s4 + $0x58] sm:$0xff]   ;;  %v9395_v16 = vld [vmem:[%s15251_s4 + $0x60] sm:$0xff]   ;;  %v9399_v20 = vld [vmem:[%s15251_s4 + $0x68] sm:$0xff]  }
  0x1f   : > { %8427 = vmatprep.subr.bf16.mxu1 %v9385_v6  ;;  %v9392_v13 = vld [vmem:[%s15251_s4 + $0x18] sm:$0xff]   ;;  %v9396_v17 = vld [vmem:[%s15251_s4 + $0x20] sm:$0xff]   ;;  %v9400_v21 = vld [vmem:[%s15251_s4 + $0x28] sm:$0xff]  }
  0x20   : > { %8316 = vmatpush3.bf16.msra.mxu0 %v9384_v5  ;;  %v9393_v14 = vld [vmem:[%s15251_s4 + $0xd8] sm:$0xff]   ;;  %v9397_v18 = vld [vmem:[%s15251_s4 + $0xe0] sm:$0xff]   ;;  %v9401_v22 = vld [vmem:[%s15251_s4 + $0xe8] sm:$0xff]  }
  0x21   : > { %8317 = vmatprep.subr.bf16.mxu0 %v9387_v8  ;;  %v9394_v15 = vld [vmem:[%s15251_s4 + $0x98] sm:$0xff]   ;;  %v9398_v19 = vld [vmem:[%s15251_s4 + $0xa0] sm:$0xff]   ;;  %v9402_v23 = vld [vmem:[%s15251_s4 + $0xa8] sm:$0xff]  }
  0x22   : > { %8428 = vmatpush3.bf16.msra.mxu1 %v9386_v7  ;;  %v9403_v24 = vld [vmem:[%s15251_s4 + $0x70] sm:$0xff]   ;;  %v9407_v28 = vld [vmem:[%s15251_s4 + $0x78] sm:$0xff]   ;;  %v708_v31 = vld [vmem:[%s10705_s23 + $0x8] sm:$0xff] }
  0x23   : > { %8429 = vmatprep.subr.bf16.mxu1 %v9389_v10  ;;  %v9404_v25 = vld [vmem:[%s15251_s4 + $0x30] sm:$0xff]   ;;  %v9408_v29 = vld [vmem:[%s15251_s4 + $0x38] sm:$0xff]   ;;  %v715_v32 = vld [vmem:[%s10705_s23 + $0x40] sm:$0xff] }
  0x24   : > { %8318 = vmatpush3.bf16.msra.mxu0 %v9388_v9  ;;  %v9405_v26 = vld [vmem:[%s15251_s4 + $0xf0] sm:$0xff]   ;;  %v9409_v30 = vld [vmem:[%s15251_s4 + $0xf8] sm:$0xff]   ;;  %v1045_v33 = vpack.c.bf16 %v715_v32, %v708_v31  ;;  %v707_v35 = vld [vmem:[%s10705_s23] sm:$0xff] }
  0x25   : > { %8319 = vmatprep.subr.bf16.mxu0 %v9391_v12  ;;  %v9406_v27 = vld [vmem:[%s15251_s4 + $0xb0] sm:$0xff]   ;;  %v9410_v34 = vld [vmem:[%s15251_s4 + $0xb8] sm:$0xff]   ;;  %v9411_v38 = vld [vmem:[%s15251_s4 + $0x140] sm:$0xff]  }
  0x26   : > { %8430 = vmatpush3.bf16.msra.mxu1 %v9390_v11  ;;  %v714_v36 = vld [vmem:[%s10705_s23 + $0x38] sm:$0xff]  ;;  %1530 = vmatprep.mubr.bf16.mxu0 %v1045_v33  ;;  %v717_v40 = vld [vmem:[%s10705_s23 + $0x50] sm:$0xff]  ;;  %v9412_v42 = vld [vmem:[%s15251_s4 + $0x100] sm:$0xff]  }
  0x27   : > { %8431 = vmatprep.subr.bf16.mxu1 %v9393_v14  ;;  %v1044_v37 = vpack.c.bf16 %v714_v36, %v707_v35  ;;  %v710_v39 = vld [vmem:[%s10705_s23 + $0x18] sm:$0xff]  ;;  %v709_v43 = vld [vmem:[%s10705_s23 + $0x10] sm:$0xff]  ;;  %v716_v44 = vld [vmem:[%s10705_s23 + $0x48] sm:$0xff] }
  0x28   : > { %8320 = vmatpush3.bf16.msra.mxu0 %v9392_v13  ;;  %v1047_v41 = vpack.c.bf16 %v717_v40, %v710_v39  ;;  %v722_v45 = vld [vmem:[%s10705_s23 + $0x78] sm:$0xff]  ;;  %v1046_v46 = vpack.c.bf16 %v716_v44, %v709_v43  ;;  %v729_v47 = vld [vmem:[%s10705_s23 + $0xb0] sm:$0xff]  ;;  %v728_v49 = vld [vmem:[%s10705_s23 + $0xa8] sm:$0xff] }
  0x29   : > { %8321 = vmatprep.subr.bf16.mxu0 %v9395_v16  ;;  %v721_v48 = vld [vmem:[%s10705_s23 + $0x70] sm:$0xff]  ;;  %v1052_v50 = vpack.c.bf16 %v729_v47, %v722_v45  ;;  %v724_v51 = vld [vmem:[%s10705_s23 + $0x88] sm:$0xff]  ;;  %v731_v52 = vld [vmem:[%s10705_s23 + $0xc0] sm:$0xff] }
  0x2a   : > { %8432 = vmatpush3.bf16.msra.mxu1 %v9394_v15  ;;  %1691 = vmatprep.mubr.bf16.mxu1 %v1047_v41  ;;  %v723_v53 = vld [vmem:[%s10705_s23 + $0x80] sm:$0xff]  ;;  %v1054_v54 = vpack.c.bf16 %v731_v52, %v724_v51  ;;  %v730_v55 = vld [vmem:[%s10705_s23 + $0xb8] sm:$0xff]  ;;  %v1051_v56 = vpack.c.bf16 %v728_v49, %v721_v48  ;;  %v736_v58 = vld [vmem:[%s10705_s23 + $0xe8] sm:$0xff] }
  0x2b   : > { %8433 = vmatprep.subr.bf16.mxu1 %v9397_v18  ;;  %v9413_v57 = vld [vmem:[%s15251_s4 + $0x180] sm:$0xff]   ;;  %v9414_v61 = vld [vmem:[%s15251_s4 + $0x148] sm:$0xff]   ;;  %v738_v62 = vld [vmem:[%s10705_s23 + $0xf8] sm:$0xff]  ;;  %v1053_v63 = vpack.c.bf16 %v730_v55, %v723_v53 }
  0x2c   : > { %8322 = vmatpush3.bf16.msra.mxu0 %v9396_v17  ;;  %v743_v59 = vld [vmem:[%s10705_s23 + $0x120] sm:$0xff]  ;;  %v745_v0 = vld [vmem:[%s10705_s23 + $0x130] sm:$0xff]  ;;  %v9415_v2 = vld [vmem:[%s15251_s4 + $0x108] sm:$0xff]  }
  0x2d   : > { %8323 = vmatprep.subr.bf16.mxu0 %v9399_v20  ;;  %v1059_v60 = vpack.c.bf16 %v743_v59, %v736_v58  ;;  %v1061_v1 = vpack.c.bf16 %v745_v0, %v738_v62  ;;  %v735_v3 = vld [vmem:[%s10705_s23 + $0xe0] sm:$0xff]  ;;  %v742_v4 = vld [vmem:[%s10705_s23 + $0x118] sm:$0xff]  ;;  %v757_v6 = vld [vmem:[%s10705_s23 + $0x190] sm:$0xff] }
  0x2e   : > { %8434 = vmatpush3.bf16.msra.mxu1 %v9398_v19  ;;  %v750_v5 = vld [vmem:[%s10705_s23 + $0x158] sm:$0xff]  ;;  %v737_v7 = vld [vmem:[%s10705_s23 + $0xf0] sm:$0xff]  ;;  %v1058_v8 = vpack.c.bf16 %v742_v4, %v735_v3  ;;  %v744_v9 = vld [vmem:[%s10705_s23 + $0x128] sm:$0xff] }
  0x2f   : > { %8435 = vmatprep.subr.bf16.mxu1 %v9401_v22  ;;  %v9416_v10 = vld [vmem:[%s15251_s4 + $0x188] sm:$0xff]   ;;  %v1066_v11 = vpack.c.bf16 %v757_v6, %v750_v5  ;;  %v759_v13 = vld [vmem:[%s10705_s23 + $0x1a0] sm:$0xff]  ;;  %v9417_v14 = vld [vmem:[%s15251_s4 + $0x150] sm:$0xff]   ;;  %v1060_v15 = vpack.c.bf16 %v744_v9, %v737_v7 }
  0x30   : > { %8324 = vmatpush3.bf16.msra.mxu0 %v9400_v21  ;;  %v752_v12 = vld [vmem:[%s10705_s23 + $0x168] sm:$0xff]  ;;  %v9418_v17 = vld [vmem:[%s15251_s4 + $0x110] sm:$0xff]   ;;  %v771_v21 = vld [vmem:[%s10705_s23 + $0x200] sm:$0xff] }
  0x31   : > { %8325 = vmatprep.subr.bf16.mxu0 %v9403_v24  ;;  %v1068_v16 = vpack.c.bf16 %v759_v13, %v752_v12  ;;  %v749_v18 = vld [vmem:[%s10705_s23 + $0x150] sm:$0xff]  ;;  %v756_v19 = vld [vmem:[%s10705_s23 + $0x188] sm:$0xff]  ;;  %v751_v22 = vld [vmem:[%s10705_s23 + $0x160] sm:$0xff] }
  0x32   : > { %8436 = vmatpush3.bf16.msra.mxu1 %v9402_v23  ;;  %v764_v20 = vld [vmem:[%s10705_s23 + $0x1c8] sm:$0xff]  ;;  %v758_v23 = vld [vmem:[%s10705_s23 + $0x198] sm:$0xff]  ;;  %v1065_v24 = vpack.c.bf16 %v756_v19, %v749_v18  ;;  %v763_v33 = vld [vmem:[%s10705_s23 + $0x1c0] sm:$0xff] }
  0x33   : > { %8437 = vmatprep.subr.bf16.mxu1 %v9405_v26  ;;  %v1073_v26 = vpack.c.bf16 %v771_v21, %v764_v20  ;;  %v9421_v32 = vld [vmem:[%s15251_s4 + $0x118] sm:$0xff]   ;;  %v785_v36 = vld [vmem:[%s10705_s23 + $0x270] sm:$0xff]  ;;  %v772_v39 = vld [vmem:[%s10705_s23 + $0x208] sm:$0xff] }
  0x34   : > { %8326 = vmatpush3.bf16.msra.mxu0 %v9404_v25  ;;  %v9419_v25 = vld [vmem:[%s15251_s4 + $0x190] sm:$0xff]   ;;  %v778_v35 = vld [vmem:[%s10705_s23 + $0x238] sm:$0xff]  ;;  %v780_v41 = vld [vmem:[%s10705_s23 + $0x248] sm:$0xff] }
  0x35   : > { %8327 = vmatprep.subr.bf16.mxu0 %v9407_v28  ;;  %v773_v28 = vld [vmem:[%s10705_s23 + $0x210] sm:$0xff]  ;;  %v1080_v40 = vpack.c.bf16 %v785_v36, %v778_v35  ;;  %v9422_v43 = vld [vmem:[%s15251_s4 + $0x198] sm:$0xff]   ;;  %v9423_v45 = vld [vmem:[%s15251_s4 + $0x160] sm:$0xff]  }
  0x36   : > { %8438 = vmatpush3.bf16.msra.mxu1 %v9406_v27  ;;  %v766_v27 = vld [vmem:[%s10705_s23 + $0x1d8] sm:$0xff]  ;;  %v777_v47 = vld [vmem:[%s10705_s23 + $0x230] sm:$0xff]  ;;  %v784_v48 = vld [vmem:[%s10705_s23 + $0x268] sm:$0xff] }
  0x37   : > { %8439 = vmatprep.subr.bf16.mxu1 %v9409_v30  ;;  %v9420_v30 = vld [vmem:[%s15251_s4 + $0x158] sm:$0xff]   ;;  %v1075_v31 = vpack.c.bf16 %v773_v28, %v766_v27  ;;  %v9424_v49 = vld [vmem:[%s15251_s4 + $0x120] sm:$0xff]   ;;  %v1079_v53 = vpack.c.bf16 %v784_v48, %v777_v47  ;;  %v9427_v0 = vld [vmem:[%s15251_s4 + $0x128] sm:$0xff]  }
  0x38   : > { %8328 = vmatpush3.bf16.msra.mxu0 %v9408_v29  ;;  %v1067_v29 = vpack.c.bf16 %v758_v23, %v751_v22  ;;  %v799_v51 = vld [vmem:[%s10705_s23 + $0x2e0] sm:$0xff]  ;;  %v794_v55 = vld [vmem:[%s10705_s23 + $0x2b8] sm:$0xff]  ;;  %v793_v3 = vld [vmem:[%s10705_s23 + $0x2b0] sm:$0xff] }
  0x39   : > { %8537 = vmatprep.subr.bf16.mxu0 %v9411_v38  ;;  %v779_v52 = vld [vmem:[%s10705_s23 + $0x240] sm:$0xff]  ;;  %v800_v5 = vld [vmem:[%s10705_s23 + $0x2e8] sm:$0xff]  ;;  %v814_v20 = vld [vmem:[%s10705_s23 + $0x358] sm:$0xff] }
  0x3a   : > { %8440 = vmatpush3.bf16.msra.mxu1 %v9410_v34  ;;  %v770_v34 = vld [vmem:[%s10705_s23 + $0x1f8] sm:$0xff]  ;;  %v9425_v58 = vld [vmem:[%s15251_s4 + $0x1a0] sm:$0xff]   ;;  %v808_v6 = vld [vmem:[%s10705_s23 + $0x328] sm:$0xff] }
  0x3b   : > { %1531 = vmatmul.mubr.bf16.vlgmr.msra.gmra.mrb[0].mxu0 %v1044_v37  ;;  %8889 = vmatprep.subr.bf16.mxu1 %v9413_v57  ;;  %v765_v37 = vld [vmem:[%s10705_s23 + $0x1d0] sm:$0xff]  ;;  %v1072_v38 = vpack.c.bf16 %v770_v34, %v763_v33  ;;  %v815_v7 = vld [vmem:[%s10705_s23 + $0x360] sm:$0xff]  ;;  %v9428_v9 = vld [vmem:[%s15251_s4 + $0x1a8] sm:$0xff]  }
  0x3c   : > { %8538 = vmatpush3.bf16.msra.mxu0 %v9412_v42  ;;  %1538 = vmatprep.mubr.bf16.mxu0 %v1052_v50  ;;  %v787_v42 = vld [vmem:[%s10705_s23 + $0x280] sm:$0xff]  ;;  %v1074_v44 = vpack.c.bf16 %v772_v39, %v765_v37  ;;  %v792_v50 = vld [vmem:[%s10705_s23 + $0x2a8] sm:$0xff]  ;;  %v1096_v13 = vpack.c.bf16 %v815_v7, %v808_v6  ;;  %v822_v21 = vld [vmem:[%s10705_s23 + $0x398] sm:$0xff] }
  0x3d   : > { %1692 = vmatmul.mubr.bf16.vlgmr.msra.gmra.mrb[0].mxu1 %v1046_v46  ;;  %8539 = vmatprep.subr.bf16.mxu0 %v9414_v61  ;;  %v1082_v46 = vpack.c.bf16 %v787_v42, %v780_v41  ;;  %v791_v61 = vld [vmem:[%s10705_s23 + $0x2a0] sm:$0xff]  ;;  %v812_v12 = vld [vmem:[%s10705_s23 + $0x348] sm:$0xff]  ;;  %v829_v23 = vld [vmem:[%s10705_s23 + $0x3d0] sm:$0xff] }
  0x3e   : > { %1699 = vmatprep.mubr.bf16.mxu1 %v1054_v54  ;;  %8890 = vmatpush3.bf16.msra.mxu1 %v9413_v57  ;;  %v786_v54 = vld [vmem:[%s10705_s23 + $0x278] sm:$0xff]  ;;  %v801_v57 = vld [vmem:[%s10705_s23 + $0x2f0] sm:$0xff]  ;;  %v807_v19 = vld [vmem:[%s10705_s23 + $0x320] sm:$0xff]  ;;  %v1103_v27 = vpack.c.bf16 %v829_v23, %v822_v21 }
  0x3f   : > { %8891 = vmatprep.subr.bf16.mxu1 %v9416_v10  ;;  %v1081_v59 = vpack.c.bf16 %v786_v54, %v779_v52  ;;  %v1089_v62 = vpack.c.bf16 %v801_v57, %v794_v55  ;;  %v9432_v28 = vld [vmem:[%s15251_s4 + $0x178] sm:$0xff]   ;;  %v821_v34 = vld [vmem:[%s10705_s23 + $0x390] sm:$0xff]  ;;  %v828_v35 = vld [vmem:[%s10705_s23 + $0x3c8] sm:$0xff] }
  0x40   : > { %8540 = vmatpush3.bf16.msra.mxu0 %v9415_v2  ;;  %v813_v2 = vld [vmem:[%s10705_s23 + $0x350] sm:$0xff]  ;;  %v836_v37 = vld [vmem:[%s10705_s23 + $0x408] sm:$0xff]  ;;  %v9434_v39 = vld [vmem:[%s15251_s4 + $0x1b8] sm:$0xff]  }
  0x41   : > { %8541 = vmatprep.subr.bf16.mxu0 %v9417_v14  ;;  %v9429_v14 = vld [vmem:[%s15251_s4 + $0x170] sm:$0xff]   ;;  %v835_v47 = vld [vmem:[%s10705_s23 + $0x400] sm:$0xff]  ;;  %v842_v48 = vld [vmem:[%s10705_s23 + $0x438] sm:$0xff] }
  0x42   : > { %8892 = vmatpush3.bf16.msra.mxu1 %v9416_v10  ;;  %v1088_v10 = vpack.c.bf16 %v800_v5, %v793_v3  ;;  %v833_v42 = vld [vmem:[%s10705_s23 + $0x3f0] sm:$0xff]  ;;  %v1109_v52 = vpack.c.bf16 %v842_v48, %v835_v47  ;;  %v847_v54 = vld [vmem:[%s10705_s23 + $0x460] sm:$0xff]  ;;  %v854_v55 = vld [vmem:[%s10705_s23 + $0x498] sm:$0xff] }
  0x43   : > { %1539 = vmatmul.mubr.bf16.gmra.mrb[4].mxu0 %v1051_v56  ;;  %8893 = vmatprep.subr.bf16.mxu1 %v9419_v25  ;;  %v1087_v56 = vpack.c.bf16 %v799_v51, %v792_v50  ;;  %v850_v50 = vld [vmem:[%s10705_s23 + $0x478] sm:$0xff]  ;;  %v857_v51 = vld [vmem:[%s10705_s23 + $0x4b0] sm:$0xff]  ;;  %v868_v3 = vld [vmem:[%s10705_s23 + $0x508] sm:$0xff] }
  0x44   : > { %1546 = vmatprep.mubr.bf16.mxu0 %v1059_v60  ;;  %8542 = vmatpush3.bf16.msra.mxu0 %v9418_v17  ;;  %v9426_v60 = vld [vmem:[%s15251_s4 + $0x168] sm:$0xff]   ;;  %v827_v17 = vld [vmem:[%s10705_s23 + $0x3c0] sm:$0xff]  ;;  %v869_v57 = vld [vmem:[%s10705_s23 + $0x510] sm:$0xff] }
  0x45   : > { %1700 = vmatmul.mubr.bf16.gmra.mrb[4].mxu1 %v1053_v63  ;;  %8543 = vmatprep.subr.bf16.mxu0 %v9420_v30  ;;  %v798_v63 = vld [vmem:[%s10705_s23 + $0x2d8] sm:$0xff]  ;;  %v883_v5 = vld [vmem:[%s10705_s23 + $0x580] sm:$0xff] }
  0x46   : > { %1707 = vmatprep.mubr.bf16.mxu1 %v1061_v1  ;;  %8894 = vmatpush3.bf16.msra.mxu1 %v9419_v25  ;;  %v806_v1 = vld [vmem:[%s10705_s23 + $0x318] sm:$0xff]  ;;  %v1086_v4 = vpack.c.bf16 %v798_v63, %v791_v61  ;;  %v1095_v25 = vpack.c.bf16 %v814_v20, %v807_v19  ;;  %v871_v63 = vld [vmem:[%s10705_s23 + $0x520] sm:$0xff]  ;;  %v884_v19 = vld [vmem:[%s10705_s23 + $0x588] sm:$0xff] }
  0x47   : > { %8895 = vmatprep.subr.bf16.mxu1 %v9422_v43  ;;  %v834_v30 = vld [vmem:[%s10705_s23 + $0x3f8] sm:$0xff]  ;;  %v863_v7 = vld [vmem:[%s10705_s23 + $0x4e0] sm:$0xff] }
  0x48   : > { %8544 = vmatpush3.bf16.msra.mxu0 %v9421_v32  ;;  %v9433_v32 = vld [vmem:[%s15251_s4 + $0x138] sm:$0xff]   ;;  %v899_v23 = vld [vmem:[%s10705_s23 + $0x600] sm:$0xff] }
  0x49   : > { %8545 = vmatprep.subr.bf16.mxu0 %v9423_v45  ;;  %v855_v45 = vld [vmem:[%s10705_s23 + $0x4a0] sm:$0xff] }
  0x4a   : > { %8896 = vmatpush3.bf16.msra.mxu1 %v9422_v43  ;;  %v840_v43 = vld [vmem:[%s10705_s23 + $0x428] sm:$0xff]  ;;  %v927_v47 = vld [vmem:[%s10705_s23 + $0x6e0] sm:$0xff] }
  0x4b   : > { %1547 = vmatmul.mubr.bf16.gmra.mrb[8].mxu0 %v1058_v8  ;;  %8897 = vmatprep.subr.bf16.mxu1 %v9425_v58  ;;  %v1094_v8 = vpack.c.bf16 %v813_v2, %v806_v1  ;;  %v861_v2 = vld [vmem:[%s10705_s23 + $0x4d0] sm:$0xff] }
  0x4c   : > { %1554 = vmatprep.mubr.bf16.mxu0 %v1066_v11  ;;  %8546 = vmatpush3.bf16.msra.mxu0 %v9424_v49  ;;  %v805_v11 = vld [vmem:[%s10705_s23 + $0x310] sm:$0xff]  ;;  %v1121_v6 = vpack.c.bf16 %v868_v3, %v861_v2  ;;  %v727_v2 = vld [vmem:[%s10705_s23 + $0xa0] sm:$0xff]  ;;  %v734_v3 = vld [vmem:[%s10705_s23 + $0xd8] sm:$0xff] }
  0x4d   : > { %1708 = vmatmul.mubr.bf16.gmra.mrb[8].mxu1 %v1060_v15  ;;  %8547 = vmatprep.subr.bf16.mxu0 %v9426_v60  ;;  %v9430_v15 = vld [vmem:[%s15251_s4 + $0x130] sm:$0xff]   ;;  %v1093_v18 = vpack.c.bf16 %v812_v12, %v805_v11  ;;  %v856_v60 = vld [vmem:[%s10705_s23 + $0x4a8] sm:$0xff] }
  0x4e   : > { %1715 = vmatprep.mubr.bf16.mxu1 %v1068_v16  ;;  %8898 = vmatpush3.bf16.msra.mxu1 %v9425_v58  ;;  %v820_v16 = vld [vmem:[%s10705_s23 + $0x388] sm:$0xff]  ;;  %v1114_v58 = vpack.c.bf16 %v854_v55, %v847_v54  ;;  %v885_v11 = vld [vmem:[%s10705_s23 + $0x590] sm:$0xff]  ;;  %v719_v55 = vld [vmem:[%s10705_s23 + $0x60] sm:$0xff] }
  0x4f   : > { %8899 = vmatprep.subr.bf16.mxu1 %v9428_v9  ;;  %v1101_v22 = vpack.c.bf16 %v827_v17, %v820_v16  ;;  %v890_v16 = vld [vmem:[%s10705_s23 + $0x5b8] sm:$0xff]  ;;  %v897_v17 = vld [vmem:[%s10705_s23 + $0x5f0] sm:$0xff]  ;;  %v712_v54 = vld [vmem:[%s10705_s23 + $0x28] sm:$0xff] }
  0x50   : > { %8548 = vmatpush3.bf16.msra.mxu0 %v9427_v0  ;;  %v1136_v21 = vpack.c.bf16 %v897_v17, %v890_v16  ;;  %v769_v16 = vld [vmem:[%s10705_s23 + $0x1f0] sm:$0xff]  ;;  %v776_v17 = vld [vmem:[%s10705_s23 + $0x228] sm:$0xff] }
  0x51   : > { %8549 = vmatprep.subr.bf16.mxu0 %v9429_v14  ;;  %v882_v14 = vld [vmem:[%s10705_s23 + $0x578] sm:$0xff] }
  0x52   : > { %8900 = vmatpush3.bf16.msra.mxu1 %v9428_v9 }
  0x53   : > { %1555 = vmatmul.mubr.bf16.gmra.mrb[12].mxu0 %v1065_v24  ;;  %v9431_v24 = vld [vmem:[%s15251_s4 + $0x1b0] sm:$0xff]  }
  0x54   : > { %1562 = vmatprep.mubr.bf16.mxu0 %v1073_v26  ;;  %8550 = vmatpush3.bf16.msra.mxu0 %v9430_v15  ;;  %v819_v26 = vld [vmem:[%s10705_s23 + $0x380] sm:$0xff] }
  0x55   : > { %1716 = vmatmul.mubr.bf16.gmra.mrb[12].mxu1 %v1067_v29  ;;  %8901 = vmatprep.subr.bf16.mxu1 %v9431_v24  ;;  %v826_v29 = vld [vmem:[%s10705_s23 + $0x3b8] sm:$0xff] }
  0x56   : > { %1723 = vmatprep.mubr.bf16.mxu1 %v1075_v31  ;;  %8902 = vmatpush3.bf16.msra.mxu1 %v9431_v24  ;;  %v841_v31 = vld [vmem:[%s10705_s23 + $0x430] sm:$0xff]  ;;  %v1100_v33 = vpack.c.bf16 %v826_v29, %v819_v26  ;;  %v898_v29 = vld [vmem:[%s10705_s23 + $0x5f8] sm:$0xff] }
  0x57   : > { %8551 = vmatprep.subr.bf16.mxu0 %v9432_v28  ;;  %v1108_v36 = vpack.c.bf16 %v841_v31, %v834_v30  ;;  %8903 = vmatprep.subr.bf16.mxu1 %v9434_v39  ;;  %v889_v26 = vld [vmem:[%s10705_s23 + $0x5b0] sm:$0xff]  ;;  %v891_v28 = vld [vmem:[%s10705_s23 + $0x5c0] sm:$0xff]  ;;  %v904_v30 = vld [vmem:[%s10705_s23 + $0x628] sm:$0xff] }
  0x58   : > { %8552 = vmatpush3.bf16.msra.mxu0 %v9433_v32  ;;  %v911_v31 = vld [vmem:[%s10705_s23 + $0x660] sm:$0xff] }
  0x5a   : > { %8904 = vmatpush3.bf16.msra.mxu1 %v9434_v39 }
  0x5b   : > { %1563 = vmatmul.mubr.bf16.gmra.mrb[16].mxu0 %v1072_v38  ;;  %v843_v38 = vld [vmem:[%s10705_s23 + $0x440] sm:$0xff] }
  0x5c   : > { %1570 = vmatprep.mubr.bf16.mxu0 %v1080_v40  ;;  %v1102_v40 = vpack.c.bf16 %v828_v35, %v821_v34  ;;  %v1110_v41 = vpack.c.bf16 %v843_v38, %v836_v37  ;;  %v906_v34 = vld [vmem:[%s10705_s23 + $0x638] sm:$0xff]  ;;  %v913_v35 = vld [vmem:[%s10705_s23 + $0x670] sm:$0xff]  ;;  %v903_v37 = vld [vmem:[%s10705_s23 + $0x620] sm:$0xff] }
  0x5d   : > { %1724 = vmatmul.mubr.bf16.gmra.mrb[16].mxu1 %v1074_v44  ;;  %v848_v44 = vld [vmem:[%s10705_s23 + $0x468] sm:$0xff]  ;;  %v910_v38 = vld [vmem:[%s10705_s23 + $0x658] sm:$0xff]  ;;  %v1145_v39 = vpack.c.bf16 %v913_v35, %v906_v34 }
  0x5e   : > { %1731 = vmatprep.mubr.bf16.mxu1 %v1082_v46  ;;  %v1107_v46 = vpack.c.bf16 %v840_v43, %v833_v42  ;;  %v1115_v49 = vpack.c.bf16 %v855_v45, %v848_v44  ;;  %v905_v42 = vld [vmem:[%s10705_s23 + $0x630] sm:$0xff]  ;;  %v912_v43 = vld [vmem:[%s10705_s23 + $0x668] sm:$0xff]  ;;  %v1142_v44 = vpack.c.bf16 %v910_v38, %v903_v37  ;;  %v811_v38 = vld [vmem:[%s10705_s23 + $0x340] sm:$0xff] }
  0x5f   : > { %v1144_v48 = vpack.c.bf16 %v912_v43, %v905_v42  ;;  %v768_v35 = vld [vmem:[%s10705_s23 + $0x1e8] sm:$0xff] }
  0x63   : > { %1571 = vmatmul.mubr.bf16.gmra.mrb[20].mxu0 %v1079_v53  ;;  %v1117_v53 = vpack.c.bf16 %v857_v51, %v850_v50  ;;  %v917_v50 = vld [vmem:[%s10705_s23 + $0x690] sm:$0xff]  ;;  %v924_v51 = vld [vmem:[%s10705_s23 + $0x6c8] sm:$0xff] }
  0x64   : > { %1578 = vmatprep.mubr.bf16.mxu0 %v1087_v56  ;;  %v862_v56 = vld [vmem:[%s10705_s23 + $0x4d8] sm:$0xff] }
  0x65   : > { %1732 = vmatmul.mubr.bf16.gmra.mrb[20].mxu1 %v1081_v59  ;;  %v849_v59 = vld [vmem:[%s10705_s23 + $0x470] sm:$0xff]  ;;  %v1122_v61 = vpack.c.bf16 %v869_v57, %v862_v56  ;;  %v1149_v56 = vpack.c.bf16 %v924_v51, %v917_v50  ;;  %v1049_v57 = vpack.c.bf16 %v719_v55, %v712_v54  ;;  %v839_v50 = vld [vmem:[%s10705_s23 + $0x420] sm:$0xff]  ;;  %v846_v51 = vld [vmem:[%s10705_s23 + $0x458] sm:$0xff] }
  0x66   : > { %1739 = vmatprep.mubr.bf16.mxu1 %v1089_v62  ;;  %v864_v62 = vld [vmem:[%s10705_s23 + $0x4e8] sm:$0xff]  ;;  %v1116_v0 = vpack.c.bf16 %v856_v60, %v849_v59 }
  0x67   : > { %v1124_v1 = vpack.c.bf16 %v871_v63, %v864_v62  ;;  %v720_v59 = vld [vmem:[%s10705_s23 + $0x68] sm:$0xff]  ;;  %v718_v62 = vld [vmem:[%s10705_s23 + $0x58] sm:$0xff] }
  0x6b   : > { %1579 = vmatmul.mubr.bf16.gmra.mrb[24].mxu0 %v1086_v4  ;;  %v876_v4 = vld [vmem:[%s10705_s23 + $0x548] sm:$0xff] }
  0x6c   : > { %1586 = vmatprep.mubr.bf16.mxu0 %v1094_v8  ;;  %v870_v8 = vld [vmem:[%s10705_s23 + $0x518] sm:$0xff]  ;;  %v1129_v9 = vpack.c.bf16 %v883_v5, %v876_v4  ;;  %v741_v4 = vld [vmem:[%s10705_s23 + $0x110] sm:$0xff]  ;;  %v748_v5 = vld [vmem:[%s10705_s23 + $0x148] sm:$0xff] }
  0x6d   : > { %1740 = vmatmul.mubr.bf16.gmra.mrb[24].mxu1 %v1088_v10  ;;  %v878_v10 = vld [vmem:[%s10705_s23 + $0x558] sm:$0xff]  ;;  %v1123_v12 = vpack.c.bf16 %v870_v8, %v863_v7  ;;  %v1057_v8 = vpack.c.bf16 %v734_v3, %v727_v2  ;;  %v881_v2 = vld [vmem:[%s10705_s23 + $0x570] sm:$0xff]  ;;  %v888_v3 = vld [vmem:[%s10705_s23 + $0x5a8] sm:$0xff] }
  0x6e   : > { %1747 = vmatprep.mubr.bf16.mxu1 %v1096_v13  ;;  %v875_v13 = vld [vmem:[%s10705_s23 + $0x540] sm:$0xff]  ;;  %v1131_v15 = vpack.c.bf16 %v885_v11, %v878_v10  ;;  %v732_v10 = vld [vmem:[%s10705_s23 + $0xc8] sm:$0xff] }
  0x6f   : > { %v1128_v20 = vpack.c.bf16 %v882_v14, %v875_v13  ;;  %v740_v11 = vld [vmem:[%s10705_s23 + $0x108] sm:$0xff]  ;;  %v1064_v13 = vpack.c.bf16 %v748_v5, %v741_v4  ;;  %v755_v14 = vld [vmem:[%s10705_s23 + $0x180] sm:$0xff]  ;;  %v1134_v5 = vpack.c.bf16 %v888_v3, %v881_v2 }
  0x73   : > { %1587 = vmatmul.mubr.bf16.gmra.mrb[28].mxu0 %v1093_v18  ;;  %v877_v18 = vld [vmem:[%s10705_s23 + $0x550] sm:$0xff] }
  0x74   : > { %1594 = vmatprep.mubr.bf16.mxu0 %v1101_v22  ;;  %v892_v22 = vld [vmem:[%s10705_s23 + $0x5c8] sm:$0xff]  ;;  %v1130_v24 = vpack.c.bf16 %v884_v19, %v877_v18 }
  0x75   : > { %1748 = vmatmul.mubr.bf16.gmra.mrb[28].mxu1 %v1095_v25  ;;  %v1138_v25 = vpack.c.bf16 %v899_v23, %v892_v22  ;;  %v754_v23 = vld [vmem:[%s10705_s23 + $0x178] sm:$0xff] }
  0x76   : > { %1755 = vmatprep.mubr.bf16.mxu1 %v1103_v27  ;;  %v896_v27 = vld [vmem:[%s10705_s23 + $0x5e8] sm:$0xff] }
  0x77   : > { %v1135_v32 = vpack.c.bf16 %v896_v27, %v889_v26  ;;  %v783_v26 = vld [vmem:[%s10705_s23 + $0x260] sm:$0xff]  ;;  %v790_v27 = vld [vmem:[%s10705_s23 + $0x298] sm:$0xff] }
  0x78   : > { %v1085_v34 = vpack.c.bf16 %v790_v27, %v783_v26  ;;  %v930_v26 = vld [vmem:[%s10705_s23 + $0x6f8] sm:$0xff] }
  0x7b   : > { %1595 = vmatmul.mubr.bf16.gmra.mrb[32].mxu0 %v1100_v33  ;;  %v1143_v33 = vpack.c.bf16 %v911_v31, %v904_v30 }
  0x7c   : > { %1602 = vmatprep.mubr.bf16.mxu0 %v1108_v36  ;;  %v1137_v36 = vpack.c.bf16 %v898_v29, %v891_v28  ;;  %v797_v28 = vld [vmem:[%s10705_s23 + $0x2d0] sm:$0xff]  ;;  %v804_v29 = vld [vmem:[%s10705_s23 + $0x308] sm:$0xff] }
  0x7d   : > { %1756 = vmatmul.mubr.bf16.gmra.mrb[32].mxu1 %v1102_v40  ;;  %v918_v40 = vld [vmem:[%s10705_s23 + $0x698] sm:$0xff]  ;;  %v1092_v37 = vpack.c.bf16 %v804_v29, %v797_v28  ;;  %v823_v29 = vld [vmem:[%s10705_s23 + $0x3a0] sm:$0xff] }
  0x7e   : > { %1763 = vmatprep.mubr.bf16.mxu1 %v1110_v41  ;;  %v925_v41 = vld [vmem:[%s10705_s23 + $0x6d0] sm:$0xff] }
  0x7f   : > { %v1150_v45 = vpack.c.bf16 %v925_v41, %v918_v40  ;;  %v825_v40 = vld [vmem:[%s10705_s23 + $0x3b0] sm:$0xff]  ;;  %v832_v41 = vld [vmem:[%s10705_s23 + $0x3e8] sm:$0xff] }
  0x83   : > { %1603 = vmatmul.mubr.bf16.gmra.mrb[36].mxu0 %v1107_v46  ;;  %v920_v46 = vld [vmem:[%s10705_s23 + $0x6a8] sm:$0xff] }
  0x84   : > { %1610 = vmatprep.mubr.bf16.mxu0 %v1115_v49  ;;  %v1152_v49 = vpack.c.bf16 %v927_v47, %v920_v46  ;;  %v782_v47 = vld [vmem:[%s10705_s23 + $0x258] sm:$0xff] }
  0x85   : > { %1764 = vmatmul.mubr.bf16.gmra.mrb[36].mxu1 %v1109_v52  ;;  %v919_v52 = vld [vmem:[%s10705_s23 + $0x6a0] sm:$0xff] }
  0x86   : > { %1771 = vmatprep.mubr.bf16.mxu1 %v1117_v53  ;;  %v926_v53 = vld [vmem:[%s10705_s23 + $0x6d8] sm:$0xff] }
  0x87   : > { %v1151_v60 = vpack.c.bf16 %v926_v53, %v919_v52  ;;  %v853_v52 = vld [vmem:[%s10705_s23 + $0x490] sm:$0xff]  ;;  %v860_v53 = vld [vmem:[%s10705_s23 + $0x4c8] sm:$0xff] }
  0x8b   : > { %1611 = vmatmul.mubr.bf16.gmra.mrb[40].mxu0 %v1114_v58  ;;  %v713_v58 = vld [vmem:[%s10705_s23 + $0x30] sm:$0xff] }
  0x8c   : > { %1618 = vmatprep.mubr.bf16.mxu0 %v1122_v61  ;;  %v711_v61 = vld [vmem:[%s10705_s23 + $0x20] sm:$0xff]  ;;  %v1050_v63 = vpack.c.bf16 %v720_v59, %v713_v58  ;;  %v781_v58 = vld [vmem:[%s10705_s23 + $0x250] sm:$0xff]  ;;  %v788_v59 = vld [vmem:[%s10705_s23 + $0x288] sm:$0xff] }
  0x8d   : > { %1772 = vmatmul.mubr.bf16.gmra.mrb[40].mxu1 %v1116_v0  ;;  %v726_v0 = vld [vmem:[%s10705_s23 + $0x98] sm:$0xff] }
  0x8e   : > { %1779 = vmatprep.mubr.bf16.mxu1 %v1124_v1  ;;  %v733_v1 = vld [vmem:[%s10705_s23 + $0xd0] sm:$0xff] }
  0x8f   : > { %v1056_v7 = vpack.c.bf16 %v733_v1, %v726_v0  ;;  %v874_v0 = vld [vmem:[%s10705_s23 + $0x538] sm:$0xff] }
  0x93   : > { %1619 = vmatmul.mubr.bf16.gmra.mrb[44].mxu0 %v1121_v6  ;;  %v1048_v6 = vpack.c.bf16 %v718_v62, %v711_v61  ;;  %v803_v61 = vld [vmem:[%s10705_s23 + $0x300] sm:$0xff]  ;;  %v1083_v62 = vpack.c.bf16 %v788_v59, %v781_v58 }
  0x94   : > { %1626 = vmatprep.mubr.bf16.mxu0 %v1129_v9  ;;  %v725_v9 = vld [vmem:[%s10705_s23 + $0x90] sm:$0xff] }
  0x95   : > { %1780 = vmatmul.mubr.bf16.gmra.mrb[44].mxu1 %v1123_v12  ;;  %v747_v12 = vld [vmem:[%s10705_s23 + $0x140] sm:$0xff]  ;;  %v1055_v18 = vpack.c.bf16 %v732_v10, %v725_v9  ;;  %v817_v9 = vld [vmem:[%s10705_s23 + $0x370] sm:$0xff] }
  0x96   : > { %1787 = vmatprep.mubr.bf16.mxu1 %v1131_v15  ;;  %v762_v15 = vld [vmem:[%s10705_s23 + $0x1b8] sm:$0xff]  ;;  %v1063_v19 = vpack.c.bf16 %v747_v12, %v740_v11  ;;  %v9435_v10 = vld [vmem:[%s15253_s27] sm:$0xff]  }
  0x97   : > { %v1071_v22 = vpack.c.bf16 %v762_v15, %v755_v14  ;;  %v895_v12 = vld [vmem:[%s10705_s23 + $0x5e0] sm:$0xff]  ;;  %8937 = vmatprep.subr.bf16.mxu1 %v9435_v10  ;;  %v909_v15 = vld [vmem:[%s10705_s23 + $0x650] sm:$0xff] }
  0x9b   : > { %1627 = vmatmul.mubr.bf16.gmra.mrb[48].mxu0 %v1128_v20  ;;  %v739_v20 = vld [vmem:[%s10705_s23 + $0x100] sm:$0xff] }
  0x9c   : > { %1634 = vmatprep.mubr.bf16.mxu0 %v1136_v21  ;;  %v746_v21 = vld [vmem:[%s10705_s23 + $0x138] sm:$0xff] }
  0x9d   : > { %1788 = vmatmul.mubr.bf16.gmra.mrb[48].mxu1 %v1130_v24  ;;  %v761_v24 = vld [vmem:[%s10705_s23 + $0x1b0] sm:$0xff]  ;;  %v1062_v30 = vpack.c.bf16 %v746_v21, %v739_v20  ;;  %v816_v20 = vld [vmem:[%s10705_s23 + $0x368] sm:$0xff] }
  0x9e   : > { %1795 = vmatprep.mubr.bf16.mxu1 %v1138_v25  ;;  %v1078_v25 = vpack.c.bf16 %v776_v17, %v769_v16  ;;  %v1070_v31 = vpack.c.bf16 %v761_v24, %v754_v23  ;;  %v916_v16 = vld [vmem:[%s10705_s23 + $0x688] sm:$0xff] }
  0x9f   : > { %v824_v21 = vld [vmem:[%s10705_s23 + $0x3a8] sm:$0xff] }
  0xa0   : > { %v9436_v23 = vld [vmem:[%s15253_s27 + $0x8] sm:$0xff]  }
  0xa3   : > { %1635 = vmatmul.mubr.bf16.gmra.mrb[52].mxu0 %v1135_v32  ;;  %v753_v32 = vld [vmem:[%s10705_s23 + $0x170] sm:$0xff] }
  0xa4   : > { %1642 = vmatprep.mubr.bf16.mxu0 %v1143_v33  ;;  %v760_v33 = vld [vmem:[%s10705_s23 + $0x1a8] sm:$0xff] }
  0xa5   : > { %1796 = vmatmul.mubr.bf16.gmra.mrb[52].mxu1 %v1137_v36  ;;  %v775_v36 = vld [vmem:[%s10705_s23 + $0x220] sm:$0xff]  ;;  %v1069_v42 = vpack.c.bf16 %v760_v33, %v753_v32  ;;  %v845_v32 = vld [vmem:[%s10705_s23 + $0x450] sm:$0xff] }
  0xa6   : > { %1803 = vmatprep.mubr.bf16.mxu1 %v1145_v39  ;;  %v818_v39 = vld [vmem:[%s10705_s23 + $0x378] sm:$0xff]  ;;  %v1077_v43 = vpack.c.bf16 %v775_v36, %v768_v35  ;;  %v9437_v33 = vld [vmem:[%s15253_s27 + $0x10] sm:$0xff]  }
  0xa7   : > { %v1099_v46 = vpack.c.bf16 %v818_v39, %v811_v38  ;;  %v837_v36 = vld [vmem:[%s10705_s23 + $0x410] sm:$0xff]  ;;  %v852_v38 = vld [vmem:[%s10705_s23 + $0x488] sm:$0xff]  ;;  %v859_v39 = vld [vmem:[%s10705_s23 + $0x4c0] sm:$0xff] }
  0xab   : > { %1643 = vmatmul.mubr.bf16.gmra.mrb[56].mxu0 %v1142_v44  ;;  %v767_v44 = vld [vmem:[%s10705_s23 + $0x1e0] sm:$0xff] }
  0xac   : > { %1650 = vmatprep.mubr.bf16.mxu0 %v1150_v45  ;;  %v774_v45 = vld [vmem:[%s10705_s23 + $0x218] sm:$0xff] }
  0xad   : > { %1804 = vmatmul.mubr.bf16.gmra.mrb[56].mxu1 %v1144_v48  ;;  %v789_v48 = vld [vmem:[%s10705_s23 + $0x290] sm:$0xff]  ;;  %v1076_v54 = vpack.c.bf16 %v774_v45, %v767_v44  ;;  %v858_v44 = vld [vmem:[%s10705_s23 + $0x4b8] sm:$0xff] }
  0xae   : > { %1811 = vmatprep.mubr.bf16.mxu1 %v1152_v49  ;;  %v1106_v49 = vpack.c.bf16 %v832_v41, %v825_v40  ;;  %v1084_v55 = vpack.c.bf16 %v789_v48, %v782_v47  ;;  %v9438_v40 = vld [vmem:[%s15253_s27 + $0x18] sm:$0xff]   ;;  %v9439_v47 = vld [vmem:[%s15253_s27 + $0x20] sm:$0xff]  }
  0xaf   : > { %v866_v45 = vld [vmem:[%s10705_s23 + $0x4f8] sm:$0xff] }
  0xb3   : > { %1651 = vmatmul.mubr.bf16.gmra.mrb[60].mxu0 %v1149_v56  ;;  %v1113_v56 = vpack.c.bf16 %v846_v51, %v839_v50  ;;  %v865_v50 = vld [vmem:[%s10705_s23 + $0x4f0] sm:$0xff]  ;;  %v872_v51 = vld [vmem:[%s10705_s23 + $0x528] sm:$0xff] }
  0xb4   : > { %1852 = vmatprep.mubr.bf16.mxu0 %v1049_v57  ;;  %v1120_v57 = vpack.c.bf16 %v860_v53, %v853_v52  ;;  %v880_v52 = vld [vmem:[%s10705_s23 + $0x568] sm:$0xff]  ;;  %v887_v53 = vld [vmem:[%s10705_s23 + $0x5a0] sm:$0xff]  ;;  %v1125_v58 = vpack.c.bf16 %v872_v51, %v865_v50 }
  0xb5   : > { %1812 = vmatmul.mubr.bf16.gmra.mrb[60].mxu1 %v1151_v60  ;;  %v796_v60 = vld [vmem:[%s10705_s23 + $0x2c8] sm:$0xff] }
  0xb6   : > { %8905 = vmatprep.mubr.bf16.mxu1 %v1050_v63  ;;  %v867_v63 = vld [vmem:[%s10705_s23 + $0x500] sm:$0xff]  ;;  %v1091_v1 = vpack.c.bf16 %v803_v61, %v796_v60  ;;  %v1133_v61 = vpack.c.bf16 %v887_v53, %v880_v52 }
  0xb7   : > { %v1127_v4 = vpack.c.bf16 %v874_v0, %v867_v63  ;;  %v907_v53 = vld [vmem:[%s10705_s23 + $0x640] sm:$0xff] }
  0xbb   : > { %1853 = vmatmul.mubr.bf16.vlgmr.msra.gmra.mrb[64].mxu0 %v1048_v6  ;;  %v795_v6 = vld [vmem:[%s10705_s23 + $0x2c0] sm:$0xff] }
  0xbc   : > { %1860 = vmatprep.mubr.bf16.mxu0 %v1056_v7  ;;  %v802_v7 = vld [vmem:[%s10705_s23 + $0x2f8] sm:$0xff] }
  0xbd   : > { %8906 = vmatmul.mubr.bf16.vlgmr.msra.gmra.mrb[64].mxu1 %v1057_v8  ;;  %v810_v8 = vld [vmem:[%s10705_s23 + $0x338] sm:$0xff]  ;;  %v1090_v11 = vpack.c.bf16 %v802_v7, %v795_v6  ;;  %v879_v7 = vld [vmem:[%s10705_s23 + $0x560] sm:$0xff] }
  0xbe   : > { %8909 = vmatprep.mubr.bf16.mxu1 %v1064_v13  ;;  %v902_v13 = vld [vmem:[%s10705_s23 + $0x618] sm:$0xff]  ;;  %v1098_v14 = vpack.c.bf16 %v817_v9, %v810_v8  ;;  %8938 = vmatpush3.bf16.msra.mxu1 %v9435_v10 }
  0xbf   : > { %v1141_v17 = vpack.c.bf16 %v902_v13, %v895_v12  ;;  %8939 = vmatprep.subr.bf16.mxu1 %v9436_v23  ;;  %v886_v8 = vld [vmem:[%s10705_s23 + $0x598] sm:$0xff]  ;;  %v901_v12 = vld [vmem:[%s10705_s23 + $0x610] sm:$0xff] }
  0xc2   : > { %8940 = vmatpush3.bf16.msra.mxu1 %v9436_v23 }
  0xc3   : > { %1861 = vmatmul.mubr.bf16.gmra.mrb[68].mxu0 %v1055_v18  ;;  %v1148_v18 = vpack.c.bf16 %v916_v16, %v909_v15  ;;  %8941 = vmatprep.subr.bf16.mxu1 %v9437_v33 }
  0xc4   : > { %1868 = vmatprep.mubr.bf16.mxu0 %v1063_v19  ;;  %v809_v19 = vld [vmem:[%s10705_s23 + $0x330] sm:$0xff] }
  0xc5   : > { %8910 = vmatmul.mubr.bf16.gmra.mrb[68].mxu1 %v1071_v22  ;;  %v831_v22 = vld [vmem:[%s10705_s23 + $0x3e0] sm:$0xff]  ;;  %v1097_v24 = vpack.c.bf16 %v816_v20, %v809_v19 }
  0xc6   : > { %8913 = vmatprep.mubr.bf16.mxu1 %v1078_v25  ;;  %v923_v25 = vld [vmem:[%s10705_s23 + $0x6c0] sm:$0xff]  ;;  %v1105_v27 = vpack.c.bf16 %v831_v22, %v824_v21  ;;  %8942 = vmatpush3.bf16.msra.mxu1 %v9437_v33 }
  0xc7   : > { %v1155_v28 = vpack.c.bf16 %v930_v26, %v923_v25  ;;  %8943 = vmatprep.subr.bf16.mxu1 %v9438_v40 }
  0xca   : > { %8944 = vmatpush3.bf16.msra.mxu1 %v9438_v40  ;;  %v9442_v40 = vld [vmem:[%s15253_s27 + $0x38] sm:$0xff]  }
  0xcb   : > { %1869 = vmatmul.mubr.bf16.gmra.mrb[72].mxu0 %v1062_v30  ;;  %v830_v30 = vld [vmem:[%s10705_s23 + $0x3d8] sm:$0xff]  ;;  %8945 = vmatprep.subr.bf16.mxu1 %v9439_v47 }
  0xcc   : > { %1876 = vmatprep.mubr.bf16.mxu0 %v1070_v31  ;;  %v838_v31 = vld [vmem:[%s10705_s23 + $0x418] sm:$0xff] }
  0xcd   : > { %8914 = vmatmul.mubr.bf16.gmra.mrb[72].mxu1 %v1085_v34  ;;  %v1104_v34 = vpack.c.bf16 %v830_v30, %v823_v29  ;;  %v1112_v35 = vpack.c.bf16 %v845_v32, %v838_v31  ;;  %v893_v30 = vld [vmem:[%s10705_s23 + $0x5d0] sm:$0xff]  ;;  %v900_v31 = vld [vmem:[%s10705_s23 + $0x608] sm:$0xff] }
  0xce   : > { %8917 = vmatprep.mubr.bf16.mxu1 %v1092_v37  ;;  %v844_v37 = vld [vmem:[%s10705_s23 + $0x448] sm:$0xff]  ;;  %8946 = vmatpush3.bf16.msra.mxu1 %v9439_v47 }
  0xcf   : > { %v1111_v41 = vpack.c.bf16 %v844_v37, %v837_v36 }
  0xd3   : > { %1877 = vmatmul.mubr.bf16.gmra.mrb[76].mxu0 %v1069_v42  ;;  %v1119_v42 = vpack.c.bf16 %v859_v39, %v852_v38  ;;  %v1139_v39 = vpack.c.bf16 %v900_v31, %v893_v30 }
  0xd4   : > { %1884 = vmatprep.mubr.bf16.mxu0 %v1077_v43  ;;  %v851_v43 = vld [vmem:[%s10705_s23 + $0x480] sm:$0xff] }
  0xd5   : > { %8918 = vmatmul.mubr.bf16.gmra.mrb[76].mxu1 %v1099_v46  ;;  %v873_v46 = vld [vmem:[%s10705_s23 + $0x530] sm:$0xff]  ;;  %v1118_v48 = vpack.c.bf16 %v858_v44, %v851_v43 }
  0xd6   : > { %8921 = vmatprep.mubr.bf16.mxu1 %v1106_v49  ;;  %v1126_v49 = vpack.c.bf16 %v873_v46, %v866_v45 }
  0xdb   : > { %1885 = vmatmul.mubr.bf16.gmra.mrb[80].mxu0 %v1076_v54  ;;  %v9440_v54 = vld [vmem:[%s15253_s27 + $0x28] sm:$0xff]  }
  0xdc   : > { %1892 = vmatprep.mubr.bf16.mxu0 %v1084_v55  ;;  %8947 = vmatprep.subr.bf16.mxu1 %v9440_v54 }
  0xdd   : > { %8922 = vmatmul.mubr.bf16.gmra.mrb[80].mxu1 %v1113_v56  ;;  %v11019_v56 = vld [vmem:[%s15254_s5] ss:$0 sm:$0xff]  ;;  %s15256_s5 = sld [smem:[#allocation40_spill]] }
  0xde   : > { %8925 = vmatprep.mubr.bf16.mxu1 %v1120_v57  ;;  %8948 = vmatpush3.bf16.msra.mxu1 %v9440_v54  ;;  %v914_v54 = vld [vmem:[%s10705_s23 + $0x678] sm:$0xff] }
  0xe3   : > { %1893 = vmatmul.mubr.bf16.gmra.mrb[84].mxu0 %v1083_v62 }
  0xe4   : > { %1900 = vmatprep.mubr.bf16.mxu0 %v1091_v1 }
  0xe5   : > { %8926 = vmatmul.mubr.bf16.gmra.mrb[84].mxu1 %v1127_v4 }
  0xe6   : > { %8929 = vmatprep.mubr.bf16.mxu1 %v1134_v5 }
  0xeb   : > { %1901 = vmatmul.mubr.bf16.gmra.mrb[88].mxu0 %v1090_v11  ;;  %v894_v11 = vld [vmem:[%s10705_s23 + $0x5d8] sm:$0xff] }
  0xec   : > { %1908 = vmatprep.mubr.bf16.mxu0 %v1098_v14  ;;  %v9441_v14 = vld [vmem:[%s15253_s27 + $0x30] sm:$0xff]   ;;  %v1140_v20 = vpack.c.bf16 %v901_v12, %v894_v11 }
  0xed   : > { %8930 = vmatmul.mubr.bf16.gmra.mrb[88].mxu1 %v1141_v17  ;;  %v1132_v17 = vpack.c.bf16 %v886_v8, %v879_v7  ;;  %8949 = vmatprep.subr.bf16.mxu1 %v9441_v14 }
  0xee   : > { %8933 = vmatprep.mubr.bf16.mxu1 %v1148_v18  ;;  %8950 = vmatpush3.bf16.msra.mxu1 %v9441_v14  ;;  %v928_v14 = vld [vmem:[%s10705_s23 + $0x6e8] sm:$0xff] }
  0xef   : > { %8951 = vmatprep.subr.bf16.mxu1 %v9442_v40 }
  0xf2   : > { %8952 = vmatpush3.bf16.msra.mxu1 %v9442_v40 }
  0xf3   : > { %1909 = vmatmul.mubr.bf16.gmra.mrb[92].mxu0 %v1097_v24 }
  0xf4   : > { %1916 = vmatprep.mubr.bf16.mxu0 %v1105_v27 }
  0xf5   : > { %8934 = vmatmul.mubr.bf16.gmra.mrb[92].mxu1 %v1155_v28 }
  0xfb   : > { %1917 = vmatmul.mubr.bf16.gmra.mrb[96].mxu0 %v1104_v34  ;;  %v908_v34 = vld [vmem:[%s10705_s23 + $0x648] sm:$0xff] }
  0xfc   : > { %1924 = vmatprep.mubr.bf16.mxu0 %v1112_v35  ;;  %v915_v35 = vld [vmem:[%s10705_s23 + $0x680] sm:$0xff] }
  0xfd   : > { %v1147_v43 = vpack.c.bf16 %v915_v35, %v908_v34 }
 0x103   : > { %1925 = vmatmul.mubr.bf16.gmra.mrb[100].mxu0 %v1111_v41 }
 0x104   : > { %1932 = vmatprep.mubr.bf16.mxu0 %v1119_v42 }
 0x10b   : > { %1933 = vmatmul.mubr.bf16.gmra.mrb[104].mxu0 %v1118_v48 }
 0x10c   : > { %1940 = vmatprep.mubr.bf16.mxu0 %v1126_v49 }
 0x10e   : > { %v8329_v55 = vpop.f32.mrb[0].mxu0 }
 0x10f   : > { %v8330_v57 = vpop.f32.mrb[1].mxu0 }
 0x110   : > { %v8331_v59 = vadd.f32 %v8330_v57, %v8329_v55  ;;  %v8332_v60 = vpop.f32.mrb[2].mxu0  ;;  %v8441_v62 = vpop.f32.mrb[0].mxu1 }
 0x111   : > { %v8333_v63 = vpop.f32.mrb[3].mxu0  ;;  %v8442_v2 = vpop.f32.mrb[1].mxu1 }
 0x112   : > { %v1533_v0 = vadd.f32 %v8331_v59, %v11019_v56  ;;  %v8334_v1 = vadd.f32 %v8333_v63, %v8332_v60  ;;  %v8443_v3 = vadd.f32 %v8442_v2, %v8441_v62  ;;  %v8444_v4 = vpop.f32.mrb[2].mxu1  ;;  %v929_v59 = vld [vmem:[%s10705_s23 + $0x6f0] sm:$0xff]  ;;  %v1146_v63 = vpack.c.bf16 %v914_v54, %v907_v53 }
 0x113   : > { %1941 = vmatmul.mubr.bf16.gmra.mrb[108].mxu0 %v1125_v58  ;;  %v8445_v6 = vpop.f32.mrb[3].mxu1  ;;  %v922_v58 = vld [vmem:[%s10705_s23 + $0x6b8] sm:$0xff] }
 0x114   : > { %v1536_v5 = vadd.f32 %v8334_v1, %v11019_v56  ;;  %1948 = vmatprep.mubr.bf16.mxu0 %v1133_v61  ;;  %v11025_v9 = vadd.f32 %v8443_v3, %v1533_v0  ;;  %v8446_v10 = vadd.f32 %v8445_v6, %v8444_v4  ;;  %v1154_v2 = vpack.c.bf16 %v929_v59, %v922_v58 }
 0x116   : > { %v8335_v13 = vpop.f32.mrb[4].mxu0  ;;  %v11032_v15 = vadd.f32 %v8446_v10, %v1536_v5 }
 0x117   : > { %v8336_v16 = vpop.f32.mrb[5].mxu0 }
 0x118   : > { %v8337_v18 = vadd.f32 %v8336_v16, %v8335_v13  ;;  %v8338_v19 = vpop.f32.mrb[6].mxu0  ;;  %v8447_v21 = vpop.f32.mrb[4].mxu1  ;;  %v921_v13 = vld [vmem:[%s10705_s23 + $0x6b0] sm:$0xff] }
 0x119   : > { %v8339_v22 = vpop.f32.mrb[7].mxu0  ;;  %v8448_v25 = vpop.f32.mrb[5].mxu1 }
 0x11a   : > { %v1541_v23 = vadd.f32 %v8337_v18, %v11019_v56  ;;  %v8340_v24 = vadd.f32 %v8339_v22, %v8338_v19  ;;  %v8449_v26 = vadd.f32 %v8448_v25, %v8447_v21  ;;  %v8450_v27 = vpop.f32.mrb[6].mxu1  ;;  %v1153_v21 = vpack.c.bf16 %v928_v14, %v921_v13 }
 0x11b   : > { %1949 = vmatmul.mubr.bf16.gmra.mrb[112].mxu0 %v1132_v17  ;;  %v8451_v29 = vpop.f32.mrb[7].mxu1 }
 0x11c   : > { %v1544_v28 = vadd.f32 %v8340_v24, %v11019_v56  ;;  %1956 = vmatprep.mubr.bf16.mxu0 %v1140_v20  ;;  %v11038_v32 = vadd.f32 %v8449_v26, %v1541_v23  ;;  %v8452_v33 = vadd.f32 %v8451_v29, %v8450_v27 }
 0x11e   : > { %v8341_v36 = vpop.f32.mrb[8].mxu0  ;;  %v11042_v37 = vadd.f32 %v8452_v33, %v1544_v28 }
 0x11f   : > { %v8342_v38 = vpop.f32.mrb[9].mxu0 }
 0x120   : > { %v8343_v41 = vadd.f32 %v8342_v38, %v8341_v36  ;;  %v8344_v42 = vpop.f32.mrb[10].mxu0  ;;  %v8453_v44 = vpop.f32.mrb[8].mxu1 }
 0x121   : > { %v8345_v45 = vpop.f32.mrb[11].mxu0  ;;  %v8454_v48 = vpop.f32.mrb[9].mxu1 }
 0x122   : > { %v1549_v46 = vadd.f32 %v8343_v41, %v11019_v56  ;;  %v8346_v47 = vadd.f32 %v8345_v45, %v8344_v42  ;;  %v8455_v49 = vadd.f32 %v8454_v48, %v8453_v44  ;;  %v8456_v50 = vpop.f32.mrb[10].mxu1 }
 0x123   : > { %1957 = vmatmul.mubr.bf16.gmra.mrb[116].mxu0 %v1139_v39  ;;  %v8457_v52 = vpop.f32.mrb[11].mxu1 }
 0x124   : > { %v1552_v51 = vadd.f32 %v8346_v47, %v11019_v56  ;;  %1964 = vmatprep.mubr.bf16.mxu0 %v1147_v43  ;;  %v11051_v55 = vadd.f32 %v8455_v49, %v1549_v46  ;;  %v8458_v57 = vadd.f32 %v8457_v52, %v8456_v50 }
 0x126   : > { %v8347_v60 = vpop.f32.mrb[12].mxu0  ;;  %v11055_v61 = vadd.f32 %v8458_v57, %v1552_v51 }
 0x127   : > { %v8348_v62 = vpop.f32.mrb[13].mxu0 }
 0x128   : > { %v8349_v0 = vadd.f32 %v8348_v62, %v8347_v60  ;;  %v8350_v1 = vpop.f32.mrb[14].mxu0  ;;  %v8459_v3 = vpop.f32.mrb[12].mxu1 }
 0x129   : > { %v8351_v4 = vpop.f32.mrb[15].mxu0  ;;  %v8460_v7 = vpop.f32.mrb[13].mxu1 }
 0x12a   : > { %v1557_v5 = vadd.f32 %v8349_v0, %v11019_v56  ;;  %v8352_v6 = vadd.f32 %v8351_v4, %v8350_v1  ;;  %v8461_v8 = vadd.f32 %v8460_v7, %v8459_v3  ;;  %v8462_v10 = vpop.f32.mrb[14].mxu1 }
 0x12b   : > { %1965 = vmatmul.mubr.bf16.gmra.mrb[120].mxu0 %v1146_v63  ;;  %v8463_v12 = vpop.f32.mrb[15].mxu1 }
 0x12c   : > { %v1560_v11 = vadd.f32 %v8352_v6, %v11019_v56  ;;  %1972 = vmatprep.mubr.bf16.mxu0 %v1154_v2  ;;  %v11061_v16 = vadd.f32 %v8461_v8, %v1557_v5  ;;  %v8464_v17 = vadd.f32 %v8463_v12, %v8462_v10 }
 0x12e   : > { %v8353_v18 = vpop.f32.mrb[16].mxu0  ;;  %v11063_v19 = vadd.f32 %v8464_v17, %v1560_v11 }
 0x12f   : > { %v8354_v20 = vpop.f32.mrb[17].mxu0 }
 0x130   : > { %v8355_v22 = vadd.f32 %v8354_v20, %v8353_v18  ;;  %v8356_v23 = vpop.f32.mrb[18].mxu0  ;;  %v8465_v24 = vpop.f32.mrb[16].mxu1 }
 0x131   : > { %v8357_v25 = vpop.f32.mrb[19].mxu0  ;;  %v8466_v28 = vpop.f32.mrb[17].mxu1 }
 0x132   : > { %v1565_v26 = vadd.f32 %v8355_v22, %v11019_v56  ;;  %v8358_v27 = vadd.f32 %v8357_v25, %v8356_v23  ;;  %v8467_v29 = vadd.f32 %v8466_v28, %v8465_v24  ;;  %v8468_v30 = vpop.f32.mrb[18].mxu1 }
 0x133   : > { %1973 = vmatmul.mubr.bf16.gmra.mrb[124].mxu0 %v1153_v21  ;;  %v8469_v33 = vpop.f32.mrb[19].mxu1 }
 0x134   : > { %v1568_v31 = vadd.f32 %v8358_v27, %v11019_v56  ;;  %v11067_v34 = vadd.f32 %v8467_v29, %v1565_v26  ;;  %v8470_v35 = vadd.f32 %v8469_v33, %v8468_v30 }
 0x136   : > { %v8359_v36 = vpop.f32.mrb[20].mxu0  ;;  %v11069_v38 = vadd.f32 %v8470_v35, %v1568_v31 }
 0x137   : > { %v8360_v39 = vpop.f32.mrb[21].mxu0 }
 0x138   : > { %v8361_v40 = vadd.f32 %v8360_v39, %v8359_v36  ;;  %v8362_v41 = vpop.f32.mrb[22].mxu0  ;;  %v8471_v42 = vpop.f32.mrb[20].mxu1 }
 0x139   : > { %v8363_v43 = vpop.f32.mrb[23].mxu0  ;;  %v8472_v46 = vpop.f32.mrb[21].mxu1 }
 0x13a   : > { %v1573_v44 = vadd.f32 %v8361_v40, %v11019_v56  ;;  %v8364_v45 = vadd.f32 %v8363_v43, %v8362_v41  ;;  %v8473_v47 = vadd.f32 %v8472_v46, %v8471_v42  ;;  %v8474_v48 = vpop.f32.mrb[22].mxu1 }
 0x13b   : > { %v8475_v50 = vpop.f32.mrb[23].mxu1 }
 0x13c   : > { %v1576_v49 = vadd.f32 %v8364_v45, %v11019_v56  ;;  %v11073_v51 = vadd.f32 %v8473_v47, %v1573_v44  ;;  %v8476_v52 = vadd.f32 %v8475_v50, %v8474_v48 }
 0x13e   : > { %v8365_v53 = vpop.f32.mrb[24].mxu0  ;;  %v11075_v54 = vadd.f32 %v8476_v52, %v1576_v49 }
 0x13f   : > { %v8366_v57 = vpop.f32.mrb[25].mxu0 }
 0x140   : > { %v8367_v58 = vadd.f32 %v8366_v57, %v8365_v53  ;;  %v8368_v59 = vpop.f32.mrb[26].mxu0  ;;  %v8477_v60 = vpop.f32.mrb[24].mxu1 }
 0x141   : > { %v8369_v62 = vpop.f32.mrb[27].mxu0  ;;  %v8478_v1 = vpop.f32.mrb[25].mxu1 }
 0x142   : > { %v1581_v63 = vadd.f32 %v8367_v58, %v11019_v56  ;;  %v8370_v0 = vadd.f32 %v8369_v62, %v8368_v59  ;;  %v8479_v2 = vadd.f32 %v8478_v1, %v8477_v60  ;;  %v8480_v3 = vpop.f32.mrb[26].mxu1 }
 0x143   : > { %v8481_v5 = vpop.f32.mrb[27].mxu1 }
 0x144   : > { %v1584_v4 = vadd.f32 %v8370_v0, %v11019_v56  ;;  %v11079_v6 = vadd.f32 %v8479_v2, %v1581_v63  ;;  %v8482_v7 = vadd.f32 %v8481_v5, %v8480_v3 }
 0x146   : > { %v8371_v8 = vpop.f32.mrb[28].mxu0  ;;  %v11081_v10 = vadd.f32 %v8482_v7, %v1584_v4 }
 0x147   : > { %v8372_v11 = vpop.f32.mrb[29].mxu0 }
 0x148   : > { %v8373_v12 = vadd.f32 %v8372_v11, %v8371_v8  ;;  %v8374_v13 = vpop.f32.mrb[30].mxu0  ;;  %v8483_v14 = vpop.f32.mrb[28].mxu1 }
 0x149   : > { %v8375_v17 = vpop.f32.mrb[31].mxu0  ;;  %v8484_v21 = vpop.f32.mrb[29].mxu1 }
 0x14a   : > { %v1589_v18 = vadd.f32 %v8373_v12, %v11019_v56  ;;  %v8376_v20 = vadd.f32 %v8375_v17, %v8374_v13  ;;  %v8485_v22 = vadd.f32 %v8484_v21, %v8483_v14  ;;  %v8486_v23 = vpop.f32.mrb[30].mxu1 }
 0x14b   : > { %v8487_v25 = vpop.f32.mrb[31].mxu1 }
 0x14c   : > { %v1592_v24 = vadd.f32 %v8376_v20, %v11019_v56  ;;  %v11085_v26 = vadd.f32 %v8485_v22, %v1589_v18  ;;  %v8488_v27 = vadd.f32 %v8487_v25, %v8486_v23 }
 0x14e   : > { %v8377_v28 = vpop.f32.mrb[32].mxu0  ;;  %v11087_v29 = vadd.f32 %v8488_v27, %v1592_v24 }
 0x14f   : > { %v8378_v30 = vpop.f32.mrb[33].mxu0 }
 0x150   : > { %v8379_v31 = vadd.f32 %v8378_v30, %v8377_v28  ;;  %v8380_v33 = vpop.f32.mrb[34].mxu0  ;;  %v8489_v35 = vpop.f32.mrb[32].mxu1 }
 0x151   : > { %v8381_v36 = vpop.f32.mrb[35].mxu0  ;;  %v8490_v41 = vpop.f32.mrb[33].mxu1 }
 0x152   : > { %v1597_v39 = vadd.f32 %v8379_v31, %v11019_v56  ;;  %v8382_v40 = vadd.f32 %v8381_v36, %v8380_v33  ;;  %v8491_v42 = vadd.f32 %v8490_v41, %v8489_v35  ;;  %v8492_v43 = vpop.f32.mrb[34].mxu1 }
 0x153   : > { %v8493_v45 = vpop.f32.mrb[35].mxu1 }
 0x154   : > { %v1600_v44 = vadd.f32 %v8382_v40, %v11019_v56  ;;  %v8494_v46 = vadd.f32 %v8493_v45, %v8492_v43  ;;  %v11091_v47 = vadd.f32 %v8491_v42, %v1597_v39 }
 0x156   : > { %v8383_v48 = vpop.f32.mrb[36].mxu0  ;;  %v11093_v50 = vadd.f32 %v8494_v46, %v1600_v44 }
 0x157   : > { %v8384_v49 = vpop.f32.mrb[37].mxu0 }
 0x158   : > { %v8385_v52 = vadd.f32 %v8384_v49, %v8383_v48  ;;  %v8386_v53 = vpop.f32.mrb[38].mxu0  ;;  %v8495_v57 = vpop.f32.mrb[36].mxu1 }
 0x159   : > { %v8387_v58 = vpop.f32.mrb[39].mxu0  ;;  %v8496_v62 = vpop.f32.mrb[37].mxu1 }
 0x15a   : > { %v1605_v59 = vadd.f32 %v8385_v52, %v11019_v56  ;;  %v8388_v60 = vadd.f32 %v8387_v58, %v8386_v53  ;;  %v8497_v63 = vadd.f32 %v8496_v62, %v8495_v57  ;;  %v8498_v0 = vpop.f32.mrb[38].mxu1 }
 0x15b   : > { %v8499_v2 = vpop.f32.mrb[39].mxu1 }
 0x15c   : > { %v1608_v1 = vadd.f32 %v8388_v60, %v11019_v56  ;;  %v8500_v3 = vadd.f32 %v8499_v2, %v8498_v0  ;;  %v11097_v4 = vadd.f32 %v8497_v63, %v1605_v59 }
 0x15e   : > { %v8389_v5 = vpop.f32.mrb[40].mxu0  ;;  %v11099_v8 = vadd.f32 %v8500_v3, %v1608_v1 }
 0x15f   : > { %v8390_v7 = vpop.f32.mrb[41].mxu0 }
 0x160   : > { %v8391_v11 = vadd.f32 %v8390_v7, %v8389_v5  ;;  %v8392_v12 = vpop.f32.mrb[42].mxu0  ;;  %v8501_v13 = vpop.f32.mrb[40].mxu1 }
 0x161   : > { %v8393_v14 = vpop.f32.mrb[43].mxu0  ;;  %v8502_v20 = vpop.f32.mrb[41].mxu1 }
 0x162   : > { %v1613_v17 = vadd.f32 %v8391_v11, %v11019_v56  ;;  %v8394_v18 = vadd.f32 %v8393_v14, %v8392_v12  ;;  %v8503_v21 = vadd.f32 %v8502_v20, %v8501_v13  ;;  %v8504_v22 = vpop.f32.mrb[42].mxu1 }
 0x163   : > { %v8505_v24 = vpop.f32.mrb[43].mxu1 }
 0x164   : > { %v1616_v23 = vadd.f32 %v8394_v18, %v11019_v56  ;;  %v8506_v25 = vadd.f32 %v8505_v24, %v8504_v22  ;;  %v11103_v27 = vadd.f32 %v8503_v21, %v1613_v17 }
 0x166   : > { %v8395_v28 = vpop.f32.mrb[44].mxu0  ;;  %v11105_v31 = vadd.f32 %v8506_v25, %v1616_v23 }
 0x167   : > { %v8396_v30 = vpop.f32.mrb[45].mxu0 }
 0x168   : > { %v8397_v33 = vadd.f32 %v8396_v30, %v8395_v28  ;;  %v8398_v35 = vpop.f32.mrb[46].mxu0  ;;  %v8507_v36 = vpop.f32.mrb[44].mxu1 }
 0x169   : > { %v8399_v39 = vpop.f32.mrb[47].mxu0  ;;  %v8508_v42 = vpop.f32.mrb[45].mxu1 }
 0x16a   : > { %v1621_v40 = vadd.f32 %v8397_v33, %v11019_v56  ;;  %v8400_v41 = vadd.f32 %v8399_v39, %v8398_v35  ;;  %v8509_v43 = vadd.f32 %v8508_v42, %v8507_v36  ;;  %v8510_v44 = vpop.f32.mrb[46].mxu1 }
 0x16b   : > { %v8511_v46 = vpop.f32.mrb[47].mxu1 }
 0x16c   : > { %v1624_v45 = vadd.f32 %v8400_v41, %v11019_v56  ;;  %v8512_v48 = vadd.f32 %v8511_v46, %v8510_v44  ;;  %v11109_v49 = vadd.f32 %v8509_v43, %v1621_v40 }
 0x16e   : > { %v8401_v52 = vpop.f32.mrb[48].mxu0  ;;  %v11111_v57 = vadd.f32 %v8512_v48, %v1624_v45 }
 0x16f   : > { %v8402_v53 = vpop.f32.mrb[49].mxu0 }
 0x170   : > { %v8403_v58 = vadd.f32 %v8402_v53, %v8401_v52  ;;  %v8404_v59 = vpop.f32.mrb[50].mxu0  ;;  %v8513_v60 = vpop.f32.mrb[48].mxu1 }
 0x171   : > { %v8405_v62 = vpop.f32.mrb[51].mxu0  ;;  %v8514_v1 = vpop.f32.mrb[49].mxu1 }
 0x172   : > { %v1629_v63 = vadd.f32 %v8403_v58, %v11019_v56  ;;  %v8406_v0 = vadd.f32 %v8405_v62, %v8404_v59  ;;  %v8515_v2 = vadd.f32 %v8514_v1, %v8513_v60  ;;  %v8516_v3 = vpop.f32.mrb[50].mxu1 }
 0x173   : > { %v8517_v7 = vpop.f32.mrb[51].mxu1 }
 0x174   : > { %v1632_v5 = vadd.f32 %v8406_v0, %v11019_v56  ;;  %v8518_v11 = vadd.f32 %v8517_v7, %v8516_v3  ;;  %v11115_v12 = vadd.f32 %v8515_v2, %v1629_v63  ;;  %v9443_v63 = vld [vmem:[%s15255_s29] sm:$0xff]  }
 0x175   : > { %8985 = vmatprep.subr.bf16.mxu0 %v9443_v63 }
 0x176   : > { %v8407_v13 = vpop.f32.mrb[52].mxu0  ;;  %v11117_v17 = vadd.f32 %v8518_v11, %v1632_v5  ;;  %8986 = vmatpush3.bf16.msra.mxu0 %v9443_v63 }
 0x177   : > { %v8408_v14 = vpop.f32.mrb[53].mxu0 }
 0x178   : > { %v8409_v18 = vadd.f32 %v8408_v14, %v8407_v13  ;;  %v8410_v20 = vpop.f32.mrb[54].mxu0  ;;  %v8519_v21 = vpop.f32.mrb[52].mxu1 }
 0x179   : > { %v8411_v22 = vpop.f32.mrb[55].mxu0  ;;  %v8520_v25 = vpop.f32.mrb[53].mxu1 }
 0x17a   : > { %v1637_v23 = vadd.f32 %v8409_v18, %v11019_v56  ;;  %v8412_v24 = vadd.f32 %v8411_v22, %v8410_v20  ;;  %v8521_v28 = vadd.f32 %v8520_v25, %v8519_v21  ;;  %v8522_v30 = vpop.f32.mrb[54].mxu1 }
 0x17b   : > { %v8523_v35 = vpop.f32.mrb[55].mxu1 }
 0x17c   : > { %v1640_v33 = vadd.f32 %v8412_v24, %v11019_v56  ;;  %v8524_v36 = vadd.f32 %v8523_v35, %v8522_v30  ;;  %v11121_v39 = vadd.f32 %v8521_v28, %v1637_v23 }
 0x17e   : > { %v8413_v40 = vpop.f32.mrb[56].mxu0  ;;  %v11123_v42 = vadd.f32 %v8524_v36, %v1640_v33 }
 0x17f   : > { %v8414_v41 = vpop.f32.mrb[57].mxu0 }
 0x180   : > { %v8415_v43 = vadd.f32 %v8414_v41, %v8413_v40  ;;  %v8416_v44 = vpop.f32.mrb[58].mxu0  ;;  %v8525_v45 = vpop.f32.mrb[56].mxu1 }
 0x181   : > { %v8417_v46 = vpop.f32.mrb[59].mxu0  ;;  %v8526_v53 = vpop.f32.mrb[57].mxu1 }
 0x182   : > { %v1645_v48 = vadd.f32 %v8415_v43, %v11019_v56  ;;  %v8418_v52 = vadd.f32 %v8417_v46, %v8416_v44  ;;  %v8527_v58 = vadd.f32 %v8526_v53, %v8525_v45  ;;  %v8528_v59 = vpop.f32.mrb[58].mxu1  ;;  %v9444_v43 = vld [vmem:[%s15255_s29 + $0x8] sm:$0xff]  }
 0x183   : > { %v8529_v62 = vpop.f32.mrb[59].mxu1  ;;  %8987 = vmatprep.subr.bf16.mxu0 %v9444_v43 }
 0x184   : > { %v1648_v60 = vadd.f32 %v8418_v52, %v11019_v56  ;;  %v8530_v0 = vadd.f32 %v8529_v62, %v8528_v59  ;;  %v11130_v1 = vadd.f32 %v8527_v58, %v1645_v48  ;;  %8988 = vmatpush3.bf16.msra.mxu0 %v9444_v43  ;;  %v9446_v62 = vld [vmem:[%s15255_s29 + $0x18] sm:$0xff]  }
 0x186   : > { %v8419_v2 = vpop.f32.mrb[60].mxu0  ;;  %v11132_v5 = vadd.f32 %v8530_v0, %v1648_v60  ;;  %v9445_v60 = vld [vmem:[%s15255_s29 + $0x10] sm:$0xff]  }
 0x187   : > { %v8420_v3 = vpop.f32.mrb[61].mxu0  ;;  %8989 = vmatprep.subr.bf16.mxu0 %v9445_v60 }
 0x188   : > { %v8421_v7 = vadd.f32 %v8420_v3, %v8419_v2  ;;  %v8422_v11 = vpop.f32.mrb[62].mxu0  ;;  %v8531_v13 = vpop.f32.mrb[60].mxu1  ;;  %8990 = vmatpush3.bf16.msra.mxu0 %v9445_v60 }
 0x189   : > { %v8423_v14 = vpop.f32.mrb[63].mxu0  ;;  %v8532_v21 = vpop.f32.mrb[61].mxu1  ;;  %8991 = vmatprep.subr.bf16.mxu0 %v9446_v62 }
 0x18a   : > { %v1653_v18 = vadd.f32 %v8421_v7, %v11019_v56  ;;  %v8424_v20 = vadd.f32 %v8423_v14, %v8422_v11  ;;  %v8533_v22 = vadd.f32 %v8532_v21, %v8531_v13  ;;  %v8534_v23 = vpop.f32.mrb[62].mxu1 }
 0x18b   : > { %v8535_v25 = vpop.f32.mrb[63].mxu1 }
 0x18c   : > { %v1656_v24 = vadd.f32 %v8424_v20, %v11019_v56  ;;  %v8536_v28 = vadd.f32 %v8535_v25, %v8534_v23  ;;  %v11136_v30 = vadd.f32 %v8533_v22, %v1653_v18  ;;  %8992 = vmatpush3.bf16.msra.mxu0 %v9446_v62 }
 0x18e   : > { %v8553_v33 = vpop.f32.mrb[64].mxu0  ;;  %v11138_v36 = vadd.f32 %v8536_v28, %v1656_v24 }
 0x18f   : > { %v8554_v35 = vpop.f32.mrb[65].mxu0 }
 0x190   : > { %v8555_v40 = vadd.f32 %v8554_v35, %v8553_v33  ;;  %v8556_v41 = vpop.f32.mrb[66].mxu0  ;;  %v8907_v45 = vpop.f32.mrb[64].mxu1  ;;  %v9448_v33 = vld [vmem:[%s15255_s29 + $0x28] sm:$0xff]  }
 0x191   : > { %v8557_v44 = vpop.f32.mrb[67].mxu0  ;;  %v2015_v56 = vpop.f32.mrb[65].mxu1 }
 0x192   : > { %v8558_v46 = vadd.f32 %v8557_v44, %v8556_v41  ;;  %v1855_v48 = vadd.f32 %v8555_v40, %v11025_v9  ;;  %v8908_v52 = vpop.f32.mrb[66].mxu1 }
 0x193   : > { %v2018_v59 = vpop.f32.mrb[67].mxu1 }
 0x194   : > { %v2016_v53 = vadd.f32 %v2015_v56, %v1855_v48  ;;  %v1858_v58 = vadd.f32 %v8558_v46, %v11032_v15  ;;  %v9447_v15 = vld [vmem:[%s15255_s29 + $0x20] sm:$0xff]  }
 0x195   : > { %8993 = vmatprep.subr.bf16.mxu0 %v9447_v15 }
 0x196   : > { %v2019_v63 = vadd.f32 %v2018_v59, %v1858_v58  ;;  %v8559_v0 = vpop.f32.mrb[68].mxu0  ;;  %v2142_v2 = vmax.f32 %v2016_v53, 0.0  ;;  %8994 = vmatpush3.bf16.msra.mxu0 %v9447_v15 }
 0x197   : > { %v8560_v9 = vpop.f32.mrb[69].mxu0  ;;  %8995 = vmatprep.subr.bf16.mxu0 %v9448_v33 }
 0x198   : > { %v2143_v3 = vmax.f32 %v2019_v63, 0.0  ;;  %v8561_v7 = vadd.f32 %v8560_v9, %v8559_v0  ;;  %v8562_v11 = vpop.f32.mrb[70].mxu0  ;;  %v8911_v14 = vpop.f32.mrb[68].mxu1  ;;  %v9450_v0 = vld [vmem:[%s15255_s29 + $0x38] sm:$0xff]  }
 0x199   : > { %v8563_v13 = vpop.f32.mrb[71].mxu0  ;;  %v2031_v22 = vpop.f32.mrb[69].mxu1 }
 0x19a   : > { %v1863_v18 = vadd.f32 %v8561_v7, %v11038_v32  ;;  %v8564_v20 = vadd.f32 %v8563_v13, %v8562_v11  ;;  %v2191_v21 = vpack.c.bf16 %v2143_v3, %v2142_v2  ;;  %v8912_v23 = vpop.f32.mrb[70].mxu1  ;;  %8996 = vmatpush3.bf16.msra.mxu0 %v9448_v33 }
 0x19b   : > { %v2034_v28 = vpop.f32.mrb[71].mxu1 }
 0x19c   : > { %v2024_v24 = vadd.f32 %v8907_v45, %v1863_v18  ;;  %v1866_v25 = vadd.f32 %v8564_v20, %v11042_v37  ;;  %8953 = vmatprep.mubr.bf16.mxu1 %v2191_v21  ;;  %v9449_v37 = vld [vmem:[%s15255_s29 + $0x30] sm:$0xff]  }
 0x19d   : > { %8997 = vmatprep.subr.bf16.mxu0 %v9449_v37 }
 0x19e   : > { %v2027_v35 = vadd.f32 %v8908_v52, %v1866_v25  ;;  %v8565_v40 = vpop.f32.mrb[72].mxu0  ;;  %v2144_v32 = vmax.f32 %v2024_v24, 0.0  ;;  %8998 = vmatpush3.bf16.msra.mxu0 %v9449_v37 }
 0x19f   : > { %v8566_v41 = vpop.f32.mrb[73].mxu0  ;;  %8999 = vmatprep.subr.bf16.mxu0 %v9450_v0 }
 0x1a0   : > { %v2145_v43 = vmax.f32 %v2027_v35, 0.0  ;;  %v8567_v44 = vadd.f32 %v8566_v41, %v8565_v40  ;;  %v8568_v46 = vpop.f32.mrb[74].mxu0  ;;  %v11162_v48 = vpop.f32.mrb[72].mxu1 }
 0x1a1   : > { %v8569_v45 = vpop.f32.mrb[75].mxu0  ;;  %v2047_v52 = vpop.f32.mrb[73].mxu1 }
 0x1a2   : > { %v2192_v56 = vpack.c.bf16 %v2145_v43, %v2144_v32  ;;  %v8570_v53 = vadd.f32 %v8569_v45, %v8568_v46  ;;  %v1871_v58 = vadd.f32 %v8567_v44, %v11051_v55  ;;  %v11165_v59 = vpop.f32.mrb[74].mxu1  ;;  %9000 = vmatpush3.bf16.msra.mxu0 %v9450_v0 }
 0x1a3   : > { %v2050_v63 = vpop.f32.mrb[75].mxu1 }
 0x1a4   : > { %v2032_v60 = vadd.f32 %v2031_v22, %v1871_v58  ;;  %8954 = vmatmul.mubr.bf16.vlgmr.msra.gmra.mrb[96].mxu1 %v2192_v56  ;;  %v1874_v62 = vadd.f32 %v8570_v53, %v11055_v61 }
 0x1a6   : > { %v2035_v9 = vadd.f32 %v2034_v28, %v1874_v62  ;;  %v8571_v2 = vpop.f32.mrb[76].mxu0  ;;  %v2146_v7 = vmax.f32 %v2032_v60, 0.0 }
 0x1a7   : > { %v8572_v3 = vpop.f32.mrb[77].mxu0 }
 0x1a8   : > { %v2147_v55 = vmax.f32 %v2035_v9, 0.0  ;;  %v8573_v11 = vadd.f32 %v8572_v3, %v8571_v2  ;;  %v8574_v15 = vpop.f32.mrb[78].mxu0  ;;  %v11171_v18 = vpop.f32.mrb[76].mxu1 }
 0x1a9   : > { %v8575_v13 = vpop.f32.mrb[79].mxu0  ;;  %v2063_v22 = vpop.f32.mrb[77].mxu1 }
 0x1aa   : > { %v1879_v61 = vadd.f32 %v8573_v11, %v11061_v16  ;;  %v8576_v20 = vadd.f32 %v8575_v13, %v8574_v15  ;;  %v2193_v21 = vpack.c.bf16 %v2147_v55, %v2146_v7  ;;  %v11174_v24 = vpop.f32.mrb[78].mxu1 }
 0x1ab   : > { %v2066_v33 = vpop.f32.mrb[79].mxu1 }
 0x1ac   : > { %v1882_v25 = vadd.f32 %v8576_v20, %v11063_v19  ;;  %8957 = vmatprep.mubr.bf16.mxu1 %v2193_v21  ;;  %v2040_v28 = vadd.f32 %v8911_v14, %v1879_v61 }
 0x1ae   : > { %v8577_v35 = vpop.f32.mrb[80].mxu0  ;;  %v2043_v40 = vadd.f32 %v8912_v23, %v1882_v25  ;;  %v2148_v44 = vmax.f32 %v2040_v28, 0.0 }
 0x1af   : > { %v8578_v41 = vpop.f32.mrb[81].mxu0 }
 0x1b0   : > { %v8579_v32 = vadd.f32 %v8578_v41, %v8577_v35  ;;  %v8580_v43 = vpop.f32.mrb[82].mxu0  ;;  %v2149_v46 = vmax.f32 %v2043_v40, 0.0  ;;  %v11177_v16 = vpop.f32.mrb[80].mxu1 }
 0x1b1   : > { %v8581_v37 = vpop.f32.mrb[83].mxu0  ;;  %v11180_v58 = vpop.f32.mrb[81].mxu1 }
 0x1b2   : > { %v8582_v45 = vadd.f32 %v8581_v37, %v8580_v43  ;;  %v1887_v56 = vadd.f32 %v8579_v32, %v11067_v34  ;;  %v2194_v53 = vpack.c.bf16 %v2149_v46, %v2148_v44  ;;  %v11182_v19 = vpop.f32.mrb[82].mxu1 }
 0x1b3   : > { %v11185_v60 = vpop.f32.mrb[83].mxu1 }
 0x1b4   : > { %v2048_v14 = vadd.f32 %v2047_v52, %v1887_v56  ;;  %8958 = vmatmul.mubr.bf16.gmra.mrb[100].mxu1 %v2194_v53  ;;  %v1890_v23 = vadd.f32 %v8582_v45, %v11069_v38 }
 0x1b6   : > { %v2051_v62 = vadd.f32 %v2050_v63, %v1890_v23  ;;  %v8583_v0 = vpop.f32.mrb[84].mxu0  ;;  %v2150_v2 = vmax.f32 %v2048_v14, 0.0 }
 0x1b7   : > { %v8584_v9 = vpop.f32.mrb[85].mxu0 }
 0x1b8   : > { %v2151_v3 = vmax.f32 %v2051_v62, 0.0  ;;  %v8585_v7 = vadd.f32 %v8584_v9, %v8583_v0  ;;  %v8586_v55 = vpop.f32.mrb[86].mxu0  ;;  %v11187_v34 = vpop.f32.mrb[84].mxu1 }
 0x1b9   : > { %v8587_v11 = vpop.f32.mrb[87].mxu0  ;;  %v11190_v52 = vpop.f32.mrb[85].mxu1 }
 0x1ba   : > { %v1895_v15 = vadd.f32 %v8585_v7, %v11073_v51  ;;  %v8588_v13 = vadd.f32 %v8587_v11, %v8586_v55  ;;  %v2195_v61 = vpack.c.bf16 %v2151_v3, %v2150_v2  ;;  %v11192_v20 = vpop.f32.mrb[86].mxu1 }
 0x1bb   : > { %v11196_v21 = vpop.f32.mrb[87].mxu1 }
 0x1bc   : > { %v1898_v38 = vadd.f32 %v8588_v13, %v11075_v54  ;;  %8961 = vmatprep.mubr.bf16.mxu1 %v2195_v61  ;;  %v2056_v63 = vadd.f32 %v11162_v48, %v1895_v15 }
 0x1be   : > { %v8589_v25 = vpop.f32.mrb[88].mxu0  ;;  %v2059_v28 = vadd.f32 %v11165_v59, %v1898_v38  ;;  %v2152_v51 = vmax.f32 %v2056_v63, 0.0 }
 0x1bf   : > { %v8590_v35 = vpop.f32.mrb[89].mxu0 }
 0x1c0   : > { %v8591_v40 = vadd.f32 %v8590_v35, %v8589_v25  ;;  %v8592_v41 = vpop.f32.mrb[90].mxu0  ;;  %v2153_v32 = vmax.f32 %v2059_v28, 0.0  ;;  %v11199_v44 = vpop.f32.mrb[88].mxu1 }
 0x1c1   : > { %v8593_v43 = vpop.f32.mrb[91].mxu0  ;;  %v11202_v45 = vpop.f32.mrb[89].mxu1 }
 0x1c2   : > { %v8594_v46 = vadd.f32 %v8593_v43, %v8592_v41  ;;  %v1903_v37 = vadd.f32 %v8591_v40, %v11079_v6  ;;  %v2196_v54 = vpack.c.bf16 %v2153_v32, %v2152_v51  ;;  %v11204_v48 = vpop.f32.mrb[90].mxu1 }
 0x1c3   : > { %v11207_v53 = vpop.f32.mrb[91].mxu1 }
 0x1c4   : > { %v2064_v56 = vadd.f32 %v2063_v22, %v1903_v37  ;;  %8962 = vmatmul.mubr.bf16.gmra.mrb[104].mxu1 %v2196_v54  ;;  %v1906_v59 = vadd.f32 %v8594_v46, %v11081_v10 }
 0x1c6   : > { %v2067_v14 = vadd.f32 %v2066_v33, %v1906_v59  ;;  %v8595_v23 = vpop.f32.mrb[92].mxu0  ;;  %v2154_v0 = vmax.f32 %v2064_v56, 0.0 }
 0x1c7   : > { %v8596_v62 = vpop.f32.mrb[93].mxu0 }
 0x1c8   : > { %v2155_v9 = vmax.f32 %v2067_v14, 0.0  ;;  %v8597_v2 = vadd.f32 %v8596_v62, %v8595_v23  ;;  %v8598_v3 = vpop.f32.mrb[94].mxu0  ;;  %v11209_v6 = vpop.f32.mrb[92].mxu1 }
 0x1c9   : > { %v8599_v7 = vpop.f32.mrb[95].mxu0  ;;  %v11212_v22 = vpop.f32.mrb[93].mxu1 }
 0x1ca   : > { %v1911_v55 = vadd.f32 %v8597_v2, %v11085_v26  ;;  %v8600_v11 = vadd.f32 %v8599_v7, %v8598_v3  ;;  %v2197_v15 = vpack.c.bf16 %v2155_v9, %v2154_v0  ;;  %v11214_v13 = vpop.f32.mrb[94].mxu1 }
 0x1cb   : > { %v11218_v61 = vpop.f32.mrb[95].mxu1 }
 0x1cc   : > { %v1914_v10 = vadd.f32 %v8600_v11, %v11087_v29  ;;  %8965 = vmatprep.mubr.bf16.mxu1 %v2197_v15  ;;  %v2072_v33 = vadd.f32 %v11171_v18, %v1911_v55 }
 0x1ce   : > { %v8601_v38 = vpop.f32.mrb[96].mxu0  ;;  %v2075_v63 = vadd.f32 %v11174_v24, %v1914_v10  ;;  %v2156_v26 = vmax.f32 %v2072_v33, 0.0 }
 0x1cf   : > { %v8602_v25 = vpop.f32.mrb[97].mxu0 }
 0x1d0   : > { %v8603_v28 = vadd.f32 %v8602_v25, %v8601_v38  ;;  %v8604_v35 = vpop.f32.mrb[98].mxu0  ;;  %v2157_v40 = vmax.f32 %v2075_v63, 0.0 }
 0x1d1   : > { %v8605_v41 = vpop.f32.mrb[99].mxu0 }
 0x1d2   : > { %v1919_v51 = vadd.f32 %v8603_v28, %v11091_v47  ;;  %v8606_v32 = vadd.f32 %v8605_v41, %v8604_v35  ;;  %v2198_v43 = vpack.c.bf16 %v2157_v40, %v2156_v26 }
 0x1d4   : > { %v1922_v29 = vadd.f32 %v8606_v32, %v11093_v50  ;;  %v2080_v46 = vadd.f32 %v11180_v58, %v1919_v51  ;;  %8966 = vmatmul.mubr.bf16.gmra.mrb[108].mxu1 %v2198_v43 }
 0x1d6   : > { %v2083_v18 = vadd.f32 %v11185_v60, %v1922_v29  ;;  %v8607_v37 = vpop.f32.mrb[100].mxu0  ;;  %v2158_v24 = vmax.f32 %v2080_v46, 0.0 }
 0x1d7   : > { %v8608_v54 = vpop.f32.mrb[101].mxu0 }
 0x1d8   : > { %v2159_v56 = vmax.f32 %v2083_v18, 0.0  ;;  %v8609_v59 = vadd.f32 %v8608_v54, %v8607_v37  ;;  %v8610_v14 = vpop.f32.mrb[102].mxu0 }
 0x1d9   : > { %v8611_v23 = vpop.f32.mrb[103].mxu0 }
 0x1da   : > { %v1927_v62 = vadd.f32 %v8609_v59, %v11097_v4  ;;  %v8612_v0 = vadd.f32 %v8611_v23, %v8610_v14  ;;  %v2199_v47 = vpack.c.bf16 %v2159_v56, %v2158_v24 }
 0x1dc   : > { %v2088_v9 = vadd.f32 %v11177_v16, %v1927_v62  ;;  %v1930_v50 = vadd.f32 %v8612_v0, %v11099_v8  ;;  %8969 = vmatprep.mubr.bf16.mxu1 %v2199_v47 }
 0x1de   : > { %v2091_v58 = vadd.f32 %v11182_v19, %v1930_v50  ;;  %v8613_v2 = vpop.f32.mrb[104].mxu0  ;;  %v2160_v3 = vmax.f32 %v2088_v9, 0.0 }
 0x1df   : > { %v8614_v60 = vpop.f32.mrb[105].mxu0 }
 0x1e0   : > { %v2161_v7 = vmax.f32 %v2091_v58, 0.0  ;;  %v8615_v55 = vadd.f32 %v8614_v60, %v8613_v2  ;;  %v8616_v11 = vpop.f32.mrb[106].mxu0 }
 0x1e1   : > { %v8617_v15 = vpop.f32.mrb[107].mxu0 }
 0x1e2   : > { %v1935_v10 = vadd.f32 %v8615_v55, %v11103_v27  ;;  %v8618_v33 = vadd.f32 %v8617_v15, %v8616_v11  ;;  %v2200_v4 = vpack.c.bf16 %v2161_v7, %v2160_v3 }
 0x1e4   : > { %v1938_v38 = vadd.f32 %v8618_v33, %v11105_v31  ;;  %v2096_v16 = vadd.f32 %v11190_v52, %v1935_v10  ;;  %8970 = vmatmul.mubr.bf16.gmra.mrb[112].mxu1 %v2200_v4 }
 0x1e6   : > { %v2099_v8 = vadd.f32 %v11196_v21, %v1938_v38  ;;  %v8619_v63 = vpop.f32.mrb[108].mxu0  ;;  %v2162_v25 = vmax.f32 %v2096_v16, 0.0 }
 0x1e7   : > { %v8620_v19 = vpop.f32.mrb[109].mxu0 }
 0x1e8   : > { %v2163_v28 = vmax.f32 %v2099_v8, 0.0  ;;  %v8621_v35 = vadd.f32 %v8620_v19, %v8619_v63  ;;  %v8622_v26 = vpop.f32.mrb[110].mxu0 }
 0x1e9   : > { %v8623_v40 = vpop.f32.mrb[111].mxu0 }
 0x1ea   : > { %v1943_v41 = vadd.f32 %v8621_v35, %v11109_v49  ;;  %v8624_v51 = vadd.f32 %v8623_v40, %v8622_v26  ;;  %v2201_v27 = vpack.c.bf16 %v2163_v28, %v2162_v25 }
 0x1ec   : > { %v2104_v32 = vadd.f32 %v11187_v34, %v1943_v41  ;;  %v1946_v31 = vadd.f32 %v8624_v51, %v11111_v57  ;;  %8973 = vmatprep.mubr.bf16.mxu1 %v2201_v27  ;;  %v9451_v51 = vld [vmem:[%s15222_s7] sm:$0xff]  }
 0x1ed   : > { %9033 = vmatprep.subr.bf16.mxu1 %v9451_v51 }
 0x1ee   : > { %v2107_v52 = vadd.f32 %v11192_v20, %v1946_v31  ;;  %v8625_v43 = vpop.f32.mrb[112].mxu0  ;;  %v2164_v29 = vmax.f32 %v2104_v32, 0.0  ;;  %9034 = vmatpush3.bf16.msra.mxu1 %v9451_v51 }
 0x1ef   : > { %v8626_v21 = vpop.f32.mrb[113].mxu0 }
 0x1f0   : > { %v2165_v46 = vmax.f32 %v2107_v52, 0.0  ;;  %v8627_v18 = vadd.f32 %v8626_v21, %v8625_v43  ;;  %v8628_v37 = vpop.f32.mrb[114].mxu0 }
 0x1f1   : > { %v8629_v54 = vpop.f32.mrb[115].mxu0 }
 0x1f2   : > { %v1951_v24 = vadd.f32 %v8627_v18, %v11115_v12  ;;  %v8630_v56 = vadd.f32 %v8629_v54, %v8628_v37  ;;  %v2202_v49 = vpack.c.bf16 %v2165_v46, %v2164_v29  ;;  %v9454_v29 = vld [vmem:[%s15222_s7 + $0x18] sm:$0xff]  }
 0x1f4   : > { %v1954_v59 = vadd.f32 %v8630_v56, %v11117_v17  ;;  %v2112_v34 = vadd.f32 %v11202_v45, %v1951_v24  ;;  %8974 = vmatmul.mubr.bf16.gmra.mrb[116].mxu1 %v2202_v49  ;;  %v9455_v49 = vld [vmem:[%s15222_s7 + $0x20] sm:$0xff]  }
 0x1f6   : > { %v2115_v57 = vadd.f32 %v11207_v53, %v1954_v59  ;;  %v8631_v14 = vpop.f32.mrb[116].mxu0  ;;  %v2166_v23 = vmax.f32 %v2112_v34, 0.0  ;;  %v9456_v34 = vld [vmem:[%s15222_s7 + $0x28] sm:$0xff]  }
 0x1f7   : > { %v8632_v20 = vpop.f32.mrb[117].mxu0 }
 0x1f8   : > { %v2167_v62 = vmax.f32 %v2115_v57, 0.0  ;;  %v8633_v0 = vadd.f32 %v8632_v20, %v8631_v14  ;;  %v8634_v47 = vpop.f32.mrb[118].mxu0  ;;  %v9457_v57 = vld [vmem:[%s15222_s7 + $0x30] sm:$0xff]  }
 0x1f9   : > { %v8635_v9 = vpop.f32.mrb[119].mxu0 }
 0x1fa   : > { %v1959_v50 = vadd.f32 %v8633_v0, %v11121_v39  ;;  %v8636_v58 = vadd.f32 %v8635_v9, %v8634_v47  ;;  %v2203_v12 = vpack.c.bf16 %v2167_v62, %v2166_v23 }
 0x1fc   : > { %v2120_v2 = vadd.f32 %v11199_v44, %v1959_v50  ;;  %v1962_v17 = vadd.f32 %v8636_v58, %v11123_v42  ;;  %8977 = vmatprep.mubr.bf16.mxu1 %v2203_v12 }
 0x1fe   : > { %v2123_v45 = vadd.f32 %v11204_v48, %v1962_v17  ;;  %v8637_v60 = vpop.f32.mrb[120].mxu0  ;;  %v2168_v3 = vmax.f32 %v2120_v2, 0.0 }
 0x1ff   : > { %v8638_v53 = vpop.f32.mrb[121].mxu0 }
 0x200   : > { %v2169_v7 = vmax.f32 %v2123_v45, 0.0  ;;  %v8639_v55 = vadd.f32 %v8638_v53, %v8637_v60  ;;  %v8640_v11 = vpop.f32.mrb[122].mxu0 }
 0x201   : > { %v8641_v15 = vpop.f32.mrb[123].mxu0 }
 0x202   : > { %v1967_v10 = vadd.f32 %v8639_v55, %v11130_v1  ;;  %v8642_v33 = vadd.f32 %v8641_v15, %v8640_v11  ;;  %v2204_v39 = vpack.c.bf16 %v2169_v7, %v2168_v3 }
 0x204   : > { %v1970_v4 = vadd.f32 %v8642_v33, %v11132_v5  ;;  %v2128_v44 = vadd.f32 %v11212_v22, %v1967_v10  ;;  %8978 = vmatmul.mubr.bf16.gmra.mrb[120].mxu1 %v2204_v39 }
 0x206   : > { %v2131_v42 = vadd.f32 %v11218_v61, %v1970_v4  ;;  %v8643_v38 = vpop.f32.mrb[124].mxu0  ;;  %v2170_v16 = vmax.f32 %v2128_v44, 0.0 }
 0x207   : > { %v8644_v48 = vpop.f32.mrb[125].mxu0 }
 0x208   : > { %v2171_v8 = vmax.f32 %v2131_v42, 0.0  ;;  %v8645_v63 = vadd.f32 %v8644_v48, %v8643_v38  ;;  %v8646_v19 = vpop.f32.mrb[126].mxu0 }
 0x209   : > { %v8647_v25 = vpop.f32.mrb[127].mxu0 }
 0x20a   : > { %v1975_v28 = vadd.f32 %v8645_v63, %v11136_v30  ;;  %v8648_v35 = vadd.f32 %v8647_v25, %v8646_v19  ;;  %v2205_v1 = vpack.c.bf16 %v2171_v8, %v2170_v16  ;;  %v9452_v30 = vld [vmem:[%s15222_s7 + $0x8] sm:$0xff]  }
 0x20b   : > { %9035 = vmatprep.subr.bf16.mxu1 %v9452_v30 }
 0x20c   : > { %v2136_v26 = vadd.f32 %v11209_v6, %v1975_v28  ;;  %v1978_v5 = vadd.f32 %v8648_v35, %v11138_v36  ;;  %8981 = vmatprep.mubr.bf16.mxu1 %v2205_v1  ;;  %v11262_v36 = vld [vmem:[%s15256_s5] ss:$0 sm:$0xff]  ;;  %v9453_v6 = vld [vmem:[%s15222_s7 + $0x10] sm:$0xff]   ;;  %9036 = vmatpush3.bf16.msra.mxu1 %v9452_v30  ;;  %s8123_s5 = sshll.u32 %s15472_s1, 3 }
 0x20d   : > { %9037 = vmatprep.subr.bf16.mxu1 %v9453_v6  ;;  %s11454_s2 = scalar_lea.vmem %s15236_s21, %s8123_s5 }
 0x20e   : > { %v2139_v22 = vadd.f32 %v11214_v13, %v1978_v5  ;;  %v2172_v40 = vmax.f32 %v2136_v26, 0.0 }
 0x210   : > { %v2173_v61 = vmax.f32 %v2139_v22, 0.0  ;;  %9038 = vmatpush3.bf16.msra.mxu1 %v9453_v6 }
 0x211   : > { %9039 = vmatprep.subr.bf16.mxu1 %v9454_v29 }
 0x212   : > { %v2206_v41 = vpack.c.bf16 %v2173_v61, %v2172_v40 }
 0x214   : > { %8982 = vmatmul.mubr.bf16.gmra.mrb[124].mxu1 %v2206_v41 }
 0x215   : > { %9040 = vmatpush3.bf16.msra.mxu1 %v9454_v29 }
 0x216   : > { %9041 = vmatprep.subr.bf16.mxu1 %v9455_v49 }
 0x219   : > { %9042 = vmatpush3.bf16.msra.mxu1 %v9455_v49 }
 0x21a   : > { %9043 = vmatprep.subr.bf16.mxu1 %v9456_v34 }
 0x21d   : > { %9044 = vmatpush3.bf16.msra.mxu1 %v9456_v34 }
 0x21e   : > { %9045 = vmatprep.subr.bf16.mxu1 %v9457_v57 }
 0x221   : > { %9046 = vmatpush3.bf16.msra.mxu1 %v9457_v57 }
 0x277   : > { %v8955_v13 = vpop.f32.mrb[96].mxu1 }
 0x278   : > { %v2304_v27 = vadd.f32 %v8955_v13, %v11262_v36  ;;  %v2295_v32 = vpop.f32.mrb[97].mxu1 }
 0x279   : > { %v2296_v31 = vadd.f32 %v11262_v36, %v2295_v32  ;;  %v8956_v52 = vpop.f32.mrb[98].mxu1 }
 0x27a   : > { %v2307_v43 = vadd.f32 %v8956_v52, %v11262_v36  ;;  %v2298_v21 = vpop.f32.mrb[99].mxu1  ;;  %v2424_v18 = vmax.f32 %v2304_v27, 0.0 }
 0x27b   : > { %v2299_v46 = vadd.f32 %v11262_v36, %v2298_v21  ;;  %v2422_v54 = vmax.f32 %v2296_v31, 0.0 }
 0x27c   : > { %v2425_v37 = vmax.f32 %v2307_v43, 0.0 }
 0x27d   : > { %v2423_v24 = vmax.f32 %v2299_v46, 0.0 }
 0x27e   : > { %v2472_v56 = vpack.c.bf16 %v2425_v37, %v2424_v18 }
 0x27f   : > { %v2471_v59 = vpack.c.bf16 %v2423_v24, %v2422_v54 }
 0x281   : > { %9001 = vmatprep.mubr.bf16.mxu0 %v2471_v59 }
 0x282   : > { %9002 = vmatmul.mubr.bf16.vlgmr.msra.gmra.mrb[128].mxu0 %v2472_v56 }
 0x287   : > { %v8959_v14 = vpop.f32.mrb[100].mxu1 }
 0x288   : > { %v2320_v20 = vadd.f32 %v8959_v14, %v11262_v36  ;;  %v2311_v23 = vpop.f32.mrb[101].mxu1 }
 0x289   : > { %v2312_v62 = vadd.f32 %v11262_v36, %v2311_v23  ;;  %v8960_v0 = vpop.f32.mrb[102].mxu1 }
 0x28a   : > { %v2323_v47 = vadd.f32 %v8960_v0, %v11262_v36  ;;  %v2314_v9 = vpop.f32.mrb[103].mxu1  ;;  %v2428_v58 = vmax.f32 %v2320_v20, 0.0 }
 0x28b   : > { %v2315_v50 = vadd.f32 %v11262_v36, %v2314_v9  ;;  %v2426_v2 = vmax.f32 %v2312_v62, 0.0 }
 0x28c   : > { %v2429_v12 = vmax.f32 %v2323_v47, 0.0 }
 0x28d   : > { %v2427_v17 = vmax.f32 %v2315_v50, 0.0 }
 0x28e   : > { %v2474_v45 = vpack.c.bf16 %v2429_v12, %v2428_v58 }
 0x28f   : > { %v2473_v60 = vpack.c.bf16 %v2427_v17, %v2426_v2 }
 0x291   : > { %9005 = vmatprep.mubr.bf16.mxu0 %v2473_v60 }
 0x292   : > { %9006 = vmatmul.mubr.bf16.gmra.mrb[132].mxu0 %v2474_v45 }
 0x297   : > { %v8963_v53 = vpop.f32.mrb[104].mxu1 }
 0x298   : > { %v2336_v3 = vadd.f32 %v8963_v53, %v11262_v36  ;;  %v2327_v7 = vpop.f32.mrb[105].mxu1 }
 0x299   : > { %v2328_v55 = vadd.f32 %v11262_v36, %v2327_v7  ;;  %v8964_v11 = vpop.f32.mrb[106].mxu1 }
 0x29a   : > { %v2339_v15 = vadd.f32 %v8964_v11, %v11262_v36  ;;  %v2330_v10 = vpop.f32.mrb[107].mxu1  ;;  %v2432_v39 = vmax.f32 %v2336_v3, 0.0  ;;  %v9458_v3 = vld [vmem:[%s15222_s7 + $0x38] sm:$0xff]  }
 0x29b   : > { %v2331_v33 = vadd.f32 %v11262_v36, %v2330_v10  ;;  %v2430_v44 = vmax.f32 %v2328_v55, 0.0  ;;  %9047 = vmatprep.subr.bf16.mxu1 %v9458_v3 }
 0x29c   : > { %v2433_v4 = vmax.f32 %v2339_v15, 0.0  ;;  %9048 = vmatpush3.bf16.msra.mxu1 %v9458_v3 }
 0x29d   : > { %v2431_v42 = vmax.f32 %v2331_v33, 0.0 }
 0x29e   : > { %v2476_v38 = vpack.c.bf16 %v2433_v4, %v2432_v39 }
 0x29f   : > { %v2475_v48 = vpack.c.bf16 %v2431_v42, %v2430_v44 }
 0x2a1   : > { %9009 = vmatprep.mubr.bf16.mxu0 %v2475_v48 }
 0x2a2   : > { %9010 = vmatmul.mubr.bf16.gmra.mrb[136].mxu0 %v2476_v38 }
 0x2a7   : > { %v8967_v16 = vpop.f32.mrb[108].mxu1 }
 0x2a8   : > { %v2352_v8 = vadd.f32 %v8967_v16, %v11262_v36  ;;  %v2343_v63 = vpop.f32.mrb[109].mxu1 }
 0x2a9   : > { %v2344_v19 = vadd.f32 %v11262_v36, %v2343_v63  ;;  %v8968_v25 = vpop.f32.mrb[110].mxu1 }
 0x2aa   : > { %v2355_v28 = vadd.f32 %v8968_v25, %v11262_v36  ;;  %v2346_v35 = vpop.f32.mrb[111].mxu1  ;;  %v2436_v26 = vmax.f32 %v2352_v8, 0.0 }
 0x2ab   : > { %v2347_v1 = vadd.f32 %v11262_v36, %v2346_v35  ;;  %v2434_v22 = vmax.f32 %v2344_v19, 0.0 }
 0x2ac   : > { %v2437_v5 = vmax.f32 %v2355_v28, 0.0 }
 0x2ad   : > { %v2435_v40 = vmax.f32 %v2347_v1, 0.0 }
 0x2ae   : > { %v2478_v61 = vpack.c.bf16 %v2437_v5, %v2436_v26  ;;  %v9459_v26 = vld [vmem:[%s15224_s9] sm:$0xff]   ;;  %v9460_v5 = vld [vmem:[%s15224_s9 + $0x8] sm:$0xff]  }
 0x2af   : > { %v2477_v41 = vpack.c.bf16 %v2435_v40, %v2434_v22  ;;  %9081 = vmatprep.subr.bf16.mxu0 %v9459_v26  ;;  %v9461_v22 = vld [vmem:[%s15224_s9 + $0x10] sm:$0xff]  }
 0x2b0   : > { %9082 = vmatpush3.bf16.msra.mxu0 %v9459_v26 }
 0x2b1   : > { %9013 = vmatprep.mubr.bf16.mxu0 %v2477_v41  ;;  %9083 = vmatprep.subr.bf16.mxu0 %v9460_v5 }
 0x2b2   : > { %9014 = vmatmul.mubr.bf16.gmra.mrb[140].mxu0 %v2478_v61 }
 0x2b4   : > { %9084 = vmatpush3.bf16.msra.mxu0 %v9460_v5 }
 0x2b5   : > { %9085 = vmatprep.subr.bf16.mxu0 %v9461_v22 }
 0x2b7   : > { %v8971_v51 = vpop.f32.mrb[112].mxu1 }
 0x2b8   : > { %v2368_v30 = vadd.f32 %v8971_v51, %v11262_v36  ;;  %v2359_v6 = vpop.f32.mrb[113].mxu1  ;;  %9086 = vmatpush3.bf16.msra.mxu0 %v9461_v22 }
 0x2b9   : > { %v2360_v13 = vadd.f32 %v11262_v36, %v2359_v6  ;;  %v8972_v27 = vpop.f32.mrb[114].mxu1 }
 0x2ba   : > { %v2371_v32 = vadd.f32 %v8972_v27, %v11262_v36  ;;  %v2362_v31 = vpop.f32.mrb[115].mxu1  ;;  %v2440_v43 = vmax.f32 %v2368_v30, 0.0  ;;  %v9462_v27 = vld [vmem:[%s15224_s9 + $0x18] sm:$0xff]  }
 0x2bb   : > { %v2363_v52 = vadd.f32 %v11262_v36, %v2362_v31  ;;  %v2438_v29 = vmax.f32 %v2360_v13, 0.0  ;;  %9087 = vmatprep.subr.bf16.mxu0 %v9462_v27 }
 0x2bc   : > { %v2441_v21 = vmax.f32 %v2371_v32, 0.0  ;;  %9088 = vmatpush3.bf16.msra.mxu0 %v9462_v27 }
 0x2bd   : > { %v2439_v46 = vmax.f32 %v2363_v52, 0.0 }
 0x2be   : > { %v2480_v18 = vpack.c.bf16 %v2441_v21, %v2440_v43 }
 0x2bf   : > { %v2479_v37 = vpack.c.bf16 %v2439_v46, %v2438_v29  ;;  %v9463_v46 = vld [vmem:[%s15224_s9 + $0x20] sm:$0xff]  }
 0x2c0   : > { %9089 = vmatprep.subr.bf16.mxu0 %v9463_v46 }
 0x2c1   : > { %9017 = vmatprep.mubr.bf16.mxu0 %v2479_v37  ;;  %v9464_v37 = vld [vmem:[%s15224_s9 + $0x28] sm:$0xff]   ;;  %9090 = vmatpush3.bf16.msra.mxu0 %v9463_v46 }
 0x2c2   : > { %9018 = vmatmul.mubr.bf16.gmra.mrb[144].mxu0 %v2480_v18  ;;  %9091 = vmatprep.subr.bf16.mxu0 %v9464_v37 }
 0x2c5   : > { %9092 = vmatpush3.bf16.msra.mxu0 %v9464_v37 }
 0x2c7   : > { %v8975_v54 = vpop.f32.mrb[116].mxu1 }
 0x2c8   : > { %v2384_v24 = vadd.f32 %v8975_v54, %v11262_v36  ;;  %v2375_v56 = vpop.f32.mrb[117].mxu1  ;;  %v9465_v54 = vld [vmem:[%s15224_s9 + $0x30] sm:$0xff]  }
 0x2c9   : > { %v2376_v49 = vadd.f32 %v11262_v36, %v2375_v56  ;;  %v8976_v59 = vpop.f32.mrb[118].mxu1  ;;  %9093 = vmatprep.subr.bf16.mxu0 %v9465_v54 }
 0x2ca   : > { %v2387_v34 = vadd.f32 %v8976_v59, %v11262_v36  ;;  %v2378_v57 = vpop.f32.mrb[119].mxu1  ;;  %v2444_v20 = vmax.f32 %v2384_v24, 0.0  ;;  %9094 = vmatpush3.bf16.msra.mxu0 %v9465_v54 }
 0x2cb   : > { %v2379_v14 = vadd.f32 %v11262_v36, %v2378_v57  ;;  %v2442_v62 = vmax.f32 %v2376_v49, 0.0 }
 0x2cc   : > { %v2445_v23 = vmax.f32 %v2387_v34, 0.0 }
 0x2cd   : > { %v2443_v0 = vmax.f32 %v2379_v14, 0.0 }
 0x2ce   : > { %v2482_v47 = vpack.c.bf16 %v2445_v23, %v2444_v20 }
 0x2cf   : > { %v2481_v9 = vpack.c.bf16 %v2443_v0, %v2442_v62 }
 0x2d1   : > { %9021 = vmatprep.mubr.bf16.mxu0 %v2481_v9 }
 0x2d2   : > { %9022 = vmatmul.mubr.bf16.gmra.mrb[148].mxu0 %v2482_v47 }
 0x2d7   : > { %v8979_v50 = vpop.f32.mrb[120].mxu1 }
 0x2d8   : > { %v2400_v58 = vadd.f32 %v8979_v50, %v11262_v36  ;;  %v2391_v12 = vpop.f32.mrb[121].mxu1 }
 0x2d9   : > { %v2392_v2 = vadd.f32 %v11262_v36, %v2391_v12  ;;  %v8980_v17 = vpop.f32.mrb[122].mxu1 }
 0x2da   : > { %v2403_v45 = vadd.f32 %v8980_v17, %v11262_v36  ;;  %v2394_v60 = vpop.f32.mrb[123].mxu1  ;;  %v2448_v7 = vmax.f32 %v2400_v58, 0.0 }
 0x2db   : > { %v2395_v53 = vadd.f32 %v11262_v36, %v2394_v60  ;;  %v2446_v11 = vmax.f32 %v2392_v2, 0.0 }
 0x2dc   : > { %v2449_v55 = vmax.f32 %v2403_v45, 0.0 }
 0x2dd   : > { %v2447_v15 = vmax.f32 %v2395_v53, 0.0 }
 0x2de   : > { %v2484_v10 = vpack.c.bf16 %v2449_v55, %v2448_v7 }
 0x2df   : > { %v2483_v33 = vpack.c.bf16 %v2447_v15, %v2446_v11 }
 0x2e1   : > { %9025 = vmatprep.mubr.bf16.mxu0 %v2483_v33 }
 0x2e2   : > { %9026 = vmatmul.mubr.bf16.gmra.mrb[152].mxu0 %v2484_v10 }
 0x2e7   : > { %v8983_v39 = vpop.f32.mrb[124].mxu1 }
 0x2e8   : > { %v2416_v4 = vadd.f32 %v8983_v39, %v11262_v36  ;;  %v2407_v44 = vpop.f32.mrb[125].mxu1 }
 0x2e9   : > { %v2408_v42 = vadd.f32 %v11262_v36, %v2407_v44  ;;  %v8984_v38 = vpop.f32.mrb[126].mxu1 }
 0x2ea   : > { %v2419_v48 = vadd.f32 %v8984_v38, %v11262_v36  ;;  %v2410_v16 = vpop.f32.mrb[127].mxu1  ;;  %v2452_v63 = vmax.f32 %v2416_v4, 0.0 }
 0x2eb   : > { %v2411_v8 = vadd.f32 %v11262_v36, %v2410_v16  ;;  %v2450_v25 = vmax.f32 %v2408_v42, 0.0  ;;  %v11323_v36 = vld [vmem:[%s15257_s24] ss:$0 sm:$0xff] }
 0x2ec   : > { %v2453_v19 = vmax.f32 %v2419_v48, 0.0 }
 0x2ed   : > { %v2451_v28 = vmax.f32 %v2411_v8, 0.0 }
 0x2ee   : > { %v2486_v35 = vpack.c.bf16 %v2453_v19, %v2452_v63 }
 0x2ef   : > { %v2485_v1 = vpack.c.bf16 %v2451_v28, %v2450_v25 }
 0x2f1   : > { %9029 = vmatprep.mubr.bf16.mxu0 %v2485_v1 }
 0x2f2   : > { %9030 = vmatmul.mubr.bf16.gmra.mrb[156].mxu0 %v2486_v35 }
 0x355   : > { %v9003_v40 = vpop.f32.mrb[128].mxu0 }
 0x356   : > { %v2584_v61 = vadd.f32 %v9003_v40, %v11323_v36  ;;  %v2575_v41 = vpop.f32.mrb[129].mxu0 }
 0x357   : > { %v2576_v51 = vadd.f32 %v11323_v36, %v2575_v41  ;;  %v9004_v30 = vpop.f32.mrb[130].mxu0 }
 0x358   : > { %v2587_v6 = vadd.f32 %v9004_v30, %v11323_v36  ;;  %v2578_v13 = vpop.f32.mrb[131].mxu0  ;;  %v2704_v31 = vmax.f32 %v2584_v61, 0.0 }
 0x359   : > { %v2579_v32 = vadd.f32 %v11323_v36, %v2578_v13  ;;  %v2702_v43 = vmax.f32 %v2576_v51, 0.0 }
 0x35a   : > { %v2705_v52 = vmax.f32 %v2587_v6, 0.0 }
 0x35b   : > { %v2703_v21 = vmax.f32 %v2579_v32, 0.0 }
 0x35c   : > { %v2752_v29 = vpack.c.bf16 %v2705_v52, %v2704_v31 }
 0x35d   : > { %v2751_v18 = vpack.c.bf16 %v2703_v21, %v2702_v43 }
 0x35f   : > { %9049 = vmatprep.mubr.bf16.mxu1 %v2751_v18 }
 0x360   : > { %9050 = vmatmul.mubr.bf16.vlgmr.msra.gmra.mrb[128].mxu1 %v2752_v29 }
 0x365   : > { %v9007_v24 = vpop.f32.mrb[132].mxu0 }
 0x366   : > { %v2600_v56 = vadd.f32 %v9007_v24, %v11323_v36  ;;  %v2591_v49 = vpop.f32.mrb[133].mxu0 }
 0x367   : > { %v2592_v59 = vadd.f32 %v11323_v36, %v2591_v49  ;;  %v9008_v34 = vpop.f32.mrb[134].mxu0 }
 0x368   : > { %v2603_v57 = vadd.f32 %v9008_v34, %v11323_v36  ;;  %v2594_v14 = vpop.f32.mrb[135].mxu0  ;;  %v2708_v23 = vmax.f32 %v2600_v56, 0.0 }
 0x369   : > { %v2595_v20 = vadd.f32 %v11323_v36, %v2594_v14  ;;  %v2706_v0 = vmax.f32 %v2592_v59, 0.0 }
 0x36a   : > { %v2709_v62 = vmax.f32 %v2603_v57, 0.0 }
 0x36b   : > { %v2707_v47 = vmax.f32 %v2595_v20, 0.0 }
 0x36c   : > { %v2754_v9 = vpack.c.bf16 %v2709_v62, %v2708_v23 }
 0x36d   : > { %v2753_v50 = vpack.c.bf16 %v2707_v47, %v2706_v0 }
 0x36f   : > { %9053 = vmatprep.mubr.bf16.mxu1 %v2753_v50 }
 0x370   : > { %9054 = vmatmul.mubr.bf16.gmra.mrb[132].mxu1 %v2754_v9 }
 0x375   : > { %v9011_v58 = vpop.f32.mrb[136].mxu0 }
 0x376   : > { %v2616_v12 = vadd.f32 %v9011_v58, %v11323_v36  ;;  %v2607_v2 = vpop.f32.mrb[137].mxu0 }
 0x377   : > { %v2608_v17 = vadd.f32 %v11323_v36, %v2607_v2  ;;  %v9012_v45 = vpop.f32.mrb[138].mxu0 }
 0x378   : > { %v2619_v60 = vadd.f32 %v9012_v45, %v11323_v36  ;;  %v2610_v53 = vpop.f32.mrb[139].mxu0  ;;  %v2712_v7 = vmax.f32 %v2616_v12, 0.0  ;;  %v9466_v12 = vld [vmem:[%s15224_s9 + $0x38] sm:$0xff]  }
 0x379   : > { %v2611_v3 = vadd.f32 %v11323_v36, %v2610_v53  ;;  %v2710_v11 = vmax.f32 %v2608_v17, 0.0  ;;  %9095 = vmatprep.subr.bf16.mxu0 %v9466_v12 }
 0x37a   : > { %v2713_v55 = vmax.f32 %v2619_v60, 0.0  ;;  %9096 = vmatpush3.bf16.msra.mxu0 %v9466_v12 }
 0x37b   : > { %v2711_v15 = vmax.f32 %v2611_v3, 0.0 }
 0x37c   : > { %v2756_v10 = vpack.c.bf16 %v2713_v55, %v2712_v7 }
 0x37d   : > { %v2755_v33 = vpack.c.bf16 %v2711_v15, %v2710_v11 }
 0x37f   : > { %9057 = vmatprep.mubr.bf16.mxu1 %v2755_v33 }
 0x380   : > { %9058 = vmatmul.mubr.bf16.gmra.mrb[136].mxu1 %v2756_v10 }
 0x385   : > { %v9015_v39 = vpop.f32.mrb[140].mxu0 }
 0x386   : > { %v2632_v4 = vadd.f32 %v9015_v39, %v11323_v36  ;;  %v2623_v44 = vpop.f32.mrb[141].mxu0 }
 0x387   : > { %v2624_v42 = vadd.f32 %v11323_v36, %v2623_v44  ;;  %v9016_v38 = vpop.f32.mrb[142].mxu0 }
 0x388   : > { %v2635_v48 = vadd.f32 %v9016_v38, %v11323_v36  ;;  %v2626_v16 = vpop.f32.mrb[143].mxu0  ;;  %v2716_v63 = vmax.f32 %v2632_v4, 0.0 }
 0x389   : > { %v2627_v8 = vadd.f32 %v11323_v36, %v2626_v16  ;;  %v2714_v25 = vmax.f32 %v2624_v42, 0.0 }
 0x38a   : > { %v2717_v19 = vmax.f32 %v2635_v48, 0.0 }
 0x38b   : > { %v2715_v28 = vmax.f32 %v2627_v8, 0.0 }
 0x38c   : > { %v2758_v35 = vpack.c.bf16 %v2717_v19, %v2716_v63  ;;  %v9467_v63 = vld [vmem:[%s15226_s11] sm:$0xff]   ;;  %v9468_v19 = vld [vmem:[%s15226_s11 + $0x8] sm:$0xff]  }
 0x38d   : > { %v2757_v1 = vpack.c.bf16 %v2715_v28, %v2714_v25  ;;  %9129 = vmatprep.subr.bf16.mxu1 %v9467_v63  ;;  %v9469_v25 = vld [vmem:[%s15226_s11 + $0x10] sm:$0xff]  }
 0x38e   : > { %9130 = vmatpush3.bf16.msra.mxu1 %v9467_v63 }
 0x38f   : > { %9061 = vmatprep.mubr.bf16.mxu1 %v2757_v1  ;;  %9131 = vmatprep.subr.bf16.mxu1 %v9468_v19 }
 0x390   : > { %9062 = vmatmul.mubr.bf16.gmra.mrb[140].mxu1 %v2758_v35 }
 0x392   : > { %9132 = vmatpush3.bf16.msra.mxu1 %v9468_v19 }
 0x393   : > { %9133 = vmatprep.subr.bf16.mxu1 %v9469_v25 }
 0x395   : > { %v9019_v26 = vpop.f32.mrb[144].mxu0 }
 0x396   : > { %v2648_v5 = vadd.f32 %v9019_v26, %v11323_v36  ;;  %v2639_v22 = vpop.f32.mrb[145].mxu0  ;;  %9134 = vmatpush3.bf16.msra.mxu1 %v9469_v25 }
 0x397   : > { %v2640_v40 = vadd.f32 %v11323_v36, %v2639_v22  ;;  %v9020_v61 = vpop.f32.mrb[146].mxu0 }
 0x398   : > { %v2651_v41 = vadd.f32 %v9020_v61, %v11323_v36  ;;  %v2642_v51 = vpop.f32.mrb[147].mxu0  ;;  %v2720_v6 = vmax.f32 %v2648_v5, 0.0  ;;  %v9470_v61 = vld [vmem:[%s15226_s11 + $0x18] sm:$0xff]  }
 0x399   : > { %v2643_v30 = vadd.f32 %v11323_v36, %v2642_v51  ;;  %v2718_v27 = vmax.f32 %v2640_v40, 0.0  ;;  %9135 = vmatprep.subr.bf16.mxu1 %v9470_v61 }
 0x39a   : > { %v2721_v13 = vmax.f32 %v2651_v41, 0.0  ;;  %9136 = vmatpush3.bf16.msra.mxu1 %v9470_v61 }
 0x39b   : > { %v2719_v32 = vmax.f32 %v2643_v30, 0.0 }
 0x39c   : > { %v2760_v31 = vpack.c.bf16 %v2721_v13, %v2720_v6 }
 0x39d   : > { %v2759_v52 = vpack.c.bf16 %v2719_v32, %v2718_v27  ;;  %v9471_v32 = vld [vmem:[%s15226_s11 + $0x20] sm:$0xff]  }
 0x39e   : > { %9137 = vmatprep.subr.bf16.mxu1 %v9471_v32 }
 0x39f   : > { %9065 = vmatprep.mubr.bf16.mxu1 %v2759_v52  ;;  %v9472_v52 = vld [vmem:[%s15226_s11 + $0x28] sm:$0xff]   ;;  %9138 = vmatpush3.bf16.msra.mxu1 %v9471_v32 }
 0x3a0   : > { %9066 = vmatmul.mubr.bf16.gmra.mrb[144].mxu1 %v2760_v31  ;;  %9139 = vmatprep.subr.bf16.mxu1 %v9472_v52 }
 0x3a3   : > { %9140 = vmatpush3.bf16.msra.mxu1 %v9472_v52 }
 0x3a5   : > { %v9023_v43 = vpop.f32.mrb[148].mxu0 }
 0x3a6   : > { %v2664_v21 = vadd.f32 %v9023_v43, %v11323_v36  ;;  %v2655_v29 = vpop.f32.mrb[149].mxu0  ;;  %v9473_v43 = vld [vmem:[%s15226_s11 + $0x30] sm:$0xff]  }
 0x3a7   : > { %v2656_v46 = vadd.f32 %v11323_v36, %v2655_v29  ;;  %v9024_v18 = vpop.f32.mrb[150].mxu0  ;;  %9141 = vmatprep.subr.bf16.mxu1 %v9473_v43 }
 0x3a8   : > { %v2667_v37 = vadd.f32 %v9024_v18, %v11323_v36  ;;  %v2658_v54 = vpop.f32.mrb[151].mxu0  ;;  %v2724_v56 = vmax.f32 %v2664_v21, 0.0  ;;  %9142 = vmatpush3.bf16.msra.mxu1 %v9473_v43 }
 0x3a9   : > { %v2659_v24 = vadd.f32 %v11323_v36, %v2658_v54  ;;  %v2722_v59 = vmax.f32 %v2656_v46, 0.0 }
 0x3aa   : > { %v2725_v49 = vmax.f32 %v2667_v37, 0.0 }
 0x3ab   : > { %v2723_v34 = vmax.f32 %v2659_v24, 0.0 }
 0x3ac   : > { %v2762_v57 = vpack.c.bf16 %v2725_v49, %v2724_v56 }
 0x3ad   : > { %v2761_v14 = vpack.c.bf16 %v2723_v34, %v2722_v59 }
 0x3af   : > { %9069 = vmatprep.mubr.bf16.mxu1 %v2761_v14 }
 0x3b0   : > { %9070 = vmatmul.mubr.bf16.gmra.mrb[148].mxu1 %v2762_v57 }
 0x3b5   : > { %v9027_v20 = vpop.f32.mrb[152].mxu0 }
 0x3b6   : > { %v2680_v23 = vadd.f32 %v9027_v20, %v11323_v36  ;;  %v2671_v62 = vpop.f32.mrb[153].mxu0 }
 0x3b7   : > { %v2672_v0 = vadd.f32 %v11323_v36, %v2671_v62  ;;  %v9028_v47 = vpop.f32.mrb[154].mxu0 }
 0x3b8   : > { %v2683_v9 = vadd.f32 %v9028_v47, %v11323_v36  ;;  %v2674_v50 = vpop.f32.mrb[155].mxu0  ;;  %v2728_v2 = vmax.f32 %v2680_v23, 0.0 }
 0x3b9   : > { %v2675_v58 = vadd.f32 %v11323_v36, %v2674_v50  ;;  %v2726_v45 = vmax.f32 %v2672_v0, 0.0 }
 0x3ba   : > { %v2729_v17 = vmax.f32 %v2683_v9, 0.0 }
 0x3bb   : > { %v2727_v60 = vmax.f32 %v2675_v58, 0.0 }
 0x3bc   : > { %v2764_v53 = vpack.c.bf16 %v2729_v17, %v2728_v2 }
 0x3bd   : > { %v2763_v3 = vpack.c.bf16 %v2727_v60, %v2726_v45 }
 0x3bf   : > { %9073 = vmatprep.mubr.bf16.mxu1 %v2763_v3 }
 0x3c0   : > { %9074 = vmatmul.mubr.bf16.gmra.mrb[152].mxu1 %v2764_v53 }
 0x3c5   : > { %v9031_v7 = vpop.f32.mrb[156].mxu0 }
 0x3c6   : > { %v2696_v55 = vadd.f32 %v9031_v7, %v11323_v36  ;;  %v2687_v11 = vpop.f32.mrb[157].mxu0 }
 0x3c7   : > { %v2688_v15 = vadd.f32 %v11323_v36, %v2687_v11  ;;  %v9032_v10 = vpop.f32.mrb[158].mxu0 }
 0x3c8   : > { %v2699_v33 = vadd.f32 %v9032_v10, %v11323_v36  ;;  %v2690_v39 = vpop.f32.mrb[159].mxu0  ;;  %v2732_v44 = vmax.f32 %v2696_v55, 0.0 }
 0x3c9   : > { %v2691_v4 = vadd.f32 %v11323_v36, %v2690_v39  ;;  %v2730_v38 = vmax.f32 %v2688_v15, 0.0  ;;  %v11384_v36 = vld [vmem:[%s15223_s8] ss:$0 sm:$0xff] }
 0x3ca   : > { %v2733_v42 = vmax.f32 %v2699_v33, 0.0 }
 0x3cb   : > { %v2731_v48 = vmax.f32 %v2691_v4, 0.0 }
 0x3cc   : > { %v2766_v16 = vpack.c.bf16 %v2733_v42, %v2732_v44 }
 0x3cd   : > { %v2765_v8 = vpack.c.bf16 %v2731_v48, %v2730_v38 }
 0x3cf   : > { %9077 = vmatprep.mubr.bf16.mxu1 %v2765_v8 }
 0x3d0   : > { %9078 = vmatmul.mubr.bf16.gmra.mrb[156].mxu1 %v2766_v16 }
 0x433   : > { %v9051_v28 = vpop.f32.mrb[128].mxu1 }
 0x434   : > { %v2864_v35 = vadd.f32 %v9051_v28, %v11384_v36  ;;  %v2855_v1 = vpop.f32.mrb[129].mxu1 }
 0x435   : > { %v2856_v26 = vadd.f32 %v11384_v36, %v2855_v1  ;;  %v9052_v5 = vpop.f32.mrb[130].mxu1 }
 0x436   : > { %v2867_v22 = vadd.f32 %v9052_v5, %v11384_v36  ;;  %v2858_v40 = vpop.f32.mrb[131].mxu1  ;;  %v2984_v51 = vmax.f32 %v2864_v35, 0.0 }
 0x437   : > { %v2859_v41 = vadd.f32 %v11384_v36, %v2858_v40  ;;  %v2982_v6 = vmax.f32 %v2856_v26, 0.0 }
 0x438   : > { %v2985_v30 = vmax.f32 %v2867_v22, 0.0 }
 0x439   : > { %v2983_v13 = vmax.f32 %v2859_v41, 0.0 }
 0x43a   : > { %v3032_v27 = vpack.c.bf16 %v2985_v30, %v2984_v51 }
 0x43b   : > { %v3031_v31 = vpack.c.bf16 %v2983_v13, %v2982_v6 }
 0x43d   : > { %9097 = vmatprep.mubr.bf16.mxu0 %v3031_v31 }
 0x43e   : > { %9098 = vmatmul.mubr.bf16.vlgmr.msra.gmra.mrb[160].mxu0 %v3032_v27 }
 0x443   : > { %v9055_v21 = vpop.f32.mrb[132].mxu1 }
 0x444   : > { %v2880_v29 = vadd.f32 %v9055_v21, %v11384_v36  ;;  %v2871_v46 = vpop.f32.mrb[133].mxu1 }
 0x445   : > { %v2872_v18 = vadd.f32 %v11384_v36, %v2871_v46  ;;  %v9056_v37 = vpop.f32.mrb[134].mxu1 }
 0x446   : > { %v2883_v54 = vadd.f32 %v9056_v37, %v11384_v36  ;;  %v2874_v24 = vpop.f32.mrb[135].mxu1  ;;  %v2988_v49 = vmax.f32 %v2880_v29, 0.0 }
 0x447   : > { %v2875_v56 = vadd.f32 %v11384_v36, %v2874_v24  ;;  %v2986_v34 = vmax.f32 %v2872_v18, 0.0 }
 0x448   : > { %v2989_v59 = vmax.f32 %v2883_v54, 0.0 }
 0x449   : > { %v2987_v57 = vmax.f32 %v2875_v56, 0.0 }
 0x44a   : > { %v3034_v14 = vpack.c.bf16 %v2989_v59, %v2988_v49 }
 0x44b   : > { %v3033_v20 = vpack.c.bf16 %v2987_v57, %v2986_v34 }
 0x44d   : > { %9101 = vmatprep.mubr.bf16.mxu0 %v3033_v20 }
 0x44e   : > { %9102 = vmatmul.mubr.bf16.gmra.mrb[164].mxu0 %v3034_v14  ;;  %v9474_v14 = vld [vmem:[%s15226_s11 + $0x38] sm:$0xff]  }
 0x44f   : > { %9143 = vmatprep.subr.bf16.mxu1 %v9474_v14 }
 0x450   : > { %9144 = vmatpush3.bf16.msra.mxu1 %v9474_v14 }
 0x453   : > { %v9059_v23 = vpop.f32.mrb[136].mxu1 }
 0x454   : > { %v2896_v62 = vadd.f32 %v9059_v23, %v11384_v36  ;;  %v2887_v0 = vpop.f32.mrb[137].mxu1 }
 0x455   : > { %v2888_v47 = vadd.f32 %v11384_v36, %v2887_v0  ;;  %v9060_v9 = vpop.f32.mrb[138].mxu1 }
 0x456   : > { %v2899_v50 = vadd.f32 %v9060_v9, %v11384_v36  ;;  %v2890_v58 = vpop.f32.mrb[139].mxu1  ;;  %v2992_v2 = vmax.f32 %v2896_v62, 0.0 }
 0x457   : > { %v2891_v12 = vadd.f32 %v11384_v36, %v2890_v58  ;;  %v2990_v45 = vmax.f32 %v2888_v47, 0.0 }
 0x458   : > { %v2993_v17 = vmax.f32 %v2899_v50, 0.0 }
 0x459   : > { %v2991_v60 = vmax.f32 %v2891_v12, 0.0 }
 0x45a   : > { %v3036_v53 = vpack.c.bf16 %v2993_v17, %v2992_v2 }
 0x45b   : > { %v3035_v3 = vpack.c.bf16 %v2991_v60, %v2990_v45 }
 0x45d   : > { %9105 = vmatprep.mubr.bf16.mxu0 %v3035_v3 }
 0x45e   : > { %9106 = vmatmul.mubr.bf16.gmra.mrb[168].mxu0 %v3036_v53 }
 0x463   : > { %v9063_v7 = vpop.f32.mrb[140].mxu1 }
 0x464   : > { %v2912_v55 = vadd.f32 %v9063_v7, %v11384_v36  ;;  %v2903_v11 = vpop.f32.mrb[141].mxu1 }
 0x465   : > { %v2904_v15 = vadd.f32 %v11384_v36, %v2903_v11  ;;  %v9064_v10 = vpop.f32.mrb[142].mxu1 }
 0x466   : > { %v2915_v33 = vadd.f32 %v9064_v10, %v11384_v36  ;;  %v2906_v39 = vpop.f32.mrb[143].mxu1  ;;  %v2996_v44 = vmax.f32 %v2912_v55, 0.0 }
 0x467   : > { %v2907_v4 = vadd.f32 %v11384_v36, %v2906_v39  ;;  %v2994_v38 = vmax.f32 %v2904_v15, 0.0 }
 0x468   : > { %v2997_v42 = vmax.f32 %v2915_v33, 0.0 }
 0x469   : > { %v2995_v48 = vmax.f32 %v2907_v4, 0.0 }
 0x46a   : > { %v3038_v16 = vpack.c.bf16 %v2997_v42, %v2996_v44  ;;  %v9475_v44 = vld [vmem:[%s15228_s13] sm:$0xff]   ;;  %v9476_v42 = vld [vmem:[%s15228_s13 + $0x8] sm:$0xff]  }
 0x46b   : > { %v3037_v8 = vpack.c.bf16 %v2995_v48, %v2994_v38  ;;  %9177 = vmatprep.subr.bf16.mxu0 %v9475_v44  ;;  %v11449_v38 = vld [vmem:[%s15225_s10] ss:$0 sm:$0xff] }
 0x46c   : > { %9178 = vmatpush3.bf16.msra.mxu0 %v9475_v44 }
 0x46d   : > { %9109 = vmatprep.mubr.bf16.mxu0 %v3037_v8  ;;  %9179 = vmatprep.subr.bf16.mxu0 %v9476_v42 }
 0x46e   : > { %9110 = vmatmul.mubr.bf16.gmra.mrb[172].mxu0 %v3038_v16 }
 0x470   : > { %9180 = vmatpush3.bf16.msra.mxu0 %v9476_v42 }
 0x473   : > { %v9067_v63 = vpop.f32.mrb[144].mxu1 }
 0x474   : > { %v2928_v19 = vadd.f32 %v9067_v63, %v11384_v36  ;;  %v2919_v25 = vpop.f32.mrb[145].mxu1  ;;  %v9478_v63 = vld [vmem:[%s15228_s13 + $0x18] sm:$0xff]  }
 0x475   : > { %v2920_v28 = vadd.f32 %v11384_v36, %v2919_v25  ;;  %v9068_v35 = vpop.f32.mrb[146].mxu1 }
 0x476   : > { %v2931_v1 = vadd.f32 %v9068_v35, %v11384_v36  ;;  %v2922_v26 = vpop.f32.mrb[147].mxu1  ;;  %v3000_v22 = vmax.f32 %v2928_v19, 0.0 }
 0x477   : > { %v2923_v5 = vadd.f32 %v11384_v36, %v2922_v26  ;;  %v2998_v61 = vmax.f32 %v2920_v28, 0.0 }
 0x478   : > { %v3001_v40 = vmax.f32 %v2931_v1, 0.0 }
 0x479   : > { %v2999_v41 = vmax.f32 %v2923_v5, 0.0  ;;  %v9479_v5 = vld [vmem:[%s15228_s13 + $0x20] sm:$0xff]  }
 0x47a   : > { %v3040_v51 = vpack.c.bf16 %v3001_v40, %v3000_v22  ;;  %v9480_v40 = vld [vmem:[%s15228_s13 + $0x28] sm:$0xff]  }
 0x47b   : > { %v3039_v30 = vpack.c.bf16 %v2999_v41, %v2998_v61  ;;  %v9481_v61 = vld [vmem:[%s15228_s13 + $0x30] sm:$0xff]  }
 0x47d   : > { %9113 = vmatprep.mubr.bf16.mxu0 %v3039_v30 }
 0x47e   : > { %9114 = vmatmul.mubr.bf16.gmra.mrb[176].mxu0 %v3040_v51 }
 0x483   : > { %v9071_v6 = vpop.f32.mrb[148].mxu1 }
 0x484   : > { %v2944_v13 = vadd.f32 %v9071_v6, %v11384_v36  ;;  %v2935_v27 = vpop.f32.mrb[149].mxu1 }
 0x485   : > { %v2936_v32 = vadd.f32 %v11384_v36, %v2935_v27  ;;  %v9072_v31 = vpop.f32.mrb[150].mxu1 }
 0x486   : > { %v2947_v52 = vadd.f32 %v9072_v31, %v11384_v36  ;;  %v2938_v43 = vpop.f32.mrb[151].mxu1  ;;  %v3004_v29 = vmax.f32 %v2944_v13, 0.0 }
 0x487   : > { %v2939_v21 = vadd.f32 %v11384_v36, %v2938_v43  ;;  %v3002_v18 = vmax.f32 %v2936_v32, 0.0 }
 0x488   : > { %v3005_v46 = vmax.f32 %v2947_v52, 0.0 }
 0x489   : > { %v3003_v37 = vmax.f32 %v2939_v21, 0.0 }
 0x48a   : > { %v3042_v54 = vpack.c.bf16 %v3005_v46, %v3004_v29 }
 0x48b   : > { %v3041_v24 = vpack.c.bf16 %v3003_v37, %v3002_v18 }
 0x48d   : > { %9117 = vmatprep.mubr.bf16.mxu0 %v3041_v24 }
 0x48e   : > { %9118 = vmatmul.mubr.bf16.gmra.mrb[180].mxu0 %v3042_v54 }
 0x493   : > { %v9075_v56 = vpop.f32.mrb[152].mxu1 }
 0x494   : > { %v2960_v49 = vadd.f32 %v9075_v56, %v11384_v36  ;;  %v2951_v59 = vpop.f32.mrb[153].mxu1 }
 0x495   : > { %v2952_v34 = vadd.f32 %v11384_v36, %v2951_v59  ;;  %v9076_v57 = vpop.f32.mrb[154].mxu1 }
 0x496   : > { %v2963_v20 = vadd.f32 %v9076_v57, %v11384_v36  ;;  %v2954_v23 = vpop.f32.mrb[155].mxu1  ;;  %v3008_v0 = vmax.f32 %v2960_v49, 0.0 }
 0x497   : > { %v2955_v62 = vadd.f32 %v11384_v36, %v2954_v23  ;;  %v3006_v9 = vmax.f32 %v2952_v34, 0.0 }
 0x498   : > { %v3009_v47 = vmax.f32 %v2963_v20, 0.0 }
 0x499   : > { %v3007_v50 = vmax.f32 %v2955_v62, 0.0 }
 0x49a   : > { %v3044_v58 = vpack.c.bf16 %v3009_v47, %v3008_v0 }
 0x49b   : > { %v3043_v12 = vpack.c.bf16 %v3007_v50, %v3006_v9 }
 0x49d   : > { %9121 = vmatprep.mubr.bf16.mxu0 %v3043_v12 }
 0x49e   : > { %9122 = vmatmul.mubr.bf16.gmra.mrb[184].mxu0 %v3044_v58 }
 0x4a3   : > { %v9079_v2 = vpop.f32.mrb[156].mxu1 }
 0x4a4   : > { %v2976_v17 = vadd.f32 %v9079_v2, %v11384_v36  ;;  %v2967_v45 = vpop.f32.mrb[157].mxu1 }
 0x4a5   : > { %v2968_v60 = vadd.f32 %v11384_v36, %v2967_v45  ;;  %v9080_v53 = vpop.f32.mrb[158].mxu1 }
 0x4a6   : > { %v2979_v3 = vadd.f32 %v9080_v53, %v11384_v36  ;;  %v2970_v7 = vpop.f32.mrb[159].mxu1  ;;  %v3012_v11 = vmax.f32 %v2976_v17, 0.0 }
 0x4a7   : > { %v2971_v55 = vadd.f32 %v11384_v36, %v2970_v7  ;;  %v3010_v10 = vmax.f32 %v2968_v60, 0.0  ;;  %v9477_v36 = vld [vmem:[%s15228_s13 + $0x10] sm:$0xff]  }
 0x4a8   : > { %v3013_v15 = vmax.f32 %v2979_v3, 0.0  ;;  %9181 = vmatprep.subr.bf16.mxu0 %v9477_v36 }
 0x4a9   : > { %v3011_v33 = vmax.f32 %v2971_v55, 0.0  ;;  %9182 = vmatpush3.bf16.msra.mxu0 %v9477_v36 }
 0x4aa   : > { %v3046_v39 = vpack.c.bf16 %v3013_v15, %v3012_v11  ;;  %9183 = vmatprep.subr.bf16.mxu0 %v9478_v63 }
 0x4ab   : > { %v3045_v4 = vpack.c.bf16 %v3011_v33, %v3010_v10 }
 0x4ad   : > { %9125 = vmatprep.mubr.bf16.mxu0 %v3045_v4  ;;  %9184 = vmatpush3.bf16.msra.mxu0 %v9478_v63 }
 0x4ae   : > { %9126 = vmatmul.mubr.bf16.gmra.mrb[188].mxu0 %v3046_v39  ;;  %9185 = vmatprep.subr.bf16.mxu0 %v9479_v5 }
 0x4b1   : > { %9186 = vmatpush3.bf16.msra.mxu0 %v9479_v5 }
 0x4b2   : > { %9187 = vmatprep.subr.bf16.mxu0 %v9480_v40 }
 0x4b5   : > { %9188 = vmatpush3.bf16.msra.mxu0 %v9480_v40 }
 0x4b6   : > { %9189 = vmatprep.subr.bf16.mxu0 %v9481_v61 }
 0x4b9   : > { %9190 = vmatpush3.bf16.msra.mxu0 %v9481_v61 }
 0x511   : > { %v9099_v48 = vpop.f32.mrb[160].mxu0 }
 0x512   : > { %v3144_v16 = vadd.f32 %v9099_v48, %v11449_v38  ;;  %v3135_v8 = vpop.f32.mrb[161].mxu0 }
 0x513   : > { %v3136_v19 = vadd.f32 %v11449_v38, %v3135_v8  ;;  %v9100_v25 = vpop.f32.mrb[162].mxu0 }
 0x514   : > { %3264 = vst [vmem:[%s11454_s2 + $0x10] sm:$0xff] %v3144_v16  ;;  %v3147_v28 = vadd.f32 %v9100_v25, %v11449_v38  ;;  %v3138_v35 = vpop.f32.mrb[163].mxu0 }
 0x515   : > { %3262 = vst [vmem:[%s11454_s2] sm:$0xff] %v3136_v19  ;;  %v3139_v1 = vadd.f32 %v11449_v38, %v3138_v35 }
 0x516   : > { %3265 = vst [vmem:[%s11454_s2 + $0x18] sm:$0xff] %v3147_v28  ;;  %v3312_v26 = vpack.c.bf16 %v3147_v28, %v3144_v16  ;;  %v9482_v28 = vld [vmem:[%s15228_s13 + $0x38] sm:$0xff]  }
 0x517   : > { %3263 = vst [vmem:[%s11454_s2 + $0x8] sm:$0xff] %v3139_v1  ;;  %v3311_v22 = vpack.c.bf16 %v3139_v1, %v3136_v19  ;;  %9191 = vmatprep.subr.bf16.mxu0 %v9482_v28 }
 0x518   : > { %9192 = vmatpush3.bf16.msra.mxu0 %v9482_v28 }
 0x519   : > { %9145 = vmatprep.mubr.bf16.mxu1 %v3311_v22 }
 0x51a   : > { %9146 = vmatmul.mubr.bf16.vlgmr.msra.gmra.mrb[160].mxu1 %v3312_v26 }
 0x521   : > { %v9103_v41 = vpop.f32.mrb[164].mxu0 }
 0x522   : > { %v3160_v51 = vadd.f32 %v9103_v41, %v11449_v38  ;;  %v3151_v30 = vpop.f32.mrb[165].mxu0 }
 0x523   : > { %v3152_v6 = vadd.f32 %v11449_v38, %v3151_v30  ;;  %v9104_v13 = vpop.f32.mrb[166].mxu0 }
 0x524   : > { %3268 = vst [vmem:[%s11454_s2 + $0x30] sm:$0xff] %v3160_v51  ;;  %v3163_v27 = vadd.f32 %v9104_v13, %v11449_v38  ;;  %v3154_v32 = vpop.f32.mrb[167].mxu0 }
 0x525   : > { %3266 = vst [vmem:[%s11454_s2 + $0x20] sm:$0xff] %v3152_v6  ;;  %v3155_v31 = vadd.f32 %v11449_v38, %v3154_v32 }
 0x526   : > { %3269 = vst [vmem:[%s11454_s2 + $0x38] sm:$0xff] %v3163_v27  ;;  %v3314_v52 = vpack.c.bf16 %v3163_v27, %v3160_v51 }
 0x527   : > { %3267 = vst [vmem:[%s11454_s2 + $0x28] sm:$0xff] %v3155_v31  ;;  %v3313_v43 = vpack.c.bf16 %v3155_v31, %v3152_v6 }
 0x529   : > { %9149 = vmatprep.mubr.bf16.mxu1 %v3313_v43  ;;  %v9484_v43 = vld [vmem:[%s15230_s15 + $0x8] sm:$0xff]  }
 0x52a   : > { %9150 = vmatmul.mubr.bf16.gmra.mrb[164].mxu1 %v3314_v52  ;;  %v9483_v52 = vld [vmem:[%s15230_s15] sm:$0xff]  }
 0x52b   : > { %9225 = vmatprep.subr.bf16.mxu1 %v9483_v52 }
 0x52c   : > { %9226 = vmatpush3.bf16.msra.mxu1 %v9483_v52 }
 0x52d   : > { %9227 = vmatprep.subr.bf16.mxu1 %v9484_v43 }
 0x530   : > { %9228 = vmatpush3.bf16.msra.mxu1 %v9484_v43 }
 0x531   : > { %v9107_v21 = vpop.f32.mrb[168].mxu0 }
 0x532   : > { %v3176_v29 = vadd.f32 %v9107_v21, %v11449_v38  ;;  %v3167_v46 = vpop.f32.mrb[169].mxu0  ;;  %v11544_v21 = vld [vmem:[%s15227_s12] ss:$0 sm:$0xff] }
 0x533   : > { %v3168_v18 = vadd.f32 %v11449_v38, %v3167_v46  ;;  %v9108_v37 = vpop.f32.mrb[170].mxu0 }
 0x534   : > { %3272 = vst [vmem:[%s11454_s2 + $0x50] sm:$0xff] %v3176_v29  ;;  %v3179_v54 = vadd.f32 %v9108_v37, %v11449_v38  ;;  %v3170_v24 = vpop.f32.mrb[171].mxu0 }
 0x535   : > { %3270 = vst [vmem:[%s11454_s2 + $0x40] sm:$0xff] %v3168_v18  ;;  %v3171_v56 = vadd.f32 %v11449_v38, %v3170_v24 }
 0x536   : > { %3273 = vst [vmem:[%s11454_s2 + $0x58] sm:$0xff] %v3179_v54  ;;  %v3316_v49 = vpack.c.bf16 %v3179_v54, %v3176_v29 }
 0x537   : > { %3271 = vst [vmem:[%s11454_s2 + $0x48] sm:$0xff] %v3171_v56  ;;  %v3315_v59 = vpack.c.bf16 %v3171_v56, %v3168_v18 }
 0x539   : > { %9153 = vmatprep.mubr.bf16.mxu1 %v3315_v59 }
 0x53a   : > { %9154 = vmatmul.mubr.bf16.gmra.mrb[168].mxu1 %v3316_v49  ;;  %v9486_v49 = vld [vmem:[%s15230_s15 + $0x18] sm:$0xff]  }
 0x541   : > { %v9111_v34 = vpop.f32.mrb[172].mxu0 }
 0x542   : > { %v3192_v57 = vadd.f32 %v9111_v34, %v11449_v38  ;;  %v3183_v14 = vpop.f32.mrb[173].mxu0 }
 0x543   : > { %v3184_v20 = vadd.f32 %v11449_v38, %v3183_v14  ;;  %v9112_v23 = vpop.f32.mrb[174].mxu0 }
 0x544   : > { %3276 = vst [vmem:[%s11454_s2 + $0x70] sm:$0xff] %v3192_v57  ;;  %v3195_v62 = vadd.f32 %v9112_v23, %v11449_v38  ;;  %v3186_v0 = vpop.f32.mrb[175].mxu0 }
 0x545   : > { %3274 = vst [vmem:[%s11454_s2 + $0x60] sm:$0xff] %v3184_v20  ;;  %v3187_v47 = vadd.f32 %v11449_v38, %v3186_v0 }
 0x546   : > { %3277 = vst [vmem:[%s11454_s2 + $0x78] sm:$0xff] %v3195_v62  ;;  %v3318_v9 = vpack.c.bf16 %v3195_v62, %v3192_v57  ;;  %v9487_v62 = vld [vmem:[%s15230_s15 + $0x20] sm:$0xff]  }
 0x547   : > { %3275 = vst [vmem:[%s11454_s2 + $0x68] sm:$0xff] %v3187_v47  ;;  %v3317_v50 = vpack.c.bf16 %v3187_v47, %v3184_v20  ;;  %v9488_v47 = vld [vmem:[%s15230_s15 + $0x28] sm:$0xff]  }
 0x549   : > { %9157 = vmatprep.mubr.bf16.mxu1 %v3317_v50 }
 0x54a   : > { %9158 = vmatmul.mubr.bf16.gmra.mrb[172].mxu1 %v3318_v9  ;;  %v9489_v9 = vld [vmem:[%s15230_s15 + $0x30] sm:$0xff]  }
 0x551   : > { %v9115_v58 = vpop.f32.mrb[176].mxu0 }
 0x552   : > { %v3208_v12 = vadd.f32 %v9115_v58, %v11449_v38  ;;  %v3199_v2 = vpop.f32.mrb[177].mxu0 }
 0x553   : > { %v3200_v17 = vadd.f32 %v11449_v38, %v3199_v2  ;;  %v9116_v45 = vpop.f32.mrb[178].mxu0 }
 0x554   : > { %3280 = vst [vmem:[%s11454_s2 + $0x90] sm:$0xff] %v3208_v12  ;;  %v3211_v60 = vadd.f32 %v9116_v45, %v11449_v38  ;;  %v3202_v53 = vpop.f32.mrb[179].mxu0 }
 0x555   : > { %3278 = vst [vmem:[%s11454_s2 + $0x80] sm:$0xff] %v3200_v17  ;;  %v3203_v3 = vadd.f32 %v11449_v38, %v3202_v53 }
 0x556   : > { %3281 = vst [vmem:[%s11454_s2 + $0x98] sm:$0xff] %v3211_v60  ;;  %v3320_v7 = vpack.c.bf16 %v3211_v60, %v3208_v12 }
 0x557   : > { %3279 = vst [vmem:[%s11454_s2 + $0x88] sm:$0xff] %v3203_v3  ;;  %v3319_v55 = vpack.c.bf16 %v3203_v3, %v3200_v17 }
 0x559   : > { %9161 = vmatprep.mubr.bf16.mxu1 %v3319_v55 }
 0x55a   : > { %9162 = vmatmul.mubr.bf16.gmra.mrb[176].mxu1 %v3320_v7 }
 0x561   : > { %v9119_v11 = vpop.f32.mrb[180].mxu0 }
 0x562   : > { %v3224_v15 = vadd.f32 %v9119_v11, %v11449_v38  ;;  %v3215_v10 = vpop.f32.mrb[181].mxu0 }
 0x563   : > { %v3216_v33 = vadd.f32 %v11449_v38, %v3215_v10  ;;  %v9120_v39 = vpop.f32.mrb[182].mxu0 }
 0x564   : > { %3284 = vst [vmem:[%s11454_s2 + $0xb0] sm:$0xff] %v3224_v15  ;;  %v3227_v4 = vadd.f32 %v9120_v39, %v11449_v38  ;;  %v3218_v44 = vpop.f32.mrb[183].mxu0 }
 0x565   : > { %3282 = vst [vmem:[%s11454_s2 + $0xa0] sm:$0xff] %v3216_v33  ;;  %v3219_v42 = vadd.f32 %v11449_v38, %v3218_v44 }
 0x566   : > { %3285 = vst [vmem:[%s11454_s2 + $0xb8] sm:$0xff] %v3227_v4  ;;  %v3322_v36 = vpack.c.bf16 %v3227_v4, %v3224_v15 }
 0x567   : > { %3283 = vst [vmem:[%s11454_s2 + $0xa8] sm:$0xff] %v3219_v42  ;;  %v3321_v48 = vpack.c.bf16 %v3219_v42, %v3216_v33 }
 0x569   : > { %9165 = vmatprep.mubr.bf16.mxu1 %v3321_v48 }
 0x56a   : > { %9166 = vmatmul.mubr.bf16.gmra.mrb[180].mxu1 %v3322_v36 }
 0x571   : > { %v9123_v16 = vpop.f32.mrb[184].mxu0 }
 0x572   : > { %v3240_v8 = vadd.f32 %v9123_v16, %v11449_v38  ;;  %v3231_v63 = vpop.f32.mrb[185].mxu0 }
 0x573   : > { %v3232_v19 = vadd.f32 %v11449_v38, %v3231_v63  ;;  %v9124_v25 = vpop.f32.mrb[186].mxu0 }
 0x574   : > { %3288 = vst [vmem:[%s11454_s2 + $0xd0] sm:$0xff] %v3240_v8  ;;  %v3243_v35 = vadd.f32 %v9124_v25, %v11449_v38  ;;  %v3234_v1 = vpop.f32.mrb[187].mxu0 }
 0x575   : > { %3286 = vst [vmem:[%s11454_s2 + $0xc0] sm:$0xff] %v3232_v19  ;;  %v3235_v26 = vadd.f32 %v11449_v38, %v3234_v1 }
 0x576   : > { %3289 = vst [vmem:[%s11454_s2 + $0xd8] sm:$0xff] %v3243_v35  ;;  %v3324_v5 = vpack.c.bf16 %v3243_v35, %v3240_v8 }
 0x577   : > { %3287 = vst [vmem:[%s11454_s2 + $0xc8] sm:$0xff] %v3235_v26  ;;  %v3323_v22 = vpack.c.bf16 %v3235_v26, %v3232_v19 }
 0x579   : > { %9169 = vmatprep.mubr.bf16.mxu1 %v3323_v22 }
 0x57a   : > { %9170 = vmatmul.mubr.bf16.gmra.mrb[184].mxu1 %v3324_v5 }
 0x581   : > { %v9127_v40 = vpop.f32.mrb[188].mxu0 }
 0x582   : > { %v3256_v61 = vadd.f32 %v9127_v40, %v11449_v38  ;;  %v3247_v41 = vpop.f32.mrb[189].mxu0 }
 0x583   : > { %v3248_v51 = vadd.f32 %v11449_v38, %v3247_v41  ;;  %v9128_v30 = vpop.f32.mrb[190].mxu0 }
 0x584   : > { %3292 = vst [vmem:[%s11454_s2 + $0xf0] sm:$0xff] %v3256_v61  ;;  %v3259_v6 = vadd.f32 %v9128_v30, %v11449_v38  ;;  %v3250_v13 = vpop.f32.mrb[191].mxu0 }
 0x585   : > { %3290 = vst [vmem:[%s11454_s2 + $0xe0] sm:$0xff] %v3248_v51  ;;  %v3251_v27 = vadd.f32 %v11449_v38, %v3250_v13  ;;  %v9485_v38 = vld [vmem:[%s15230_s15 + $0x10] sm:$0xff]  }
 0x586   : > { %3293 = vst [vmem:[%s11454_s2 + $0xf8] sm:$0xff] %v3259_v6  ;;  %v3326_v32 = vpack.c.bf16 %v3259_v6, %v3256_v61  ;;  %9229 = vmatprep.subr.bf16.mxu1 %v9485_v38 }
 0x587   : > { %3291 = vst [vmem:[%s11454_s2 + $0xe8] sm:$0xff] %v3251_v27  ;;  %v3325_v31 = vpack.c.bf16 %v3251_v27, %v3248_v51  ;;  %9230 = vmatpush3.bf16.msra.mxu1 %v9485_v38 }
 0x588   : > { %9231 = vmatprep.subr.bf16.mxu1 %v9486_v49 }
 0x589   : > { %9173 = vmatprep.mubr.bf16.mxu1 %v3325_v31 }
 0x58a   : > { %9174 = vmatmul.mubr.bf16.gmra.mrb[188].mxu1 %v3326_v32 }
 0x58b   : > { %9232 = vmatpush3.bf16.msra.mxu1 %v9486_v49 }
 0x58c   : > { %9233 = vmatprep.subr.bf16.mxu1 %v9487_v62 }
 0x58f   : > { %9234 = vmatpush3.bf16.msra.mxu1 %v9487_v62 }
 0x590   : > { %9235 = vmatprep.subr.bf16.mxu1 %v9488_v47 }
 0x593   : > { %9236 = vmatpush3.bf16.msra.mxu1 %v9488_v47 }
 0x594   : > { %9237 = vmatprep.subr.bf16.mxu1 %v9489_v9 }
 0x597   : > { %9238 = vmatpush3.bf16.msra.mxu1 %v9489_v9 }
 0x5ed   : > { %v9147_v29 = vpop.f32.mrb[160].mxu1 }
 0x5ee   : > { %v3424_v46 = vadd.f32 %v9147_v29, %v11544_v21  ;;  %v3415_v18 = vpop.f32.mrb[161].mxu1 }
 0x5ef   : > { %v3416_v37 = vadd.f32 %v11544_v21, %v3415_v18  ;;  %v9148_v54 = vpop.f32.mrb[162].mxu1 }
 0x5f0   : > { %v3427_v24 = vadd.f32 %v9148_v54, %v11544_v21  ;;  %v3418_v56 = vpop.f32.mrb[163].mxu1  ;;  %v3544_v34 = vmax.f32 %v3424_v46, 0.0 }
 0x5f1   : > { %v3419_v59 = vadd.f32 %v11544_v21, %v3418_v56  ;;  %v3542_v14 = vmax.f32 %v3416_v37, 0.0 }
 0x5f2   : > { %v3545_v57 = vmax.f32 %v3427_v24, 0.0 }
 0x5f3   : > { %v3543_v20 = vmax.f32 %v3419_v59, 0.0 }
 0x5f4   : > { %v3592_v23 = vpack.c.bf16 %v3545_v57, %v3544_v34 }
 0x5f5   : > { %v3591_v0 = vpack.c.bf16 %v3543_v20, %v3542_v14 }
 0x5f7   : > { %9193 = vmatprep.mubr.bf16.mxu0 %v3591_v0 }
 0x5f8   : > { %9194 = vmatmul.mubr.bf16.vlgmr.msra.gmra.mrb[192].mxu0 %v3592_v23 }
 0x5fd   : > { %v9151_v50 = vpop.f32.mrb[164].mxu1 }
 0x5fe   : > { %v3440_v58 = vadd.f32 %v9151_v50, %v11544_v21  ;;  %v3431_v12 = vpop.f32.mrb[165].mxu1 }
 0x5ff   : > { %v3432_v2 = vadd.f32 %v11544_v21, %v3431_v12  ;;  %v9152_v17 = vpop.f32.mrb[166].mxu1 }
 0x600   : > { %v3443_v45 = vadd.f32 %v9152_v17, %v11544_v21  ;;  %v3434_v60 = vpop.f32.mrb[167].mxu1  ;;  %v3548_v3 = vmax.f32 %v3440_v58, 0.0 }
 0x601   : > { %v3435_v53 = vadd.f32 %v11544_v21, %v3434_v60  ;;  %v3546_v55 = vmax.f32 %v3432_v2, 0.0 }
 0x602   : > { %v3549_v7 = vmax.f32 %v3443_v45, 0.0 }
 0x603   : > { %v3547_v11 = vmax.f32 %v3435_v53, 0.0 }
 0x604   : > { %v3594_v15 = vpack.c.bf16 %v3549_v7, %v3548_v3 }
 0x605   : > { %v3593_v10 = vpack.c.bf16 %v3547_v11, %v3546_v55 }
 0x607   : > { %9197 = vmatprep.mubr.bf16.mxu0 %v3593_v10 }
 0x608   : > { %9198 = vmatmul.mubr.bf16.gmra.mrb[196].mxu0 %v3594_v15 }
 0x60d   : > { %v9155_v33 = vpop.f32.mrb[168].mxu1 }
 0x60e   : > { %v3456_v39 = vadd.f32 %v9155_v33, %v11544_v21  ;;  %v3447_v4 = vpop.f32.mrb[169].mxu1 }
 0x60f   : > { %v3448_v44 = vadd.f32 %v11544_v21, %v3447_v4  ;;  %v9156_v42 = vpop.f32.mrb[170].mxu1 }
 0x610   : > { %v3459_v36 = vadd.f32 %v9156_v42, %v11544_v21  ;;  %v3450_v48 = vpop.f32.mrb[171].mxu1  ;;  %v3552_v8 = vmax.f32 %v3456_v39, 0.0  ;;  %v9490_v39 = vld [vmem:[%s15230_s15 + $0x38] sm:$0xff]  }
 0x611   : > { %v3451_v16 = vadd.f32 %v11544_v21, %v3450_v48  ;;  %v3550_v19 = vmax.f32 %v3448_v44, 0.0  ;;  %9239 = vmatprep.subr.bf16.mxu1 %v9490_v39 }
 0x612   : > { %v3553_v63 = vmax.f32 %v3459_v36, 0.0  ;;  %9240 = vmatpush3.bf16.msra.mxu1 %v9490_v39 }
 0x613   : > { %v3551_v25 = vmax.f32 %v3451_v16, 0.0 }
 0x614   : > { %v3596_v28 = vpack.c.bf16 %v3553_v63, %v3552_v8 }
 0x615   : > { %v3595_v35 = vpack.c.bf16 %v3551_v25, %v3550_v19 }
 0x617   : > { %9201 = vmatprep.mubr.bf16.mxu0 %v3595_v35 }
 0x618   : > { %9202 = vmatmul.mubr.bf16.gmra.mrb[200].mxu0 %v3596_v28 }
 0x61d   : > { %v9159_v1 = vpop.f32.mrb[172].mxu1 }
 0x61e   : > { %v3472_v26 = vadd.f32 %v9159_v1, %v11544_v21  ;;  %v3463_v5 = vpop.f32.mrb[173].mxu1 }
 0x61f   : > { %v3464_v22 = vadd.f32 %v11544_v21, %v3463_v5  ;;  %v9160_v40 = vpop.f32.mrb[174].mxu1 }
 0x620   : > { %v3475_v61 = vadd.f32 %v9160_v40, %v11544_v21  ;;  %v3466_v41 = vpop.f32.mrb[175].mxu1  ;;  %v3556_v30 = vmax.f32 %v3472_v26, 0.0 }
 0x621   : > { %v3467_v51 = vadd.f32 %v11544_v21, %v3466_v41  ;;  %v3554_v13 = vmax.f32 %v3464_v22, 0.0 }
 0x622   : > { %v3557_v6 = vmax.f32 %v3475_v61, 0.0 }
 0x623   : > { %v3555_v27 = vmax.f32 %v3467_v51, 0.0 }
 0x624   : > { %v3598_v32 = vpack.c.bf16 %v3557_v6, %v3556_v30  ;;  %v9491_v30 = vld [vmem:[%s15232_s17] sm:$0xff]   ;;  %v9492_v6 = vld [vmem:[%s15232_s17 + $0x8] sm:$0xff]  }
 0x625   : > { %v3597_v31 = vpack.c.bf16 %v3555_v27, %v3554_v13  ;;  %9273 = vmatprep.subr.bf16.mxu0 %v9491_v30  ;;  %v9493_v13 = vld [vmem:[%s15232_s17 + $0x10] sm:$0xff]  }
 0x626   : > { %9274 = vmatpush3.bf16.msra.mxu0 %v9491_v30 }
 0x627   : > { %9205 = vmatprep.mubr.bf16.mxu0 %v3597_v31  ;;  %9275 = vmatprep.subr.bf16.mxu0 %v9492_v6 }
 0x628   : > { %9206 = vmatmul.mubr.bf16.gmra.mrb[204].mxu0 %v3598_v32 }
 0x62a   : > { %9276 = vmatpush3.bf16.msra.mxu0 %v9492_v6 }
 0x62b   : > { %9277 = vmatprep.subr.bf16.mxu0 %v9493_v13 }
 0x62d   : > { %v9163_v52 = vpop.f32.mrb[176].mxu1 }
 0x62e   : > { %v3488_v43 = vadd.f32 %v9163_v52, %v11544_v21  ;;  %v3479_v38 = vpop.f32.mrb[177].mxu1  ;;  %9278 = vmatpush3.bf16.msra.mxu0 %v9493_v13 }
 0x62f   : > { %v3480_v29 = vadd.f32 %v11544_v21, %v3479_v38  ;;  %v9164_v46 = vpop.f32.mrb[178].mxu1 }
 0x630   : > { %v3491_v18 = vadd.f32 %v9164_v46, %v11544_v21  ;;  %v3482_v37 = vpop.f32.mrb[179].mxu1  ;;  %v3560_v24 = vmax.f32 %v3488_v43, 0.0  ;;  %v9494_v46 = vld [vmem:[%s15232_s17 + $0x18] sm:$0xff]  }
 0x631   : > { %v3483_v54 = vadd.f32 %v11544_v21, %v3482_v37  ;;  %v3558_v49 = vmax.f32 %v3480_v29, 0.0  ;;  %9279 = vmatprep.subr.bf16.mxu0 %v9494_v46 }
 0x632   : > { %v3561_v56 = vmax.f32 %v3491_v18, 0.0  ;;  %9280 = vmatpush3.bf16.msra.mxu0 %v9494_v46 }
 0x633   : > { %v3559_v59 = vmax.f32 %v3483_v54, 0.0 }
 0x634   : > { %v3600_v34 = vpack.c.bf16 %v3561_v56, %v3560_v24 }
 0x635   : > { %v3599_v57 = vpack.c.bf16 %v3559_v59, %v3558_v49  ;;  %v9495_v59 = vld [vmem:[%s15232_s17 + $0x20] sm:$0xff]  }
 0x636   : > { %9281 = vmatprep.subr.bf16.mxu0 %v9495_v59 }
 0x637   : > { %9209 = vmatprep.mubr.bf16.mxu0 %v3599_v57  ;;  %v9496_v57 = vld [vmem:[%s15232_s17 + $0x28] sm:$0xff]   ;;  %9282 = vmatpush3.bf16.msra.mxu0 %v9495_v59 }
 0x638   : > { %9210 = vmatmul.mubr.bf16.gmra.mrb[208].mxu0 %v3600_v34  ;;  %9283 = vmatprep.subr.bf16.mxu0 %v9496_v57 }
 0x63b   : > { %9284 = vmatpush3.bf16.msra.mxu0 %v9496_v57 }
 0x63d   : > { %v9167_v14 = vpop.f32.mrb[180].mxu1 }
 0x63e   : > { %v3504_v20 = vadd.f32 %v9167_v14, %v11544_v21  ;;  %v3495_v23 = vpop.f32.mrb[181].mxu1  ;;  %v9497_v14 = vld [vmem:[%s15232_s17 + $0x30] sm:$0xff]  }
 0x63f   : > { %v3496_v62 = vadd.f32 %v11544_v21, %v3495_v23  ;;  %v9168_v0 = vpop.f32.mrb[182].mxu1  ;;  %9285 = vmatprep.subr.bf16.mxu0 %v9497_v14 }
 0x640   : > { %v3507_v47 = vadd.f32 %v9168_v0, %v11544_v21  ;;  %v3498_v9 = vpop.f32.mrb[183].mxu1  ;;  %v3564_v58 = vmax.f32 %v3504_v20, 0.0  ;;  %9286 = vmatpush3.bf16.msra.mxu0 %v9497_v14 }
 0x641   : > { %v3499_v50 = vadd.f32 %v11544_v21, %v3498_v9  ;;  %v3562_v2 = vmax.f32 %v3496_v62, 0.0 }
 0x642   : > { %v3565_v12 = vmax.f32 %v3507_v47, 0.0 }
 0x643   : > { %v3563_v17 = vmax.f32 %v3499_v50, 0.0 }
 0x644   : > { %v3602_v45 = vpack.c.bf16 %v3565_v12, %v3564_v58 }
 0x645   : > { %v3601_v60 = vpack.c.bf16 %v3563_v17, %v3562_v2 }
 0x647   : > { %9213 = vmatprep.mubr.bf16.mxu0 %v3601_v60 }
 0x648   : > { %9214 = vmatmul.mubr.bf16.gmra.mrb[212].mxu0 %v3602_v45 }
 0x64d   : > { %v9171_v53 = vpop.f32.mrb[184].mxu1 }
 0x64e   : > { %v3520_v3 = vadd.f32 %v9171_v53, %v11544_v21  ;;  %v3511_v7 = vpop.f32.mrb[185].mxu1 }
 0x64f   : > { %v3512_v55 = vadd.f32 %v11544_v21, %v3511_v7  ;;  %v9172_v11 = vpop.f32.mrb[186].mxu1 }
 0x650   : > { %v3523_v15 = vadd.f32 %v9172_v11, %v11544_v21  ;;  %v3514_v10 = vpop.f32.mrb[187].mxu1  ;;  %v3568_v4 = vmax.f32 %v3520_v3, 0.0 }
 0x651   : > { %v3515_v33 = vadd.f32 %v11544_v21, %v3514_v10  ;;  %v3566_v42 = vmax.f32 %v3512_v55, 0.0 }
 0x652   : > { %v3569_v44 = vmax.f32 %v3523_v15, 0.0 }
 0x653   : > { %v3567_v36 = vmax.f32 %v3515_v33, 0.0 }
 0x654   : > { %v3604_v48 = vpack.c.bf16 %v3569_v44, %v3568_v4 }
 0x655   : > { %v3603_v16 = vpack.c.bf16 %v3567_v36, %v3566_v42 }
 0x657   : > { %9217 = vmatprep.mubr.bf16.mxu0 %v3603_v16 }
 0x658   : > { %9218 = vmatmul.mubr.bf16.gmra.mrb[216].mxu0 %v3604_v48 }
 0x65d   : > { %v9175_v8 = vpop.f32.mrb[188].mxu1 }
 0x65e   : > { %v3536_v63 = vadd.f32 %v9175_v8, %v11544_v21  ;;  %v3527_v19 = vpop.f32.mrb[189].mxu1 }
 0x65f   : > { %v3528_v25 = vadd.f32 %v11544_v21, %v3527_v19  ;;  %v9176_v28 = vpop.f32.mrb[190].mxu1 }
 0x660   : > { %v3539_v35 = vadd.f32 %v9176_v28, %v11544_v21  ;;  %v3530_v1 = vpop.f32.mrb[191].mxu1  ;;  %v3572_v5 = vmax.f32 %v3536_v63, 0.0 }
 0x661   : > { %v3531_v26 = vadd.f32 %v11544_v21, %v3530_v1  ;;  %v3570_v40 = vmax.f32 %v3528_v25, 0.0  ;;  %v11605_v21 = vld [vmem:[%s15229_s14] ss:$0 sm:$0xff] }
 0x662   : > { %v3573_v22 = vmax.f32 %v3539_v35, 0.0 }
 0x663   : > { %v3571_v61 = vmax.f32 %v3531_v26, 0.0 }
 0x664   : > { %v3606_v41 = vpack.c.bf16 %v3573_v22, %v3572_v5 }
 0x665   : > { %v3605_v51 = vpack.c.bf16 %v3571_v61, %v3570_v40 }
 0x667   : > { %9221 = vmatprep.mubr.bf16.mxu0 %v3605_v51 }
 0x668   : > { %9222 = vmatmul.mubr.bf16.gmra.mrb[220].mxu0 %v3606_v41 }
 0x6cb   : > { %v9195_v27 = vpop.f32.mrb[192].mxu0 }
 0x6cc   : > { %v3704_v32 = vadd.f32 %v9195_v27, %v11605_v21  ;;  %v3695_v31 = vpop.f32.mrb[193].mxu0 }
 0x6cd   : > { %v3696_v52 = vadd.f32 %v11605_v21, %v3695_v31  ;;  %v9196_v43 = vpop.f32.mrb[194].mxu0 }
 0x6ce   : > { %v3707_v38 = vadd.f32 %v9196_v43, %v11605_v21  ;;  %v3698_v29 = vpop.f32.mrb[195].mxu0  ;;  %v3824_v37 = vmax.f32 %v3704_v32, 0.0 }
 0x6cf   : > { %v3699_v18 = vadd.f32 %v11605_v21, %v3698_v29  ;;  %v3822_v24 = vmax.f32 %v3696_v52, 0.0 }
 0x6d0   : > { %v3825_v54 = vmax.f32 %v3707_v38, 0.0 }
 0x6d1   : > { %v3823_v56 = vmax.f32 %v3699_v18, 0.0 }
 0x6d2   : > { %v3872_v49 = vpack.c.bf16 %v3825_v54, %v3824_v37 }
 0x6d3   : > { %v3871_v34 = vpack.c.bf16 %v3823_v56, %v3822_v24 }
 0x6d5   : > { %9241 = vmatprep.mubr.bf16.mxu1 %v3871_v34 }
 0x6d6   : > { %9242 = vmatmul.mubr.bf16.vlgmr.msra.gmra.mrb[192].mxu1 %v3872_v49 }
 0x6db   : > { %v9199_v20 = vpop.f32.mrb[196].mxu0 }
 0x6dc   : > { %v3720_v23 = vadd.f32 %v9199_v20, %v11605_v21  ;;  %v3711_v62 = vpop.f32.mrb[197].mxu0 }
 0x6dd   : > { %v3712_v0 = vadd.f32 %v11605_v21, %v3711_v62  ;;  %v9200_v47 = vpop.f32.mrb[198].mxu0 }
 0x6de   : > { %v3723_v9 = vadd.f32 %v9200_v47, %v11605_v21  ;;  %v3714_v50 = vpop.f32.mrb[199].mxu0  ;;  %v3828_v12 = vmax.f32 %v3720_v23, 0.0 }
 0x6df   : > { %v3715_v58 = vadd.f32 %v11605_v21, %v3714_v50  ;;  %v3826_v17 = vmax.f32 %v3712_v0, 0.0 }
 0x6e0   : > { %v3829_v2 = vmax.f32 %v3723_v9, 0.0 }
 0x6e1   : > { %v3827_v45 = vmax.f32 %v3715_v58, 0.0 }
 0x6e2   : > { %v3874_v60 = vpack.c.bf16 %v3829_v2, %v3828_v12 }
 0x6e3   : > { %v3873_v53 = vpack.c.bf16 %v3827_v45, %v3826_v17 }
 0x6e5   : > { %9245 = vmatprep.mubr.bf16.mxu1 %v3873_v53 }
 0x6e6   : > { %9246 = vmatmul.mubr.bf16.gmra.mrb[196].mxu1 %v3874_v60 }
 0x6eb   : > { %v9203_v3 = vpop.f32.mrb[200].mxu0 }
 0x6ec   : > { %v3736_v7 = vadd.f32 %v9203_v3, %v11605_v21  ;;  %v3727_v55 = vpop.f32.mrb[201].mxu0 }
 0x6ed   : > { %v3728_v11 = vadd.f32 %v11605_v21, %v3727_v55  ;;  %v9204_v15 = vpop.f32.mrb[202].mxu0 }
 0x6ee   : > { %v3739_v10 = vadd.f32 %v9204_v15, %v11605_v21  ;;  %v3730_v33 = vpop.f32.mrb[203].mxu0  ;;  %v3832_v4 = vmax.f32 %v3736_v7, 0.0  ;;  %v9498_v7 = vld [vmem:[%s15232_s17 + $0x38] sm:$0xff]  }
 0x6ef   : > { %v3731_v39 = vadd.f32 %v11605_v21, %v3730_v33  ;;  %v3830_v42 = vmax.f32 %v3728_v11, 0.0  ;;  %9287 = vmatprep.subr.bf16.mxu0 %v9498_v7 }
 0x6f0   : > { %v3833_v44 = vmax.f32 %v3739_v10, 0.0  ;;  %9288 = vmatpush3.bf16.msra.mxu0 %v9498_v7 }
 0x6f1   : > { %v3831_v36 = vmax.f32 %v3731_v39, 0.0 }
 0x6f2   : > { %v3876_v48 = vpack.c.bf16 %v3833_v44, %v3832_v4 }
 0x6f3   : > { %v3875_v16 = vpack.c.bf16 %v3831_v36, %v3830_v42 }
 0x6f5   : > { %9249 = vmatprep.mubr.bf16.mxu1 %v3875_v16 }
 0x6f6   : > { %9250 = vmatmul.mubr.bf16.gmra.mrb[200].mxu1 %v3876_v48 }
 0x6fb   : > { %v9207_v8 = vpop.f32.mrb[204].mxu0 }
 0x6fc   : > { %v3752_v63 = vadd.f32 %v9207_v8, %v11605_v21  ;;  %v3743_v19 = vpop.f32.mrb[205].mxu0 }
 0x6fd   : > { %v3744_v25 = vadd.f32 %v11605_v21, %v3743_v19  ;;  %v9208_v28 = vpop.f32.mrb[206].mxu0 }
 0x6fe   : > { %v3755_v35 = vadd.f32 %v9208_v28, %v11605_v21  ;;  %v3746_v1 = vpop.f32.mrb[207].mxu0  ;;  %v3836_v5 = vmax.f32 %v3752_v63, 0.0 }
 0x6ff   : > { %v3747_v26 = vadd.f32 %v11605_v21, %v3746_v1  ;;  %v3834_v40 = vmax.f32 %v3744_v25, 0.0 }
 0x700   : > { %v3837_v22 = vmax.f32 %v3755_v35, 0.0 }
 0x701   : > { %v3835_v61 = vmax.f32 %v3747_v26, 0.0 }
 0x702   : > { %v3878_v41 = vpack.c.bf16 %v3837_v22, %v3836_v5  ;;  %v9499_v5 = vld [vmem:[%s15234_s19] ss:$28 sps:$4 sm:$0xff]  }
 0x703   : > { %v3877_v51 = vpack.c.bf16 %v3835_v61, %v3834_v40  ;;  %v9501_v22 = vld [vmem:[%s15234_s19 + $0x4] ss:$28 sps:$4 sm:$0xff]   ;;  %v9502_v61 = vld [vmem:[%s15234_s19 + $0x38] ss:$28 sps:$4 sm:$0xff]  }
 0x704   : > { %4819 = vmatprep.subr.bf16.mxu1 %v9501_v22  ;;  %v11669_v40 = vld [vmem:[%s15231_s16] ss:$0 sm:$0xff] }
 0x705   : > { %9253 = vmatprep.mubr.bf16.mxu1 %v3877_v51  ;;  %4820 = vmatpush1.bf16.msra.mxu1 %v9499_v5  ;;  %v9507_v51 = vld [vmem:[%s15234_s19 + $0x74] ss:$28 sps:$4 sm:$0xff]  }
 0x706   : > { %9254 = vmatmul.mubr.bf16.gmra.mrb[204].mxu1 %v3878_v41  ;;  %v9516_v41 = vld [vmem:[%s15234_s19 + $0xc] ss:$28 sps:$4 sm:$0xff]  }
 0x707   : > { %5012 = vmatprep.subr.bf16.mxu0 %v9516_v41 }
 0x70b   : > { %v9211_v30 = vpop.f32.mrb[208].mxu0 }
 0x70c   : > { %v3768_v6 = vadd.f32 %v9211_v30, %v11605_v21  ;;  %v3759_v13 = vpop.f32.mrb[209].mxu0 }
 0x70d   : > { %v3760_v27 = vadd.f32 %v11605_v21, %v3759_v13  ;;  %v9212_v32 = vpop.f32.mrb[210].mxu0 }
 0x70e   : > { %v3771_v31 = vadd.f32 %v9212_v32, %v11605_v21  ;;  %v3762_v52 = vpop.f32.mrb[211].mxu0  ;;  %v3840_v38 = vmax.f32 %v3768_v6, 0.0 }
 0x70f   : > { %v3763_v43 = vadd.f32 %v11605_v21, %v3762_v52  ;;  %v3838_v46 = vmax.f32 %v3760_v27, 0.0 }
 0x710   : > { %v3841_v29 = vmax.f32 %v3771_v31, 0.0  ;;  %v9505_v31 = vld [vmem:[%s15234_s19 + $0x70] ss:$28 sps:$4 sm:$0xff]  }
 0x711   : > { %v3839_v18 = vmax.f32 %v3763_v43, 0.0 }
 0x712   : > { %v3880_v37 = vpack.c.bf16 %v3841_v29, %v3840_v38  ;;  %v9510_v38 = vld [vmem:[%s15234_s19 + $0xac] ss:$28 sps:$4 sm:$0xff]  }
 0x713   : > { %v3879_v54 = vpack.c.bf16 %v3839_v18, %v3838_v46 }
 0x715   : > { %9257 = vmatprep.mubr.bf16.mxu1 %v3879_v54 }
 0x716   : > { %9258 = vmatmul.mubr.bf16.gmra.mrb[208].mxu1 %v3880_v37 }
 0x71b   : > { %v9215_v24 = vpop.f32.mrb[212].mxu0 }
 0x71c   : > { %v3784_v56 = vadd.f32 %v9215_v24, %v11605_v21  ;;  %v3775_v49 = vpop.f32.mrb[213].mxu0  ;;  %v9508_v24 = vld [vmem:[%s15234_s19 + $0xa8] ss:$28 sps:$4 sm:$0xff]  }
 0x71d   : > { %v3776_v59 = vadd.f32 %v11605_v21, %v3775_v49  ;;  %v9216_v34 = vpop.f32.mrb[214].mxu0  ;;  %v9513_v49 = vld [vmem:[%s15234_s19 + $0xe4] ss:$28 sps:$4 sm:$0xff]  }
 0x71e   : > { %v3787_v57 = vadd.f32 %v9216_v34, %v11605_v21  ;;  %v3778_v14 = vpop.f32.mrb[215].mxu0  ;;  %v3844_v23 = vmax.f32 %v3784_v56, 0.0  ;;  %v9514_v34 = vld [vmem:[%s15234_s19 + $0x8] ss:$28 sps:$4 sm:$0xff]  }
 0x71f   : > { %v3779_v20 = vadd.f32 %v11605_v21, %v3778_v14  ;;  %v3842_v0 = vmax.f32 %v3776_v59, 0.0  ;;  %v9511_v14 = vld [vmem:[%s15234_s19 + $0xe0] ss:$28 sps:$4 sm:$0xff]  }
 0x720   : > { %v3845_v62 = vmax.f32 %v3787_v57, 0.0  ;;  %v9519_v57 = vld [vmem:[%s15234_s19 + $0x44] ss:$28 sps:$4 sm:$0xff]  }
 0x721   : > { %v3843_v47 = vmax.f32 %v3779_v20, 0.0  ;;  %v9522_v20 = vld [vmem:[%s15234_s19 + $0x11c] ss:$28 sps:$4 sm:$0xff]  }
 0x722   : > { %v3882_v9 = vpack.c.bf16 %v3845_v62, %v3844_v23  ;;  %v9517_v23 = vld [vmem:[%s15234_s19 + $0x40] ss:$28 sps:$4 sm:$0xff]  }
 0x723   : > { %v3881_v50 = vpack.c.bf16 %v3843_v47, %v3842_v0  ;;  %v9525_v62 = vld [vmem:[%s15234_s19 + $0x7c] ss:$28 sps:$4 sm:$0xff]   ;;  %v9531_v47 = vld [vmem:[%s15234_s19 + $0x154] ss:$28 sps:$4 sm:$0xff]  }
 0x724   : > { %v9520_v0 = vld [vmem:[%s15234_s19 + $0x118] ss:$28 sps:$4 sm:$0xff]  }
 0x725   : > { %9261 = vmatprep.mubr.bf16.mxu1 %v3881_v50  ;;  %v9523_v50 = vld [vmem:[%s15234_s19 + $0x78] ss:$28 sps:$4 sm:$0xff]  }
 0x726   : > { %9262 = vmatmul.mubr.bf16.gmra.mrb[212].mxu1 %v3882_v9 }
 0x72b   : > { %v9219_v58 = vpop.f32.mrb[216].mxu0 }
 0x72c   : > { %v3800_v12 = vadd.f32 %v9219_v58, %v11605_v21  ;;  %v3791_v2 = vpop.f32.mrb[217].mxu0 }
 0x72d   : > { %v3792_v17 = vadd.f32 %v11605_v21, %v3791_v2  ;;  %v9220_v45 = vpop.f32.mrb[218].mxu0  ;;  %v9528_v2 = vld [vmem:[%s15234_s19 + $0xb4] ss:$28 sps:$4 sm:$0xff]  }
 0x72e   : > { %v3803_v60 = vadd.f32 %v9220_v45, %v11605_v21  ;;  %v3794_v53 = vpop.f32.mrb[219].mxu0  ;;  %v3848_v55 = vmax.f32 %v3800_v12, 0.0 }
 0x72f   : > { %v3795_v3 = vadd.f32 %v11605_v21, %v3794_v53  ;;  %v3846_v15 = vmax.f32 %v3792_v17, 0.0 }
 0x730   : > { %v3849_v11 = vmax.f32 %v3803_v60, 0.0  ;;  %v9529_v60 = vld [vmem:[%s15234_s19 + $0x150] ss:$28 sps:$4 sm:$0xff]  }
 0x731   : > { %v3847_v10 = vmax.f32 %v3795_v3, 0.0 }
 0x732   : > { %v3884_v33 = vpack.c.bf16 %v3849_v11, %v3848_v55  ;;  %v9526_v55 = vld [vmem:[%s15234_s19 + $0xb0] ss:$28 sps:$4 sm:$0xff]  }
 0x733   : > { %v3883_v39 = vpack.c.bf16 %v3847_v10, %v3846_v15  ;;  %v9534_v10 = vld [vmem:[%s15234_s19 + $0xec] ss:$28 sps:$4 sm:$0xff]  }
 0x735   : > { %9265 = vmatprep.mubr.bf16.mxu1 %v3883_v39 }
 0x736   : > { %9266 = vmatmul.mubr.bf16.gmra.mrb[216].mxu1 %v3884_v33 }
 0x73b   : > { %v9223_v4 = vpop.f32.mrb[220].mxu0 }
 0x73c   : > { %v3816_v44 = vadd.f32 %v9223_v4, %v11605_v21  ;;  %v3807_v42 = vpop.f32.mrb[221].mxu0 }
 0x73d   : > { %v3808_v36 = vadd.f32 %v11605_v21, %v3807_v42  ;;  %v9224_v48 = vpop.f32.mrb[222].mxu0  ;;  %v9532_v42 = vld [vmem:[%s15234_s19 + $0xe8] ss:$28 sps:$4 sm:$0xff]  }
 0x73e   : > { %v3819_v16 = vadd.f32 %v9224_v48, %v11605_v21  ;;  %v3810_v8 = vpop.f32.mrb[223].mxu0  ;;  %v3852_v19 = vmax.f32 %v3816_v44, 0.0  ;;  %v9535_v48 = vld [vmem:[%s15234_s19 + $0x120] ss:$28 sps:$4 sm:$0xff]  }
 0x73f   : > { %v3811_v63 = vadd.f32 %v11605_v21, %v3810_v8  ;;  %v3850_v28 = vmax.f32 %v3808_v36, 0.0  ;;  %v9504_v21 = vld [vmem:[%s15234_s19 + $0x3c] ss:$28 sps:$4 sm:$0xff]   ;;  %v9537_v36 = vld [vmem:[%s15234_s19 + $0x124] ss:$28 sps:$4 sm:$0xff]  }
 0x740   : > { %v3853_v25 = vmax.f32 %v3819_v16, 0.0  ;;  %4821 = vmatprep.subr.bf16.mxu1 %v9504_v21 }
 0x741   : > { %v3851_v35 = vmax.f32 %v3811_v63, 0.0  ;;  %4822 = vmatpush1.bf16.msra.mxu1 %v9502_v61 }
 0x742   : > { %v3886_v1 = vpack.c.bf16 %v3853_v25, %v3852_v19  ;;  %4823 = vmatprep.subr.bf16.mxu1 %v9507_v51 }
 0x743   : > { %v3885_v26 = vpack.c.bf16 %v3851_v35, %v3850_v28 }
 0x745   : > { %9269 = vmatprep.mubr.bf16.mxu1 %v3885_v26  ;;  %4824 = vmatpush1.bf16.msra.mxu1 %v9505_v31 }
 0x746   : > { %9270 = vmatmul.mubr.bf16.gmra.mrb[220].mxu1 %v3886_v1  ;;  %4825 = vmatprep.subr.bf16.mxu1 %v9510_v38 }
 0x749   : > { %4826 = vmatpush1.bf16.msra.mxu1 %v9508_v24 }
 0x74a   : > { %4827 = vmatprep.subr.bf16.mxu1 %v9513_v49 }
 0x74d   : > { %4828 = vmatpush1.bf16.msra.mxu1 %v9511_v14 }
 0x74e   : > { %4829 = vmatprep.subr.bf16.mxu1 %v9522_v20 }
 0x751   : > { %4830 = vmatpush1.bf16.msra.mxu1 %v9520_v0 }
 0x752   : > { %4831 = vmatprep.subr.bf16.mxu1 %v9531_v47 }
 0x755   : > { %4832 = vmatpush1.bf16.msra.mxu1 %v9529_v60 }
 0x7a9   : > { %v9243_v30 = vpop.f32.mrb[192].mxu1 }
 0x7aa   : > { %v3984_v6 = vadd.f32 %v9243_v30, %v11669_v40  ;;  %v3975_v13 = vpop.f32.mrb[193].mxu1 }
 0x7ab   : > { %v3976_v27 = vadd.f32 %v11669_v40, %v3975_v13  ;;  %v9244_v32 = vpop.f32.mrb[194].mxu1 }
 0x7ac   : > { %v3987_v52 = vadd.f32 %v9244_v32, %v11669_v40  ;;  %v3978_v43 = vpop.f32.mrb[195].mxu1  ;;  %v4104_v46 = vmax.f32 %v3984_v6, 0.0 }
 0x7ad   : > { %v3979_v29 = vadd.f32 %v11669_v40, %v3978_v43  ;;  %v4102_v37 = vmax.f32 %v3976_v27, 0.0 }
 0x7ae   : > { %v4105_v18 = vmax.f32 %v3987_v52, 0.0 }
 0x7af   : > { %v4103_v54 = vmax.f32 %v3979_v29, 0.0 }
 0x7b0   : > { %v4152_v56 = vpack.c.bf16 %v4105_v18, %v4104_v46 }
 0x7b1   : > { %v4151_v59 = vpack.c.bf16 %v4103_v54, %v4102_v37 }
 0x7b3   : > { %9289 = vmatprep.mubr.bf16.mxu0 %v4151_v59 }
 0x7b4   : > { %9290 = vmatmul.mubr.bf16.vlgmr.msra.gmra.mrb[224].mxu0 %v4152_v56 }
 0x7b5   : > { %5013 = vmatpush1.bf16.msra.mxu0 %v9514_v34 }
 0x7b6   : > { %5014 = vmatprep.subr.bf16.mxu0 %v9519_v57 }
 0x7b9   : > { %v9247_v9 = vpop.f32.mrb[196].mxu1  ;;  %5015 = vmatpush1.bf16.msra.mxu0 %v9517_v23 }
 0x7ba   : > { %v4000_v58 = vadd.f32 %v9247_v9, %v11669_v40  ;;  %v3991_v12 = vpop.f32.mrb[197].mxu1  ;;  %5016 = vmatprep.subr.bf16.mxu0 %v9525_v62 }
 0x7bb   : > { %v3992_v17 = vadd.f32 %v11669_v40, %v3991_v12  ;;  %v9248_v45 = vpop.f32.mrb[198].mxu1 }
 0x7bc   : > { %v4003_v53 = vadd.f32 %v9248_v45, %v11669_v40  ;;  %v3994_v3 = vpop.f32.mrb[199].mxu1  ;;  %v4108_v11 = vmax.f32 %v4000_v58, 0.0 }
 0x7bd   : > { %v3995_v7 = vadd.f32 %v11669_v40, %v3994_v3  ;;  %5017 = vmatpush1.bf16.msra.mxu0 %v9523_v50  ;;  %v4106_v33 = vmax.f32 %v3992_v17, 0.0 }
 0x7be   : > { %v4109_v15 = vmax.f32 %v4003_v53, 0.0  ;;  %5018 = vmatprep.subr.bf16.mxu0 %v9528_v2 }
 0x7bf   : > { %v4107_v39 = vmax.f32 %v3995_v7, 0.0 }
 0x7c0   : > { %v4154_v4 = vpack.c.bf16 %v4109_v15, %v4108_v11 }
 0x7c1   : > { %v4153_v44 = vpack.c.bf16 %v4107_v39, %v4106_v33  ;;  %5019 = vmatpush1.bf16.msra.mxu0 %v9526_v55  ;;  %v9543_v33 = vld [vmem:[%s15234_s19 + $0x15c] ss:$28 sps:$4 sm:$0xff]  }
 0x7c2   : > { %5020 = vmatprep.subr.bf16.mxu0 %v9534_v10 }
 0x7c3   : > { %9293 = vmatprep.mubr.bf16.mxu0 %v4153_v44 }
 0x7c4   : > { %9294 = vmatmul.mubr.bf16.gmra.mrb[228].mxu0 %v4154_v4  ;;  %v9541_v4 = vld [vmem:[%s15234_s19 + $0x158] ss:$28 sps:$4 sm:$0xff]  }
 0x7c5   : > { %5021 = vmatpush1.bf16.msra.mxu0 %v9532_v42 }
 0x7c6   : > { %5022 = vmatprep.subr.bf16.mxu0 %v9537_v36 }
 0x7c9   : > { %v9251_v16 = vpop.f32.mrb[200].mxu1  ;;  %5023 = vmatpush1.bf16.msra.mxu0 %v9535_v48 }
 0x7ca   : > { %v4016_v8 = vadd.f32 %v9251_v16, %v11669_v40  ;;  %v4007_v63 = vpop.f32.mrb[201].mxu1  ;;  %5024 = vmatprep.subr.bf16.mxu0 %v9543_v33 }
 0x7cb   : > { %v4008_v19 = vadd.f32 %v11669_v40, %v4007_v63  ;;  %v9252_v25 = vpop.f32.mrb[202].mxu1  ;;  %v9540_v63 = vld [vmem:[%s15234_s19 + $0x18c] ss:$28 sps:$4 sm:$0xff]  }
 0x7cc   : > { %v4019_v28 = vadd.f32 %v9252_v25, %v11669_v40  ;;  %v4010_v35 = vpop.f32.mrb[203].mxu1  ;;  %v4112_v26 = vmax.f32 %v4016_v8, 0.0  ;;  %4833 = vmatprep.subr.bf16.mxu1 %v9540_v63 }
 0x7cd   : > { %v4011_v1 = vadd.f32 %v11669_v40, %v4010_v35  ;;  %v4110_v22 = vmax.f32 %v4008_v19, 0.0  ;;  %5025 = vmatpush1.bf16.msra.mxu0 %v9541_v4  ;;  %v9546_v19 = vld [vmem:[%s15234_s19 + $0x194] ss:$28 sps:$4 sm:$0xff]  }
 0x7ce   : > { %v4113_v5 = vmax.f32 %v4019_v28, 0.0  ;;  %v9538_v28 = vld [vmem:[%s15234_s19 + $0x188] ss:$28 sps:$4 sm:$0xff]   ;;  %v9544_v35 = vld [vmem:[%s15234_s19 + $0x190] ss:$28 sps:$4 sm:$0xff]   ;;  %5026 = vmatprep.subr.bf16.mxu0 %v9546_v19 }
 0x7cf   : > { %v4111_v21 = vmax.f32 %v4011_v1, 0.0  ;;  %4834 = vmatpush1.bf16.msra.mxu1 %v9538_v28 }
 0x7d0   : > { %v4156_v61 = vpack.c.bf16 %v4113_v5, %v4112_v26 }
 0x7d1   : > { %v4155_v41 = vpack.c.bf16 %v4111_v21, %v4110_v22  ;;  %5027 = vmatpush1.bf16.msra.mxu0 %v9544_v35  ;;  %v9559_v35 = vld [vmem:[%s15234_s19 + $0xf0] ss:$28 sps:$4 sm:$0xff]  }
 0x7d3   : > { %9297 = vmatprep.mubr.bf16.mxu0 %v4155_v41 }
 0x7d4   : > { %9298 = vmatmul.mubr.bf16.gmra.mrb[232].mxu0 %v4156_v61  ;;  %v10484_v61 = vmov 0  }
 0x7d5   : > { %4851 = vmatprep.mubr.bf16.mxu1 %v10484_v61 }
 0x7d9   : > { %v9255_v51 = vpop.f32.mrb[204].mxu1 }
 0x7da   : > { %v4032_v30 = vadd.f32 %v9255_v51, %v11669_v40  ;;  %v4023_v6 = vpop.f32.mrb[205].mxu1  ;;  %v9549_v51 = vld [vmem:[%s15234_s19 + $0x14] ss:$28 sps:$4 sm:$0xff]  }
 0x7db   : > { %v4024_v13 = vadd.f32 %v11669_v40, %v4023_v6  ;;  %v9256_v27 = vpop.f32.mrb[206].mxu1  ;;  %5205 = vmatprep.subr.bf16.mxu1 %v9549_v51  ;;  %v9567_v51 = vld [vmem:[%s15234_s19 + $0x160] ss:$28 sps:$4 sm:$0xff]  }
 0x7dc   : > { %v4035_v32 = vadd.f32 %v9256_v27, %v11669_v40  ;;  %v4026_v31 = vpop.f32.mrb[207].mxu1  ;;  %v4116_v43 = vmax.f32 %v4032_v30, 0.0 }
 0x7dd   : > { %v4027_v52 = vadd.f32 %v11669_v40, %v4026_v31  ;;  %v4114_v29 = vmax.f32 %v4024_v13, 0.0 }
 0x7de   : > { %v4117_v38 = vmax.f32 %v4035_v32, 0.0 }
 0x7df   : > { %v4115_v46 = vmax.f32 %v4027_v52, 0.0 }
 0x7e0   : > { %v4158_v18 = vpack.c.bf16 %v4117_v38, %v4116_v43 }
 0x7e1   : > { %v4157_v37 = vpack.c.bf16 %v4115_v46, %v4114_v29 }
 0x7e3   : > { %9301 = vmatprep.mubr.bf16.mxu0 %v4157_v37 }
 0x7e4   : > { %9302 = vmatmul.mubr.bf16.gmra.mrb[236].mxu0 %v4158_v18 }
 0x7e9   : > { %v9259_v54 = vpop.f32.mrb[208].mxu1 }
 0x7ea   : > { %v4048_v24 = vadd.f32 %v9259_v54, %v11669_v40  ;;  %v4039_v56 = vpop.f32.mrb[209].mxu1 }
 0x7eb   : > { %v4040_v49 = vadd.f32 %v11669_v40, %v4039_v56  ;;  %v9260_v59 = vpop.f32.mrb[210].mxu1  ;;  %v11801_v56 = vld [vmem:[%s15233_s18] ss:$0 sm:$0xff] }
 0x7ec   : > { %v4051_v34 = vadd.f32 %v9260_v59, %v11669_v40  ;;  %v4042_v57 = vpop.f32.mrb[211].mxu1  ;;  %v4120_v20 = vmax.f32 %v4048_v24, 0.0  ;;  %v9562_v24 = vld [vmem:[%s15234_s19 + $0x18] ss:$28 sps:$4 sm:$0xff]  }
 0x7ed   : > { %v4043_v14 = vadd.f32 %v11669_v40, %v4042_v57  ;;  %v4118_v62 = vmax.f32 %v4040_v49, 0.0  ;;  %9321 = vmatprep.subr.bf16.mxu0 %v9562_v24 }
 0x7ee   : > { %v4121_v23 = vmax.f32 %v4051_v34, 0.0 }
 0x7ef   : > { %v4119_v0 = vmax.f32 %v4043_v14, 0.0 }
 0x7f0   : > { %v4160_v47 = vpack.c.bf16 %v4121_v23, %v4120_v20 }
 0x7f1   : > { %v4159_v9 = vpack.c.bf16 %v4119_v0, %v4118_v62 }
 0x7f3   : > { %9305 = vmatprep.mubr.bf16.mxu0 %v4159_v9 }
 0x7f4   : > { %9306 = vmatmul.mubr.bf16.gmra.mrb[240].mxu0 %v4160_v47 }
 0x7f9   : > { %v9263_v50 = vpop.f32.mrb[212].mxu1 }
 0x7fa   : > { %v4064_v58 = vadd.f32 %v9263_v50, %v11669_v40  ;;  %v4055_v12 = vpop.f32.mrb[213].mxu1 }
 0x7fb   : > { %v4056_v2 = vadd.f32 %v11669_v40, %v4055_v12  ;;  %v9264_v17 = vpop.f32.mrb[214].mxu1 }
 0x7fc   : > { %v4067_v45 = vadd.f32 %v9264_v17, %v11669_v40  ;;  %v4058_v60 = vpop.f32.mrb[215].mxu1  ;;  %v4124_v3 = vmax.f32 %v4064_v58, 0.0  ;;  %v9547_v58 = vld [vmem:[%s15234_s19 + $0x10] ss:$28 sps:$4 sm:$0xff]  }
 0x7fd   : > { %v4059_v53 = vadd.f32 %v11669_v40, %v4058_v60  ;;  %v4122_v55 = vmax.f32 %v4056_v2, 0.0  ;;  %v9552_v2 = vld [vmem:[%s15234_s19 + $0x4c] ss:$28 sps:$4 sm:$0xff]   ;;  %v9555_v60 = vld [vmem:[%s15234_s19 + $0x84] ss:$28 sps:$4 sm:$0xff]  }
 0x7fe   : > { %v4125_v7 = vmax.f32 %v4067_v45, 0.0  ;;  %v9566_v17 = vld [vmem:[%s15234_s19 + $0x50] ss:$28 sps:$4 sm:$0xff]   ;;  %v9550_v45 = vld [vmem:[%s15234_s19 + $0x48] ss:$28 sps:$4 sm:$0xff]  }
 0x7ff   : > { %v4123_v11 = vmax.f32 %v4059_v53, 0.0 }
 0x800   : > { %v4162_v15 = vpack.c.bf16 %v4125_v7, %v4124_v3  ;;  %v9553_v3 = vld [vmem:[%s15234_s19 + $0x80] ss:$28 sps:$4 sm:$0xff]   ;;  %v9570_v7 = vld [vmem:[%s15234_s19 + $0x88] ss:$28 sps:$4 sm:$0xff]  }
 0x801   : > { %v4161_v10 = vpack.c.bf16 %v4123_v11, %v4122_v55 }
 0x803   : > { %9309 = vmatprep.mubr.bf16.mxu0 %v4161_v10 }
 0x804   : > { %9310 = vmatmul.mubr.bf16.gmra.mrb[244].mxu0 %v4162_v15  ;;  %v9558_v15 = vld [vmem:[%s15234_s19 + $0xbc] ss:$28 sps:$4 sm:$0xff]  }
 0x809   : > { %v9267_v39 = vpop.f32.mrb[216].mxu1 }
 0x80a   : > { %v4080_v44 = vadd.f32 %v9267_v39, %v11669_v40  ;;  %v4071_v42 = vpop.f32.mrb[217].mxu1  ;;  %v9571_v39 = vld [vmem:[%s15234_s19 + $0xc0] ss:$28 sps:$4 sm:$0xff]  }
 0x80b   : > { %v4072_v36 = vadd.f32 %v11669_v40, %v4071_v42  ;;  %v9268_v48 = vpop.f32.mrb[218].mxu1 }
 0x80c   : > { %v4083_v16 = vadd.f32 %v9268_v48, %v11669_v40  ;;  %v4074_v8 = vpop.f32.mrb[219].mxu1  ;;  %v4128_v1 = vmax.f32 %v4080_v44, 0.0 }
 0x80d   : > { %v4075_v25 = vadd.f32 %v11669_v40, %v4074_v8  ;;  %v4126_v5 = vmax.f32 %v4072_v36, 0.0  ;;  %v9556_v36 = vld [vmem:[%s15234_s19 + $0xb8] ss:$28 sps:$4 sm:$0xff]  }
 0x80e   : > { %v4129_v26 = vmax.f32 %v4083_v16, 0.0  ;;  %v9561_v8 = vld [vmem:[%s15234_s19 + $0xf4] ss:$28 sps:$4 sm:$0xff]  }
 0x80f   : > { %v4127_v22 = vmax.f32 %v4075_v25, 0.0 }
 0x810   : > { %v4164_v21 = vpack.c.bf16 %v4129_v26, %v4128_v1  ;;  %v9575_v1 = vld [vmem:[%s15234_s19 + $0xf8] ss:$28 sps:$4 sm:$0xff]   ;;  %v9565_v26 = vld [vmem:[%s15234_s19 + $0x12c] ss:$28 sps:$4 sm:$0xff]  }
 0x811   : > { %v4163_v41 = vpack.c.bf16 %v4127_v22, %v4126_v5  ;;  %v9576_v5 = vld [vmem:[%s15234_s19 + $0x130] ss:$28 sps:$4 sm:$0xff]   ;;  %v9563_v22 = vld [vmem:[%s15234_s19 + $0x128] ss:$28 sps:$4 sm:$0xff]  }
 0x813   : > { %9313 = vmatprep.mubr.bf16.mxu0 %v4163_v41 }
 0x814   : > { %9314 = vmatmul.mubr.bf16.gmra.mrb[248].mxu0 %v4164_v21  ;;  %v9569_v21 = vld [vmem:[%s15234_s19 + $0x164] ss:$28 sps:$4 sm:$0xff]  }
 0x819   : > { %v9271_v30 = vpop.f32.mrb[220].mxu1 }
 0x81a   : > { %v4096_v6 = vadd.f32 %v9271_v30, %v11669_v40  ;;  %v4087_v13 = vpop.f32.mrb[221].mxu1  ;;  %v9577_v30 = vld [vmem:[%s15234_s19 + $0x168] ss:$28 sps:$4 sm:$0xff]  }
 0x81b   : > { %v4088_v27 = vadd.f32 %v11669_v40, %v4087_v13  ;;  %v9272_v32 = vpop.f32.mrb[222].mxu1 }
 0x81c   : > { %v4099_v31 = vadd.f32 %v9272_v32, %v11669_v40  ;;  %v4090_v52 = vpop.f32.mrb[223].mxu1  ;;  %v4132_v38 = vmax.f32 %v4096_v6, 0.0 }
 0x81d   : > { %v4091_v43 = vadd.f32 %v11669_v40, %v4090_v52  ;;  %v4130_v46 = vmax.f32 %v4088_v27, 0.0  ;;  %v9574_v27 = vld [vmem:[%s15234_s19 + $0x19c] ss:$28 sps:$4 sm:$0xff]  }
 0x81e   : > { %v4133_v29 = vmax.f32 %v4099_v31, 0.0  ;;  %v9578_v52 = vld [vmem:[%s15234_s19 + $0x1a0] ss:$28 sps:$4 sm:$0xff]  }
 0x81f   : > { %v4131_v18 = vmax.f32 %v4091_v43, 0.0 }
 0x820   : > { %v4166_v37 = vpack.c.bf16 %v4133_v29, %v4132_v38 }
 0x821   : > { %v4165_v54 = vpack.c.bf16 %v4131_v18, %v4130_v46  ;;  %v9572_v46 = vld [vmem:[%s15234_s19 + $0x198] ss:$28 sps:$4 sm:$0xff]  }
 0x823   : > { %9317 = vmatprep.mubr.bf16.mxu0 %v4165_v54 }
 0x824   : > { %9318 = vmatmul.mubr.bf16.gmra.mrb[252].mxu0 %v4166_v37 }
 0x825   : > { %5044 = vmatprep.mubr.bf16.mxu0 %v10484_v61 }
 0x887   : > { %v9291_v40 = vpop.f32.mrb[224].mxu0 }
 0x888   : > { %v4264_v49 = vadd.f32 %v9291_v40, %v11801_v56  ;;  %v4255_v59 = vpop.f32.mrb[225].mxu0 }
 0x889   : > { %v4256_v34 = vadd.f32 %v11801_v56, %v4255_v59  ;;  %v9292_v57 = vpop.f32.mrb[226].mxu0 }
 0x88a   : > { %v4267_v14 = vadd.f32 %v9292_v57, %v11801_v56  ;;  %v4258_v20 = vpop.f32.mrb[227].mxu0  ;;  %v4384_v62 = vmax.f32 %v4264_v49, 0.0 }
 0x88b   : > { %v4259_v23 = vadd.f32 %v11801_v56, %v4258_v20  ;;  %v4382_v47 = vmax.f32 %v4256_v34, 0.0 }
 0x88c   : > { %v4385_v0 = vmax.f32 %v4267_v14, 0.0 }
 0x88d   : > { %v4383_v9 = vmax.f32 %v4259_v23, 0.0 }
 0x88e   : > { %v11807_v50 = vpack.c.bf16 %v4385_v0, %v4384_v62 }
 0x88f   : > { %v11812_v12 = vpack.c.bf16 %v4383_v9, %v4382_v47 }
 0x891   : > { %4852 = vmatmul.mubr.bf16.vlgmr.msra.gmra.mrb[224].mxu1 %v11812_v12  ;;  %5045 = vmatmul.mubr.bf16.vlgmr.msra.gmra.mrb[0].mxu0 %v11812_v12 }
 0x892   : > { %5206 = vmatpush1.bf16.msra.mxu1 %v9547_v58  ;;  %4861 = vmatprep.mubr.bf16.mxu1 %v10484_v61 }
 0x893   : > { %5054 = vmatprep.mubr.bf16.mxu0 %v10484_v61  ;;  %5207 = vmatprep.subr.bf16.mxu1 %v9552_v2 }
 0x894   : > { %9322 = vmatpush3.bf16.msra.mxu0 %v9562_v24 }
 0x895   : > { %9323 = vmatprep.subr.bf16.mxu0 %v9566_v17 }
 0x896   : > { %5208 = vmatpush1.bf16.msra.mxu1 %v9550_v45 }
 0x897   : > { %v9295_v53 = vpop.f32.mrb[228].mxu0  ;;  %5209 = vmatprep.subr.bf16.mxu1 %v9555_v60 }
 0x898   : > { %v4280_v55 = vadd.f32 %v9295_v53, %v11801_v56  ;;  %v4271_v11 = vpop.f32.mrb[229].mxu0  ;;  %9324 = vmatpush3.bf16.msra.mxu0 %v9566_v17 }
 0x899   : > { %v4272_v10 = vadd.f32 %v11801_v56, %v4271_v11  ;;  %v9296_v33 = vpop.f32.mrb[230].mxu0  ;;  %4862 = vmatmul.mubr.bf16.gmra.mrb[228].mxu1 %v11807_v50  ;;  %5055 = vmatmul.mubr.bf16.gmra.mrb[4].mxu0 %v11807_v50 }
 0x89a   : > { %v4283_v4 = vadd.f32 %v9296_v33, %v11801_v56  ;;  %v4274_v44 = vpop.f32.mrb[231].mxu0  ;;  %4871 = vmatprep.mubr.bf16.mxu1 %v10484_v61  ;;  %5064 = vmatprep.mubr.bf16.mxu0 %v10484_v61  ;;  %v4388_v48 = vmax.f32 %v4280_v55, 0.0 }
 0x89b   : > { %v4275_v42 = vadd.f32 %v11801_v56, %v4274_v44  ;;  %5210 = vmatpush1.bf16.msra.mxu1 %v9553_v3  ;;  %9325 = vmatprep.subr.bf16.mxu0 %v9570_v7  ;;  %v4386_v63 = vmax.f32 %v4272_v10, 0.0 }
 0x89c   : > { %v4389_v16 = vmax.f32 %v4283_v4, 0.0  ;;  %5211 = vmatprep.subr.bf16.mxu1 %v9558_v15  ;;  %9326 = vmatpush3.bf16.msra.mxu0 %v9570_v7 }
 0x89d   : > { %v4387_v19 = vmax.f32 %v4275_v42, 0.0  ;;  %9327 = vmatprep.subr.bf16.mxu0 %v9571_v39 }
 0x89e   : > { %v11856_v25 = vpack.c.bf16 %v4389_v16, %v4388_v48 }
 0x89f   : > { %v11858_v28 = vpack.c.bf16 %v4387_v19, %v4386_v63  ;;  %5212 = vmatpush1.bf16.msra.mxu1 %v9556_v36 }
 0x8a0   : > { %5213 = vmatprep.subr.bf16.mxu1 %v9561_v8  ;;  %9328 = vmatpush3.bf16.msra.mxu0 %v9571_v39 }
 0x8a1   : > { %4872 = vmatmul.mubr.bf16.gmra.mrb[232].mxu1 %v11858_v28  ;;  %5065 = vmatmul.mubr.bf16.gmra.mrb[8].mxu0 %v11858_v28 }
 0x8a2   : > { %4881 = vmatprep.mubr.bf16.mxu1 %v10484_v61  ;;  %5074 = vmatprep.mubr.bf16.mxu0 %v10484_v61 }
 0x8a3   : > { %5214 = vmatpush1.bf16.msra.mxu1 %v9559_v35  ;;  %9329 = vmatprep.subr.bf16.mxu0 %v9575_v1 }
 0x8a4   : > { %5215 = vmatprep.subr.bf16.mxu1 %v9565_v26  ;;  %9330 = vmatpush3.bf16.msra.mxu0 %v9575_v1 }
 0x8a5   : > { %9331 = vmatprep.subr.bf16.mxu0 %v9576_v5 }
 0x8a7   : > { %v9299_v41 = vpop.f32.mrb[232].mxu0  ;;  %5216 = vmatpush1.bf16.msra.mxu1 %v9563_v22 }
 0x8a8   : > { %v4296_v6 = vadd.f32 %v9299_v41, %v11801_v56  ;;  %v4287_v13 = vpop.f32.mrb[233].mxu0  ;;  %5217 = vmatprep.subr.bf16.mxu1 %v9569_v21  ;;  %9332 = vmatpush3.bf16.msra.mxu0 %v9576_v5 }
 0x8a9   : > { %v4288_v32 = vadd.f32 %v11801_v56, %v4287_v13  ;;  %v9300_v31 = vpop.f32.mrb[234].mxu0  ;;  %4882 = vmatmul.mubr.bf16.gmra.mrb[236].mxu1 %v11856_v25  ;;  %5075 = vmatmul.mubr.bf16.gmra.mrb[12].mxu0 %v11856_v25 }
 0x8aa   : > { %v4299_v43 = vadd.f32 %v9300_v31, %v11801_v56  ;;  %v4290_v38 = vpop.f32.mrb[235].mxu0  ;;  %4891 = vmatprep.mubr.bf16.mxu1 %v10484_v61  ;;  %5084 = vmatprep.mubr.bf16.mxu0 %v10484_v61  ;;  %v4392_v18 = vmax.f32 %v4296_v6, 0.0 }
 0x8ab   : > { %v4291_v29 = vadd.f32 %v11801_v56, %v4290_v38  ;;  %5218 = vmatpush1.bf16.msra.mxu1 %v9567_v51  ;;  %9333 = vmatprep.subr.bf16.mxu0 %v9577_v30  ;;  %v4390_v54 = vmax.f32 %v4288_v32, 0.0 }
 0x8ac   : > { %v4393_v37 = vmax.f32 %v4299_v43, 0.0  ;;  %5219 = vmatprep.subr.bf16.mxu1 %v9574_v27  ;;  %9334 = vmatpush3.bf16.msra.mxu0 %v9577_v30 }
 0x8ad   : > { %v4391_v24 = vmax.f32 %v4291_v29, 0.0  ;;  %9335 = vmatprep.subr.bf16.mxu0 %v9578_v52 }
 0x8ae   : > { %v11905_v40 = vpack.c.bf16 %v4393_v37, %v4392_v18 }
 0x8af   : > { %v11907_v49 = vpack.c.bf16 %v4391_v24, %v4390_v54  ;;  %5220 = vmatpush1.bf16.msra.mxu1 %v9572_v46 }
 0x8b0   : > { %9336 = vmatpush3.bf16.msra.mxu0 %v9578_v52 }
 0x8b1   : > { %4892 = vmatmul.mubr.bf16.gmra.mrb[240].mxu1 %v11907_v49  ;;  %5085 = vmatmul.mubr.bf16.gmra.mrb[16].mxu0 %v11907_v49 }
 0x8b2   : > { %4901 = vmatprep.mubr.bf16.mxu1 %v10484_v61  ;;  %5094 = vmatprep.mubr.bf16.mxu0 %v10484_v61 }
 0x8b7   : > { %v9303_v59 = vpop.f32.mrb[236].mxu0 }
 0x8b8   : > { %v4312_v34 = vadd.f32 %v9303_v59, %v11801_v56  ;;  %v4303_v57 = vpop.f32.mrb[237].mxu0 }
 0x8b9   : > { %v4304_v14 = vadd.f32 %v11801_v56, %v4303_v57  ;;  %v9304_v20 = vpop.f32.mrb[238].mxu0  ;;  %4902 = vmatmul.mubr.bf16.gmra.mrb[244].mxu1 %v11905_v40  ;;  %5095 = vmatmul.mubr.bf16.gmra.mrb[20].mxu0 %v11905_v40 }
 0x8ba   : > { %v4315_v23 = vadd.f32 %v9304_v20, %v11801_v56  ;;  %v4306_v62 = vpop.f32.mrb[239].mxu0  ;;  %4911 = vmatprep.mubr.bf16.mxu1 %v10484_v61  ;;  %5104 = vmatprep.mubr.bf16.mxu0 %v10484_v61  ;;  %v4396_v47 = vmax.f32 %v4312_v34, 0.0 }
 0x8bb   : > { %v4307_v0 = vadd.f32 %v11801_v56, %v4306_v62  ;;  %v4394_v58 = vmax.f32 %v4304_v14, 0.0 }
 0x8bc   : > { %v4397_v9 = vmax.f32 %v4315_v23, 0.0 }
 0x8bd   : > { %v4395_v2 = vmax.f32 %v4307_v0, 0.0 }
 0x8be   : > { %v11921_v17 = vpack.c.bf16 %v4397_v9, %v4396_v47 }
 0x8bf   : > { %v11923_v45 = vpack.c.bf16 %v4395_v2, %v4394_v58 }
 0x8c1   : > { %4912 = vmatmul.mubr.bf16.gmra.mrb[248].mxu1 %v11923_v45  ;;  %5105 = vmatmul.mubr.bf16.gmra.mrb[24].mxu0 %v11923_v45 }
 0x8c2   : > { %4921 = vmatprep.mubr.bf16.mxu1 %v10484_v61  ;;  %5114 = vmatprep.mubr.bf16.mxu0 %v10484_v61 }
 0x8c7   : > { %v9307_v60 = vpop.f32.mrb[240].mxu0 }
 0x8c8   : > { %v4328_v53 = vadd.f32 %v9307_v60, %v11801_v56  ;;  %v4319_v3 = vpop.f32.mrb[241].mxu0 }
 0x8c9   : > { %v4320_v7 = vadd.f32 %v11801_v56, %v4319_v3  ;;  %v9308_v55 = vpop.f32.mrb[242].mxu0  ;;  %4922 = vmatmul.mubr.bf16.gmra.mrb[252].mxu1 %v11921_v17  ;;  %5115 = vmatmul.mubr.bf16.gmra.mrb[28].mxu0 %v11921_v17 }
 0x8ca   : > { %v4331_v11 = vadd.f32 %v9308_v55, %v11801_v56  ;;  %v4322_v15 = vpop.f32.mrb[243].mxu0  ;;  %4931 = vmatprep.mubr.bf16.mxu1 %v10484_v61  ;;  %5124 = vmatprep.mubr.bf16.mxu0 %v10484_v61  ;;  %v4400_v33 = vmax.f32 %v4328_v53, 0.0 }
 0x8cb   : > { %v4323_v10 = vadd.f32 %v11801_v56, %v4322_v15  ;;  %v4398_v4 = vmax.f32 %v4320_v7, 0.0 }
 0x8cc   : > { %v4401_v39 = vmax.f32 %v4331_v11, 0.0 }
 0x8cd   : > { %v4399_v44 = vmax.f32 %v4323_v10, 0.0 }
 0x8ce   : > { %v11937_v42 = vpack.c.bf16 %v4401_v39, %v4400_v33 }
 0x8cf   : > { %v11939_v36 = vpack.c.bf16 %v4399_v44, %v4398_v4 }
 0x8d1   : > { %4932 = vmatmul.mubr.bf16.gmra.mrb[0].mxu1 %v11939_v36  ;;  %5125 = vmatmul.mubr.bf16.gmra.mrb[32].mxu0 %v11939_v36 }
 0x8d2   : > { %4941 = vmatprep.mubr.bf16.mxu1 %v10484_v61  ;;  %5134 = vmatprep.mubr.bf16.mxu0 %v10484_v61 }
 0x8d7   : > { %v9311_v48 = vpop.f32.mrb[244].mxu0 }
 0x8d8   : > { %v4344_v16 = vadd.f32 %v9311_v48, %v11801_v56  ;;  %v4335_v8 = vpop.f32.mrb[245].mxu0 }
 0x8d9   : > { %v4336_v63 = vadd.f32 %v11801_v56, %v4335_v8  ;;  %v9312_v19 = vpop.f32.mrb[246].mxu0  ;;  %4942 = vmatmul.mubr.bf16.gmra.mrb[4].mxu1 %v11937_v42  ;;  %5135 = vmatmul.mubr.bf16.gmra.mrb[36].mxu0 %v11937_v42 }
 0x8da   : > { %v4347_v35 = vadd.f32 %v9312_v19, %v11801_v56  ;;  %v4338_v1 = vpop.f32.mrb[247].mxu0  ;;  %4951 = vmatprep.mubr.bf16.mxu1 %v10484_v61  ;;  %5144 = vmatprep.mubr.bf16.mxu0 %v10484_v61  ;;  %v4404_v5 = vmax.f32 %v4344_v16, 0.0 }
 0x8db   : > { %v4339_v26 = vadd.f32 %v11801_v56, %v4338_v1  ;;  %v4402_v21 = vmax.f32 %v4336_v63, 0.0 }
 0x8dc   : > { %v4405_v22 = vmax.f32 %v4347_v35, 0.0 }
 0x8dd   : > { %v4403_v41 = vmax.f32 %v4339_v26, 0.0 }
 0x8de   : > { %v11953_v51 = vpack.c.bf16 %v4405_v22, %v4404_v5 }
 0x8df   : > { %v11955_v30 = vpack.c.bf16 %v4403_v41, %v4402_v21 }
 0x8e1   : > { %4952 = vmatmul.mubr.bf16.gmra.mrb[8].mxu1 %v11955_v30  ;;  %5145 = vmatmul.mubr.bf16.gmra.mrb[40].mxu0 %v11955_v30 }
 0x8e2   : > { %4961 = vmatprep.mubr.bf16.mxu1 %v10484_v61  ;;  %5154 = vmatprep.mubr.bf16.mxu0 %v10484_v61 }
 0x8e7   : > { %v9315_v6 = vpop.f32.mrb[248].mxu0 }
 0x8e8   : > { %v4360_v13 = vadd.f32 %v9315_v6, %v11801_v56  ;;  %v4351_v27 = vpop.f32.mrb[249].mxu0 }
 0x8e9   : > { %v4352_v32 = vadd.f32 %v11801_v56, %v4351_v27  ;;  %v9316_v31 = vpop.f32.mrb[250].mxu0  ;;  %4962 = vmatmul.mubr.bf16.gmra.mrb[12].mxu1 %v11953_v51  ;;  %5155 = vmatmul.mubr.bf16.gmra.mrb[44].mxu0 %v11953_v51 }
 0x8ea   : > { %v4363_v52 = vadd.f32 %v9316_v31, %v11801_v56  ;;  %v4354_v43 = vpop.f32.mrb[251].mxu0  ;;  %4971 = vmatprep.mubr.bf16.mxu1 %v10484_v61  ;;  %5164 = vmatprep.mubr.bf16.mxu0 %v10484_v61  ;;  %v4408_v29 = vmax.f32 %v4360_v13, 0.0 }
 0x8eb   : > { %v4355_v38 = vadd.f32 %v11801_v56, %v4354_v43  ;;  %v4406_v18 = vmax.f32 %v4352_v32, 0.0 }
 0x8ec   : > { %v4409_v46 = vmax.f32 %v4363_v52, 0.0 }
 0x8ed   : > { %v4407_v37 = vmax.f32 %v4355_v38, 0.0 }
 0x8ee   : > { %v11969_v54 = vpack.c.bf16 %v4409_v46, %v4408_v29 }
 0x8ef   : > { %v11971_v24 = vpack.c.bf16 %v4407_v37, %v4406_v18 }
 0x8f1   : > { %4972 = vmatmul.mubr.bf16.gmra.mrb[16].mxu1 %v11971_v24  ;;  %5165 = vmatmul.mubr.bf16.gmra.mrb[48].mxu0 %v11971_v24 }
 0x8f2   : > { %4981 = vmatprep.mubr.bf16.mxu1 %v10484_v61  ;;  %5174 = vmatprep.mubr.bf16.mxu0 %v10484_v61 }
 0x8f7   : > { %v9319_v59 = vpop.f32.mrb[252].mxu0 }
 0x8f8   : > { %v4376_v34 = vadd.f32 %v9319_v59, %v11801_v56  ;;  %v4367_v57 = vpop.f32.mrb[253].mxu0 }
 0x8f9   : > { %v4368_v14 = vadd.f32 %v11801_v56, %v4367_v57  ;;  %v9320_v20 = vpop.f32.mrb[254].mxu0  ;;  %4982 = vmatmul.mubr.bf16.gmra.mrb[20].mxu1 %v11969_v54  ;;  %5175 = vmatmul.mubr.bf16.gmra.mrb[52].mxu0 %v11969_v54 }
 0x8fa   : > { %v4379_v23 = vadd.f32 %v9320_v20, %v11801_v56  ;;  %v4370_v62 = vpop.f32.mrb[255].mxu0  ;;  %4991 = vmatprep.mubr.bf16.mxu1 %v10484_v61  ;;  %5184 = vmatprep.mubr.bf16.mxu0 %v10484_v61  ;;  %v4412_v47 = vmax.f32 %v4376_v34, 0.0 }
 0x8fb   : > { %v4371_v0 = vadd.f32 %v11801_v56, %v4370_v62  ;;  %v4410_v58 = vmax.f32 %v4368_v14, 0.0  ;;  %v4496_v56 = vlaneseq }
 0x8fc   : > { %v4413_v9 = vmax.f32 %v4379_v23, 0.0 }
 0x8fd   : > { %v4411_v2 = vmax.f32 %v4371_v0, 0.0 }
 0x8fe   : > { %v11985_v60 = vpack.c.bf16 %v4413_v9, %v4412_v47 }
 0x8ff   : > { %v11987_v53 = vpack.c.bf16 %v4411_v2, %v4410_v58 }
 0x901   : > { %4992 = vmatmul.mubr.bf16.gmra.mrb[24].mxu1 %v11987_v53  ;;  %5185 = vmatmul.mubr.bf16.gmra.mrb[56].mxu0 %v11987_v53 }
 0x902   : > { %5001 = vmatprep.mubr.bf16.mxu1 %v10484_v61  ;;  %5194 = vmatprep.mubr.bf16.mxu0 %v10484_v61 }
 0x909   : > { %5002 = vmatmul.mubr.bf16.gmra.mrb[28].mxu1 %v11985_v60  ;;  %5195 = vmatmul.mubr.bf16.gmra.mrb[60].mxu0 %v11985_v60 }
 0x90a   : > { %9337 = vmatprep.mubr.bf16.mxu0 %v11812_v12  ;;  %5237 = vmatprep.mubr.bf16.mxu1 %v10484_v61 }
 0x911   : > { %5238 = vmatmul.mubr.bf16.vlgmr.msra.gmra.mrb[32].mxu1 %v11812_v12  ;;  %9338 = vmatmul.mubr.bf16.vlgmr.msra.gmra.mrb[64].mxu0 %v11807_v50 }
 0x912   : > { %9341 = vmatprep.mubr.bf16.mxu0 %v11858_v28  ;;  %5247 = vmatprep.mubr.bf16.mxu1 %v10484_v61 }
 0x919   : > { %5248 = vmatmul.mubr.bf16.gmra.mrb[36].mxu1 %v11807_v50  ;;  %9342 = vmatmul.mubr.bf16.gmra.mrb[68].mxu0 %v11856_v25  ;;  %v12031_v50 = vshrl.u32 %v4496_v56, 7 }
 0x91a   : > { %9345 = vmatprep.mubr.bf16.mxu0 %v11907_v49  ;;  %5257 = vmatprep.mubr.bf16.mxu1 %v10484_v61 }
 0x91b   : > { %15258 = vst [vmem:[#allocation2_spill] sm:$0xff] %v12031_v50  ;;  %v4498_v12 = vsub.s32 0, %v12031_v50 }
 0x921   : > { %5258 = vmatmul.mubr.bf16.gmra.mrb[40].mxu1 %v11858_v28  ;;  %9346 = vmatmul.mubr.bf16.gmra.mrb[72].mxu0 %v11905_v40  ;;  %v4478_v28 = vld [vmem:[%s15235_s20] sm:$0xff] }
 0x922   : > { %9349 = vmatprep.mubr.bf16.mxu0 %v11923_v45  ;;  %5267 = vmatprep.mubr.bf16.mxu1 %v10484_v61 }
 0x929   : > { %5268 = vmatmul.mubr.bf16.gmra.mrb[44].mxu1 %v11856_v25  ;;  %9350 = vmatmul.mubr.bf16.gmra.mrb[76].mxu0 %v11921_v17  ;;  %v4506_v25 = vsub.s32 2, %v12031_v50 }
 0x92a   : > { %9353 = vmatprep.mubr.bf16.mxu0 %v11939_v36  ;;  %5277 = vmatprep.mubr.bf16.mxu1 %v10484_v61 }
 0x931   : > { %5278 = vmatmul.mubr.bf16.gmra.mrb[48].mxu1 %v11907_v49  ;;  %9354 = vmatmul.mubr.bf16.gmra.mrb[80].mxu0 %v11937_v42  ;;  %v4510_v49 = vsub.s32 3, %v12031_v50 }
 0x932   : > { %9357 = vmatprep.mubr.bf16.mxu0 %v11955_v30  ;;  %5287 = vmatprep.mubr.bf16.mxu1 %v10484_v61 }
 0x933   : > { %v12048_v7 = vrot.slane %v4478_v28, %v4510_v49 }
 0x939   : > { %5288 = vmatmul.mubr.bf16.gmra.mrb[52].mxu1 %v11905_v40  ;;  %9358 = vmatmul.mubr.bf16.gmra.mrb[84].mxu0 %v11953_v51  ;;  %v4502_v40 = vsub.s32 1, %v12031_v50 }
 0x93a   : > { %9361 = vmatprep.mubr.bf16.mxu0 %v11971_v24  ;;  %5297 = vmatprep.mubr.bf16.mxu1 %v10484_v61 }
 0x93b   : > { %v12046_v3 = vrot.slane %v4478_v28, %v4502_v40 }
 0x941   : > { %5298 = vmatmul.mubr.bf16.gmra.mrb[56].mxu1 %v11923_v45  ;;  %9362 = vmatmul.mubr.bf16.gmra.mrb[88].mxu0 %v11969_v54  ;;  %v12044_v45 = vrot.slane %v4478_v28, %v4506_v25 }
 0x942   : > { %9365 = vmatprep.mubr.bf16.mxu0 %v11987_v53  ;;  %5307 = vmatprep.mubr.bf16.mxu1 %v10484_v61 }
 0x949   : > { %5308 = vmatmul.mubr.bf16.gmra.mrb[60].mxu1 %v11921_v17  ;;  %9366 = vmatmul.mubr.bf16.gmra.mrb[92].mxu0 %v11985_v60  ;;  %v12042_v17 = vrot.slane %v4478_v28, %v4498_v12 }
 0x94a   : > { %5317 = vmatprep.mubr.bf16.mxu1 %v10484_v61 }
 0x951   : > { %5318 = vmatmul.mubr.bf16.gmra.mrb[64].mxu1 %v11939_v36 }
 0x952   : > { %5327 = vmatprep.mubr.bf16.mxu1 %v10484_v61 }
 0x959   : > { %5328 = vmatmul.mubr.bf16.gmra.mrb[68].mxu1 %v11937_v42 }
 0x95a   : > { %5337 = vmatprep.mubr.bf16.mxu1 %v10484_v61 }
 0x961   : > { %5338 = vmatmul.mubr.bf16.gmra.mrb[72].mxu1 %v11955_v30 }
 0x962   : > { %5347 = vmatprep.mubr.bf16.mxu1 %v10484_v61 }
 0x964   : > { %v4853_v55 = vpop.f32.mrb[224].mxu1  ;;  %v5046_v11 = vpop.f32.mrb[0].mxu0 }
 0x965   : > { %v12052_v15 = vadd.f32 %v4853_v55, %v12042_v17  ;;  %v12055_v10 = vadd.f32 %v5046_v11, %v12044_v45  ;;  %v4855_v33 = vpop.f32.mrb[225].mxu1  ;;  %v5048_v39 = vpop.f32.mrb[1].mxu0 }
 0x966   : > { %v12058_v4 = vadd.f32 %v4855_v33, %v12046_v3  ;;  %v12061_v44 = vadd.f32 %v5048_v39, %v12048_v7  ;;  %v4857_v42 = vpop.f32.mrb[226].mxu1  ;;  %v5050_v36 = vpop.f32.mrb[2].mxu0 }
 0x967   : > { %v5559_v48 = vand.u32 2147483647, %v12052_v15  ;;  %v5561_v16 = vand.u32 2147483647, %v12055_v10  ;;  %v12068_v1 = vadd.f32 %v4857_v42, %v12042_v17  ;;  %v12071_v26 = vadd.f32 %v5050_v36, %v12044_v45  ;;  %v4859_v5 = vpop.f32.mrb[227].mxu1  ;;  %v5052_v22 = vpop.f32.mrb[3].mxu0 }
 0x968   : > { %v5560_v8 = vand.u32 2147483647, %v12058_v4  ;;  %v5562_v63 = vand.u32 2147483647, %v12061_v44  ;;  %v12075_v30 = vadd.f32 %v4859_v5, %v12046_v3  ;;  %v12078_v6 = vadd.f32 %v5052_v22, %v12048_v7 }
 0x969   : > { %v5783_v19 = vsub.f32 0.0, %v5559_v48  ;;  %v5785_v35 = vsub.f32 0.0, %v5561_v16  ;;  %5348 = vmatmul.mubr.bf16.gmra.mrb[76].mxu1 %v11953_v51  ;;  %v5566_v32 = vand.u32 2147483647, %v12068_v1  ;;  %v5568_v51 = vand.u32 2147483647, %v12071_v26 }
 0x96a   : > { %v5784_v21 = vsub.f32 0.0, %v5560_v8  ;;  %v5786_v41 = vsub.f32 0.0, %v5562_v63  ;;  %5357 = vmatprep.mubr.bf16.mxu1 %v10484_v61  ;;  %v5567_v38 = vand.u32 2147483647, %v12075_v30  ;;  %v5569_v46 = vand.u32 2147483647, %v12078_v6 }
 0x96b   : > { %v6007_v13 = vmul.f32 1.442695, %v5783_v19  ;;  %v6011_v27 = vmul.f32 1.442695, %v5785_v35  ;;  %v5790_v43 = vsub.f32 0.0, %v5566_v32  ;;  %v5792_v34 = vsub.f32 0.0, %v5568_v51 }
 0x96c   : > { %v6009_v31 = vmul.f32 1.442695, %v5784_v21  ;;  %v6013_v52 = vmul.f32 1.442695, %v5786_v41  ;;  %v4863_v29 = vpop.f32.mrb[228].mxu1  ;;  %v5056_v18 = vpop.f32.mrb[4].mxu0 }
 0x96d   : > { %9579 = vpow2.f32 %v6007_v13  ;;  %v4865_v37 = vpop.f32.mrb[229].mxu1  ;;  %v6021_v59 = vmul.f32 1.442695, %v5790_v43  ;;  %v5791_v57 = vsub.f32 0.0, %v5567_v38  ;;  %v5058_v14 = vpop.f32.mrb[5].mxu0  ;;  %v5793_v23 = vsub.f32 0.0, %v5569_v46 }
 0x96e   : > { %9581 = vpow2.f32 %v6011_v27  ;;  %v4867_v20 = vpop.f32.mrb[230].mxu1  ;;  %v12086_v62 = vadd.f32 %v4863_v29, %v12042_v17  ;;  %v12089_v0 = vadd.f32 %v5056_v18, %v12044_v45  ;;  %v5060_v47 = vpop.f32.mrb[6].mxu0  ;;  %v6025_v58 = vmul.f32 1.442695, %v5792_v34 }
 0x96f   : > { %9583 = vpow2.f32 %v6009_v31  ;;  %v4869_v9 = vpop.f32.mrb[231].mxu1  ;;  %v6023_v2 = vmul.f32 1.442695, %v5791_v57  ;;  %v12092_v56 = vadd.f32 %v4865_v37, %v12046_v3  ;;  %v5062_v12 = vpop.f32.mrb[7].mxu0  ;;  %v6027_v25 = vmul.f32 1.442695, %v5793_v23 }
 0x970   : > { %9585 = vpow2.f32 %v6013_v52  ;;  %v5573_v28 = vand.u32 2147483647, %v12086_v62  ;;  %v5575_v40 = vand.u32 2147483647, %v12089_v0  ;;  %v12100_v11 = vadd.f32 %v5058_v14, %v12048_v7 }
 0x971   : > { %9587 = vpow2.f32 %v6021_v59  ;;  %5358 = vmatmul.mubr.bf16.gmra.mrb[80].mxu1 %v11971_v24  ;;  %v5574_v49 = vand.u32 2147483647, %v12092_v56  ;;  %v12103_v33 = vadd.f32 %v4867_v20, %v12042_v17  ;;  %v12106_v36 = vadd.f32 %v5060_v47, %v12044_v45 }
 0x972   : > { %5367 = vmatprep.mubr.bf16.mxu1 %v10484_v61  ;;  %9589 = vpow2.f32 %v6025_v58  ;;  %v5797_v55 = vsub.f32 0.0, %v5573_v28  ;;  %v5799_v42 = vsub.f32 0.0, %v5575_v40  ;;  %v5576_v63 = vand.u32 2147483647, %v12100_v11 }
 0x973   : > { %9591 = vpow2.f32 %v6023_v2  ;;  %v5798_v5 = vsub.f32 0.0, %v5574_v49  ;;  %v12114_v22 = vadd.f32 %v4869_v9, %v12046_v3  ;;  %v5580_v27 = vand.u32 2147483647, %v12103_v33 }
 0x974   : > { %v4873_v39 = vpop.f32.mrb[232].mxu1  ;;  %v5066_v24 = vpop.f32.mrb[8].mxu0  ;;  %9593 = vpow2.f32 %v6027_v25  ;;  %v6035_v8 = vmul.f32 1.442695, %v5797_v55  ;;  %v6039_v35 = vmul.f32 1.442695, %v5799_v42  ;;  %v12149_v2 = vadd.f32 %v5062_v12, %v12048_v7 }
 0x975   : > { %v4875_v48 = vpop.f32.mrb[233].mxu1  ;;  %v12108_v16 = vpop.f32.mrb[9].mxu0  ;;  %v5800_v13 = vsub.f32 0.0, %v5576_v63  ;;  %v5582_v51 = vand.u32 2147483647, %v12106_v36  ;;  %v12152_v25 = vadd.f32 %v4873_v39, %v12042_v17  ;;  %vm7127_vm0 = vcmp.ge.f32.partialorder %v12052_v15, 0.0 }
 0x976   : > { %9595 = vpow2.f32 %v6035_v8  ;;  %v12120_v32 = vpop.f32.mrb[234].mxu1  ;;  %v12122_v31 = vpop.f32.mrb[10].mxu0  ;;  %v6037_v34 = vmul.f32 1.442695, %v5798_v5  ;;  %v5581_v57 = vand.u32 2147483647, %v12114_v22  ;;  %v12163_v42 = vadd.f32 %v5066_v24, %v12044_v45 }
 0x977   : > { %v12111_v19 = vpop.eup %9579  ;;  %9597 = vpow2.f32 %v6039_v35  ;;  %v12128_v38 = vpop.f32.mrb[235].mxu1  ;;  %v6041_v20 = vmul.f32 1.442695, %v5800_v13  ;;  %v5806_v58 = vsub.f32 0.0, %v5582_v51  ;;  %v12166_v12 = vadd.f32 %v4875_v48, %v12046_v3 }
 0x978   : > { %v12116_v21 = vpop.eup %9581  ;;  %v6455_v41 = vadd.f32 1.0, %v12111_v19  ;;  %v12130_v29 = vpop.f32.mrb[11].mxu0  ;;  %vm7129_vm1 = vcmp.ge.f32.partialorder %v12055_v10, 0.0  ;;  %v5805_v5 = vsub.f32 0.0, %v5581_v57  ;;  %vm7128_vm2 = vcmp.ge.f32.partialorder %v12058_v4, 0.0 }
 0x979   : > { %v12124_v52 = vpop.eup %9583  ;;  %v6457_v43 = vadd.f32 1.0, %v12116_v21  ;;  %5368 = vmatmul.mubr.bf16.gmra.mrb[84].mxu1 %v11969_v54  ;;  %v5804_v54 = vsub.f32 0.0, %v5580_v27  ;;  %v5587_v27 = vand.u32 2147483647, %v12152_v25  ;;  %vm7130_vm3 = vcmp.ge.f32.partialorder %v12061_v44, 0.0 }
 0x97a   : > { %v12133_v46 = vpop.eup %9585  ;;  %9599 = vrcp.f32 %v6455_v41  ;;  %v6456_v18 = vadd.f32 1.0, %v12124_v52  ;;  %5377 = vmatprep.mubr.bf16.mxu1 %v10484_v61  ;;  %v5583_v41 = vand.u32 2147483647, %v12149_v2  ;;  %vm7134_vm4 = vcmp.ge.f32.partialorder %v12068_v1, 0.0 }
 0x97b   : > { %v12137_v37 = vpop.eup %9587  ;;  %9601 = vrcp.f32 %v6457_v43  ;;  %v6458_v59 = vadd.f32 1.0, %v12133_v46  ;;  %v6049_v48 = vmul.f32 1.442695, %v5804_v54  ;;  %v5811_v57 = vsub.f32 0.0, %v5587_v27 }
 0x97c   : > { %9603 = vrcp.f32 %v6456_v18  ;;  %v6462_v14 = vadd.f32 1.0, %v12137_v37  ;;  %v12142_v23 = vpop.f32.mrb[236].mxu1  ;;  %v12144_v47 = vpop.f32.mrb[12].mxu0  ;;  %v5807_v51 = vsub.f32 0.0, %v5583_v41  ;;  %v5589_v18 = vand.u32 2147483647, %v12163_v42 }
 0x97d   : > { %v12146_v9 = vpop.eup %9589  ;;  %9605 = vrcp.f32 %v6458_v59  ;;  %v12154_v28 = vpop.f32.mrb[237].mxu1  ;;  %vm7136_vm5 = vcmp.ge.f32.partialorder %v12071_v26, 0.0  ;;  %vm7135_vm6 = vcmp.ge.f32.partialorder %v12075_v30, 0.0  ;;  %vm7137_vm7 = vcmp.ge.f32.partialorder %v12078_v6, 0.0 }
 0x97e   : > { %v12156_v40 = vpop.f32.mrb[13].mxu0  ;;  %v12158_v49 = vpop.eup %9591  ;;  %9607 = vrcp.f32 %v6462_v14  ;;  %v6464_v55 = vadd.f32 1.0, %v12146_v9  ;;  %v5588_v14 = vand.u32 2147483647, %v12166_v12  ;;  %v5813_v41 = vsub.f32 0.0, %v5589_v18 }
 0x97f   : > { %v12168_v8 = vpop.f32.mrb[238].mxu1  ;;  %v12170_v39 = vpop.f32.mrb[14].mxu0  ;;  %v6463_v35 = vadd.f32 1.0, %v12158_v49  ;;  %9609 = vpow2.f32 %v6037_v34  ;;  %v6053_v34 = vmul.f32 1.442695, %v5806_v58  ;;  %vm7141_vm8 = vcmp.ge.f32.partialorder %v12086_v62, 0.0 }
 0x980   : > { %v12172_v63 = vpop.eup %9593  ;;  %v12177_v13 = vpop.f32.mrb[239].mxu1  ;;  %9611 = vrcp.f32 %v6464_v55  ;;  %v6055_v58 = vmul.f32 1.442695, %v5807_v51  ;;  %v12280_v26 = vadd.f32 %v12122_v31, %v12044_v45  ;;  %vm7143_vm9 = vcmp.ge.f32.partialorder %v12089_v0, 0.0 }
 0x981   : > { %15259 = vst [vmem:[#allocation3_spill] sm:$0xff] %v12177_v13  ;;  %v6465_v24 = vadd.f32 1.0, %v12172_v63  ;;  %v12182_v43 = vpop.f32.mrb[15].mxu0  ;;  %9613 = vrcp.f32 %v6463_v35  ;;  %5378 = vmatmul.mubr.bf16.gmra.mrb[88].mxu1 %v11987_v53  ;;  %v12187_v59 = vpop.eup %9595  ;;  %v6051_v35 = vmul.f32 1.442695, %v5805_v5  ;;  %v5812_v5 = vsub.f32 0.0, %v5588_v14 }
 0x982   : > { %15260 = vst [vmem:[#allocation4_spill] sm:$0xff] %v12182_v43  ;;  %5387 = vmatprep.mubr.bf16.mxu1 %v10484_v61  ;;  %v12192_v54 = vpop.eup %9597  ;;  %v6469_v55 = vadd.f32 1.0, %v12187_v59  ;;  %v5596_v6 = vand.u32 2147483647, %v12280_v26  ;;  %vm7142_vm10 = vcmp.ge.f32.partialorder %v12092_v56, 0.0  ;;  %vm7144_vm11 = vcmp.ge.f32.partialorder %v12100_v11, 0.0 }
 0x983   : > { %9615 = vrcp.f32 %v6465_v24  ;;  %v6471_v50 = vadd.f32 1.0, %v12192_v54  ;;  %vm7148_vm12 = vcmp.ge.f32.partialorder %v12103_v33, 0.0  ;;  %vm7150_vm13 = vcmp.ge.f32.partialorder %v12106_v36, 0.0 }
 0x984   : > { %9617 = vpow2.f32 %v6041_v20  ;;  %v9600_v53 = vpop.eup %9599  ;;  %v12197_v24 = vpop.f32.mrb[240].mxu1  ;;  %v6063_v20 = vmul.f32 1.442695, %v5811_v57  ;;  %vm7149_vm14 = vcmp.ge.f32.partialorder %v12114_v22, 0.0  ;;  %vm7151_vm15 = vcmp.ge.f32.partialorder %v12149_v2, 0.0 }
 0x985   : > { %9619 = vpow2.f32 %v6049_v48  ;;  %15261 = vst [vmem:[#allocation5_spill] sm:$0xff] %v12197_v24  ;;  %v12199_v27 = vpop.f32.mrb[16].mxu0  ;;  %v9602_v43 = vpop.eup %9601  ;;  %v7351_v61 = vmul.f32 %v9600_v53, %v12111_v19  ;;  %v6067_v24 = vmul.f32 1.442695, %v5813_v41  ;;  %v12218_v19 = vadd.f32 %v12108_v16, %v12048_v7 }
 0x986   : > { %15262 = vst [vmem:[#allocation6_spill] sm:$0xff] %v12199_v27  ;;  %9621 = vrcp.f32 %v6469_v55  ;;  %v12210_v48 = vpop.f32.mrb[241].mxu1  ;;  %v12212_v51 = vpop.f32.mrb[17].mxu0  ;;  %v7353_v27 = vmul.f32 %v9602_v43, %v12116_v21  ;;  %v12373_v56 = vadd.f32 %v12154_v28, %v12046_v3 }
 0x987   : > { %15264 = vst [vmem:[#allocation7_spill] sm:$0xff] %v12212_v51  ;;  %v9604_v18 = vpop.eup %9603  ;;  %9623 = vrcp.f32 %v6471_v50  ;;  %v12220_v13 = vpop.f32.mrb[242].mxu1  ;;  %v7575_v55 = vsel %vm7127_vm0, %v9600_v53, %v7351_v61  ;;  %v12229_v50 = vadd.f32 %v12120_v32, %v12042_v17  ;;  %v6065_v61 = vmul.f32 1.442695, %v5812_v5 }
 0x988   : > { %v12222_v57 = vpop.f32.mrb[18].mxu0  ;;  %v9606_v14 = vpop.eup %9605  ;;  %v7352_v51 = vmul.f32 %v9604_v18, %v12124_v52  ;;  %9625 = vpow2.f32 %v6053_v34  ;;  %7799 = vst [vmem:[%s12206_s26] sm:$0xff] %v7575_v55  ;;  %v5590_v52 = vand.u32 2147483647, %v12218_v19  ;;  %vm7155_vm0 = vcmp.ge.f32.partialorder %v12152_v25, 0.0 }
 0x989   : > { %15265 = vst [vmem:[#allocation8_spill] sm:$0xff] %v12222_v57  ;;  %v12231_v21 = vpop.f32.mrb[243].mxu1  ;;  %v12233_v16 = vpop.f32.mrb[19].mxu0  ;;  %v7577_v57 = vsel %vm7129_vm1, %v9602_v43, %v7353_v27  ;;  %v7354_v15 = vmul.f32 %v9606_v14, %v12133_v46  ;;  %9627 = vpow2.f32 %v6051_v35  ;;  %5388 = vmatmul.mubr.bf16.gmra.mrb[92].mxu1 %v11985_v60  ;;  %vm7157_vm1 = vcmp.ge.f32.partialorder %v12163_v42, 0.0 }
 0x98a   : > { %v9608_v41 = vpop.eup %9607  ;;  %7801 = vst [vmem:[%s12206_s26 + $0x10] sm:$0xff] %v7577_v57  ;;  %v7576_v32 = vsel %vm7128_vm2, %v9604_v18, %v7352_v51  ;;  %9629 = vpow2.f32 %v6055_v58  ;;  %v5814_v35 = vsub.f32 0.0, %v5590_v52  ;;  %v5594_v58 = vand.u32 2147483647, %v12229_v50 }
 0x98b   : > { %v12240_v34 = vpop.eup %9609  ;;  %v7358_v53 = vmul.f32 %v9608_v41, %v12137_v37  ;;  %7800 = vst [vmem:[%s12206_s26 + $0x8] sm:$0xff] %v7576_v32  ;;  %v7578_v46 = vsel %vm7130_vm3, %v9606_v14, %v7354_v15  ;;  %9631 = vpow2.f32 %v6063_v20  ;;  %vm7156_vm2 = vcmp.ge.f32.partialorder %v12166_v12, 0.0 }
 0x98c   : > { %v9612_v10 = vpop.eup %9611  ;;  %v6470_v43 = vadd.f32 1.0, %v12240_v34  ;;  %7802 = vst [vmem:[%s12206_s26 + $0x18] sm:$0xff] %v7578_v46  ;;  %9633 = vpow2.f32 %v6067_v24  ;;  %v6069_v20 = vmul.f32 1.442695, %v5814_v35  ;;  %v12259_v5 = vpop.f32.mrb[244].mxu1  ;;  %v5818_v18 = vsub.f32 0.0, %v5594_v58 }
 0x98d   : > { %v9614_v27 = vpop.eup %9613  ;;  %v7582_v4 = vsel %vm7134_vm4, %v9608_v41, %v7358_v53  ;;  %v7360_v37 = vmul.f32 %v9612_v10, %v12146_v9  ;;  %v12261_v51 = vpop.f32.mrb[20].mxu0  ;;  %vm7158_vm3 = vcmp.ge.f32.partialorder %v12218_v19, 0.0  ;;  %vm7162_vm4 = vcmp.ge.f32.partialorder %v12229_v50, 0.0 }
 0x98e   : > { %v9616_v60 = vpop.eup %9615  ;;  %7806 = vst [vmem:[%s12206_s26 + $0x38] sm:$0xff] %v7582_v4  ;;  %v7359_v44 = vmul.f32 %v9614_v27, %v12158_v49  ;;  %9635 = vrcp.f32 %v6470_v43  ;;  %v12268_v57 = vpop.f32.mrb[245].mxu1  ;;  %v6077_v53 = vmul.f32 1.442695, %v5818_v18 }
 0x98f   : > { %v12263_v1 = vpop.eup %9617  ;;  %v7584_v9 = vsel %vm7136_vm5, %v9612_v10, %v7360_v37  ;;  %v7361_v24 = vmul.f32 %v9616_v60, %v12172_v63  ;;  %9637 = vpow2.f32 %v6065_v61  ;;  %v12270_v49 = vpop.f32.mrb[21].mxu0  ;;  %v12292_v61 = vadd.f32 %v12128_v38, %v12046_v3 }
 0x990   : > { %v12272_v14 = vpop.eup %9619  ;;  %7808 = vst [vmem:[%s12206_s26 + $0x48] sm:$0xff] %v7584_v9  ;;  %v7583_v55 = vsel %vm7135_vm6, %v9614_v27, %v7359_v44  ;;  %v6472_v41 = vadd.f32 1.0, %v12263_v1  ;;  %9639 = vpow2.f32 %v6069_v20  ;;  %v12282_v63 = vpop.f32.mrb[246].mxu1  ;;  %v5820_v37 = vsub.f32 0.0, %v5596_v6 }
 0x991   : > { %v12284_v15 = vpop.f32.mrb[22].mxu0  ;;  %v9622_v52 = vpop.eup %9621  ;;  %7807 = vst [vmem:[%s12206_s26 + $0x40] sm:$0xff] %v7583_v55  ;;  %v7585_v32 = vsel %vm7137_vm7, %v9616_v60, %v7361_v24  ;;  %v6476_v30 = vadd.f32 1.0, %v12272_v14  ;;  %v5595_v38 = vand.u32 2147483647, %v12292_v61  ;;  %v12318_v20 = vadd.f32 %v12130_v29, %v12048_v7 }
 0x992   : > { %v12294_v10 = vpop.f32.mrb[247].mxu1  ;;  %v12296_v31 = vpop.f32.mrb[23].mxu0  ;;  %7809 = vst [vmem:[%s12206_s26 + $0x50] sm:$0xff] %v7585_v32  ;;  %v7365_v43 = vmul.f32 %v9622_v52, %v12187_v59  ;;  %9641 = vrcp.f32 %v6472_v41  ;;  %v12327_v24 = vadd.f32 %v12142_v23, %v12042_v17  ;;  %vm7164_vm5 = vcmp.ge.f32.partialorder %v12280_v26, 0.0 }
 0x993   : > { %v9624_v46 = vpop.eup %9623  ;;  %9643 = vrcp.f32 %v6476_v30  ;;  %v5819_v44 = vsub.f32 0.0, %v5595_v38  ;;  %v5597_v32 = vand.u32 2147483647, %v12318_v20  ;;  %vm7163_vm6 = vcmp.ge.f32.partialorder %v12292_v61, 0.0 }
 0x994   : > { %v12302_v35 = vpop.eup %9625  ;;  %v7367_v27 = vmul.f32 %v9624_v46, %v12192_v54  ;;  %v7589_v59 = vsel %vm7141_vm8, %v9622_v52, %v7365_v43  ;;  %9645 = vpow2.f32 %v6077_v53  ;;  %v12329_v18 = vpop.f32.mrb[248].mxu1  ;;  %v6081_v52 = vmul.f32 1.442695, %v5820_v37 }
 0x995   : > { %v12307_v4 = vpop.eup %9627  ;;  %v6478_v0 = vadd.f32 1.0, %v12302_v35  ;;  %7813 = vst [vmem:[%s12206_s26 + $0x70] sm:$0xff] %v7589_v59  ;;  %v12331_v55 = vpop.f32.mrb[24].mxu0  ;;  %v6079_v59 = vmul.f32 1.442695, %v5819_v44  ;;  %vm7165_vm7 = vcmp.ge.f32.partialorder %v12318_v20, 0.0 }
 0x996   : > { %v12312_v58 = vpop.eup %9629  ;;  %v7591_v60 = vsel %vm7143_vm9, %v9624_v46, %v7367_v27  ;;  %v6477_v54 = vadd.f32 1.0, %v12307_v4  ;;  %v12337_v30 = vpop.f32.mrb[249].mxu1  ;;  %v5601_v46 = vand.u32 2147483647, %v12327_v24  ;;  %vm7169_vm8 = vcmp.ge.f32.partialorder %v12327_v24, 0.0 }
 0x997   : > { %v12320_v9 = vpop.eup %9631  ;;  %7815 = vst [vmem:[%s12206_s26 + $0x80] sm:$0xff] %v7591_v60  ;;  %9647 = vrcp.f32 %v6478_v0  ;;  %v6479_v62 = vadd.f32 1.0, %v12312_v58  ;;  %v12342_v43 = vpop.f32.mrb[25].mxu0  ;;  %v5821_v0 = vsub.f32 0.0, %v5597_v32  ;;  %v12597_v24 = vadd.f32 %v12231_v21, %v12046_v3 }
 0x998   : > { %v12333_v41 = vpop.eup %9633  ;;  %9649 = vrcp.f32 %v6477_v54  ;;  %v6483_v29 = vadd.f32 1.0, %v12320_v9  ;;  %15266 = vst [vmem:[#allocation9_spill] sm:$0xff] %v12342_v43  ;;  %v12344_v6 = vpop.f32.mrb[250].mxu1  ;;  %v12359_v43 = vadd.f32 %v12144_v47, %v12044_v45 }
 0x999   : > { %v9636_v53 = vpop.eup %9635  ;;  %9651 = vrcp.f32 %v6479_v62  ;;  %v6485_v23 = vadd.f32 1.0, %v12333_v41  ;;  %15267 = vst [vmem:[#allocation10_spill] sm:$0xff] %v12344_v6  ;;  %v12349_v37 = vpop.f32.mrb[26].mxu0  ;;  %v5825_v6 = vsub.f32 0.0, %v5601_v46  ;;  %v6083_v32 = vmul.f32 1.442695, %v5821_v0 }
 0x99a   : > { %v12346_v27 = vpop.eup %9637  ;;  %v7366_v38 = vmul.f32 %v9636_v53, %v12240_v34  ;;  %9653 = vrcp.f32 %v6483_v29  ;;  %v12351_v60 = vpop.f32.mrb[251].mxu1  ;;  %v5603_v47 = vand.u32 2147483647, %v12359_v43  ;;  %v12384_v0 = vadd.f32 %v12168_v8, %v12042_v17 }
 0x99b   : > { %15268 = vst [vmem:[#allocation11_spill] sm:$0xff] %v12351_v60  ;;  %v12353_v54 = vpop.eup %9639  ;;  %9655 = vrcp.f32 %v6485_v23  ;;  %v6484_v62 = vadd.f32 1.0, %v12346_v27  ;;  %v12361_v34 = vpop.f32.mrb[27].mxu0  ;;  %v6091_v23 = vmul.f32 1.442695, %v5825_v6  ;;  %vm7171_vm9 = vcmp.ge.f32.partialorder %v12359_v43, 0.0 }
 0x99c   : > { %15269 = vst [vmem:[#allocation12_spill] sm:$0xff] %v12361_v34  ;;  %v7590_v44 = vsel %vm7142_vm10, %v9636_v53, %v7366_v38  ;;  %v6486_v29 = vadd.f32 1.0, %v12353_v54  ;;  %9657 = vpow2.f32 %v6081_v52  ;;  %v9642_v60 = vpop.eup %9641  ;;  %v12377_v52 = vadd.f32 %v12156_v40, %v12048_v7 }
 0x99d   : > { %7814 = vst [vmem:[%s12206_s26 + $0x78] sm:$0xff] %v7590_v44  ;;  %9659 = vrcp.f32 %v6484_v62  ;;  %v9644_v46 = vpop.eup %9643  ;;  %v7368_v34 = vmul.f32 %v9642_v60, %v12263_v1  ;;  %v5827_v6 = vsub.f32 0.0, %v5603_v47  ;;  %v12386_v1 = vpop.f32.mrb[252].mxu1  ;;  %v5602_v44 = vand.u32 2147483647, %v12373_v56 }
 0x99e   : > { %9661 = vrcp.f32 %v6486_v29  ;;  %v12379_v53 = vpop.eup %9645  ;;  %v7372_v38 = vmul.f32 %v9644_v46, %v12272_v14  ;;  %v12388_v62 = vpop.f32.mrb[28].mxu0  ;;  %vm7170_vm10 = vcmp.ge.f32.partialorder %v12373_v56, 0.0  ;;  %v5623_v21 = vand.u32 2147483647, %v12597_v24 }
 0x99f   : > { %9663 = vpow2.f32 %v6079_v59  ;;  %v7592_v28 = vsel %vm7144_vm11, %v9642_v60, %v7368_v34  ;;  %v6490_v40 = vadd.f32 1.0, %v12379_v53  ;;  %v12394_v14 = vpop.f32.mrb[253].mxu1  ;;  %v12396_v59 = vpop.f32.mrb[29].mxu0  ;;  %v6095_v11 = vmul.f32 1.442695, %v5827_v6 }
 0x9a0   : > { %9665 = vpow2.f32 %v6083_v32  ;;  %15270 = vst [vmem:[#allocation13_spill] sm:$0xff] %v12394_v14  ;;  %15271 = vst [vmem:[#allocation14_spill] sm:$0xff] %v12396_v59  ;;  %v7596_v8 = vsel %vm7148_vm12, %v9644_v46, %v7372_v38  ;;  %v12402_v47 = vpop.f32.mrb[254].mxu1  ;;  %v12404_v60 = vpop.f32.mrb[30].mxu0  ;;  %v5826_v59 = vsub.f32 0.0, %v5602_v44  ;;  %vm7172_vm11 = vcmp.ge.f32.partialorder %v12377_v52, 0.0 }
 0x9a1   : > { %v9648_v29 = vpop.eup %9647  ;;  %7816 = vst [vmem:[%s12206_s26 + $0x88] sm:$0xff] %v7592_v28  ;;  %9667 = vpow2.f32 %v6091_v23  ;;  %15272 = vst [vmem:[#allocation15_spill] sm:$0xff] %v12404_v60  ;;  %v5604_v28 = vand.u32 2147483647, %v12377_v52  ;;  %v12409_v14 = vpop.f32.mrb[255].mxu1  ;;  %vm7176_vm12 = vcmp.ge.f32.partialorder %v12384_v0, 0.0 }
 0x9a2   : > { %v9650_v34 = vpop.eup %9649  ;;  %7820 = vst [vmem:[%s12206_s26 + $0xa8] sm:$0xff] %v7596_v8  ;;  %v7374_v32 = vmul.f32 %v9648_v29, %v12302_v35  ;;  %9669 = vrcp.f32 %v6490_v40  ;;  %15273 = vst [vmem:[#allocation16_spill] sm:$0xff] %v12409_v14  ;;  %v12411_v33 = vpop.f32.mrb[31].mxu0  ;;  %v5608_v38 = vand.u32 2147483647, %v12384_v0 }
 0x9a3   : > { %15274 = vst [vmem:[#allocation17_spill] sm:$0xff] %v12411_v33  ;;  %v9652_v46 = vpop.eup %9651  ;;  %v7373_v23 = vmul.f32 %v9650_v34, %v12307_v4  ;;  %9671 = vpow2.f32 %v6095_v11  ;;  %v6093_v44 = vmul.f32 1.442695, %v5826_v59  ;;  %v5828_v8 = vsub.f32 0.0, %v5604_v28 }
 0x9a4   : > { %v9654_v6 = vpop.eup %9653  ;;  %v7598_v35 = vsel %vm7150_vm13, %v9648_v29, %v7374_v32  ;;  %v7375_v40 = vmul.f32 %v9652_v46, %v12312_v58  ;;  %v5832_v11 = vsub.f32 0.0, %v5608_v38  ;;  %v12436_v32 = vadd.f32 %v12170_v39, %v12044_v45  ;;  %v12438_v28 = vpop.f32.mrb[0].mxu1 }
 0x9a5   : > { %v9656_v14 = vpop.eup %9655  ;;  %7822 = vst [vmem:[%s12206_s26 + $0xb8] sm:$0xff] %v7598_v35  ;;  %v7597_v4 = vsel %vm7149_vm14, %v9650_v34, %v7373_v23  ;;  %v7379_v33 = vmul.f32 %v9654_v6, %v12320_v9  ;;  %9673 = vpow2.f32 %v6093_v44  ;;  %v6097_v59 = vmul.f32 1.442695, %v5828_v8  ;;  %v12440_v2 = vpop.f32.mrb[32].mxu0 }
 0x9a6   : > { %v12424_v60 = vpop.eup %9657  ;;  %7821 = vst [vmem:[%s12206_s26 + $0xb0] sm:$0xff] %v7597_v4  ;;  %v7599_v36 = vsel %vm7151_vm15, %v9652_v46, %v7375_v40  ;;  %v7381_v58 = vmul.f32 %v9656_v14, %v12333_v41  ;;  %v6105_v34 = vmul.f32 1.442695, %v5832_v11  ;;  %v12450_v38 = vpop.f32.mrb[1].mxu1  ;;  %vm7178_vm13 = vcmp.ge.f32.partialorder %v12436_v32, 0.0 }
 0x9a7   : > { %v9660_v29 = vpop.eup %9659  ;;  %7823 = vst [vmem:[%s12206_s26 + $0xc0] sm:$0xff] %v7599_v36  ;;  %v7603_v22 = vsel %vm7155_vm0, %v9654_v6, %v7379_v33  ;;  %v6492_v9 = vadd.f32 1.0, %v12424_v60  ;;  %9675 = vpow2.f32 %v6097_v59  ;;  %v15275_v33 = vld [vmem:[#allocation3_spill] sm:$0xff]  ;;  %v12452_v39 = vpop.f32.mrb[33].mxu0 }
 0x9a8   : > { %v9662_v41 = vpop.eup %9661  ;;  %7827 = vst [vmem:[%s12206_s26 + $0xe0] sm:$0xff] %v7603_v22  ;;  %v7605_v46 = vsel %vm7157_vm1, %v9656_v14, %v7381_v58  ;;  %v7380_v25 = vmul.f32 %v9660_v29, %v12346_v27  ;;  %v12448_v23 = vadd.f32 %v15275_v33, %v12046_v3  ;;  %15276 = vst [vmem:[#allocation3_spill] sm:$0xff] %v12452_v39  ;;  %v5610_v27 = vand.u32 2147483647, %v12436_v32  ;;  %v12460_v14 = vpop.f32.mrb[2].mxu1  ;;  %v15282_v33 = vld [vmem:[#allocation5_spill] sm:$0xff] }
 0x9a9   : > { %v12454_v6 = vpop.eup %9663  ;;  %7829 = vst [vmem:[%s12206_s26 + $0xf0] sm:$0xff] %v7605_v46  ;;  %v7382_v42 = vmul.f32 %v9662_v41, %v12353_v54  ;;  %9677 = vrcp.f32 %v6492_v9  ;;  %15277 = vst [vmem:[#allocation18_spill] sm:$0xff] %v12460_v14  ;;  %v12462_v35 = vpop.f32.mrb[34].mxu0  ;;  %v15281_v9 = vld [vmem:[#allocation4_spill] sm:$0xff] }
 0x9aa   : > { %15278 = vst [vmem:[#allocation19_spill] sm:$0xff] %v12462_v35  ;;  %v12464_v40 = vpop.eup %9665  ;;  %v7604_v44 = vsel %vm7156_vm2, %v9660_v29, %v7380_v25  ;;  %v6491_v8 = vadd.f32 1.0, %v12454_v6  ;;  %9679 = vpow2.f32 %v6105_v34  ;;  %v5609_v19 = vand.u32 2147483647, %v12448_v23  ;;  %v12470_v4 = vpop.f32.mrb[3].mxu1 }
 0x9ab   : > { %15279 = vst [vmem:[#allocation20_spill] sm:$0xff] %v12470_v4  ;;  %v12472_v54 = vpop.f32.mrb[35].mxu0  ;;  %v12474_v11 = vpop.eup %9667  ;;  %7828 = vst [vmem:[%s12206_s26 + $0xe8] sm:$0xff] %v7604_v44  ;;  %v7606_v36 = vsel %vm7158_vm3, %v9662_v41, %v7382_v42  ;;  %v6493_v58 = vadd.f32 1.0, %v12464_v40  ;;  %v5834_v59 = vsub.f32 0.0, %v5610_v27  ;;  %v12483_v34 = vadd.f32 %v15281_v9, %v12048_v7 }
 0x9ac   : > { %15280 = vst [vmem:[#allocation21_spill] sm:$0xff] %v12472_v54  ;;  %v9670_v12 = vpop.eup %9669  ;;  %7830 = vst [vmem:[%s12206_s26 + $0xf8] sm:$0xff] %v7606_v36  ;;  %9681 = vrcp.f32 %v6491_v8  ;;  %v6497_v29 = vadd.f32 1.0, %v12474_v11  ;;  %v5833_v22 = vsub.f32 0.0, %v5609_v19  ;;  %v12490_v42 = vadd.f32 %v15282_v33, %v12042_v17  ;;  %v12497_v9 = vpop.f32.mrb[4].mxu1 }
 0x9ad   : > { %v12485_v46 = vpop.eup %9671  ;;  %v7386_v41 = vmul.f32 %v9670_v12, %v12379_v53  ;;  %9683 = vrcp.f32 %v6493_v58  ;;  %v6109_v25 = vmul.f32 1.442695, %v5834_v59  ;;  %v5611_v8 = vand.u32 2147483647, %v12483_v34  ;;  %15283 = vst [vmem:[#allocation4_spill] sm:$0xff] %v12497_v9  ;;  %v12499_v53 = vpop.f32.mrb[36].mxu0 }
 0x9ae   : > { %9685 = vrcp.f32 %v6497_v29  ;;  %v6499_v27 = vadd.f32 1.0, %v12485_v46  ;;  %v6107_v44 = vmul.f32 1.442695, %v5833_v22  ;;  %v5615_v36 = vand.u32 2147483647, %v12490_v42  ;;  %15284 = vst [vmem:[#allocation5_spill] sm:$0xff] %v12499_v53 }
 0x9af   : > { %v7610_v19 = vsel %vm7162_vm4, %v9670_v12, %v7386_v41  ;;  %9687 = vpow2.f32 %v6109_v25  ;;  %v12501_v58 = vpop.eup %9673  ;;  %v5835_v59 = vsub.f32 0.0, %v5611_v8  ;;  %v15285_v29 = vld [vmem:[#allocation6_spill] sm:$0xff]  ;;  %v12509_v50 = vpop.f32.mrb[5].mxu1  ;;  %v12516_v33 = vadd.f32 %v12210_v48, %v12046_v3 }
 0x9b0   : > { %7834 = vst [vmem:[%s12206_s26 + $0x118] sm:$0xff] %v7610_v19  ;;  %9689 = vrcp.f32 %v6499_v27  ;;  %v12507_v22 = vadd.f32 %v15285_v29, %v12044_v45  ;;  %15286 = vst [vmem:[#allocation6_spill] sm:$0xff] %v12509_v50  ;;  %v12511_v12 = vpop.f32.mrb[37].mxu0  ;;  %v6498_v41 = vadd.f32 1.0, %v12501_v58  ;;  %v5839_v25 = vsub.f32 0.0, %v5615_v36  ;;  %v12518_v19 = vpop.f32.mrb[6].mxu1 }
 0x9b1   : > { %15287 = vst [vmem:[#allocation22_spill] sm:$0xff] %v12511_v12  ;;  %9691 = vpow2.f32 %v6107_v44  ;;  %15288 = vst [vmem:[#allocation23_spill] sm:$0xff] %v12518_v19  ;;  %v12520_v27 = vpop.f32.mrb[38].mxu0  ;;  %v12522_v8 = vpop.eup %9675  ;;  %v6111_v29 = vmul.f32 1.442695, %v5835_v59  ;;  %v15290_v12 = vld [vmem:[#allocation7_spill] sm:$0xff] }
 0x9b2   : > { %15289 = vst [vmem:[#allocation24_spill] sm:$0xff] %v12520_v27  ;;  %v5617_v50 = vand.u32 2147483647, %v12507_v22  ;;  %v12528_v53 = vadd.f32 %v15290_v12, %v12048_v7  ;;  %v12530_v44 = vpop.f32.mrb[7].mxu1  ;;  %9693 = vrcp.f32 %v6498_v41  ;;  %v6500_v48 = vadd.f32 1.0, %v12522_v8  ;;  %v12534_v9 = vpop.f32.mrb[39].mxu0 }
 0x9b3   : > { %15291 = vst [vmem:[#allocation7_spill] sm:$0xff] %v12530_v44  ;;  %v9678_v36 = vpop.eup %9677  ;;  %v6119_v19 = vmul.f32 1.442695, %v5839_v25  ;;  %v5616_v27 = vand.u32 2147483647, %v12516_v33  ;;  %15292 = vst [vmem:[#allocation25_spill] sm:$0xff] %v12534_v9  ;;  %9695 = vpow2.f32 %v6111_v29 }
 0x9b4   : > { %v12536_v54 = vpop.eup %9679  ;;  %v7388_v59 = vmul.f32 %v9678_v36, %v12424_v60  ;;  %v5841_v12 = vsub.f32 0.0, %v5617_v50  ;;  %9697 = vrcp.f32 %v6500_v48  ;;  %v5618_v4 = vand.u32 2147483647, %v12528_v53  ;;  %v12547_v48 = vpop.f32.mrb[8].mxu1 }
 0x9b5   : > { %v6504_v44 = vadd.f32 1.0, %v12536_v54  ;;  %v5840_v41 = vsub.f32 0.0, %v5616_v27  ;;  %9699 = vpow2.f32 %v6119_v19  ;;  %v12549_v27 = vpop.f32.mrb[40].mxu0  ;;  %v12554_v19 = vadd.f32 %v12220_v13, %v12042_v17 }
 0x9b6   : > { %v9682_v25 = vpop.eup %9681  ;;  %v7612_v35 = vsel %vm7164_vm5, %v9678_v36, %v7388_v59  ;;  %v6123_v9 = vmul.f32 1.442695, %v5841_v12  ;;  %v5842_v29 = vsub.f32 0.0, %v5618_v4  ;;  %v12562_v4 = vpop.f32.mrb[41].mxu0  ;;  %vm7177_vm14 = vcmp.ge.f32.partialorder %v12448_v23, 0.0 }
 0x9b7   : > { %v9684_v14 = vpop.eup %9683  ;;  %7836 = vst [vmem:[%s12206_s26 + $0x128] sm:$0xff] %v7612_v35  ;;  %v7387_v60 = vmul.f32 %v9682_v25, %v12454_v6  ;;  %9701 = vrcp.f32 %v6504_v44  ;;  %v6121_v50 = vmul.f32 1.442695, %v5840_v41  ;;  %v15293_v35 = vld [vmem:[#allocation8_spill] sm:$0xff]  ;;  %v12560_v6 = vpop.f32.mrb[9].mxu1  ;;  %vm7179_vm15 = vcmp.ge.f32.partialorder %v12483_v34, 0.0 }
 0x9b8   : > { %v9686_v39 = vpop.eup %9685  ;;  %v7389_v26 = vmul.f32 %v9684_v14, %v12464_v40  ;;  %9703 = vpow2.f32 %v6123_v9  ;;  %v12558_v36 = vadd.f32 %v15293_v35, %v12044_v45  ;;  %v6125_v9 = vmul.f32 1.442695, %v5842_v29  ;;  %v12569_v13 = vpop.f32.mrb[10].mxu1 }
 0x9b9   : > { %v12564_v44 = vpop.eup %9687  ;;  %v7611_v59 = vsel %vm7163_vm6, %v9682_v25, %v7387_v60  ;;  %v7393_v40 = vmul.f32 %v9686_v39, %v12474_v11  ;;  %9705 = vpow2.f32 %v6121_v50  ;;  %v12571_v12 = vpop.f32.mrb[42].mxu0  ;;  %v5622_v25 = vand.u32 2147483647, %v12554_v19 }
 0x9ba   : > { %v9690_v41 = vpop.eup %9689  ;;  %7835 = vst [vmem:[%s12206_s26 + $0x120] sm:$0xff] %v7611_v59  ;;  %v7613_v35 = vsel %vm7165_vm7, %v9684_v14, %v7389_v26  ;;  %v6506_v61 = vadd.f32 1.0, %v12564_v44  ;;  %v12579_v60 = vpop.f32.mrb[11].mxu1  ;;  %9707 = vpow2.f32 %v6125_v9  ;;  %v5624_v14 = vand.u32 2147483647, %v12558_v36 }
 0x9bb   : > { %15294 = vst [vmem:[#allocation8_spill] sm:$0xff] %v12579_v60  ;;  %v12581_v11 = vpop.f32.mrb[43].mxu0  ;;  %v12583_v50 = vpop.eup %9691  ;;  %7837 = vst [vmem:[%s12206_s26 + $0x130] sm:$0xff] %v7613_v35  ;;  %v7617_v29 = vsel %vm7169_vm8, %v9686_v39, %v7393_v40  ;;  %v7395_v20 = vmul.f32 %v9690_v41, %v12485_v46  ;;  %v5846_v59 = vsub.f32 0.0, %v5622_v25  ;;  %v12601_v39 = vadd.f32 %v12233_v16, %v12048_v7 }
 0x9bc   : > { %15295 = vst [vmem:[#allocation26_spill] sm:$0xff] %v12581_v11  ;;  %7841 = vst [vmem:[%s12206_s26 + $0x150] sm:$0xff] %v7617_v29  ;;  %9709 = vrcp.f32 %v6506_v61  ;;  %v6505_v26 = vadd.f32 1.0, %v12583_v50  ;;  %v9694_v11 = vpop.eup %9693  ;;  %v5848_v60 = vsub.f32 0.0, %v5624_v14  ;;  %v12612_v16 = vadd.f32 %v12259_v5, %v12042_v17  ;;  %v12620_v14 = vpop.f32.mrb[12].mxu1 }
 0x9bd   : > { %v7619_v35 = vsel %vm7171_vm9, %v9690_v41, %v7395_v20  ;;  %v12603_v46 = vpop.eup %9695  ;;  %v7394_v40 = vmul.f32 %v9694_v11, %v12501_v58  ;;  %v6133_v43 = vmul.f32 1.442695, %v5846_v59  ;;  %v5625_v20 = vand.u32 2147483647, %v12601_v39  ;;  %v12627_v56 = vpop.f32.mrb[13].mxu1 }
 0x9be   : > { %7843 = vst [vmem:[%s12206_s26 + $0x160] sm:$0xff] %v7619_v35  ;;  %9711 = vrcp.f32 %v6505_v26  ;;  %v9698_v9 = vpop.eup %9697  ;;  %v6507_v41 = vadd.f32 1.0, %v12603_v46  ;;  %v6137_v61 = vmul.f32 1.442695, %v5848_v60  ;;  %v12622_v26 = vpop.f32.mrb[44].mxu0  ;;  %v5847_v59 = vsub.f32 0.0, %v5623_v21 }
 0x9bf   : > { %v12614_v25 = vpop.eup %9699  ;;  %v7618_v58 = vsel %vm7170_vm10, %v9694_v11, %v7394_v40  ;;  %v7396_v29 = vmul.f32 %v9698_v9, %v12522_v8  ;;  %9713 = vpow2.f32 %v6133_v43  ;;  %15296 = vst [vmem:[#allocation27_spill] sm:$0xff] %v12622_v26  ;;  %15297 = vst [vmem:[#allocation28_spill] sm:$0xff] %v12627_v56  ;;  %v12629_v11 = vpop.f32.mrb[45].mxu0  ;;  %v5849_v43 = vsub.f32 0.0, %v5625_v20 }
 0x9c0   : > { %7842 = vst [vmem:[%s12206_s26 + $0x158] sm:$0xff] %v7618_v58  ;;  %9715 = vrcp.f32 %v6507_v41  ;;  %v6511_v5 = vadd.f32 1.0, %v12614_v25  ;;  %15298 = vst [vmem:[#allocation29_spill] sm:$0xff] %v12629_v11  ;;  %v12636_v58 = vpop.f32.mrb[14].mxu1  ;;  %v12638_v41 = vpop.f32.mrb[46].mxu0  ;;  %v12654_v20 = vadd.f32 %v12261_v51, %v12044_v45  ;;  %vm7183_vm0 = vcmp.ge.f32.partialorder %v12490_v42, 0.0 }
 0x9c1   : > { %v9702_v60 = vpop.eup %9701  ;;  %v7620_v35 = vsel %vm7172_vm11, %v9698_v9, %v7396_v29  ;;  %9717 = vpow2.f32 %v6137_v61  ;;  %v6135_v11 = vmul.f32 1.442695, %v5847_v59  ;;  %v5629_v56 = vand.u32 2147483647, %v12612_v16 }
 0x9c2   : > { %v12631_v8 = vpop.eup %9703  ;;  %v7400_v40 = vmul.f32 %v9702_v60, %v12536_v54  ;;  %7844 = vst [vmem:[%s12206_s26 + $0x168] sm:$0xff] %v7620_v35  ;;  %9719 = vrcp.f32 %v6511_v5  ;;  %v6139_v9 = vmul.f32 1.442695, %v5849_v43  ;;  %v12658_v5 = vadd.f32 %v12268_v57, %v12046_v3 }
 0x9c3   : > { %v12640_v26 = vpop.eup %9705  ;;  %v6513_v21 = vadd.f32 1.0, %v12631_v8  ;;  %v5853_v29 = vsub.f32 0.0, %v5629_v56  ;;  %v12663_v59 = vadd.f32 %v12270_v49, %v12048_v7  ;;  %v12667_v35 = vadd.f32 %v12282_v63, %v12042_v17 }
 0x9c4   : > { %v7624_v52 = vsel %vm7176_vm12, %v9702_v60, %v7400_v40  ;;  %v6512_v54 = vadd.f32 1.0, %v12640_v26  ;;  %v12649_v61 = vpop.eup %9707  ;;  %v5631_v57 = vand.u32 2147483647, %v12654_v20  ;;  %v12671_v40 = vpop.f32.mrb[15].mxu1  ;;  %v5630_v49 = vand.u32 2147483647, %v12658_v5 }
 0x9c5   : > { %7848 = vst [vmem:[%s12206_s26 + $0x188] sm:$0xff] %v7624_v52  ;;  %9721 = vrcp.f32 %v6513_v21  ;;  %v6514_v60 = vadd.f32 1.0, %v12649_v61  ;;  %v6147_v51 = vmul.f32 1.442695, %v5853_v29  ;;  %v12679_v21 = vpop.f32.mrb[47].mxu0  ;;  %vm7185_vm1 = vcmp.ge.f32.partialorder %v12507_v22, 0.0 }
 0x9c6   : > { %v9710_v0 = vpop.eup %9709  ;;  %9723 = vrcp.f32 %v6512_v54  ;;  %15299 = vst [vmem:[#allocation30_spill] sm:$0xff] %v12679_v21  ;;  %v5854_v54 = vsub.f32 0.0, %v5630_v49  ;;  %v5632_v29 = vand.u32 2147483647, %v12663_v59  ;;  %vm7184_vm2 = vcmp.ge.f32.partialorder %v12516_v33, 0.0 }
 0x9c7   : > { %v7402_v56 = vmul.f32 %v9710_v0, %v12564_v44  ;;  %9725 = vpow2.f32 %v6135_v11  ;;  %v5855_v11 = vsub.f32 0.0, %v5631_v57  ;;  %vm7186_vm3 = vcmp.ge.f32.partialorder %v12528_v53, 0.0 }
 0x9c8   : > { %v9712_v43 = vpop.eup %9711  ;;  %9727 = vrcp.f32 %v6514_v60  ;;  %v5856_v49 = vsub.f32 0.0, %v5632_v29  ;;  %vm7190_vm4 = vcmp.ge.f32.partialorder %v12554_v19, 0.0  ;;  %vm7192_vm5 = vcmp.ge.f32.partialorder %v12558_v36, 0.0  ;;  %v15305_v36 = vld [vmem:[#allocation10_spill] sm:$0xff] }
 0x9c9   : > { %v7626_v63 = vsel %vm7178_vm13, %v9710_v0, %v7402_v56  ;;  %v7401_v44 = vmul.f32 %v9712_v43, %v12583_v50  ;;  %9729 = vpow2.f32 %v6139_v9  ;;  %v12681_v52 = vpop.eup %9713  ;;  %v6151_v0 = vmul.f32 1.442695, %v5855_v11 }
 0x9ca   : > { %7850 = vst [vmem:[%s12206_s26 + $0x198] sm:$0xff] %v7626_v63  ;;  %9731 = vpow2.f32 %v6147_v51  ;;  %v9716_v60 = vpop.eup %9715  ;;  %v6518_v50 = vadd.f32 1.0, %v12681_v52  ;;  %v5636_v9 = vand.u32 2147483647, %v12667_v35  ;;  %v6149_v51 = vmul.f32 1.442695, %v5854_v54 }
 0x9cb   : > { %v7625_v32 = vsel %vm7177_vm14, %v9712_v43, %v7401_v44  ;;  %v12690_v56 = vpop.eup %9717  ;;  %v7403_v57 = vmul.f32 %v9716_v60, %v12603_v46  ;;  %v12698_v44 = vadd.f32 %v12284_v15, %v12044_v45  ;;  %v6153_v46 = vmul.f32 1.442695, %v5856_v49 }
 0x9cc   : > { %7849 = vst [vmem:[%s12206_s26 + $0x190] sm:$0xff] %v7625_v32  ;;  %v9720_v63 = vpop.eup %9719  ;;  %9733 = vrcp.f32 %v6518_v50  ;;  %v6520_v23 = vadd.f32 1.0, %v12690_v56  ;;  %v5860_v43 = vsub.f32 0.0, %v5636_v9  ;;  %vm7191_vm6 = vcmp.ge.f32.partialorder %v12597_v24, 0.0 }
 0x9cd   : > { %v7627_v11 = vsel %vm7179_vm15, %v9716_v60, %v7403_v57  ;;  %v7407_v32 = vmul.f32 %v9720_v63, %v12614_v25  ;;  %9735 = vpow2.f32 %v6151_v0  ;;  %v5638_v29 = vand.u32 2147483647, %v12698_v44  ;;  %v12713_v60 = vpop.f32.mrb[16].mxu1  ;;  %v12715_v0 = vpop.f32.mrb[48].mxu0 }
 0x9ce   : > { %7851 = vst [vmem:[%s12206_s26 + $0x1a0] sm:$0xff] %v7627_v11  ;;  %9737 = vrcp.f32 %v6520_v23  ;;  %v6161_v54 = vmul.f32 1.442695, %v5860_v43  ;;  %v12711_v25 = vadd.f32 %v12294_v10, %v12046_v3  ;;  %v12731_v43 = vpop.f32.mrb[49].mxu0  ;;  %vm7193_vm7 = vcmp.ge.f32.partialorder %v12601_v39, 0.0 }
 0x9cf   : > { %v9722_v21 = vpop.eup %9721  ;;  %v7631_v15 = vsel %vm7183_vm0, %v9720_v63, %v7407_v32  ;;  %9739 = vpow2.f32 %v6149_v51  ;;  %v5862_v42 = vsub.f32 0.0, %v5638_v29  ;;  %v12725_v51 = vpop.f32.mrb[17].mxu1  ;;  %vm7197_vm8 = vcmp.ge.f32.partialorder %v12612_v16, 0.0  ;;  %v15307_v16 = vld [vmem:[#allocation12_spill] sm:$0xff] }
 0x9d0   : > { %v9724_v50 = vpop.eup %9723  ;;  %v7409_v34 = vmul.f32 %v9722_v21, %v12631_v8  ;;  %7855 = vst [vmem:[%s12206_s26 + $0x1c0] sm:$0xff] %v7631_v15  ;;  %9741 = vpow2.f32 %v6153_v46  ;;  %v12723_v8 = vadd.f32 %v12296_v31, %v12048_v7  ;;  %v5637_v23 = vand.u32 2147483647, %v12711_v25 }
 0x9d1   : > { %v12717_v9 = vpop.eup %9725  ;;  %v7408_v57 = vmul.f32 %v9724_v50, %v12640_v26  ;;  %9743 = vpow2.f32 %v6161_v54  ;;  %v6165_v22 = vmul.f32 1.442695, %v5862_v42  ;;  %v12761_v42 = vpop.f32.mrb[18].mxu1  ;;  %vm7199_vm9 = vcmp.ge.f32.partialorder %v12654_v20, 0.0 }
 0x9d2   : > { %v9728_v10 = vpop.eup %9727  ;;  %v7633_v49 = vsel %vm7185_vm1, %v9722_v21, %v7409_v34  ;;  %v6519_v63 = vadd.f32 1.0, %v12717_v9  ;;  %v5861_v46 = vsub.f32 0.0, %v5637_v23  ;;  %v5639_v54 = vand.u32 2147483647, %v12723_v8  ;;  %15300 = vst [vmem:[#allocation31_spill] sm:$0xff] %v12761_v42 }
 0x9d3   : > { %v12733_v26 = vpop.eup %9729  ;;  %7857 = vst [vmem:[%s12206_s26 + $0x1d0] sm:$0xff] %v7633_v49  ;;  %v7632_v31 = vsel %vm7184_vm2, %v9724_v50, %v7408_v57  ;;  %v7410_v11 = vmul.f32 %v9728_v10, %v12649_v61  ;;  %v12750_v50 = vadd.f32 %v12329_v18, %v12042_v17  ;;  %v12755_v34 = vadd.f32 %v12331_v55, %v12044_v45 }
 0x9d4   : > { %v12740_v21 = vpop.eup %9731  ;;  %7856 = vst [vmem:[%s12206_s26 + $0x1c8] sm:$0xff] %v7632_v31  ;;  %9745 = vrcp.f32 %v6519_v63  ;;  %v6521_v32 = vadd.f32 1.0, %v12733_v26  ;;  %v6163_v53 = vmul.f32 1.442695, %v5861_v46  ;;  %v5863_v61 = vsub.f32 0.0, %v5639_v54 }
 0x9d5   : > { %v7634_v29 = vsel %vm7186_vm3, %v9728_v10, %v7410_v11  ;;  %v6525_v33 = vadd.f32 1.0, %v12740_v21  ;;  %9747 = vpow2.f32 %v6165_v22  ;;  %v12759_v57 = vadd.f32 %v12337_v30, %v12046_v3  ;;  %v12763_v10 = vpop.f32.mrb[50].mxu0  ;;  %v15302_v11 = vld [vmem:[#allocation9_spill] sm:$0xff] }
 0x9d6   : > { %7858 = vst [vmem:[%s12206_s26 + $0x1d8] sm:$0xff] %v7634_v29  ;;  %9749 = vrcp.f32 %v6521_v32  ;;  %v9734_v15 = vpop.eup %9733  ;;  %15301 = vst [vmem:[#allocation32_spill] sm:$0xff] %v12763_v10  ;;  %v6167_v63 = vmul.f32 1.442695, %v5863_v61  ;;  %v5643_v23 = vand.u32 2147483647, %v12750_v50  ;;  %v12774_v22 = vadd.f32 %v15302_v11, %v12048_v7 }
 0x9d7   : > { %9751 = vrcp.f32 %v6525_v33  ;;  %v12765_v49 = vpop.eup %9735  ;;  %v7414_v18 = vmul.f32 %v9734_v15, %v12681_v52  ;;  %v5645_v30 = vand.u32 2147483647, %v12755_v34  ;;  %v12781_v29 = vpop.f32.mrb[19].mxu1  ;;  %v5644_v11 = vand.u32 2147483647, %v12759_v57 }
 0x9d8   : > { %9753 = vpow2.f32 %v6163_v53  ;;  %v9738_v31 = vpop.eup %9737  ;;  %v6527_v55 = vadd.f32 1.0, %v12765_v49  ;;  %v5867_v54 = vsub.f32 0.0, %v5643_v23  ;;  %15303 = vst [vmem:[#allocation9_spill] sm:$0xff] %v12781_v29  ;;  %v12788_v10 = vpop.f32.mrb[51].mxu0  ;;  %vm7198_vm10 = vcmp.ge.f32.partialorder %v12658_v5, 0.0 }
 0x9d9   : > { %v12776_v32 = vpop.eup %9739  ;;  %v7638_v52 = vsel %vm7190_vm4, %v9734_v15, %v7414_v18  ;;  %v7416_v46 = vmul.f32 %v9738_v31, %v12690_v56  ;;  %9755 = vpow2.f32 %v6167_v63  ;;  %v5869_v61 = vsub.f32 0.0, %v5645_v30  ;;  %15304 = vst [vmem:[#allocation33_spill] sm:$0xff] %v12788_v10 }
 0x9da   : > { %v12783_v33 = vpop.eup %9741  ;;  %7862 = vst [vmem:[%s12206_s26 + $0x1f8] sm:$0xff] %v7638_v52  ;;  %9757 = vrcp.f32 %v6527_v55  ;;  %v6526_v53 = vadd.f32 1.0, %v12776_v32  ;;  %v6175_v18 = vmul.f32 1.442695, %v5867_v54  ;;  %v5868_v55 = vsub.f32 0.0, %v5644_v11 }
 0x9db   : > { %v12790_v19 = vpop.eup %9743  ;;  %v7640_v56 = vsel %vm7192_vm5, %v9738_v31, %v7416_v46  ;;  %v6528_v15 = vadd.f32 1.0, %v12783_v33  ;;  %v6179_v23 = vmul.f32 1.442695, %v5869_v61  ;;  %v5646_v52 = vand.u32 2147483647, %v12774_v22 }
 0x9dc   : > { %7864 = vst [vmem:[%s12206_s26 + $0x208] sm:$0xff] %v7640_v56  ;;  %9759 = vrcp.f32 %v6526_v53  ;;  %v6532_v63 = vadd.f32 1.0, %v12790_v19  ;;  %v12802_v31 = vadd.f32 %v15305_v36, %v12042_v17  ;;  %v6177_v53 = vmul.f32 1.442695, %v5868_v55 }
 0x9dd   : > { %9761 = vrcp.f32 %v6528_v15  ;;  %v12809_v61 = vadd.f32 %v12349_v37, %v12044_v45  ;;  %v5870_v15 = vsub.f32 0.0, %v5646_v52  ;;  %vm7200_vm11 = vcmp.ge.f32.partialorder %v12663_v59, 0.0 }
 0x9de   : > { %v9746_v30 = vpop.eup %9745  ;;  %9763 = vrcp.f32 %v6532_v63  ;;  %v5650_v10 = vand.u32 2147483647, %v12802_v31  ;;  %vm7204_vm12 = vcmp.ge.f32.partialorder %v12667_v35, 0.0  ;;  %vm7206_vm13 = vcmp.ge.f32.partialorder %v12698_v44, 0.0 }
 0x9df   : > { %v12804_v46 = vpop.eup %9747  ;;  %v7415_v54 = vmul.f32 %v9746_v30, %v12717_v9  ;;  %9765 = vpow2.f32 %v6175_v18  ;;  %v6181_v18 = vmul.f32 1.442695, %v5870_v15  ;;  %v12848_v15 = vadd.f32 %v12386_v1, %v12042_v17 }
 0x9e0   : > { %v9750_v11 = vpop.eup %9749  ;;  %v6534_v56 = vadd.f32 1.0, %v12804_v46  ;;  %9767 = vpow2.f32 %v6179_v23  ;;  %v5874_v63 = vsub.f32 0.0, %v5650_v10  ;;  %v12827_v23 = vpop.f32.mrb[52].mxu0  ;;  %vm7205_vm14 = vcmp.ge.f32.partialorder %v12711_v25, 0.0 }
 0x9e1   : > { %v9752_v36 = vpop.eup %9751  ;;  %v7639_v29 = vsel %vm7191_vm6, %v9746_v30, %v7415_v54  ;;  %v7417_v42 = vmul.f32 %v9750_v11, %v12733_v26  ;;  %v5652_v26 = vand.u32 2147483647, %v12809_v61  ;;  %v12825_v30 = vpop.f32.mrb[20].mxu1  ;;  %v15306_v54 = vld [vmem:[#allocation11_spill] sm:$0xff]  ;;  %vm7207_vm15 = vcmp.ge.f32.partialorder %v12723_v8, 0.0 }
 0x9e2   : > { %v12817_v9 = vpop.eup %9753  ;;  %7863 = vst [vmem:[%s12206_s26 + $0x200] sm:$0xff] %v7639_v29  ;;  %v7421_v37 = vmul.f32 %v9752_v36, %v12740_v21  ;;  %9769 = vrcp.f32 %v6534_v56  ;;  %v6189_v39 = vmul.f32 1.442695, %v5874_v63  ;;  %v12844_v56 = vadd.f32 %v15307_v16, %v12048_v7 }
 0x9e3   : > { %v7641_v55 = vsel %vm7193_vm7, %v9750_v11, %v7417_v42  ;;  %v6533_v24 = vadd.f32 1.0, %v12817_v9  ;;  %9771 = vpow2.f32 %v6177_v53  ;;  %v12829_v52 = vpop.eup %9755  ;;  %v5876_v29 = vsub.f32 0.0, %v5652_v26 }
 0x9e4   : > { %7865 = vst [vmem:[%s12206_s26 + $0x210] sm:$0xff] %v7641_v55  ;;  %v7645_v21 = vsel %vm7197_vm8, %v9752_v36, %v7421_v37  ;;  %9773 = vpow2.f32 %v6181_v18  ;;  %v9758_v42 = vpop.eup %9757  ;;  %v6535_v10 = vadd.f32 1.0, %v12829_v52  ;;  %v12839_v53 = vadd.f32 %v15306_v54, %v12046_v3  ;;  %v12850_v36 = vpop.f32.mrb[21].mxu1 }
 0x9e5   : > { %7869 = vst [vmem:[%s12206_s26 + $0x230] sm:$0xff] %v7645_v21  ;;  %9775 = vrcp.f32 %v6533_v24  ;;  %v7423_v11 = vmul.f32 %v9758_v42, %v12765_v49  ;;  %15308 = vst [vmem:[#allocation10_spill] sm:$0xff] %v12850_v36  ;;  %v6193_v18 = vmul.f32 1.442695, %v5876_v29  ;;  %v12854_v49 = vpop.f32.mrb[53].mxu0  ;;  %vm7211_vm0 = vcmp.ge.f32.partialorder %v12750_v50, 0.0 }
 0x9e6   : > { %9777 = vpow2.f32 %v6189_v39  ;;  %v9760_v37 = vpop.eup %9759  ;;  %v5651_v63 = vand.u32 2147483647, %v12839_v53  ;;  %15309 = vst [vmem:[#allocation11_spill] sm:$0xff] %v12854_v49  ;;  %v5653_v1 = vand.u32 2147483647, %v12844_v56  ;;  %v12872_v16 = vpop.f32.mrb[54].mxu0  ;;  %v12932_v25 = vadd.f32 %v12402_v47, %v12042_v17 }
 0x9e7   : > { %9779 = vrcp.f32 %v6535_v10  ;;  %v9762_v55 = vpop.eup %9761  ;;  %v7647_v24 = vsel %vm7199_vm9, %v9758_v42, %v7423_v11  ;;  %v7422_v26 = vmul.f32 %v9760_v37, %v12776_v32  ;;  %v5657_v29 = vand.u32 2147483647, %v12848_v15  ;;  %v12870_v11 = vpop.f32.mrb[22].mxu1  ;;  %15311 = vst [vmem:[#allocation34_spill] sm:$0xff] %v12872_v16 }
 0x9e8   : > { %v9764_v21 = vpop.eup %9763  ;;  %7871 = vst [vmem:[%s12206_s26 + $0x240] sm:$0xff] %v7647_v24  ;;  %v7424_v39 = vmul.f32 %v9762_v55, %v12783_v33  ;;  %9781 = vpow2.f32 %v6193_v18  ;;  %v5875_v10 = vsub.f32 0.0, %v5651_v63  ;;  %v5877_v42 = vsub.f32 0.0, %v5653_v1  ;;  %15310 = vst [vmem:[#allocation12_spill] sm:$0xff] %v12870_v11  ;;  %v12912_v16 = vpop.f32.mrb[55].mxu0 }
 0x9e9   : > { %v12864_v54 = vpop.eup %9765  ;;  %v7646_v20 = vsel %vm7198_vm10, %v9760_v37, %v7422_v26  ;;  %v7428_v32 = vmul.f32 %v9764_v21, %v12790_v19  ;;  %v5881_v26 = vsub.f32 0.0, %v5657_v29  ;;  %v12887_v1 = vadd.f32 %v12388_v62, %v12044_v45  ;;  %15314 = vst [vmem:[#allocation35_spill] sm:$0xff] %v12912_v16 }
 0x9ea   : > { %v12874_v33 = vpop.eup %9767  ;;  %7870 = vst [vmem:[%s12206_s26 + $0x238] sm:$0xff] %v7646_v20  ;;  %v7648_v18 = vsel %vm7200_vm11, %v9762_v55, %v7424_v39  ;;  %v6539_v5 = vadd.f32 1.0, %v12864_v54  ;;  %v6191_v37 = vmul.f32 1.442695, %v5875_v10  ;;  %v15312_v55 = vld [vmem:[#allocation13_spill] sm:$0xff]  ;;  %vm7213_vm1 = vcmp.ge.f32.partialorder %v12755_v34, 0.0 }
 0x9eb   : > { %7872 = vst [vmem:[%s12206_s26 + $0x248] sm:$0xff] %v7648_v18  ;;  %v7652_v63 = vsel %vm7204_vm12, %v9764_v21, %v7428_v32  ;;  %v6541_v24 = vadd.f32 1.0, %v12874_v33  ;;  %v12896_v35 = vadd.f32 %v15312_v55, %v12046_v3  ;;  %v6195_v62 = vmul.f32 1.442695, %v5877_v42 }
 0x9ec   : > { %v9770_v19 = vpop.eup %9769  ;;  %7876 = vst [vmem:[%s12206_s26 + $0x268] sm:$0xff] %v7652_v63  ;;  %9783 = vrcp.f32 %v6539_v5  ;;  %v5659_v10 = vand.u32 2147483647, %v12887_v1  ;;  %v12906_v5 = vpop.f32.mrb[23].mxu1  ;;  %v6203_v42 = vmul.f32 1.442695, %v5881_v26 }
 0x9ed   : > { %v12889_v20 = vpop.eup %9771  ;;  %v7430_v59 = vmul.f32 %v9770_v19, %v12804_v46  ;;  %9785 = vrcp.f32 %v6541_v24  ;;  %v5658_v18 = vand.u32 2147483647, %v12896_v35  ;;  %15313 = vst [vmem:[#allocation13_spill] sm:$0xff] %v12906_v5  ;;  %v5664_v8 = vand.u32 2147483647, %v12932_v25 }
 0x9ee   : > { %v12898_v21 = vpop.eup %9773  ;;  %v6540_v39 = vadd.f32 1.0, %v12889_v20  ;;  %9787 = vpow2.f32 %v6191_v37  ;;  %v5883_v55 = vsub.f32 0.0, %v5659_v10  ;;  %vm7212_vm2 = vcmp.ge.f32.partialorder %v12759_v57, 0.0 }
 0x9ef   : > { %v9776_v29 = vpop.eup %9775  ;;  %v7654_v46 = vsel %vm7206_vm13, %v9770_v19, %v7430_v59  ;;  %v6542_v32 = vadd.f32 1.0, %v12898_v21  ;;  %v5882_v37 = vsub.f32 0.0, %v5658_v18  ;;  %v15315_v59 = vld [vmem:[#allocation14_spill] sm:$0xff]  ;;  %vm7214_vm3 = vcmp.ge.f32.partialorder %v12774_v22, 0.0 }
 0x9f0   : > { %v12908_v63 = vpop.eup %9777  ;;  %7878 = vst [vmem:[%s12206_s26 + $0x278] sm:$0xff] %v7654_v46  ;;  %v7429_v24 = vmul.f32 %v9776_v29, %v12817_v9  ;;  %9789 = vrcp.f32 %v6540_v39  ;;  %v12917_v5 = vadd.f32 %v15315_v59, %v12048_v7  ;;  %v6207_v26 = vmul.f32 1.442695, %v5883_v55 }
 0x9f1   : > { %v9780_v44 = vpop.eup %9779  ;;  %9791 = vrcp.f32 %v6542_v32  ;;  %v6546_v19 = vadd.f32 1.0, %v12908_v63  ;;  %v6205_v10 = vmul.f32 1.442695, %v5882_v37  ;;  %vm7218_vm4 = vcmp.ge.f32.partialorder %v12802_v31, 0.0 }
 0x9f2   : > { %v7653_v46 = vsel %vm7205_vm14, %v9776_v29, %v7429_v24  ;;  %v7431_v9 = vmul.f32 %v9780_v44, %v12829_v52  ;;  %9793 = vpow2.f32 %v6195_v62  ;;  %v12922_v39 = vpop.eup %9781  ;;  %v5660_v32 = vand.u32 2147483647, %v12917_v5  ;;  %v15316_v62 = vld [vmem:[#allocation15_spill] sm:$0xff]  ;;  %v15317_v24 = vld [vmem:[#allocation16_spill] sm:$0xff] }
 0x9f3   : > { %7877 = vst [vmem:[%s12206_s26 + $0x270] sm:$0xff] %v7653_v46  ;;  %9795 = vrcp.f32 %v6546_v19  ;;  %v6548_v59 = vadd.f32 1.0, %v12922_v39  ;;  %v12937_v29 = vadd.f32 %v15316_v62, %v12044_v45  ;;  %v12941_v55 = vadd.f32 %v15317_v24, %v12046_v3 }
 0x9f4   : > { %v7655_v18 = vsel %vm7207_vm15, %v9780_v44, %v7431_v9  ;;  %9797 = vpow2.f32 %v6203_v42  ;;  %v5884_v52 = vsub.f32 0.0, %v5660_v32  ;;  %v15318_v42 = vld [vmem:[#allocation17_spill] sm:$0xff]  ;;  %v12999_v22 = vadd.f32 %v12440_v2, %v12044_v45 }
 0x9f5   : > { %7879 = vst [vmem:[%s12206_s26 + $0x280] sm:$0xff] %v7655_v18  ;;  %9799 = vpow2.f32 %v6207_v26  ;;  %v12947_v47 = vadd.f32 %v15318_v42, %v12048_v7  ;;  %v5666_v37 = vand.u32 2147483647, %v12937_v29  ;;  %v5888_v26 = vsub.f32 0.0, %v5664_v8  ;;  %v12954_v18 = vpop.f32.mrb[24].mxu1 }
 0x9f6   : > { %9801 = vrcp.f32 %v6548_v59  ;;  %v9784_v44 = vpop.eup %9783  ;;  %v6209_v19 = vmul.f32 1.442695, %v5884_v52  ;;  %v5665_v32 = vand.u32 2147483647, %v12941_v55  ;;  %15319 = vst [vmem:[#allocation14_spill] sm:$0xff] %v12954_v18  ;;  %v12956_v59 = vpop.f32.mrb[56].mxu0 }
 0x9f7   : > { %9803 = vpow2.f32 %v6205_v10  ;;  %v9786_v46 = vpop.eup %9785  ;;  %v7435_v9 = vmul.f32 %v9784_v44, %v12864_v54  ;;  %15320 = vst [vmem:[#allocation15_spill] sm:$0xff] %v12956_v59  ;;  %v5890_v52 = vsub.f32 0.0, %v5666_v37  ;;  %v5667_v24 = vand.u32 2147483647, %v12947_v47  ;;  %v12962_v54 = vpop.f32.mrb[25].mxu1 }
 0x9f8   : > { %v12958_v62 = vpop.eup %9787  ;;  %v7437_v10 = vmul.f32 %v9786_v46, %v12874_v33  ;;  %9805 = vpow2.f32 %v6209_v19  ;;  %15321 = vst [vmem:[#allocation16_spill] sm:$0xff] %v12962_v54  ;;  %v6217_v18 = vmul.f32 1.442695, %v5888_v26  ;;  %v5889_v11 = vsub.f32 0.0, %v5665_v32  ;;  %v12967_v59 = vpop.f32.mrb[57].mxu0 }
 0x9f9   : > { %v7659_v8 = vsel %vm7211_vm0, %v9784_v44, %v7435_v9  ;;  %v6547_v16 = vadd.f32 1.0, %v12958_v62  ;;  %v6221_v37 = vmul.f32 1.442695, %v5890_v52  ;;  %v5891_v54 = vsub.f32 0.0, %v5667_v24  ;;  %v12991_v57 = vpop.f32.mrb[26].mxu1 }
 0x9fa   : > { %v9790_v42 = vpop.eup %9789  ;;  %7883 = vst [vmem:[%s12206_s26 + $0x2a0] sm:$0xff] %v7659_v8  ;;  %v7661_v33 = vsel %vm7213_vm1, %v9786_v46, %v7437_v10  ;;  %v6219_v44 = vmul.f32 1.442695, %v5889_v11  ;;  %v12989_v11 = vadd.f32 %v12438_v28, %v12042_v17  ;;  %vm7220_vm5 = vcmp.ge.f32.partialorder %v12809_v61, 0.0  ;;  %v13019_v8 = vpop.f32.mrb[27].mxu1 }
 0x9fb   : > { %v9792_v49 = vpop.eup %9791  ;;  %v7436_v19 = vmul.f32 %v9790_v42, %v12889_v20  ;;  %7885 = vst [vmem:[%s12206_s26 + $0x2b0] sm:$0xff] %v7661_v33  ;;  %9807 = vrcp.f32 %v6547_v16  ;;  %v6223_v20 = vmul.f32 1.442695, %v5891_v54  ;;  %vm7219_vm6 = vcmp.ge.f32.partialorder %v12839_v53, 0.0 }
 0x9fc   : > { %v12973_v36 = vpop.eup %9793  ;;  %v7438_v50 = vmul.f32 %v9792_v49, %v12898_v21  ;;  %9809 = vpow2.f32 %v6217_v18  ;;  %v5671_v24 = vand.u32 2147483647, %v12989_v11  ;;  %vm7221_vm7 = vcmp.ge.f32.partialorder %v12844_v56, 0.0 }
 0x9fd   : > { %v9796_v9 = vpop.eup %9795  ;;  %v7660_v34 = vsel %vm7212_vm2, %v9790_v42, %v7436_v19  ;;  %v6549_v46 = vadd.f32 1.0, %v12973_v36  ;;  %9811 = vpow2.f32 %v6221_v37  ;;  %vm7225_vm8 = vcmp.ge.f32.partialorder %v12848_v15, 0.0 }
 0x9fe   : > { %v12981_v26 = vpop.eup %9797  ;;  %7884 = vst [vmem:[%s12206_s26 + $0x2a8] sm:$0xff] %v7660_v34  ;;  %v7662_v32 = vsel %vm7214_vm3, %v9792_v49, %v7438_v50  ;;  %v7442_v21 = vmul.f32 %v9796_v9, %v12908_v63  ;;  %v13003_v49 = vadd.f32 %v12450_v38, %v12046_v3  ;;  %v13005_v63 = vpop.f32.mrb[58].mxu0  ;;  %v5673_v38 = vand.u32 2147483647, %v12999_v22 }
 0x9ff   : > { %v12993_v16 = vpop.eup %9799  ;;  %7886 = vst [vmem:[%s12206_s26 + $0x2b8] sm:$0xff] %v7662_v32  ;;  %9813 = vrcp.f32 %v6549_v46  ;;  %v6553_v18 = vadd.f32 1.0, %v12981_v26  ;;  %v5895_v42 = vsub.f32 0.0, %v5671_v24  ;;  %v13024_v50 = vpop.f32.mrb[59].mxu0  ;;  %v15323_v46 = vld [vmem:[#allocation3_spill] sm:$0xff]  ;;  %vm7227_vm9 = vcmp.ge.f32.partialorder %v12887_v1, 0.0 }
 0xa00   : > { %v9802_v28 = vpop.eup %9801  ;;  %v7666_v10 = vsel %vm7218_vm4, %v9796_v9, %v7442_v21  ;;  %v6555_v52 = vadd.f32 1.0, %v12993_v16  ;;  %9815 = vpow2.f32 %v6219_v44  ;;  %v5897_v37 = vsub.f32 0.0, %v5673_v38  ;;  %15322 = vst [vmem:[#allocation17_spill] sm:$0xff] %v13024_v50 }
 0xa01   : > { %v13011_v54 = vpop.eup %9803  ;;  %7890 = vst [vmem:[%s12206_s26 + $0x2d8] sm:$0xff] %v7666_v10  ;;  %v7444_v2 = vmul.f32 %v9802_v28, %v12922_v39  ;;  %9817 = vrcp.f32 %v6553_v18  ;;  %v5672_v61 = vand.u32 2147483647, %v13003_v49  ;;  %v6231_v44 = vmul.f32 1.442695, %v5895_v42 }
 0xa02   : > { %9819 = vrcp.f32 %v6555_v52  ;;  %v6554_v31 = vadd.f32 1.0, %v13011_v54  ;;  %v13021_v33 = vpop.eup %9805  ;;  %v6235_v9 = vmul.f32 1.442695, %v5897_v37  ;;  %v13031_v32 = vadd.f32 %v15323_v46, %v12048_v7  ;;  %v15326_v37 = vld [vmem:[#allocation20_spill] sm:$0xff]  ;;  %v13058_v46 = vpop.f32.mrb[28].mxu1 }
 0xa03   : > { %v7668_v19 = vsel %vm7220_vm5, %v9802_v28, %v7444_v2  ;;  %9821 = vpow2.f32 %v6223_v20  ;;  %v6556_v39 = vadd.f32 1.0, %v13021_v33  ;;  %v5896_v34 = vsub.f32 0.0, %v5672_v61  ;;  %v15324_v20 = vld [vmem:[#allocation18_spill] sm:$0xff]  ;;  %v15325_v28 = vld [vmem:[#allocation19_spill] sm:$0xff]  ;;  %15327 = vst [vmem:[#allocation3_spill] sm:$0xff] %v13058_v46  ;;  %v15329_v46 = vld [vmem:[#allocation21_spill] sm:$0xff] }
 0xa04   : > { %7892 = vst [vmem:[%s12206_s26 + $0x2e8] sm:$0xff] %v7668_v19  ;;  %9823 = vrcp.f32 %v6554_v31  ;;  %v13035_v21 = vadd.f32 %v15324_v20, %v12042_v17  ;;  %v13041_v10 = vadd.f32 %v15325_v28, %v12044_v45  ;;  %v5674_v38 = vand.u32 2147483647, %v13031_v32  ;;  %v13060_v20 = vpop.f32.mrb[60].mxu0 }
 0xa05   : > { %v9808_v18 = vpop.eup %9807  ;;  %9825 = vrcp.f32 %v6556_v39  ;;  %v6233_v2 = vmul.f32 1.442695, %v5896_v34  ;;  %v13053_v61 = vadd.f32 %v15326_v37, %v12046_v3  ;;  %15328 = vst [vmem:[#allocation18_spill] sm:$0xff] %v13060_v20  ;;  %vm7226_vm10 = vcmp.ge.f32.partialorder %v12896_v35, 0.0 }
 0xa06   : > { %v13043_v52 = vpop.eup %9809  ;;  %v7443_v24 = vmul.f32 %v9808_v18, %v12958_v62  ;;  %9827 = vpow2.f32 %v6231_v44  ;;  %v5678_v19 = vand.u32 2147483647, %v13035_v21  ;;  %v5898_v34 = vsub.f32 0.0, %v5674_v38 }
 0xa07   : > { %v13047_v31 = vpop.eup %9811  ;;  %v6560_v42 = vadd.f32 1.0, %v13043_v52  ;;  %9829 = vpow2.f32 %v6235_v9  ;;  %v13074_v50 = vadd.f32 %v15329_v46, %v12048_v7  ;;  %v5679_v56 = vand.u32 2147483647, %v13053_v61 }
 0xa08   : > { %v7667_v62 = vsel %vm7219_vm6, %v9808_v18, %v7443_v24  ;;  %v6562_v44 = vadd.f32 1.0, %v13047_v31  ;;  %9831 = vpow2.f32 %v6233_v2  ;;  %v5902_v37 = vsub.f32 0.0, %v5678_v19 }
 0xa09   : > { %v9814_v39 = vpop.eup %9813  ;;  %7891 = vst [vmem:[%s12206_s26 + $0x2e0] sm:$0xff] %v7667_v62  ;;  %9833 = vrcp.f32 %v6560_v42  ;;  %v6237_v24 = vmul.f32 1.442695, %v5898_v34  ;;  %v5680_v2 = vand.u32 2147483647, %v13041_v10  ;;  %v13076_v42 = vpop.f32.mrb[29].mxu1 }
 0xa0a   : > { %v13062_v28 = vpop.eup %9815  ;;  %v7445_v9 = vmul.f32 %v9814_v39, %v12973_v36  ;;  %9835 = vrcp.f32 %v6562_v44  ;;  %v6245_v36 = vmul.f32 1.442695, %v5902_v37  ;;  %vm7228_vm11 = vcmp.ge.f32.partialorder %v12917_v5, 0.0 }
 0xa0b   : > { %v9818_v53 = vpop.eup %9817  ;;  %v6561_v18 = vadd.f32 1.0, %v13062_v28  ;;  %v5904_v34 = vsub.f32 0.0, %v5680_v2  ;;  %vm7232_vm12 = vcmp.ge.f32.partialorder %v12932_v25, 0.0  ;;  %v5903_v15 = vsub.f32 0.0, %v5679_v56  ;;  %v13096_v2 = vpop.f32.mrb[30].mxu1  ;;  %v15332_v56 = vld [vmem:[#allocation5_spill] sm:$0xff] }
 0xa0c   : > { %v9820_v38 = vpop.eup %9819  ;;  %v7669_v20 = vsel %vm7221_vm7, %v9814_v39, %v7445_v9  ;;  %v7449_v62 = vmul.f32 %v9818_v53, %v12981_v26  ;;  %v13083_v39 = vpop.f32.mrb[61].mxu0  ;;  %15330 = vst [vmem:[#allocation19_spill] sm:$0xff] %v13096_v2  ;;  %vm7234_vm13 = vcmp.ge.f32.partialorder %v12937_v29, 0.0  ;;  %v13114_v35 = vadd.f32 %v15332_v56, %v12044_v45 }
 0xa0d   : > { %v13078_v19 = vpop.eup %9821  ;;  %7893 = vst [vmem:[%s12206_s26 + $0x2f0] sm:$0xff] %v7669_v20  ;;  %v7451_v44 = vmul.f32 %v9820_v38, %v12993_v16  ;;  %9837 = vrcp.f32 %v6561_v18  ;;  %v6249_v37 = vmul.f32 1.442695, %v5904_v34  ;;  %vm7233_vm14 = vcmp.ge.f32.partialorder %v12941_v55, 0.0 }
 0xa0e   : > { %v9824_v26 = vpop.eup %9823  ;;  %v7673_v9 = vsel %vm7225_vm8, %v9818_v53, %v7449_v62  ;;  %v6563_v46 = vadd.f32 1.0, %v13078_v19  ;;  %9839 = vpow2.f32 %v6237_v24  ;;  %v5681_v53 = vand.u32 2147483647, %v13074_v50 }
 0xa0f   : > { %7897 = vst [vmem:[%s12206_s26 + $0x310] sm:$0xff] %v7673_v9  ;;  %v7675_v16 = vsel %vm7227_vm9, %v9820_v38, %v7451_v44  ;;  %v7450_v20 = vmul.f32 %v9824_v26, %v13011_v54  ;;  %9841 = vpow2.f32 %v6245_v36  ;;  %v9826_v18 = vpop.eup %9825  ;;  %v15331_v38 = vld [vmem:[#allocation4_spill] sm:$0xff]  ;;  %vm7235_vm15 = vcmp.ge.f32.partialorder %v12947_v47, 0.0 }
 0xa10   : > { %7899 = vst [vmem:[%s12206_s26 + $0x320] sm:$0xff] %v7675_v16  ;;  %9843 = vrcp.f32 %v6563_v46  ;;  %v13098_v24 = vpop.eup %9827  ;;  %v7452_v54 = vmul.f32 %v9826_v18, %v13021_v33  ;;  %v13105_v62 = vadd.f32 %v15331_v38, %v12042_v17  ;;  %v5905_v34 = vsub.f32 0.0, %v5681_v53 }
 0xa11   : > { %v7674_v1 = vsel %vm7226_vm10, %v9824_v26, %v7450_v20  ;;  %9845 = vpow2.f32 %v6249_v37  ;;  %v13107_v36 = vpop.eup %9829  ;;  %v6567_v44 = vadd.f32 1.0, %v13098_v24  ;;  %v6247_v46 = vmul.f32 1.442695, %v5903_v15  ;;  %v13122_v20 = vpop.f32.mrb[62].mxu0 }
 0xa12   : > { %7898 = vst [vmem:[%s12206_s26 + $0x318] sm:$0xff] %v7674_v1  ;;  %v13116_v26 = vpop.eup %9831  ;;  %v7676_v33 = vsel %vm7228_vm11, %v9826_v18, %v7452_v54  ;;  %v6569_v9 = vadd.f32 1.0, %v13107_v36  ;;  %v5685_v16 = vand.u32 2147483647, %v13105_v62  ;;  %15333 = vst [vmem:[#allocation20_spill] sm:$0xff] %v13122_v20  ;;  %vm7239_vm0 = vcmp.ge.f32.partialorder %v12989_v11, 0.0 }
 0xa13   : > { %v9834_v37 = vpop.eup %9833  ;;  %7900 = vst [vmem:[%s12206_s26 + $0x328] sm:$0xff] %v7676_v33  ;;  %9847 = vrcp.f32 %v6567_v44  ;;  %v6568_v53 = vadd.f32 1.0, %v13116_v26  ;;  %v6251_v1 = vmul.f32 1.442695, %v5905_v34  ;;  %v5687_v38 = vand.u32 2147483647, %v13114_v35 }
 0xa14   : > { %v9836_v56 = vpop.eup %9835  ;;  %v7456_v5 = vmul.f32 %v9834_v37, %v13043_v52  ;;  %9849 = vrcp.f32 %v6569_v9  ;;  %v5909_v18 = vsub.f32 0.0, %v5685_v16  ;;  %v15334_v44 = vld [vmem:[#allocation6_spill] sm:$0xff]  ;;  %v13134_v34 = vpop.f32.mrb[31].mxu1  ;;  %vm7241_vm1 = vcmp.ge.f32.partialorder %v12999_v22, 0.0 }
 0xa15   : > { %v7458_v15 = vmul.f32 %v9836_v56, %v13047_v31  ;;  %9851 = vrcp.f32 %v6568_v53  ;;  %v5911_v54 = vsub.f32 0.0, %v5687_v38  ;;  %v13132_v33 = vadd.f32 %v15334_v44, %v12046_v3  ;;  %15335 = vst [vmem:[#allocation21_spill] sm:$0xff] %v13134_v34  ;;  %v15336_v9 = vld [vmem:[#allocation22_spill] sm:$0xff] }
 0xa16   : > { %v7680_v2 = vsel %vm7232_vm12, %v9834_v37, %v7456_v5  ;;  %9853 = vpow2.f32 %v6247_v46  ;;  %v6259_v52 = vmul.f32 1.442695, %v5909_v18  ;;  %v13140_v16 = vadd.f32 %v15336_v9, %v12048_v7  ;;  %v13154_v37 = vpop.f32.mrb[63].mxu0 }
 0xa17   : > { %v9838_v20 = vpop.eup %9837  ;;  %7904 = vst [vmem:[%s12206_s26 + $0x348] sm:$0xff] %v7680_v2  ;;  %v7682_v53 = vsel %vm7234_vm13, %v9836_v56, %v7458_v15  ;;  %9855 = vpow2.f32 %v6251_v1  ;;  %v6263_v44 = vmul.f32 1.442695, %v5911_v54  ;;  %v5686_v46 = vand.u32 2147483647, %v13132_v33 }
 0xa18   : > { %v13142_v31 = vpop.eup %9839  ;;  %v7457_v38 = vmul.f32 %v9838_v20, %v13062_v28  ;;  %7906 = vst [vmem:[%s12206_s26 + $0x358] sm:$0xff] %v7682_v53  ;;  %9857 = vpow2.f32 %v6259_v52  ;;  %v5688_v1 = vand.u32 2147483647, %v13140_v16  ;;  %v15338_v53 = vld [vmem:[#allocation24_spill] sm:$0xff]  ;;  %vm7240_vm2 = vcmp.ge.f32.partialorder %v13003_v49, 0.0 }
 0xa19   : > { %v13148_v34 = vpop.eup %9841  ;;  %v6570_v25 = vadd.f32 1.0, %v13142_v31  ;;  %9859 = vpow2.f32 %v6263_v44  ;;  %v5910_v18 = vsub.f32 0.0, %v5686_v46  ;;  %vm7242_vm3 = vcmp.ge.f32.partialorder %v13031_v32, 0.0 }
 0xa1a   : > { %v9844_v2 = vpop.eup %9843  ;;  %v7681_v29 = vsel %vm7233_vm14, %v9838_v20, %v7457_v38  ;;  %v6574_v28 = vadd.f32 1.0, %v13148_v34  ;;  %v5912_v55 = vsub.f32 0.0, %v5688_v1  ;;  %v15337_v20 = vld [vmem:[#allocation23_spill] sm:$0xff]  ;;  %v13174_v38 = vadd.f32 %v15338_v53, %v12044_v45  ;;  %v13196_v53 = vpop.f32.mrb[64].mxu0 }
 0xa1b   : > { %v13160_v56 = vpop.eup %9845  ;;  %7905 = vst [vmem:[%s12206_s26 + $0x350] sm:$0xff] %v7681_v29  ;;  %v7459_v5 = vmul.f32 %v9844_v2, %v13078_v19  ;;  %9861 = vrcp.f32 %v6570_v25  ;;  %v13168_v54 = vadd.f32 %v15337_v20, %v12042_v17  ;;  %v6261_v9 = vmul.f32 1.442695, %v5910_v18  ;;  %v15339_v19 = vld [vmem:[#allocation7_spill] sm:$0xff]  ;;  %15341 = vst [vmem:[#allocation5_spill] sm:$0xff] %v13196_v53 }
 0xa1c   : > { %9863 = vrcp.f32 %v6574_v28  ;;  %v6576_v15 = vadd.f32 1.0, %v13160_v56  ;;  %v13178_v44 = vadd.f32 %v15339_v19, %v12046_v3  ;;  %v6265_v46 = vmul.f32 1.442695, %v5912_v55  ;;  %v13188_v55 = vpop.f32.mrb[32].mxu1 }
 0xa1d   : > { %v7683_v52 = vsel %vm7235_vm15, %v9844_v2, %v7459_v5  ;;  %v9848_v25 = vpop.eup %9847  ;;  %v5692_v29 = vand.u32 2147483647, %v13168_v54  ;;  %v5694_v2 = vand.u32 2147483647, %v13174_v38  ;;  %15340 = vst [vmem:[#allocation4_spill] sm:$0xff] %v13188_v55  ;;  %vm7246_vm4 = vcmp.ge.f32.partialorder %v13035_v21, 0.0 }
 0xa1e   : > { %7907 = vst [vmem:[%s12206_s26 + $0x360] sm:$0xff] %v7683_v52  ;;  %9865 = vrcp.f32 %v6576_v15  ;;  %v9850_v28 = vpop.eup %9849  ;;  %v7463_v47 = vmul.f32 %v9848_v25, %v13098_v24  ;;  %v5693_v15 = vand.u32 2147483647, %v13178_v44  ;;  %vm7248_vm5 = vcmp.ge.f32.partialorder %v13041_v10, 0.0 }
 0xa1f   : > { %9867 = vpow2.f32 %v6261_v9  ;;  %v9852_v1 = vpop.eup %9851  ;;  %v7465_v5 = vmul.f32 %v9850_v28, %v13107_v36  ;;  %v5916_v18 = vsub.f32 0.0, %v5692_v29  ;;  %v5918_v9 = vsub.f32 0.0, %v5694_v2  ;;  %v15342_v2 = vld [vmem:[#allocation25_spill] sm:$0xff] }
 0xa20   : > { %9869 = vpow2.f32 %v6265_v46  ;;  %v13190_v20 = vpop.eup %9853  ;;  %v7687_v24 = vsel %vm7239_vm0, %v9848_v25, %v7463_v47  ;;  %v7464_v52 = vmul.f32 %v9852_v1, %v13116_v26  ;;  %v5917_v11 = vsub.f32 0.0, %v5693_v15 }
 0xa21   : > { %v13198_v36 = vpop.eup %9855  ;;  %7911 = vst [vmem:[%s12206_s26 + $0x380] sm:$0xff] %v7687_v24  ;;  %v7689_v19 = vsel %vm7241_vm1, %v9850_v28, %v7465_v5  ;;  %v6575_v46 = vadd.f32 1.0, %v13190_v20  ;;  %v6273_v47 = vmul.f32 1.442695, %v5916_v18  ;;  %v13213_v24 = vadd.f32 %v15342_v2, %v12048_v7 }
 0xa22   : > { %v13205_v25 = vpop.eup %9857  ;;  %7913 = vst [vmem:[%s12206_s26 + $0x390] sm:$0xff] %v7689_v19  ;;  %v7688_v26 = vsel %vm7240_vm2, %v9852_v1, %v7464_v52  ;;  %v6577_v29 = vadd.f32 1.0, %v13198_v36  ;;  %v6277_v5 = vmul.f32 1.442695, %v5918_v9  ;;  %v13221_v15 = vadd.f32 %v12547_v48, %v12042_v17  ;;  %v13226_v52 = vpop.f32.mrb[33].mxu1 }
 0xa23   : > { %v13215_v22 = vpop.eup %9859  ;;  %7912 = vst [vmem:[%s12206_s26 + $0x388] sm:$0xff] %v7688_v26  ;;  %9871 = vrcp.f32 %v6575_v46  ;;  %v6581_v28 = vadd.f32 1.0, %v13205_v25  ;;  %v5695_v18 = vand.u32 2147483647, %v13213_v24  ;;  %15343 = vst [vmem:[#allocation6_spill] sm:$0xff] %v13226_v52  ;;  %v13228_v19 = vpop.f32.mrb[65].mxu0  ;;  %v13235_v53 = vadd.f32 %v12549_v27, %v12044_v45 }
 0xa24   : > { %9873 = vrcp.f32 %v6577_v29  ;;  %v6583_v1 = vadd.f32 1.0, %v13215_v22  ;;  %15344 = vst [vmem:[#allocation22_spill] sm:$0xff] %v13228_v19  ;;  %v6275_v26 = vmul.f32 1.442695, %v5917_v11  ;;  %v5699_v48 = vand.u32 2147483647, %v13221_v15 }
 0xa25   : > { %v9862_v49 = vpop.eup %9861  ;;  %9875 = vrcp.f32 %v6581_v28  ;;  %v5919_v29 = vsub.f32 0.0, %v5695_v18  ;;  %v13243_v11 = vpop.f32.mrb[34].mxu1  ;;  %v5701_v18 = vand.u32 2147483647, %v13235_v53  ;;  %vm7247_vm6 = vcmp.ge.f32.partialorder %v13053_v61, 0.0 }
 0xa26   : > { %v9864_v46 = vpop.eup %9863  ;;  %v7466_v9 = vmul.f32 %v9862_v49, %v13142_v31  ;;  %9877 = vrcp.f32 %v6583_v1  ;;  %v5923_v55 = vsub.f32 0.0, %v5699_v48  ;;  %v13241_v31 = vadd.f32 %v12560_v6, %v12046_v3 }
 0xa27   : > { %v7470_v2 = vmul.f32 %v9864_v46, %v13148_v34  ;;  %9879 = vpow2.f32 %v6273_v47  ;;  %v6279_v32 = vmul.f32 1.442695, %v5919_v29  ;;  %vm7249_vm7 = vcmp.ge.f32.partialorder %v13074_v50, 0.0 }
 0xa28   : > { %v9866_v52 = vpop.eup %9865  ;;  %v7690_v19 = vsel %vm7242_vm3, %v9862_v49, %v7466_v9  ;;  %9881 = vpow2.f32 %v6277_v5  ;;  %v13251_v49 = vpop.f32.mrb[66].mxu0  ;;  %v6287_v1 = vmul.f32 1.442695, %v5923_v55  ;;  %v5925_v5 = vsub.f32 0.0, %v5701_v18 }
 0xa29   : > { %v13245_v34 = vpop.eup %9867  ;;  %7914 = vst [vmem:[%s12206_s26 + $0x398] sm:$0xff] %v7690_v19  ;;  %v7694_v27 = vsel %vm7246_vm4, %v9864_v46, %v7470_v2  ;;  %v7472_v28 = vmul.f32 %v9866_v52, %v13160_v56  ;;  %9883 = vpow2.f32 %v6275_v26  ;;  %v13261_v56 = vpop.f32.mrb[35].mxu1  ;;  %v5700_v46 = vand.u32 2147483647, %v13241_v31 }
 0xa2a   : > { %v13253_v47 = vpop.eup %9869  ;;  %7918 = vst [vmem:[%s12206_s26 + $0x3b8] sm:$0xff] %v7694_v27  ;;  %v6582_v6 = vadd.f32 1.0, %v13245_v34  ;;  %9885 = vpow2.f32 %v6279_v32  ;;  %v13269_v55 = vadd.f32 %v12562_v4, %v12048_v7  ;;  %v13273_v10 = vadd.f32 %v12569_v13, %v12042_v17  ;;  %v13279_v2 = vpop.f32.mrb[67].mxu0 }
 0xa2b   : > { %v7696_v21 = vsel %vm7248_vm5, %v9866_v52, %v7472_v28  ;;  %v6584_v19 = vadd.f32 1.0, %v13253_v47  ;;  %v6291_v9 = vmul.f32 1.442695, %v5925_v5  ;;  %v5924_v26 = vsub.f32 0.0, %v5700_v46 }
 0xa2c   : > { %7920 = vst [vmem:[%s12206_s26 + $0x3c8] sm:$0xff] %v7696_v21  ;;  %9887 = vrcp.f32 %v6582_v6  ;;  %v13277_v48 = vadd.f32 %v12571_v12, %v12044_v45  ;;  %vm7253_vm8 = vcmp.ge.f32.partialorder %v13105_v62, 0.0  ;;  %v5702_v4 = vand.u32 2147483647, %v13269_v55  ;;  %v15345_v12 = vld [vmem:[#allocation8_spill] sm:$0xff] }
 0xa2d   : > { %9889 = vrcp.f32 %v6584_v19  ;;  %v9872_v52 = vpop.eup %9871  ;;  %v5706_v13 = vand.u32 2147483647, %v13273_v10  ;;  %v6289_v6 = vmul.f32 1.442695, %v5924_v26  ;;  %vm7255_vm9 = vcmp.ge.f32.partialorder %v13114_v35, 0.0 }
 0xa2e   : > { %9891 = vpow2.f32 %v6287_v1  ;;  %v9874_v29 = vpop.eup %9873  ;;  %v7471_v27 = vmul.f32 %v9872_v52, %v13190_v20  ;;  %v13288_v1 = vadd.f32 %v15345_v12, %v12046_v3  ;;  %v5926_v19 = vsub.f32 0.0, %v5702_v4 }
 0xa2f   : > { %v9876_v28 = vpop.eup %9875  ;;  %v7473_v32 = vmul.f32 %v9874_v29, %v13198_v36  ;;  %9893 = vpow2.f32 %v6291_v9  ;;  %v5930_v5 = vsub.f32 0.0, %v5706_v13  ;;  %v5708_v26 = vand.u32 2147483647, %v13277_v48 }
 0xa30   : > { %v9878_v18 = vpop.eup %9877  ;;  %v7695_v20 = vsel %vm7247_vm6, %v9872_v52, %v7471_v27  ;;  %v7477_v21 = vmul.f32 %v9876_v28, %v13205_v25  ;;  %9895 = vpow2.f32 %v6289_v6  ;;  %vm7254_vm10 = vcmp.ge.f32.partialorder %v13132_v33, 0.0  ;;  %v15346_v6 = vld [vmem:[#allocation26_spill] sm:$0xff] }
 0xa31   : > { %v13293_v46 = vpop.eup %9879  ;;  %7919 = vst [vmem:[%s12206_s26 + $0x3c0] sm:$0xff] %v7695_v20  ;;  %v7697_v36 = vsel %vm7249_vm7, %v9874_v29, %v7473_v32  ;;  %v7479_v9 = vmul.f32 %v9878_v18, %v13215_v22  ;;  %vm7256_vm11 = vcmp.ge.f32.partialorder %v13140_v16, 0.0  ;;  %v5932_v29 = vsub.f32 0.0, %v5708_v26  ;;  %v13323_v20 = vpop.f32.mrb[36].mxu1 }
 0xa32   : > { %v13300_v12 = vpop.eup %9881  ;;  %7921 = vst [vmem:[%s12206_s26 + $0x3d0] sm:$0xff] %v7697_v36  ;;  %v7701_v61 = vsel %vm7253_vm8, %v9876_v28, %v7477_v21  ;;  %v6588_v25 = vadd.f32 1.0, %v13293_v46  ;;  %v6293_v35 = vmul.f32 1.442695, %v5926_v19  ;;  %v5707_v4 = vand.u32 2147483647, %v13288_v1 }
 0xa33   : > { %v13308_v50 = vpop.eup %9883  ;;  %7925 = vst [vmem:[%s12206_s26 + $0x3f0] sm:$0xff] %v7701_v61  ;;  %v7703_v22 = vsel %vm7255_vm9, %v9878_v18, %v7479_v9  ;;  %v6590_v52 = vadd.f32 1.0, %v13300_v12  ;;  %v6301_v32 = vmul.f32 1.442695, %v5930_v5  ;;  %v13321_v18 = vadd.f32 %v15346_v6, %v12048_v7  ;;  %v13325_v21 = vpop.f32.mrb[68].mxu0 }
 0xa34   : > { %v13313_v27 = vpop.eup %9885  ;;  %7927 = vst [vmem:[%s12206_s26 + $0x400] sm:$0xff] %v7703_v22  ;;  %9897 = vrcp.f32 %v6588_v25  ;;  %v6589_v62 = vadd.f32 1.0, %v13308_v50  ;;  %v5931_v19 = vsub.f32 0.0, %v5707_v4  ;;  %v13330_v26 = vadd.f32 %v12620_v14, %v12042_v17  ;;  %v13332_v61 = vpop.f32.mrb[37].mxu1 }
 0xa35   : > { %9899 = vrcp.f32 %v6590_v52  ;;  %v6591_v28 = vadd.f32 1.0, %v13313_v27  ;;  %15347 = vst [vmem:[#allocation23_spill] sm:$0xff] %v13332_v61  ;;  %v6305_v22 = vmul.f32 1.442695, %v5932_v29  ;;  %v5709_v52 = vand.u32 2147483647, %v13321_v18 }
 0xa36   : > { %v9888_v13 = vpop.eup %9887  ;;  %9901 = vrcp.f32 %v6589_v62  ;;  %v13338_v6 = vpop.f32.mrb[69].mxu0  ;;  %vm7260_vm12 = vcmp.ge.f32.partialorder %v13168_v54, 0.0  ;;  %v6303_v62 = vmul.f32 1.442695, %v5931_v19  ;;  %vm7262_vm13 = vcmp.ge.f32.partialorder %v13174_v38, 0.0 }
 0xa37   : > { %v9890_v36 = vpop.eup %9889  ;;  %v7478_v9 = vmul.f32 %v9888_v13, %v13245_v34  ;;  %9903 = vrcp.f32 %v6591_v28  ;;  %15348 = vst [vmem:[#allocation24_spill] sm:$0xff] %v13338_v6  ;;  %v5933_v29 = vsub.f32 0.0, %v5709_v52  ;;  %v5713_v28 = vand.u32 2147483647, %v13330_v26  ;;  %v13365_v52 = vpop.f32.mrb[70].mxu0 }
 0xa38   : > { %v13334_v5 = vpop.eup %9891  ;;  %v7480_v25 = vmul.f32 %v9890_v36, %v13253_v47  ;;  %9905 = vpow2.f32 %v6293_v35  ;;  %15352 = vst [vmem:[#allocation25_spill] sm:$0xff] %v13365_v52  ;;  %vm7261_vm14 = vcmp.ge.f32.partialorder %v13178_v44, 0.0  ;;  %vm7263_vm15 = vcmp.ge.f32.partialorder %v13213_v24, 0.0  ;;  %v13386_v61 = vpop.f32.mrb[71].mxu0 }
 0xa39   : > { %v7702_v34 = vsel %vm7254_vm10, %v9888_v13, %v7478_v9  ;;  %v6595_v14 = vadd.f32 1.0, %v13334_v5  ;;  %v13344_v4 = vpop.eup %9893  ;;  %9907 = vpow2.f32 %v6301_v32  ;;  %v15349_v13 = vld [vmem:[#allocation27_spill] sm:$0xff]  ;;  %v13357_v9 = vpop.f32.mrb[38].mxu1  ;;  %v6307_v16 = vmul.f32 1.442695, %v5933_v29 }
 0xa3a   : > { %7926 = vst [vmem:[%s12206_s26 + $0x3f8] sm:$0xff] %v7702_v34  ;;  %v7704_v47 = vsel %vm7256_vm11, %v9890_v36, %v7480_v25  ;;  %v6597_v33 = vadd.f32 1.0, %v13344_v4  ;;  %v13355_v35 = vadd.f32 %v15349_v13, %v12044_v45  ;;  %15350 = vst [vmem:[#allocation7_spill] sm:$0xff] %v13357_v9  ;;  %v13359_v19 = vpop.eup %9895  ;;  %v5937_v32 = vsub.f32 0.0, %v5713_v28  ;;  %v15351_v36 = vld [vmem:[#allocation28_spill] sm:$0xff]  ;;  %v15353_v13 = vld [vmem:[#allocation29_spill] sm:$0xff] }
 0xa3b   : > { %7928 = vst [vmem:[%s12206_s26 + $0x408] sm:$0xff] %v7704_v47  ;;  %9909 = vrcp.f32 %v6595_v14  ;;  %v13363_v25 = vadd.f32 %v15351_v36, %v12046_v3  ;;  %v6596_v34 = vadd.f32 1.0, %v13359_v19  ;;  %vm7267_vm0 = vcmp.ge.f32.partialorder %v13221_v15, 0.0 }
 0xa3c   : > { %9911 = vpow2.f32 %v6305_v22  ;;  %v5715_v14 = vand.u32 2147483647, %v13355_v35  ;;  %v6315_v47 = vmul.f32 1.442695, %v5937_v32  ;;  %v13375_v36 = vadd.f32 %v15353_v13, %v12048_v7  ;;  %v13382_v32 = vpop.f32.mrb[39].mxu1 }
 0xa3d   : > { %9913 = vrcp.f32 %v6597_v33  ;;  %v5714_v22 = vand.u32 2147483647, %v13363_v25  ;;  %15354 = vst [vmem:[#allocation8_spill] sm:$0xff] %v13382_v32  ;;  %v13393_v32 = vadd.f32 %v12638_v41, %v12044_v45  ;;  %vm7269_vm1 = vcmp.ge.f32.partialorder %v13235_v53, 0.0 }
 0xa3e   : > { %9915 = vpow2.f32 %v6303_v62  ;;  %v9898_v29 = vpop.eup %9897  ;;  %v5939_v28 = vsub.f32 0.0, %v5715_v14  ;;  %v13380_v62 = vadd.f32 %v12636_v58, %v12042_v17  ;;  %v5716_v13 = vand.u32 2147483647, %v13375_v36 }
 0xa3f   : > { %9917 = vrcp.f32 %v6596_v34  ;;  %v9900_v33 = vpop.eup %9899  ;;  %v7484_v52 = vmul.f32 %v9898_v29, %v13293_v46  ;;  %v5938_v9 = vsub.f32 0.0, %v5714_v22  ;;  %vm7268_vm2 = vcmp.ge.f32.partialorder %v13241_v31, 0.0 }
 0xa40   : > { %9919 = vpow2.f32 %v6307_v16  ;;  %v9902_v6 = vpop.eup %9901  ;;  %v7486_v34 = vmul.f32 %v9900_v33, %v13300_v12  ;;  %v6319_v14 = vmul.f32 1.442695, %v5939_v28  ;;  %v5940_v54 = vsub.f32 0.0, %v5716_v13 }
 0xa41   : > { %9921 = vpow2.f32 %v6315_v47  ;;  %v9904_v46 = vpop.eup %9903  ;;  %v7708_v16 = vsel %vm7260_vm12, %v9898_v29, %v7484_v52  ;;  %v7485_v22 = vmul.f32 %v9902_v6, %v13308_v50  ;;  %v6317_v58 = vmul.f32 1.442695, %v5938_v9 }
 0xa42   : > { %v13395_v12 = vpop.eup %9905  ;;  %7932 = vst [vmem:[%s12206_s26 + $0x428] sm:$0xff] %v7708_v16  ;;  %v7710_v47 = vsel %vm7262_vm13, %v9900_v33, %v7486_v34  ;;  %v7487_v28 = vmul.f32 %v9904_v46, %v13313_v27  ;;  %9923 = vpow2.f32 %v6319_v14  ;;  %v5720_v9 = vand.u32 2147483647, %v13380_v62 }
 0xa43   : > { %v13401_v52 = vpop.eup %9907  ;;  %7934 = vst [vmem:[%s12206_s26 + $0x438] sm:$0xff] %v7710_v47  ;;  %v7709_v50 = vsel %vm7261_vm14, %v9902_v6, %v7485_v22  ;;  %v6598_v41 = vadd.f32 1.0, %v13395_v12  ;;  %9925 = vpow2.f32 %v6317_v58  ;;  %v6321_v33 = vmul.f32 1.442695, %v5940_v54  ;;  %v13429_v47 = vpop.f32.mrb[40].mxu1 }
 0xa44   : > { %7933 = vst [vmem:[%s12206_s26 + $0x430] sm:$0xff] %v7709_v50  ;;  %v7711_v38 = vsel %vm7263_vm15, %v9904_v46, %v7487_v28  ;;  %v6602_v27 = vadd.f32 1.0, %v13401_v52  ;;  %v5944_v6 = vsub.f32 0.0, %v5720_v9  ;;  %v5722_v14 = vand.u32 2147483647, %v13393_v32  ;;  %v13431_v28 = vpop.f32.mrb[72].mxu0 }
 0xa45   : > { %v9910_v29 = vpop.eup %9909  ;;  %7935 = vst [vmem:[%s12206_s26 + $0x440] sm:$0xff] %v7711_v38  ;;  %9927 = vrcp.f32 %v6598_v41  ;;  %v13422_v46 = vadd.f32 %v12671_v40, %v12046_v3  ;;  %15355 = vst [vmem:[#allocation26_spill] sm:$0xff] %v13431_v28  ;;  %vm7270_vm3 = vcmp.ge.f32.partialorder %v13269_v55, 0.0  ;;  %vm7274_vm4 = vcmp.ge.f32.partialorder %v13273_v10, 0.0 }
 0xa46   : > { %v13413_v34 = vpop.eup %9911  ;;  %v7491_v44 = vmul.f32 %v9910_v29, %v13334_v5  ;;  %9929 = vrcp.f32 %v6602_v27  ;;  %v6329_v58 = vmul.f32 1.442695, %v5944_v6  ;;  %v5946_v50 = vsub.f32 0.0, %v5722_v14  ;;  %v13448_v6 = vpop.f32.mrb[73].mxu0  ;;  %v15358_v14 = vld [vmem:[#allocation30_spill] sm:$0xff] }
 0xa47   : > { %v9914_v13 = vpop.eup %9913  ;;  %v6604_v24 = vadd.f32 1.0, %v13413_v34  ;;  %9931 = vpow2.f32 %v6321_v33  ;;  %v5721_v41 = vand.u32 2147483647, %v13422_v46  ;;  %15357 = vst [vmem:[#allocation28_spill] sm:$0xff] %v13448_v6  ;;  %v13467_v31 = vadd.f32 %v12715_v0, %v12044_v45 }
 0xa48   : > { %v13424_v16 = vpop.eup %9915  ;;  %v7715_v5 = vsel %vm7267_vm0, %v9910_v29, %v7491_v44  ;;  %v7493_v22 = vmul.f32 %v9914_v13, %v13344_v4  ;;  %v13442_v29 = vpop.f32.mrb[41].mxu1  ;;  %v6333_v33 = vmul.f32 1.442695, %v5946_v50  ;;  %vm7276_vm5 = vcmp.ge.f32.partialorder %v13277_v48, 0.0  ;;  %v15362_v48 = vld [vmem:[#allocation32_spill] sm:$0xff] }
 0xa49   : > { %v9918_v54 = vpop.eup %9917  ;;  %7939 = vst [vmem:[%s12206_s26 + $0x460] sm:$0xff] %v7715_v5  ;;  %9933 = vrcp.f32 %v6604_v24  ;;  %v6603_v40 = vadd.f32 1.0, %v13424_v16  ;;  %15356 = vst [vmem:[#allocation27_spill] sm:$0xff] %v13442_v29  ;;  %v5945_v44 = vsub.f32 0.0, %v5721_v41  ;;  %v13459_v24 = vadd.f32 %v12713_v60, %v12042_v17 }
 0xa4a   : > { %v13436_v9 = vpop.eup %9919  ;;  %v7717_v15 = vsel %vm7269_vm1, %v9914_v13, %v7493_v22  ;;  %v7492_v4 = vmul.f32 %v9918_v54, %v13359_v19  ;;  %9935 = vpow2.f32 %v6329_v58  ;;  %v13455_v13 = vadd.f32 %v15358_v14, %v12048_v7 }
 0xa4b   : > { %v13444_v38 = vpop.eup %9921  ;;  %7941 = vst [vmem:[%s12206_s26 + $0x470] sm:$0xff] %v7717_v15  ;;  %9937 = vrcp.f32 %v6603_v40  ;;  %v6605_v27 = vadd.f32 1.0, %v13436_v9  ;;  %v13471_v22 = vadd.f32 %v12725_v51, %v12046_v3  ;;  %v5727_v0 = vand.u32 2147483647, %v13459_v24 }
 0xa4c   : > { %v7716_v53 = vsel %vm7268_vm2, %v9918_v54, %v7492_v4  ;;  %v6609_v19 = vadd.f32 1.0, %v13444_v38  ;;  %v13461_v5 = vpop.eup %9923  ;;  %v6331_v54 = vmul.f32 1.442695, %v5945_v44  ;;  %v5723_v40 = vand.u32 2147483647, %v13455_v13  ;;  %v13482_v4 = vpop.f32.mrb[42].mxu1 }
 0xa4d   : > { %7940 = vst [vmem:[%s12206_s26 + $0x468] sm:$0xff] %v7716_v53  ;;  %9939 = vrcp.f32 %v6605_v27  ;;  %v13473_v58 = vpop.eup %9925  ;;  %v6611_v60 = vadd.f32 1.0, %v13461_v5  ;;  %vm7275_vm6 = vcmp.ge.f32.partialorder %v13288_v1, 0.0  ;;  %v5729_v15 = vand.u32 2147483647, %v13467_v31  ;;  %15359 = vst [vmem:[#allocation29_spill] sm:$0xff] %v13482_v4 }
 0xa4e   : > { %9941 = vrcp.f32 %v6609_v19  ;;  %v6610_v50 = vadd.f32 1.0, %v13473_v58  ;;  %v5947_v51 = vsub.f32 0.0, %v5723_v40  ;;  %v5951_v53 = vsub.f32 0.0, %v5727_v0  ;;  %v13489_v40 = vpop.f32.mrb[74].mxu0 }
 0xa4f   : > { %9943 = vpow2.f32 %v6333_v33  ;;  %v9928_v41 = vpop.eup %9927  ;;  %v5728_v19 = vand.u32 2147483647, %v13471_v22  ;;  %15360 = vst [vmem:[#allocation30_spill] sm:$0xff] %v13489_v40  ;;  %vm7277_vm7 = vcmp.ge.f32.partialorder %v13321_v18, 0.0  ;;  %vm7281_vm8 = vcmp.ge.f32.partialorder %v13330_v26, 0.0 }
 0xa50   : > { %9945 = vrcp.f32 %v6611_v60  ;;  %v9930_v27 = vpop.eup %9929  ;;  %v7494_v44 = vmul.f32 %v9928_v41, %v13395_v12  ;;  %v6335_v6 = vmul.f32 1.442695, %v5947_v51  ;;  %v5953_v60 = vsub.f32 0.0, %v5729_v15  ;;  %v13500_v15 = vpop.f32.mrb[43].mxu1 }
 0xa51   : > { %9947 = vrcp.f32 %v6610_v50  ;;  %v13486_v33 = vpop.eup %9931  ;;  %v7498_v14 = vmul.f32 %v9930_v27, %v13401_v52  ;;  %v6343_v50 = vmul.f32 1.442695, %v5951_v53  ;;  %v5952_v0 = vsub.f32 0.0, %v5728_v19 }
 0xa52   : > { %9949 = vpow2.f32 %v6331_v54  ;;  %v7718_v4 = vsel %vm7270_vm3, %v9928_v41, %v7494_v44  ;;  %v6612_v12 = vadd.f32 1.0, %v13486_v33  ;;  %v6347_v51 = vmul.f32 1.442695, %v5953_v60  ;;  %v15361_v44 = vld [vmem:[#allocation31_spill] sm:$0xff] }
 0xa53   : > { %v9934_v29 = vpop.eup %9933  ;;  %7942 = vst [vmem:[%s12206_s26 + $0x478] sm:$0xff] %v7718_v4  ;;  %v7722_v52 = vsel %vm7274_vm4, %v9930_v27, %v7498_v14  ;;  %9951 = vpow2.f32 %v6335_v6  ;;  %v6345_v41 = vmul.f32 1.442695, %v5952_v0  ;;  %v13512_v6 = vpop.f32.mrb[75].mxu0  ;;  %v13518_v53 = vadd.f32 %v15361_v44, %v12042_v17 }
 0xa54   : > { %v13494_v28 = vpop.eup %9935  ;;  %v7500_v54 = vmul.f32 %v9934_v29, %v13413_v34  ;;  %7946 = vst [vmem:[%s12206_s26 + $0x498] sm:$0xff] %v7722_v52  ;;  %9953 = vrcp.f32 %v6612_v12  ;;  %v13510_v34 = vadd.f32 %v12731_v43, %v12048_v7  ;;  %vm7283_vm9 = vcmp.ge.f32.partialorder %v13355_v35, 0.0  ;;  %v15363_v52 = vld [vmem:[#allocation9_spill] sm:$0xff]  ;;  %v13551_v44 = vpop.f32.mrb[44].mxu1 }
 0xa55   : > { %v9938_v40 = vpop.eup %9937  ;;  %v6616_v55 = vadd.f32 1.0, %v13494_v28  ;;  %9955 = vpow2.f32 %v6343_v50  ;;  %v5734_v50 = vand.u32 2147483647, %v13518_v53  ;;  %vm7282_vm10 = vcmp.ge.f32.partialorder %v13363_v25, 0.0  ;;  %v13553_v26 = vpop.f32.mrb[76].mxu0 }
 0xa56   : > { %v7724_v4 = vsel %vm7276_vm5, %v9934_v29, %v7500_v54  ;;  %v7499_v10 = vmul.f32 %v9938_v40, %v13424_v16  ;;  %v13522_v16 = vadd.f32 %v15362_v48, %v12044_v45  ;;  %v5730_v14 = vand.u32 2147483647, %v13510_v34 }
 0xa57   : > { %v9940_v27 = vpop.eup %9939  ;;  %7948 = vst [vmem:[%s12206_s26 + $0x4a8] sm:$0xff] %v7724_v4  ;;  %9957 = vrcp.f32 %v6616_v55  ;;  %v13539_v54 = vadd.f32 %v15363_v52, %v12046_v3  ;;  %vm7284_vm11 = vcmp.ge.f32.partialorder %v13375_v36, 0.0  ;;  %vm7288_vm12 = vcmp.ge.f32.partialorder %v13380_v62, 0.0  ;;  %v15367_v62 = vld [vmem:[#allocation10_spill] sm:$0xff] }
 0xa58   : > { %v9942_v29 = vpop.eup %9941  ;;  %v7723_v43 = vsel %vm7275_vm6, %v9938_v40, %v7499_v10  ;;  %v7501_v19 = vmul.f32 %v9940_v27, %v13436_v9  ;;  %9959 = vpow2.f32 %v6347_v51  ;;  %v5954_v40 = vsub.f32 0.0, %v5730_v14  ;;  %v13563_v14 = vpop.f32.mrb[45].mxu1 }
 0xa59   : > { %v13528_v60 = vpop.eup %9943  ;;  %7947 = vst [vmem:[%s12206_s26 + $0x4a0] sm:$0xff] %v7723_v43  ;;  %v7505_v12 = vmul.f32 %v9942_v29, %v13444_v38  ;;  %9961 = vpow2.f32 %v6345_v41  ;;  %v5958_v41 = vsub.f32 0.0, %v5734_v50  ;;  %v5736_v4 = vand.u32 2147483647, %v13522_v16 }
 0xa5a   : > { %v9946_v0 = vpop.eup %9945  ;;  %v7725_v1 = vsel %vm7277_vm7, %v9940_v27, %v7501_v19  ;;  %v6618_v9 = vadd.f32 1.0, %v13528_v60  ;;  %v6349_v27 = vmul.f32 1.442695, %v5954_v40  ;;  %vm7290_vm13 = vcmp.ge.f32.partialorder %v13393_v32, 0.0 }
 0xa5b   : > { %v9948_v51 = vpop.eup %9947  ;;  %7949 = vst [vmem:[%s12206_s26 + $0x4b0] sm:$0xff] %v7725_v1  ;;  %v7729_v38 = vsel %vm7281_vm8, %v9942_v29, %v7505_v12  ;;  %v7507_v55 = vmul.f32 %v9946_v0, %v13461_v5  ;;  %v6357_v29 = vmul.f32 1.442695, %v5958_v41  ;;  %v5960_v43 = vsub.f32 0.0, %v5736_v4  ;;  %v13565_v12 = vpop.f32.mrb[77].mxu0  ;;  %v15364_v1 = vld [vmem:[#allocation33_spill] sm:$0xff] }
 0xa5c   : > { %v13546_v18 = vpop.eup %9949  ;;  %7953 = vst [vmem:[%s12206_s26 + $0x4d0] sm:$0xff] %v7729_v38  ;;  %v7506_v10 = vmul.f32 %v9948_v51, %v13473_v58  ;;  %9963 = vrcp.f32 %v6618_v9  ;;  %v5735_v58 = vand.u32 2147483647, %v13539_v54  ;;  %v13571_v9 = vadd.f32 %v15364_v1, %v12048_v7 }
 0xa5d   : > { %v7731_v5 = vsel %vm7283_vm9, %v9946_v0, %v7507_v55  ;;  %v6617_v48 = vadd.f32 1.0, %v13546_v18  ;;  %v13558_v19 = vpop.eup %9951  ;;  %9965 = vpow2.f32 %v6349_v27  ;;  %v6361_v0 = vmul.f32 1.442695, %v5960_v43 }
 0xa5e   : > { %7955 = vst [vmem:[%s12206_s26 + $0x4e0] sm:$0xff] %v7731_v5  ;;  %v7730_v25 = vsel %vm7282_vm10, %v9948_v51, %v7506_v10  ;;  %v9954_v50 = vpop.eup %9953  ;;  %v6619_v35 = vadd.f32 1.0, %v13558_v19  ;;  %v5959_v51 = vsub.f32 0.0, %v5735_v58  ;;  %v13578_v38 = vadd.f32 %v12825_v30, %v12042_v17  ;;  %v13588_v30 = vpop.f32.mrb[46].mxu1 }
 0xa5f   : > { %7954 = vst [vmem:[%s12206_s26 + $0x4d8] sm:$0xff] %v7730_v25  ;;  %9967 = vrcp.f32 %v6617_v48  ;;  %v13573_v40 = vpop.eup %9955  ;;  %v7508_v52 = vmul.f32 %v9954_v50, %v13486_v33  ;;  %v5737_v4 = vand.u32 2147483647, %v13571_v9  ;;  %15365 = vst [vmem:[#allocation31_spill] sm:$0xff] %v13588_v30  ;;  %vm7289_vm14 = vcmp.ge.f32.partialorder %v13422_v46, 0.0 }
 0xa60   : > { %9969 = vpow2.f32 %v6357_v29  ;;  %v6623_v41 = vadd.f32 1.0, %v13573_v40  ;;  %v6359_v5 = vmul.f32 1.442695, %v5959_v51  ;;  %v5741_v25 = vand.u32 2147483647, %v13578_v38  ;;  %v15368_v51 = vld [vmem:[#allocation11_spill] sm:$0xff] }
 0xa61   : > { %v9958_v55 = vpop.eup %9957  ;;  %9971 = vrcp.f32 %v6619_v35  ;;  %v7732_v33 = vsel %vm7284_vm11, %v9954_v50, %v7508_v52  ;;  %v5961_v43 = vsub.f32 0.0, %v5737_v4  ;;  %v13602_v35 = vadd.f32 %v12827_v23, %v12044_v45 }
 0xa62   : > { %v13583_v10 = vpop.eup %9959  ;;  %v7512_v27 = vmul.f32 %v9958_v55, %v13494_v28  ;;  %9973 = vpow2.f32 %v6361_v0  ;;  %7956 = vst [vmem:[%s12206_s26 + $0x4e8] sm:$0xff] %v7732_v33  ;;  %v5965_v50 = vsub.f32 0.0, %v5741_v25  ;;  %v13604_v0 = vpop.f32.mrb[78].mxu0  ;;  %v13608_v52 = vadd.f32 %v15367_v62, %v12046_v3 }
 0xa63   : > { %v13590_v48 = vpop.eup %9961  ;;  %9975 = vrcp.f32 %v6623_v41  ;;  %v6625_v29 = vadd.f32 1.0, %v13583_v10  ;;  %v6363_v58 = vmul.f32 1.442695, %v5961_v43  ;;  %15366 = vst [vmem:[#allocation32_spill] sm:$0xff] %v13604_v0  ;;  %v15369_v41 = vld [vmem:[#allocation12_spill] sm:$0xff]  ;;  %vm7291_vm15 = vcmp.ge.f32.partialorder %v13455_v13, 0.0 }
 0xa64   : > { %v7736_v36 = vsel %vm7288_vm12, %v9958_v55, %v7512_v27  ;;  %v6624_v28 = vadd.f32 1.0, %v13590_v48  ;;  %9977 = vpow2.f32 %v6359_v5  ;;  %v13612_v55 = vadd.f32 %v15368_v51, %v12048_v7 }
 0xa65   : > { %7960 = vst [vmem:[%s12206_s26 + $0x508] sm:$0xff] %v7736_v36  ;;  %9979 = vrcp.f32 %v6625_v29  ;;  %v13616_v4 = vadd.f32 %v15369_v41, %v12042_v17  ;;  %v6371_v23 = vmul.f32 1.442695, %v5965_v50  ;;  %v5743_v27 = vand.u32 2147483647, %v13602_v35  ;;  %v13631_v50 = vpop.f32.mrb[79].mxu0 }
 0xa66   : > { %v9964_v1 = vpop.eup %9963  ;;  %9981 = vrcp.f32 %v6624_v28  ;;  %v5742_v29 = vand.u32 2147483647, %v13608_v52  ;;  %v5744_v43 = vand.u32 2147483647, %v13612_v55  ;;  %15371 = vst [vmem:[#allocation33_spill] sm:$0xff] %v13631_v50  ;;  %vm7295_vm0 = vcmp.ge.f32.partialorder %v13459_v24, 0.0 }
 0xa67   : > { %v7514_v33 = vmul.f32 %v9964_v1, %v13528_v60  ;;  %9983 = vpow2.f32 %v6363_v58  ;;  %v13620_v5 = vpop.eup %9965  ;;  %v5967_v28 = vsub.f32 0.0, %v5743_v27  ;;  %v13629_v58 = vpop.f32.mrb[47].mxu1  ;;  %vm7297_vm1 = vcmp.ge.f32.partialorder %v13467_v31, 0.0 }
 0xa68   : > { %v6626_v60 = vadd.f32 1.0, %v13620_v5  ;;  %9985 = vpow2.f32 %v6371_v23  ;;  %15370 = vst [vmem:[#allocation9_spill] sm:$0xff] %v13629_v58  ;;  %v5966_v41 = vsub.f32 0.0, %v5742_v29  ;;  %v5968_v0 = vsub.f32 0.0, %v5744_v43  ;;  %v13675_v24 = vpop.f32.mrb[80].mxu0 }
 0xa69   : > { %v9968_v25 = vpop.eup %9967  ;;  %v7738_v36 = vsel %vm7290_vm13, %v9964_v1, %v7514_v33  ;;  %v6375_v33 = vmul.f32 1.442695, %v5967_v28  ;;  %v5748_v23 = vand.u32 2147483647, %v13616_v4  ;;  %vm7296_vm2 = vcmp.ge.f32.partialorder %v13471_v22, 0.0  ;;  %15375 = vst [vmem:[#allocation11_spill] sm:$0xff] %v13675_v24 }
 0xa6a   : > { %v13633_v62 = vpop.eup %9969  ;;  %7962 = vst [vmem:[%s12206_s26 + $0x518] sm:$0xff] %v7738_v36  ;;  %v7513_v51 = vmul.f32 %v9968_v25, %v13546_v18  ;;  %9987 = vrcp.f32 %v6626_v60  ;;  %v6373_v18 = vmul.f32 1.442695, %v5966_v41  ;;  %v6377_v60 = vmul.f32 1.442695, %v5968_v0  ;;  %v15373_v41 = vld [vmem:[#allocation13_spill] sm:$0xff] }
 0xa6b   : > { %v9972_v32 = vpop.eup %9971  ;;  %v6630_v1 = vadd.f32 1.0, %v13633_v62  ;;  %v5972_v28 = vsub.f32 0.0, %v5748_v23  ;;  %vm7298_vm3 = vcmp.ge.f32.partialorder %v13510_v34, 0.0  ;;  %vm7302_vm4 = vcmp.ge.f32.partialorder %v13518_v53, 0.0 }
 0xa6c   : > { %v13640_v27 = vpop.eup %9973  ;;  %v7737_v50 = vsel %vm7289_vm14, %v9968_v25, %v7513_v51  ;;  %v7515_v36 = vmul.f32 %v9972_v32, %v13558_v19  ;;  %v15372_v19 = vld [vmem:[#allocation34_spill] sm:$0xff]  ;;  %vm7304_vm5 = vcmp.ge.f32.partialorder %v13522_v16, 0.0  ;;  %vm7303_vm6 = vcmp.ge.f32.partialorder %v13539_v54, 0.0 }
 0xa6d   : > { %v9976_v29 = vpop.eup %9975  ;;  %7961 = vst [vmem:[%s12206_s26 + $0x510] sm:$0xff] %v7737_v50  ;;  %9989 = vrcp.f32 %v6630_v1  ;;  %v6632_v43 = vadd.f32 1.0, %v13640_v27  ;;  %v13655_v25 = vadd.f32 %v15372_v19, %v12044_v45  ;;  %v6385_v0 = vmul.f32 1.442695, %v5972_v28  ;;  %v13686_v19 = vpop.f32.mrb[81].mxu0 }
 0xa6e   : > { %v13648_v58 = vpop.eup %9977  ;;  %v7739_v30 = vsel %vm7291_vm15, %v9972_v32, %v7515_v36  ;;  %v7519_v46 = vmul.f32 %v9976_v29, %v13573_v40  ;;  %9991 = vpow2.f32 %v6375_v33  ;;  %v13661_v1 = vadd.f32 %v15373_v41, %v12046_v3  ;;  %15377 = vst [vmem:[#allocation34_spill] sm:$0xff] %v13686_v19  ;;  %v13722_v24 = vpop.f32.mrb[82].mxu0 }
 0xa6f   : > { %v9980_v51 = vpop.eup %9979  ;;  %7963 = vst [vmem:[%s12206_s26 + $0x520] sm:$0xff] %v7739_v30  ;;  %9993 = vrcp.f32 %v6632_v43  ;;  %v6631_v50 = vadd.f32 1.0, %v13648_v58  ;;  %v5750_v33 = vand.u32 2147483647, %v13655_v25  ;;  %v13673_v43 = vpop.f32.mrb[48].mxu1  ;;  %vm7305_vm7 = vcmp.ge.f32.partialorder %v13571_v9, 0.0 }
 0xa70   : > { %v9982_v13 = vpop.eup %9981  ;;  %v7743_v32 = vsel %vm7295_vm0, %v9976_v29, %v7519_v46  ;;  %v7521_v40 = vmul.f32 %v9980_v51, %v13583_v10  ;;  %9995 = vpow2.f32 %v6373_v18  ;;  %v5749_v36 = vand.u32 2147483647, %v13661_v1  ;;  %15374 = vst [vmem:[#allocation10_spill] sm:$0xff] %v13673_v43  ;;  %v13680_v28 = vpop.f32.mrb[49].mxu1 }
 0xa71   : > { %v13667_v23 = vpop.eup %9983  ;;  %7967 = vst [vmem:[%s12206_s26 + $0x540] sm:$0xff] %v7743_v32  ;;  %v7520_v30 = vmul.f32 %v9982_v13, %v13590_v48  ;;  %9997 = vrcp.f32 %v6631_v50  ;;  %v5974_v29 = vsub.f32 0.0, %v5750_v33  ;;  %15376 = vst [vmem:[#allocation12_spill] sm:$0xff] %v13680_v28  ;;  %vm7309_vm8 = vcmp.ge.f32.partialorder %v13578_v38, 0.0  ;;  %v15382_v38 = vld [vmem:[#allocation17_spill] sm:$0xff] }
 0xa72   : > { %v7745_v10 = vsel %vm7297_vm1, %v9980_v51, %v7521_v40  ;;  %v6633_v18 = vadd.f32 1.0, %v13667_v23  ;;  %9999 = vpow2.f32 %v6377_v60  ;;  %v13682_v22 = vpop.eup %9985  ;;  %v5973_v46 = vsub.f32 0.0, %v5749_v36  ;;  %v15378_v60 = vld [vmem:[#allocation35_spill] sm:$0xff] }
 0xa73   : > { %7969 = vst [vmem:[%s12206_s26 + $0x550] sm:$0xff] %v7745_v10  ;;  %v7744_v48 = vsel %vm7296_vm2, %v9982_v13, %v7520_v30  ;;  %10001 = vpow2.f32 %v6385_v0  ;;  %v6637_v31 = vadd.f32 1.0, %v13682_v22  ;;  %v6389_v51 = vmul.f32 1.442695, %v5974_v29  ;;  %v15379_v13 = vld [vmem:[#allocation14_spill] sm:$0xff]  ;;  %v15380_v0 = vld [vmem:[#allocation15_spill] sm:$0xff] }
 0xa74   : > { %7968 = vst [vmem:[%s12206_s26 + $0x548] sm:$0xff] %v7744_v48  ;;  %10003 = vrcp.f32 %v6633_v18  ;;  %v13692_v50 = vadd.f32 %v15378_v60, %v12048_v7  ;;  %v9988_v41 = vpop.eup %9987  ;;  %v6387_v32 = vmul.f32 1.442695, %v5973_v46  ;;  %v13697_v40 = vadd.f32 %v15379_v13, %v12042_v17  ;;  %v15381_v10 = vld [vmem:[#allocation16_spill] sm:$0xff] }
 0xa75   : > { %v13701_v33 = vadd.f32 %v15380_v0, %v12044_v45  ;;  %v7522_v30 = vmul.f32 %v9988_v41, %v13620_v5  ;;  %10005 = vrcp.f32 %v6637_v31  ;;  %v13707_v18 = vadd.f32 %v15381_v10, %v12046_v3  ;;  %v13717_v0 = vpop.f32.mrb[50].mxu1 }
 0xa76   : > { %v5751_v36 = vand.u32 2147483647, %v13692_v50  ;;  %10007 = vpow2.f32 %v6389_v51  ;;  %v5755_v48 = vand.u32 2147483647, %v13697_v40  ;;  %v13759_v54 = vadd.f32 %v12991_v57, %v12042_v17 }
 0xa77   : > { %v9990_v29 = vpop.eup %9989  ;;  %v5757_v46 = vand.u32 2147483647, %v13701_v33  ;;  %v7746_v5 = vsel %vm7298_vm3, %v9988_v41, %v7522_v30  ;;  %10009 = vpow2.f32 %v6387_v32  ;;  %v5756_v32 = vand.u32 2147483647, %v13707_v18 }
 0xa78   : > { %v13712_v60 = vpop.eup %9991  ;;  %v7526_v31 = vmul.f32 %v9990_v29, %v13633_v62  ;;  %v5975_v13 = vsub.f32 0.0, %v5751_v36  ;;  %7970 = vst [vmem:[%s12206_s26 + $0x558] sm:$0xff] %v7746_v5  ;;  %v5979_v19 = vsub.f32 0.0, %v5755_v48  ;;  %vm7311_vm9 = vcmp.ge.f32.partialorder %v13602_v35, 0.0 }
 0xa79   : > { %v9994_v10 = vpop.eup %9993  ;;  %v6639_v51 = vadd.f32 1.0, %v13712_v60  ;;  %v5981_v28 = vsub.f32 0.0, %v5757_v46  ;;  %v13733_v46 = vpop.f32.mrb[51].mxu1  ;;  %vm7310_vm10 = vcmp.ge.f32.partialorder %v13608_v52, 0.0  ;;  %vm7312_vm11 = vcmp.ge.f32.partialorder %v13612_v55, 0.0 }
 0xa7a   : > { %v13724_v43 = vpop.eup %9995  ;;  %v7750_v34 = vsel %vm7302_vm4, %v9990_v29, %v7526_v31  ;;  %v7528_v62 = vmul.f32 %v9994_v10, %v13640_v27  ;;  %v6391_v41 = vmul.f32 1.442695, %v5975_v13  ;;  %v6399_v48 = vmul.f32 1.442695, %v5979_v19 }
 0xa7b   : > { %v9998_v30 = vpop.eup %9997  ;;  %7974 = vst [vmem:[%s12206_s26 + $0x578] sm:$0xff] %v7750_v34  ;;  %10011 = vrcp.f32 %v6639_v51  ;;  %v6638_v36 = vadd.f32 1.0, %v13724_v43  ;;  %v5980_v29 = vsub.f32 0.0, %v5756_v32  ;;  %v6403_v51 = vmul.f32 1.442695, %v5981_v28 }
 0xa7c   : > { %v13735_v5 = vpop.eup %9999  ;;  %v7752_v53 = vsel %vm7304_vm5, %v9994_v10, %v7528_v62  ;;  %v7527_v27 = vmul.f32 %v9998_v30, %v13648_v58  ;;  %10013 = vpow2.f32 %v6391_v41  ;;  %v13746_v19 = vadd.f32 %v12967_v59, %v12048_v7  ;;  %v13755_v41 = vpop.f32.mrb[83].mxu0 }
 0xa7d   : > { %v13740_v31 = vpop.eup %10001  ;;  %7976 = vst [vmem:[%s12206_s26 + $0x588] sm:$0xff] %v7752_v53  ;;  %10015 = vrcp.f32 %v6638_v36  ;;  %v6640_v13 = vadd.f32 1.0, %v13735_v5  ;;  %v6401_v58 = vmul.f32 1.442695, %v5980_v29  ;;  %v13763_v32 = vadd.f32 %v13005_v63, %v12044_v45 }
 0xa7e   : > { %v10004_v34 = vpop.eup %10003  ;;  %v7751_v16 = vsel %vm7303_vm6, %v9998_v30, %v7527_v27  ;;  %v6644_v10 = vadd.f32 1.0, %v13740_v31  ;;  %10017 = vpow2.f32 %v6399_v48  ;;  %v5758_v28 = vand.u32 2147483647, %v13746_v19 }
 0xa7f   : > { %7975 = vst [vmem:[%s12206_s26 + $0x580] sm:$0xff] %v7751_v16  ;;  %v7529_v62 = vmul.f32 %v10004_v34, %v13667_v23  ;;  %10019 = vrcp.f32 %v6640_v13  ;;  %v10006_v59 = vpop.eup %10005  ;;  %v13767_v23 = vadd.f32 %v13019_v8, %v12046_v3  ;;  %v5762_v8 = vand.u32 2147483647, %v13759_v54 }
 0xa80   : > { %10021 = vrcp.f32 %v6644_v10  ;;  %v13769_v30 = vpop.eup %10007  ;;  %v7533_v48 = vmul.f32 %v10006_v59, %v13682_v22  ;;  %v5982_v53 = vsub.f32 0.0, %v5758_v28  ;;  %v5764_v22 = vand.u32 2147483647, %v13763_v32 }
 0xa81   : > { %v7753_v36 = vsel %vm7305_vm7, %v10004_v34, %v7529_v62  ;;  %10023 = vpow2.f32 %v6403_v51  ;;  %v13774_v57 = vpop.eup %10009  ;;  %v6646_v63 = vadd.f32 1.0, %v13769_v30  ;;  %v5986_v13 = vsub.f32 0.0, %v5762_v8  ;;  %v13794_v62 = vpop.f32.mrb[84].mxu0 }
 0xa82   : > { %7977 = vst [vmem:[%s12206_s26 + $0x590] sm:$0xff] %v7753_v36  ;;  %10025 = vpow2.f32 %v6401_v58  ;;  %v7757_v27 = vsel %vm7309_vm8, %v10006_v59, %v7533_v48  ;;  %v6645_v9 = vadd.f32 1.0, %v13774_v57  ;;  %v6405_v29 = vmul.f32 1.442695, %v5982_v53  ;;  %v13792_v58 = vpop.f32.mrb[52].mxu1  ;;  %15384 = vst [vmem:[#allocation35_spill] sm:$0xff] %v13794_v62 }
 0xa83   : > { %7981 = vst [vmem:[%s12206_s26 + $0x5b0] sm:$0xff] %v7757_v27  ;;  %10027 = vrcp.f32 %v6646_v63  ;;  %v5763_v51 = vand.u32 2147483647, %v13767_v23  ;;  %v5988_v16 = vsub.f32 0.0, %v5764_v22  ;;  %v13790_v10 = vadd.f32 %v15382_v38, %v12048_v7  ;;  %15383 = vst [vmem:[#allocation13_spill] sm:$0xff] %v13792_v58  ;;  %v13799_v53 = vpop.f32.mrb[53].mxu1 }
 0xa84   : > { %10029 = vrcp.f32 %v6645_v9  ;;  %v6413_v36 = vmul.f32 1.442695, %v5986_v13  ;;  %15385 = vst [vmem:[#allocation14_spill] sm:$0xff] %v13799_v53  ;;  %vm7316_vm12 = vcmp.ge.f32.partialorder %v13616_v4, 0.0  ;;  %vm7318_vm13 = vcmp.ge.f32.partialorder %v13655_v25, 0.0  ;;  %v13810_v13 = vpop.f32.mrb[85].mxu0 }
 0xa85   : > { %v10012_v34 = vpop.eup %10011  ;;  %10031 = vpow2.f32 %v6405_v29  ;;  %v5987_v48 = vsub.f32 0.0, %v5763_v51  ;;  %v6417_v27 = vmul.f32 1.442695, %v5988_v16  ;;  %v5765_v9 = vand.u32 2147483647, %v13790_v10  ;;  %v15386_v62 = vld [vmem:[#allocation3_spill] sm:$0xff] }
 0xa86   : > { %v13796_v28 = vpop.eup %10013  ;;  %v7535_v59 = vmul.f32 %v10012_v34, %v13712_v60  ;;  %10033 = vpow2.f32 %v6413_v36  ;;  %v13816_v58 = vadd.f32 %v15386_v62, %v12042_v17  ;;  %vm7317_vm14 = vcmp.ge.f32.partialorder %v13661_v1, 0.0 }
 0xa87   : > { %v10016_v63 = vpop.eup %10015  ;;  %v6647_v8 = vadd.f32 1.0, %v13796_v28  ;;  %v6415_v29 = vmul.f32 1.442695, %v5987_v48  ;;  %v5989_v53 = vsub.f32 0.0, %v5765_v9  ;;  %vm7319_vm15 = vcmp.ge.f32.partialorder %v13692_v50, 0.0 }
 0xa88   : > { %v13804_v22 = vpop.eup %10017  ;;  %v7759_v38 = vsel %vm7311_vm9, %v10012_v34, %v7535_v59  ;;  %v7534_v60 = vmul.f32 %v10016_v63, %v13724_v43  ;;  %v15387_v59 = vld [vmem:[#allocation18_spill] sm:$0xff]  ;;  %v5769_v9 = vand.u32 2147483647, %v13816_v58  ;;  %vm7323_vm0 = vcmp.ge.f32.partialorder %v13697_v40, 0.0 }
 0xa89   : > { %v10020_v51 = vpop.eup %10019  ;;  %7983 = vst [vmem:[%s12206_s26 + $0x5c0] sm:$0xff] %v7759_v38  ;;  %10035 = vrcp.f32 %v6647_v8  ;;  %v6651_v16 = vadd.f32 1.0, %v13804_v22  ;;  %v13823_v36 = vadd.f32 %v15387_v59, %v12044_v45  ;;  %v6419_v62 = vmul.f32 1.442695, %v5989_v53  ;;  %v13838_v38 = vpop.f32.mrb[86].mxu0 }
 0xa8a   : > { %v10022_v35 = vpop.eup %10021  ;;  %v7758_v43 = vsel %vm7310_vm10, %v10016_v63, %v7534_v60  ;;  %v7536_v34 = vmul.f32 %v10020_v51, %v13735_v5  ;;  %10037 = vpow2.f32 %v6417_v27  ;;  %v13836_v27 = vpop.f32.mrb[54].mxu1  ;;  %v5993_v60 = vsub.f32 0.0, %v5769_v9 }
 0xa8b   : > { %v13825_v48 = vpop.eup %10023  ;;  %7982 = vst [vmem:[%s12206_s26 + $0x5b8] sm:$0xff] %v7758_v43  ;;  %v7540_v8 = vmul.f32 %v10022_v35, %v13740_v31  ;;  %10039 = vrcp.f32 %v6651_v16  ;;  %v5771_v55 = vand.u32 2147483647, %v13823_v36  ;;  %v13854_v43 = vadd.f32 %v13083_v39, %v12048_v7 }
 0xa8c   : > { %v13830_v52 = vpop.eup %10025  ;;  %v7760_v5 = vsel %vm7312_vm11, %v10020_v51, %v7536_v34  ;;  %v6653_v63 = vadd.f32 1.0, %v13825_v48  ;;  %10041 = vpow2.f32 %v6415_v29  ;;  %v13849_v29 = vadd.f32 %v13076_v42, %v12046_v3  ;;  %v13856_v34 = vpop.f32.mrb[55].mxu1 }
 0xa8d   : > { %7984 = vst [vmem:[%s12206_s26 + $0x5c8] sm:$0xff] %v7760_v5  ;;  %v7764_v31 = vsel %vm7316_vm12, %v10022_v35, %v7540_v8  ;;  %v6652_v53 = vadd.f32 1.0, %v13830_v52  ;;  %10043 = vpow2.f32 %v6419_v62  ;;  %v10028_v16 = vpop.eup %10027  ;;  %v6427_v35 = vmul.f32 1.442695, %v5993_v60 }
 0xa8e   : > { %7988 = vst [vmem:[%s12206_s26 + $0x5e8] sm:$0xff] %v7764_v31  ;;  %10045 = vrcp.f32 %v6653_v63  ;;  %v10030_v51 = vpop.eup %10029  ;;  %v7542_v4 = vmul.f32 %v10028_v16, %v13769_v30  ;;  %v5995_v42 = vsub.f32 0.0, %v5771_v55  ;;  %v5770_v62 = vand.u32 2147483647, %v13849_v29  ;;  %v15388_v55 = vld [vmem:[#allocation19_spill] sm:$0xff] }
 0xa8f   : > { %10047 = vrcp.f32 %v6652_v53  ;;  %v13858_v59 = vpop.eup %10031  ;;  %v7541_v8 = vmul.f32 %v10030_v51, %v13774_v57  ;;  %v5772_v39 = vand.u32 2147483647, %v13854_v43  ;;  %vm7325_vm1 = vcmp.ge.f32.partialorder %v13701_v33, 0.0  ;;  %v13873_v53 = vpop.f32.mrb[87].mxu0 }
 0xa90   : > { %v7766_v30 = vsel %vm7318_vm13, %v10028_v16, %v7542_v4  ;;  %v6654_v9 = vadd.f32 1.0, %v13858_v59  ;;  %10049 = vpow2.f32 %v6427_v35  ;;  %v13867_v5 = vpop.eup %10033  ;;  %v6431_v63 = vmul.f32 1.442695, %v5995_v42 }
 0xa91   : > { %7990 = vst [vmem:[%s12206_s26 + $0x5f8] sm:$0xff] %v7766_v30  ;;  %v7765_v57 = vsel %vm7317_vm14, %v10030_v51, %v7541_v8  ;;  %v5994_v31 = vsub.f32 0.0, %v5770_v62  ;;  %v6658_v25 = vadd.f32 1.0, %v13867_v5  ;;  %v5996_v16 = vsub.f32 0.0, %v5772_v39  ;;  %v15389_v8 = vld [vmem:[#allocation20_spill] sm:$0xff] }
 0xa92   : > { %7989 = vst [vmem:[%s12206_s26 + $0x5f0] sm:$0xff] %v7765_v57  ;;  %10051 = vrcp.f32 %v6654_v9  ;;  %v13879_v4 = vadd.f32 %v15388_v55, %v12042_v17  ;;  %v13886_v42 = vadd.f32 %v15389_v8, %v12044_v45  ;;  %vm7324_vm2 = vcmp.ge.f32.partialorder %v13707_v18, 0.0  ;;  %v10475_v18 = vld [vmem:[%s15235_s20] sm:$0xff] }
 0xa93   : > { %v10036_v60 = vpop.eup %10035  ;;  %10053 = vpow2.f32 %v6431_v63  ;;  %v6429_v51 = vmul.f32 1.442695, %v5994_v31  ;;  %v6433_v9 = vmul.f32 1.442695, %v5996_v16  ;;  %vm7326_vm3 = vcmp.ge.f32.partialorder %v13746_v19, 0.0 }
 0xa94   : > { %v13881_v35 = vpop.eup %10037  ;;  %v7543_v1 = vmul.f32 %v10036_v60, %v13796_v28  ;;  %10055 = vrcp.f32 %v6658_v25  ;;  %v5776_v39 = vand.u32 2147483647, %v13879_v4  ;;  %v5778_v25 = vand.u32 2147483647, %v13886_v42 }
 0xa95   : > { %v10040_v62 = vpop.eup %10039  ;;  %v6660_v30 = vadd.f32 1.0, %v13881_v35  ;;  %10057 = vpow2.f32 %v6429_v51  ;;  %vm7330_vm4 = vcmp.ge.f32.partialorder %v13759_v54, 0.0  ;;  %vm7332_vm5 = vcmp.ge.f32.partialorder %v13763_v32, 0.0 }
 0xa96   : > { %v13890_v17 = vpop.eup %10041  ;;  %v7767_v57 = vsel %vm7319_vm15, %v10036_v60, %v7543_v1  ;;  %v7547_v28 = vmul.f32 %v10040_v62, %v13804_v22  ;;  %v6000_v31 = vsub.f32 0.0, %v5776_v39  ;;  %v6002_v51 = vsub.f32 0.0, %v5778_v25  ;;  %v13918_v39 = vpop.f32.mrb[88].mxu0 }
 0xa97   : > { %v13896_v45 = vpop.eup %10043  ;;  %7991 = vst [vmem:[%s12206_s26 + $0x600] sm:$0xff] %v7767_v57  ;;  %10059 = vrcp.f32 %v6660_v30  ;;  %v6659_v63 = vadd.f32 1.0, %v13890_v17  ;;  %v15390_v30 = vld [vmem:[#allocation21_spill] sm:$0xff]  ;;  %15392 = vst [vmem:[#allocation16_spill] sm:$0xff] %v13918_v39  ;;  %v13933_v25 = vpop.f32.mrb[89].mxu0  ;;  %vm7331_vm6 = vcmp.ge.f32.partialorder %v13767_v23, 0.0 }
 0xa98   : > { %v10046_v16 = vpop.eup %10045  ;;  %v7771_v50 = vsel %vm7323_vm0, %v10040_v62, %v7547_v28  ;;  %v6661_v22 = vadd.f32 1.0, %v13896_v45  ;;  %10061 = vpow2.f32 %v6433_v9  ;;  %v6441_v1 = vmul.f32 1.442695, %v6000_v31  ;;  %v13916_v9 = vpop.f32.mrb[56].mxu1  ;;  %v15393_v28 = vld [vmem:[#allocation2_spill] sm:$0xff]  ;;  %15395 = vst [vmem:[#allocation3_spill] sm:$0xff] %v13933_v25 }
 0xa99   : > { %v10048_v60 = vpop.eup %10047  ;;  %7995 = vst [vmem:[%s12206_s26 + $0x620] sm:$0xff] %v7771_v50  ;;  %v7549_v55 = vmul.f32 %v10046_v16, %v13825_v48  ;;  %10063 = vrcp.f32 %v6659_v63  ;;  %v13910_v40 = vadd.f32 %v15390_v30, %v12046_v3  ;;  %v13914_v62 = vadd.f32 %v13154_v37, %v12048_v7  ;;  %15391 = vst [vmem:[#allocation15_spill] sm:$0xff] %v13916_v9  ;;  %v13925_v3 = vpop.f32.mrb[57].mxu1 }
 0xa9a   : > { %v7548_v8 = vmul.f32 %v10048_v60, %v13830_v52  ;;  %10065 = vrcp.f32 %v6661_v22  ;;  %v13920_v48 = vpop.eup %10049  ;;  %v6445_v52 = vmul.f32 1.442695, %v6002_v51  ;;  %v4514_v63 = vsub.s32 4, %v15393_v28  ;;  %15394 = vst [vmem:[#allocation17_spill] sm:$0xff] %v13925_v3 }
 0xa9b   : > { %v7773_v57 = vsel %vm7325_vm1, %v10046_v16, %v7549_v55  ;;  %10067 = vpow2.f32 %v6441_v1  ;;  %v6665_v37 = vadd.f32 1.0, %v13920_v48  ;;  %v5777_v31 = vand.u32 2147483647, %v13910_v40 }
 0xa9c   : > { %7997 = vst [vmem:[%s12206_s26 + $0x630] sm:$0xff] %v7773_v57  ;;  %v7772_v7 = vsel %vm7324_vm2, %v10048_v60, %v7548_v8  ;;  %v10052_v33 = vpop.eup %10051  ;;  %10069 = vpow2.f32 %v6445_v52  ;;  %v5779_v16 = vand.u32 2147483647, %v13914_v62  ;;  %v13941_v50 = vrot.slane %v10475_v18, %v4514_v63  ;;  %v15396_v57 = vld [vmem:[#allocation4_spill] sm:$0xff] }
 0xa9d   : > { %7996 = vst [vmem:[%s12206_s26 + $0x628] sm:$0xff] %v7772_v7  ;;  %v13943_v22 = vpop.eup %10053  ;;  %v7550_v60 = vmul.f32 %v10052_v33, %v13858_v59  ;;  %10071 = vrcp.f32 %v6665_v37  ;;  %v6001_v55 = vsub.f32 0.0, %v5777_v31  ;;  %v4522_v1 = vsub.s32 6, %v15393_v28  ;;  %v13953_v7 = vpop.f32.mrb[58].mxu1 }
 0xa9e   : > { %v10056_v51 = vpop.eup %10055  ;;  %v6667_v8 = vadd.f32 1.0, %v13943_v22  ;;  %v6003_v30 = vsub.f32 0.0, %v5779_v16  ;;  %v13950_v52 = vadd.f32 %v15396_v57, %v13941_v50  ;;  %v4518_v63 = vsub.s32 5, %v15393_v28  ;;  %15397 = vst [vmem:[#allocation18_spill] sm:$0xff] %v13953_v7  ;;  %v13965_v7 = vpop.f32.mrb[90].mxu0 }
 0xa9f   : > { %v13955_v25 = vpop.eup %10057  ;;  %v7774_v59 = vsel %vm7326_vm3, %v10052_v33, %v7550_v60  ;;  %v7554_v37 = vmul.f32 %v10056_v51, %v13867_v5  ;;  %v6443_v31 = vmul.f32 1.442695, %v6001_v55  ;;  %v13960_v3 = vrot.slane %v10475_v18, %v4522_v1  ;;  %v15398_v1 = vld [vmem:[#allocation5_spill] sm:$0xff]  ;;  %v13991_v32 = vpop.f32.mrb[91].mxu0 }
 0xaa0   : > { %7998 = vst [vmem:[%s12206_s26 + $0x638] sm:$0xff] %v7774_v59  ;;  %10073 = vrcp.f32 %v6667_v8  ;;  %v6666_v57 = vadd.f32 1.0, %v13955_v25  ;;  %v6447_v39 = vmul.f32 1.442695, %v6003_v30  ;;  %v5563_v28 = vand.u32 2147483647, %v13950_v52 }
 0xaa1   : > { %v10060_v16 = vpop.eup %10059  ;;  %v7778_v19 = vsel %vm7330_vm4, %v10056_v51, %v7554_v37  ;;  %10075 = vpow2.f32 %v6443_v31  ;;  %v13977_v8 = vadd.f32 %v15398_v1, %v13960_v3  ;;  %v13982_v51 = vrot.slane %v10475_v18, %v4518_v63  ;;  %v13984_v59 = vpop.f32.mrb[59].mxu1  ;;  %v15399_v18 = vld [vmem:[#allocation6_spill] sm:$0xff] }
 0xaa2   : > { %v13967_v9 = vpop.eup %10061  ;;  %v7556_v5 = vmul.f32 %v10060_v16, %v13881_v35  ;;  %8002 = vst [vmem:[%s12206_s26 + $0x658] sm:$0xff] %v7778_v19  ;;  %10077 = vrcp.f32 %v6666_v57  ;;  %v5787_v55 = vsub.f32 0.0, %v5563_v28  ;;  %vm7333_vm7 = vcmp.ge.f32.partialorder %v13790_v10, 0.0 }
 0xaa3   : > { %v10064_v33 = vpop.eup %10063  ;;  %v6668_v60 = vadd.f32 1.0, %v13967_v9  ;;  %10079 = vpow2.f32 %v6447_v39  ;;  %v5579_v28 = vand.u32 2147483647, %v13977_v8  ;;  %v13999_v63 = vadd.f32 %v15399_v18, %v13982_v51 }
 0xaa4   : > { %v10066_v30 = vpop.eup %10065  ;;  %v7780_v54 = vsel %vm7332_vm5, %v10060_v16, %v7556_v5  ;;  %v7555_v35 = vmul.f32 %v10064_v33, %v13890_v17  ;;  %v6015_v57 = vmul.f32 1.442695, %v5787_v55  ;;  %v15400_v5 = vld [vmem:[#allocation22_spill] sm:$0xff]  ;;  %vm7337_vm8 = vcmp.ge.f32.partialorder %v13816_v58, 0.0 }
 0xaa5   : > { %v13986_v37 = vpop.eup %10067  ;;  %8004 = vst [vmem:[%s12206_s26 + $0x668] sm:$0xff] %v7780_v54  ;;  %v7557_v31 = vmul.f32 %v10066_v30, %v13896_v45  ;;  %10081 = vrcp.f32 %v6668_v60  ;;  %v5803_v19 = vsub.f32 0.0, %v5579_v28  ;;  %v14006_v60 = vadd.f32 %v15400_v5, %v13960_v3 }
 0xaa6   : > { %v7779_v17 = vsel %vm7331_vm6, %v10064_v33, %v7555_v35  ;;  %v6672_v39 = vadd.f32 1.0, %v13986_v37  ;;  %v14001_v16 = vpop.eup %10069  ;;  %10083 = vpow2.f32 %v6015_v57  ;;  %v5564_v33 = vand.u32 2147483647, %v13999_v63 }
 0xaa7   : > { %8003 = vst [vmem:[%s12206_s26 + $0x660] sm:$0xff] %v7779_v17  ;;  %v7781_v45 = vsel %vm7333_vm7, %v10066_v30, %v7557_v31  ;;  %v10072_v23 = vpop.eup %10071  ;;  %v6674_v10 = vadd.f32 1.0, %v14001_v16  ;;  %v6047_v1 = vmul.f32 1.442695, %v5803_v19  ;;  %v5565_v30 = vand.u32 2147483647, %v14006_v60 }
 0xaa8   : > { %8005 = vst [vmem:[%s12206_s26 + $0x670] sm:$0xff] %v7781_v45  ;;  %10085 = vrcp.f32 %v6672_v39  ;;  %v7561_v55 = vmul.f32 %v10072_v23, %v13920_v48  ;;  %v5788_v54 = vsub.f32 0.0, %v5564_v33  ;;  %v14016_v35 = vadd.f32 %v13243_v11, %v13941_v50  ;;  %v14040_v33 = vpop.f32.mrb[92].mxu0 }
 0xaa9   : > { %10087 = vrcp.f32 %v6674_v10  ;;  %v14020_v31 = vadd.f32 %v13251_v49, %v13960_v3  ;;  %v5789_v17 = vsub.f32 0.0, %v5565_v30  ;;  %v14024_v58 = vadd.f32 %v13261_v56, %v13982_v51 }
 0xaaa   : > { %v10074_v57 = vpop.eup %10073  ;;  %v7785_v28 = vsel %vm7337_vm8, %v10072_v23, %v7561_v55  ;;  %10089 = vpow2.f32 %v6047_v1  ;;  %vm7339_vm9 = vcmp.ge.f32.partialorder %v13823_v36, 0.0  ;;  %v6017_v39 = vmul.f32 1.442695, %v5788_v54 }
 0xaab   : > { %v14026_v48 = vpop.eup %10075  ;;  %8009 = vst [vmem:[%s12206_s26 + $0x690] sm:$0xff] %v7785_v28  ;;  %v7563_v11 = vmul.f32 %v10074_v57, %v13943_v22  ;;  %v5570_v49 = vand.u32 2147483647, %v14016_v35  ;;  %vm7338_vm10 = vcmp.ge.f32.partialorder %v13849_v29, 0.0  ;;  %v6019_v19 = vmul.f32 1.442695, %v5789_v17 }
 0xaac   : > { %v10078_v18 = vpop.eup %10077  ;;  %v6673_v45 = vadd.f32 1.0, %v14026_v48  ;;  %v5586_v56 = vand.u32 2147483647, %v14020_v31  ;;  %10091 = vpow2.f32 %v6017_v39  ;;  %v14038_v22 = vpop.f32.mrb[60].mxu1  ;;  %v5571_v54 = vand.u32 2147483647, %v14024_v58 }
 0xaad   : > { %v14035_v5 = vpop.eup %10079  ;;  %v7787_v23 = vsel %vm7339_vm9, %v10074_v57, %v7563_v11  ;;  %v7562_v10 = vmul.f32 %v10078_v18, %v13955_v25  ;;  %v5794_v36 = vsub.f32 0.0, %v5570_v49  ;;  %v14045_v28 = vpop.f32.mrb[61].mxu1  ;;  %vm7340_vm11 = vcmp.ge.f32.partialorder %v13854_v43, 0.0 }
 0xaae   : > { %8011 = vst [vmem:[%s12206_s26 + $0x6a0] sm:$0xff] %v7787_v23  ;;  %10093 = vrcp.f32 %v6673_v45  ;;  %v6675_v1 = vadd.f32 1.0, %v14035_v5  ;;  %v5810_v30 = vsub.f32 0.0, %v5586_v56  ;;  %v14050_v11 = vpop.f32.mrb[93].mxu0  ;;  %v5795_v45 = vsub.f32 0.0, %v5571_v54 }
 0xaaf   : > { %v10082_v55 = vpop.eup %10081  ;;  %v7786_v25 = vsel %vm7338_vm10, %v10078_v18, %v7562_v10  ;;  %10095 = vpow2.f32 %v6019_v19  ;;  %v6029_v17 = vmul.f32 1.442695, %v5794_v36  ;;  %v14061_v18 = vpop.f32.mrb[62].mxu1  ;;  %v14067_v10 = vadd.f32 %v13323_v20, %v13941_v50 }
 0xab0   : > { %v7564_v57 = vmul.f32 %v10082_v55, %v13967_v9  ;;  %v14052_v39 = vpop.eup %10083  ;;  %8010 = vst [vmem:[%s12206_s26 + $0x698] sm:$0xff] %v7786_v25  ;;  %10097 = vrcp.f32 %v6675_v1  ;;  %v6061_v49 = vmul.f32 1.442695, %v5810_v30  ;;  %v14059_v9 = vadd.f32 %v13279_v2, %v13960_v3  ;;  %15401 = vst [vmem:[#allocation19_spill] sm:$0xff] %v14061_v18  ;;  %v14079_v54 = vpop.f32.mrb[94].mxu0 }
 0xab1   : > { %v6459_v29 = vadd.f32 1.0, %v14052_v39  ;;  %10099 = vpow2.f32 %v6029_v17  ;;  %v6031_v43 = vmul.f32 1.442695, %v5795_v45  ;;  %vm7344_vm12 = vcmp.ge.f32.partialorder %v13879_v4, 0.0  ;;  %15402 = vst [vmem:[#allocation20_spill] sm:$0xff] %v14079_v54  ;;  %v14090_v45 = vpop.f32.mrb[63].mxu1 }
 0xab2   : > { %v10086_v56 = vpop.eup %10085  ;;  %v7788_v23 = vsel %vm7340_vm11, %v10082_v55, %v7564_v57  ;;  %10101 = vpow2.f32 %v6061_v49  ;;  %v5572_v55 = vand.u32 2147483647, %v14059_v9  ;;  %v14073_v2 = vadd.f32 %v13325_v21, %v13960_v3  ;;  %v15403_v49 = vld [vmem:[#allocation23_spill] sm:$0xff]  ;;  %15404 = vst [vmem:[#allocation21_spill] sm:$0xff] %v14090_v45 }
 0xab3   : > { %8012 = vst [vmem:[%s12206_s26 + $0x6a8] sm:$0xff] %v7788_v23  ;;  %v7568_v19 = vmul.f32 %v10086_v56, %v13986_v37  ;;  %v10088_v36 = vpop.eup %10087  ;;  %10103 = vrcp.f32 %v6459_v29  ;;  %v5577_v20 = vand.u32 2147483647, %v14067_v10  ;;  %vm7346_vm13 = vcmp.ge.f32.partialorder %v13886_v42, 0.0  ;;  %v15405_v29 = vld [vmem:[#allocation24_spill] sm:$0xff]  ;;  %v15407_v54 = vld [vmem:[#allocation7_spill] sm:$0xff] }
 0xab4   : > { %v14075_v1 = vpop.eup %10089  ;;  %v7570_v37 = vmul.f32 %v10088_v36, %v14001_v16  ;;  %10105 = vpow2.f32 %v6031_v43  ;;  %v5796_v25 = vsub.f32 0.0, %v5572_v55  ;;  %v5607_v21 = vand.u32 2147483647, %v14073_v2 }
 0xab5   : > { %v7792_v30 = vsel %vm7344_vm12, %v10086_v56, %v7568_v19  ;;  %v6475_v4 = vadd.f32 1.0, %v14075_v1  ;;  %vm7345_vm14 = vcmp.ge.f32.partialorder %v13910_v40, 0.0  ;;  %v5801_v17 = vsub.f32 0.0, %v5577_v20 }
 0xab6   : > { %8016 = vst [vmem:[%s12206_s26 + $0x6c8] sm:$0xff] %v7792_v30  ;;  %v7794_v57 = vsel %vm7346_vm13, %v10088_v36, %v7570_v37  ;;  %v14088_v16 = vadd.f32 %v15403_v49, %v13982_v51  ;;  %v14092_v56 = vpop.eup %10091  ;;  %v6033_v42 = vmul.f32 1.442695, %v5796_v25  ;;  %v5831_v23 = vsub.f32 0.0, %v5607_v21  ;;  %v14106_v21 = vpop.f32.mrb[95].mxu0 }
 0xab7   : > { %8018 = vst [vmem:[%s12206_s26 + $0x6d8] sm:$0xff] %v7794_v57  ;;  %10107 = vrcp.f32 %v6475_v4  ;;  %v14097_v19 = vadd.f32 %v15405_v29, %v13960_v3  ;;  %vm7347_vm15 = vcmp.ge.f32.partialorder %v13914_v62, 0.0  ;;  %v6460_v36 = vadd.f32 1.0, %v14092_v56  ;;  %15406 = vst [vmem:[#allocation2_spill] sm:$0xff] %v14106_v21  ;;  %v15408_v62 = vld [vmem:[#allocation25_spill] sm:$0xff] }
 0xab8   : > { %v10094_v43 = vpop.eup %10093  ;;  %v6043_v55 = vmul.f32 1.442695, %v5801_v17  ;;  %v5578_v30 = vand.u32 2147483647, %v14088_v16  ;;  %10109 = vpow2.f32 %v6033_v42  ;;  %v6103_v4 = vmul.f32 1.442695, %v5831_v23 }
 0xab9   : > { %v14102_v37 = vpop.eup %10095  ;;  %v7569_v20 = vmul.f32 %v10094_v43, %v14026_v48  ;;  %v5593_v25 = vand.u32 2147483647, %v14097_v19  ;;  %vm7131_vm0 = vcmp.ge.f32.partialorder %v13950_v52, 0.0  ;;  %10111 = vrcp.f32 %v6460_v36 }
 0xaba   : > { %v10098_v57 = vpop.eup %10097  ;;  %v6461_v49 = vadd.f32 1.0, %v14102_v37  ;;  %v5802_v17 = vsub.f32 0.0, %v5578_v30  ;;  %10113 = vpow2.f32 %v6043_v55  ;;  %v14121_v30 = vadd.f32 %v15407_v54, %v13941_v50 }
 0xabb   : > { %v14110_v29 = vpop.eup %10099  ;;  %v7793_v45 = vsel %vm7345_vm14, %v10094_v43, %v7569_v20  ;;  %v7571_v48 = vmul.f32 %v10098_v57, %v14035_v5  ;;  %v5817_v42 = vsub.f32 0.0, %v5593_v25  ;;  %vm7147_vm1 = vcmp.ge.f32.partialorder %v13977_v8, 0.0 }
 0xabc   : > { %v14115_v23 = vpop.eup %10101  ;;  %8017 = vst [vmem:[%s12206_s26 + $0x6d0] sm:$0xff] %v7793_v45  ;;  %10115 = vrcp.f32 %v6461_v49  ;;  %v6466_v21 = vadd.f32 1.0, %v14110_v29  ;;  %v6045_v36 = vmul.f32 1.442695, %v5802_v17  ;;  %v5584_v54 = vand.u32 2147483647, %v14121_v30 }
 0xabd   : > { %v10104_v18 = vpop.eup %10103  ;;  %v7795_v40 = vsel %vm7347_vm15, %v10098_v57, %v7571_v48  ;;  %v6482_v5 = vadd.f32 1.0, %v14115_v23  ;;  %10117 = vpow2.f32 %v6103_v4  ;;  %v6075_v55 = vmul.f32 1.442695, %v5817_v42  ;;  %v15409_v57 = vld [vmem:[#allocation8_spill] sm:$0xff]  ;;  %v14141_v49 = vpop.f32.mrb[64].mxu1 }
 0xabe   : > { %v14127_v43 = vpop.eup %10105  ;;  %8019 = vst [vmem:[%s12206_s26 + $0x6e0] sm:$0xff] %v7795_v40  ;;  %v7355_v45 = vmul.f32 %v10104_v18, %v14052_v39  ;;  %10119 = vrcp.f32 %v6466_v21  ;;  %v14135_v25 = vadd.f32 %v15408_v62, %v13960_v3  ;;  %v14139_v4 = vadd.f32 %v15409_v57, %v13982_v51  ;;  %15410 = vst [vmem:[#allocation4_spill] sm:$0xff] %v14141_v49  ;;  %v14149_v48 = vpop.f32.mrb[65].mxu1 }
 0xabf   : > { %10121 = vrcp.f32 %v6482_v5  ;;  %v6467_v20 = vadd.f32 1.0, %v14127_v43  ;;  %v5808_v21 = vsub.f32 0.0, %v5584_v54  ;;  %v14147_v17 = vadd.f32 %v13386_v61, %v13960_v3  ;;  %15411 = vst [vmem:[#allocation5_spill] sm:$0xff] %v14149_v48  ;;  %v14157_v61 = vpop.f32.mrb[66].mxu1 }
 0xac0   : > { %v7579_v39 = vsel %vm7131_vm0, %v10104_v18, %v7355_v45  ;;  %10123 = vpow2.f32 %v6045_v36  ;;  %vm7132_vm2 = vcmp.ge.f32.partialorder %v13999_v63, 0.0  ;;  %v5614_v40 = vand.u32 2147483647, %v14135_v25  ;;  %15412 = vst [vmem:[#allocation6_spill] sm:$0xff] %v14157_v61 }
 0xac1   : > { %v10108_v42 = vpop.eup %10107  ;;  %7803 = vst [vmem:[%s12206_s26 + $0x20] sm:$0xff] %v7579_v39  ;;  %10125 = vrcp.f32 %v6467_v20  ;;  %v5585_v5 = vand.u32 2147483647, %v14139_v4  ;;  %vm7133_vm3 = vcmp.ge.f32.partialorder %v14006_v60, 0.0  ;;  %v6057_v18 = vmul.f32 1.442695, %v5808_v21 }
 0xac2   : > { %v7371_v52 = vmul.f32 %v10108_v42, %v14075_v1  ;;  %10127 = vpow2.f32 %v6075_v55  ;;  %v14159_v36 = vpop.eup %10109  ;;  %vm7138_vm4 = vcmp.ge.f32.partialorder %v14016_v35, 0.0  ;;  %v5838_v45 = vsub.f32 0.0, %v5614_v40  ;;  %v14170_v39 = vpop.f32.mrb[67].mxu1 }
 0xac3   : > { %v5809_v54 = vsub.f32 0.0, %v5585_v5  ;;  %v5600_v20 = vand.u32 2147483647, %v14147_v17  ;;  %v10112_v62 = vpop.eup %10111  ;;  %v6468_v1 = vadd.f32 1.0, %v14159_v36  ;;  %10129 = vpow2.f32 %v6057_v18  ;;  %15413 = vst [vmem:[#allocation22_spill] sm:$0xff] %v14170_v39 }
 0xac4   : > { %v7595_v57 = vsel %vm7147_vm1, %v10108_v42, %v7371_v52  ;;  %v14168_v55 = vadd.f32 %v13429_v47, %v13941_v50  ;;  %v14172_v21 = vpop.eup %10113  ;;  %v7356_v40 = vmul.f32 %v10112_v62, %v14092_v56  ;;  %v6117_v5 = vmul.f32 1.442695, %v5838_v45 }
 0xac5   : > { %7819 = vst [vmem:[%s12206_s26 + $0xa0] sm:$0xff] %v7595_v57  ;;  %v6059_v61 = vmul.f32 1.442695, %v5809_v54  ;;  %v5824_v48 = vsub.f32 0.0, %v5600_v20  ;;  %vm7154_vm5 = vcmp.ge.f32.partialorder %v14020_v31, 0.0  ;;  %10131 = vrcp.f32 %v6468_v1  ;;  %v15414_v1 = vld [vmem:[#allocation26_spill] sm:$0xff] }
 0xac6   : > { %v10116_v8 = vpop.eup %10115  ;;  %v6473_v42 = vadd.f32 1.0, %v14172_v21  ;;  %v5591_v47 = vand.u32 2147483647, %v14168_v55  ;;  %v7580_v18 = vsel %vm7132_vm2, %v10112_v62, %v7356_v40  ;;  %10133 = vpow2.f32 %v6117_v5  ;;  %v14197_v40 = vpop.f32.mrb[68].mxu1 }
 0xac7   : > { %v14179_v52 = vpop.eup %10117  ;;  %v7357_v57 = vmul.f32 %v10116_v8, %v14102_v37  ;;  %v6089_v56 = vmul.f32 1.442695, %v5824_v48  ;;  %7804 = vst [vmem:[%s12206_s26 + $0x28] sm:$0xff] %v7580_v18  ;;  %v14188_v39 = vadd.f32 %v15414_v1, %v13960_v3  ;;  %v15415_v37 = vld [vmem:[#allocation27_spill] sm:$0xff]  ;;  %vm7139_vm6 = vcmp.ge.f32.partialorder %v14024_v58, 0.0 }
 0xac8   : > { %v10120_v45 = vpop.eup %10119  ;;  %10135 = vrcp.f32 %v6473_v42  ;;  %v6503_v54 = vadd.f32 1.0, %v14179_v52  ;;  %v5815_v20 = vsub.f32 0.0, %v5591_v47  ;;  %v14195_v48 = vadd.f32 %v15415_v37, %v13982_v51  ;;  %v15420_v37 = vld [vmem:[#allocation29_spill] sm:$0xff] }
 0xac9   : > { %v10122_v49 = vpop.eup %10121  ;;  %v7581_v63 = vsel %vm7133_vm3, %v10116_v8, %v7357_v57  ;;  %v7362_v62 = vmul.f32 %v10120_v45, %v14110_v29  ;;  %10137 = vpow2.f32 %v6059_v61  ;;  %v5635_v60 = vand.u32 2147483647, %v14188_v39  ;;  %v14204_v8 = vpop.f32.mrb[69].mxu1 }
 0xaca   : > { %v14199_v5 = vpop.eup %10123  ;;  %7805 = vst [vmem:[%s12206_s26 + $0x30] sm:$0xff] %v7581_v63  ;;  %v7378_v42 = vmul.f32 %v10122_v49, %v14115_v23  ;;  %10139 = vrcp.f32 %v6503_v54  ;;  %v6071_v47 = vmul.f32 1.442695, %v5815_v20  ;;  %15416 = vst [vmem:[#allocation23_spill] sm:$0xff] %v14204_v8  ;;  %v14210_v57 = vpop.f32.mrb[70].mxu1  ;;  %vm7140_vm7 = vcmp.ge.f32.partialorder %v14059_v9, 0.0 }
 0xacb   : > { %v10126_v29 = vpop.eup %10125  ;;  %v7586_v61 = vsel %vm7138_vm4, %v10120_v45, %v7362_v62  ;;  %v6474_v18 = vadd.f32 1.0, %v14199_v5  ;;  %10141 = vpow2.f32 %v6089_v56  ;;  %15417 = vst [vmem:[#allocation24_spill] sm:$0xff] %v14210_v57  ;;  %v5859_v20 = vsub.f32 0.0, %v5635_v60  ;;  %v14218_v35 = vpop.f32.mrb[71].mxu1 }
 0xacc   : > { %v14212_v1 = vpop.eup %10127  ;;  %7810 = vst [vmem:[%s12206_s26 + $0x58] sm:$0xff] %v7586_v61  ;;  %v7602_v23 = vsel %vm7154_vm5, %v10122_v49, %v7378_v42  ;;  %v7363_v54 = vmul.f32 %v10126_v29, %v14127_v43  ;;  %10143 = vpow2.f32 %v6071_v47  ;;  %15418 = vst [vmem:[#allocation7_spill] sm:$0xff] %v14218_v35  ;;  %v5592_v45 = vand.u32 2147483647, %v14195_v48  ;;  %v15419_v43 = vld [vmem:[#allocation28_spill] sm:$0xff]  ;;  %v15421_v61 = vld [vmem:[#allocation30_spill] sm:$0xff] }
 0xacd   : > { %7826 = vst [vmem:[%s12206_s26 + $0xd8] sm:$0xff] %v7602_v23  ;;  %10145 = vrcp.f32 %v6474_v18  ;;  %v6489_v56 = vadd.f32 1.0, %v14212_v1  ;;  %v14224_v63 = vpop.eup %10129  ;;  %v6159_v49 = vmul.f32 1.442695, %v5859_v20  ;;  %v14230_v62 = vadd.f32 %v15419_v43, %v13960_v3 }
 0xace   : > { %v7587_v31 = vsel %vm7139_vm6, %v10126_v29, %v7363_v54  ;;  %v14234_v42 = vadd.f32 %v15420_v37, %v13941_v50  ;;  %v6480_v47 = vadd.f32 1.0, %v14224_v63  ;;  %v5816_v60 = vsub.f32 0.0, %v5592_v45 }
 0xacf   : > { %7811 = vst [vmem:[%s12206_s26 + $0x60] sm:$0xff] %v7587_v31  ;;  %10147 = vrcp.f32 %v6489_v56  ;;  %v14240_v18 = vadd.f32 %v15421_v61, %v13960_v3  ;;  %v10132_v58 = vpop.eup %10131  ;;  %vm7145_vm8 = vcmp.ge.f32.partialorder %v14067_v10, 0.0  ;;  %v5621_v29 = vand.u32 2147483647, %v14230_v62 }
 0xad0   : > { %10149 = vpow2.f32 %v6159_v49  ;;  %v5598_v23 = vand.u32 2147483647, %v14234_v42  ;;  %v14245_v54 = vpop.eup %10133  ;;  %v7364_v20 = vmul.f32 %v10132_v58, %v14159_v36  ;;  %vm7175_vm9 = vcmp.ge.f32.partialorder %v14073_v2, 0.0 }
 0xad1   : > { %10151 = vrcp.f32 %v6480_v47  ;;  %v6073_v56 = vmul.f32 1.442695, %v5816_v60  ;;  %v6510_v31 = vadd.f32 1.0, %v14245_v54  ;;  %v5845_v43 = vsub.f32 0.0, %v5621_v29 }
 0xad2   : > { %v10136_v45 = vpop.eup %10135  ;;  %v5822_v37 = vsub.f32 0.0, %v5598_v23  ;;  %v5642_v49 = vand.u32 2147483647, %v14240_v18  ;;  %v7588_v35 = vsel %vm7140_vm7, %v10132_v58, %v7364_v20  ;;  %vm7146_vm10 = vcmp.ge.f32.partialorder %v14088_v16, 0.0  ;;  %v14259_v23 = vpop.f32.mrb[72].mxu1 }
 0xad3   : > { %v14251_v61 = vpop.eup %10137  ;;  %v7369_v57 = vmul.f32 %v10136_v45, %v14172_v21  ;;  %10153 = vpow2.f32 %v6073_v56  ;;  %7812 = vst [vmem:[%s12206_s26 + $0x68] sm:$0xff] %v7588_v35  ;;  %v6131_v60 = vmul.f32 1.442695, %v5845_v43  ;;  %v14268_v20 = vadd.f32 %v13500_v15, %v13982_v51  ;;  %v14270_v35 = vpop.f32.mrb[73].mxu1 }
 0xad4   : > { %v10140_v36 = vpop.eup %10139  ;;  %10155 = vrcp.f32 %v6510_v31  ;;  %v6481_v47 = vadd.f32 1.0, %v14251_v61  ;;  %v6085_v29 = vmul.f32 1.442695, %v5822_v37  ;;  %v5866_v58 = vsub.f32 0.0, %v5642_v49 }
 0xad5   : > { %v14261_v8 = vpop.eup %10141  ;;  %v7593_v9 = vsel %vm7145_vm8, %v10136_v45, %v7369_v57  ;;  %v7399_v21 = vmul.f32 %v10140_v36, %v14179_v52  ;;  %v14278_v10 = vadd.f32 %v13512_v6, %v13960_v3  ;;  %v14282_v52 = vadd.f32 %v13551_v44, %v13941_v50  ;;  %v14284_v57 = vpop.f32.mrb[74].mxu1 }
 0xad6   : > { %v14272_v56 = vpop.eup %10143  ;;  %7817 = vst [vmem:[%s12206_s26 + $0x90] sm:$0xff] %v7593_v9  ;;  %10157 = vrcp.f32 %v6481_v47  ;;  %v6496_v31 = vadd.f32 1.0, %v14261_v8  ;;  %15422 = vst [vmem:[#allocation25_spill] sm:$0xff] %v14284_v57  ;;  %v6173_v37 = vmul.f32 1.442695, %v5866_v58  ;;  %v14289_v49 = vpop.f32.mrb[75].mxu1 }
 0xad7   : > { %v10146_v15 = vpop.eup %10145  ;;  %v7623_v45 = vsel %vm7175_vm9, %v10140_v36, %v7399_v21  ;;  %v6487_v43 = vadd.f32 1.0, %v14272_v56  ;;  %10159 = vpow2.f32 %v6131_v60  ;;  %15423 = vst [vmem:[#allocation8_spill] sm:$0xff] %v14289_v49  ;;  %vm7161_vm11 = vcmp.ge.f32.partialorder %v14097_v19, 0.0 }
 0xad8   : > { %7847 = vst [vmem:[%s12206_s26 + $0x180] sm:$0xff] %v7623_v45  ;;  %v7370_v6 = vmul.f32 %v10146_v15, %v14199_v5  ;;  %10161 = vrcp.f32 %v6496_v31  ;;  %v5599_v44 = vand.u32 2147483647, %v14268_v20  ;;  %vm7152_vm12 = vcmp.ge.f32.partialorder %v14121_v30, 0.0 }
 0xad9   : > { %v10148_v47 = vpop.eup %10147  ;;  %10163 = vrcp.f32 %v6487_v43  ;;  %v5628_v2 = vand.u32 2147483647, %v14278_v10  ;;  %v5605_v36 = vand.u32 2147483647, %v14282_v52  ;;  %vm7182_vm13 = vcmp.ge.f32.partialorder %v14135_v25, 0.0 }
 0xada   : > { %v14298_v60 = vpop.eup %10149  ;;  %v7594_v9 = vsel %vm7146_vm10, %v10146_v15, %v7370_v6  ;;  %v7385_v5 = vmul.f32 %v10148_v47, %v14212_v1  ;;  %10165 = vpow2.f32 %v6085_v29  ;;  %v5823_v21 = vsub.f32 0.0, %v5599_v44 }
 0xadb   : > { %v10152_v58 = vpop.eup %10151  ;;  %7818 = vst [vmem:[%s12206_s26 + $0x98] sm:$0xff] %v7594_v9  ;;  %v6531_v31 = vadd.f32 1.0, %v14298_v60  ;;  %10167 = vpow2.f32 %v6173_v37  ;;  %v5852_v45 = vsub.f32 0.0, %v5628_v2  ;;  %v5829_v43 = vsub.f32 0.0, %v5605_v36 }
 0xadc   : > { %v7609_v49 = vsel %vm7161_vm11, %v10148_v47, %v7385_v5  ;;  %v7376_v57 = vmul.f32 %v10152_v58, %v14224_v63  ;;  %v6087_v16 = vmul.f32 1.442695, %v5823_v21  ;;  %v14314_v37 = vadd.f32 %v13553_v26, %v13960_v3  ;;  %v14323_v47 = vpop.f32.mrb[76].mxu1 }
 0xadd   : > { %v14309_v15 = vpop.eup %10153  ;;  %7833 = vst [vmem:[%s12206_s26 + $0x110] sm:$0xff] %v7609_v49  ;;  %10169 = vrcp.f32 %v6531_v31  ;;  %v6145_v1 = vmul.f32 1.442695, %v5852_v45  ;;  %v6099_v29 = vmul.f32 1.442695, %v5829_v43  ;;  %v14321_v63 = vadd.f32 %v13563_v14, %v13982_v51  ;;  %v14329_v30 = vpop.f32.mrb[77].mxu1 }
 0xade   : > { %v10156_v6 = vpop.eup %10155  ;;  %v7600_v19 = vsel %vm7152_vm12, %v10152_v58, %v7376_v57  ;;  %v6488_v44 = vadd.f32 1.0, %v14309_v15  ;;  %10171 = vpow2.f32 %v6087_v16  ;;  %vm7153_vm14 = vcmp.ge.f32.partialorder %v14139_v4, 0.0  ;;  %v14337_v36 = vpop.f32.mrb[78].mxu1 }
 0xadf   : > { %7824 = vst [vmem:[%s12206_s26 + $0xc8] sm:$0xff] %v7600_v19  ;;  %v7406_v49 = vmul.f32 %v10156_v6, %v14245_v54  ;;  %10173 = vpow2.f32 %v6145_v1  ;;  %v5663_v26 = vand.u32 2147483647, %v14314_v37  ;;  %vm7168_vm15 = vcmp.ge.f32.partialorder %v14147_v17, 0.0  ;;  %v14348_v43 = vpop.f32.mrb[79].mxu1 }
 0xae0   : > { %v10158_v57 = vpop.eup %10157  ;;  %10175 = vrcp.f32 %v6488_v44  ;;  %v5606_v14 = vand.u32 2147483647, %v14321_v63  ;;  %v14335_v2 = vadd.f32 %v13565_v12, %v13960_v3  ;;  %vm7159_vm0 = vcmp.ge.f32.partialorder %v14168_v55, 0.0  ;;  %15424 = vst [vmem:[#allocation26_spill] sm:$0xff] %v14348_v43  ;;  %v15427_v55 = vld [vmem:[#allocation9_spill] sm:$0xff] }
 0xae1   : > { %v14339_v54 = vpop.eup %10159  ;;  %v7630_v9 = vsel %vm7182_vm13, %v10156_v6, %v7406_v49  ;;  %v7377_v5 = vmul.f32 %v10158_v57, %v14251_v61  ;;  %10177 = vpow2.f32 %v6099_v29  ;;  %v5887_v21 = vsub.f32 0.0, %v5663_v26  ;;  %v15425_v29 = vld [vmem:[#allocation31_spill] sm:$0xff] }
 0xae2   : > { %v10162_v58 = vpop.eup %10161  ;;  %7854 = vst [vmem:[%s12206_s26 + $0x1b8] sm:$0xff] %v7630_v9  ;;  %v6517_v31 = vadd.f32 1.0, %v14339_v54  ;;  %v5830_v12 = vsub.f32 0.0, %v5606_v14  ;;  %v5649_v45 = vand.u32 2147483647, %v14335_v2  ;;  %v14355_v6 = vadd.f32 %v15425_v29, %v13941_v50 }
 0xae3   : > { %v10164_v16 = vpop.eup %10163  ;;  %v7601_v25 = vsel %vm7153_vm14, %v10158_v57, %v7377_v5  ;;  %v7392_v61 = vmul.f32 %v10162_v58, %v14261_v8  ;;  %v6215_v1 = vmul.f32 1.442695, %v5887_v21  ;;  %vm7203_vm1 = vcmp.ge.f32.partialorder %v14188_v39, 0.0 }
 0xae4   : > { %v14357_v19 = vpop.eup %10165  ;;  %7825 = vst [vmem:[%s12206_s26 + $0xd0] sm:$0xff] %v7601_v25  ;;  %v7383_v44 = vmul.f32 %v10164_v16, %v14272_v56  ;;  %10179 = vrcp.f32 %v6517_v31  ;;  %v6101_v49 = vmul.f32 1.442695, %v5830_v12  ;;  %v5873_v26 = vsub.f32 0.0, %v5649_v45  ;;  %v15428_v25 = vld [vmem:[#allocation33_spill] sm:$0xff] }
 0xae5   : > { %v14361_v14 = vpop.eup %10167  ;;  %v7616_v4 = vsel %vm7168_vm15, %v10162_v58, %v7392_v61  ;;  %v6494_v8 = vadd.f32 1.0, %v14357_v19  ;;  %10181 = vpow2.f32 %v6215_v1  ;;  %v5612_v57 = vand.u32 2147483647, %v14355_v6  ;;  %v15426_v58 = vld [vmem:[#allocation32_spill] sm:$0xff]  ;;  %v14388_v1 = vpop.f32.mrb[80].mxu1 }
 0xae6   : > { %7840 = vst [vmem:[%s12206_s26 + $0x148] sm:$0xff] %v7616_v4  ;;  %v7607_v9 = vsel %vm7159_vm0, %v10164_v16, %v7383_v44  ;;  %v6538_v5 = vadd.f32 1.0, %v14361_v14  ;;  %10183 = vpow2.f32 %v6101_v49  ;;  %v6187_v56 = vmul.f32 1.442695, %v5873_v26  ;;  %15429 = vst [vmem:[#allocation27_spill] sm:$0xff] %v14388_v1  ;;  %v14394_v26 = vpop.f32.mrb[81].mxu1 }
 0xae7   : > { %v10170_v21 = vpop.eup %10169  ;;  %7831 = vst [vmem:[%s12206_s26 + $0x100] sm:$0xff] %v7607_v9  ;;  %10185 = vrcp.f32 %v6494_v8  ;;  %v5836_v17 = vsub.f32 0.0, %v5612_v57  ;;  %v14375_v31 = vadd.f32 %v15426_v58, %v13960_v3  ;;  %v14382_v16 = vadd.f32 %v15427_v55, %v13982_v51  ;;  %15430 = vst [vmem:[#allocation28_spill] sm:$0xff] %v14394_v26 }
 0xae8   : > { %v14377_v12 = vpop.eup %10171  ;;  %v7427_v45 = vmul.f32 %v10170_v21, %v14298_v60  ;;  %10187 = vrcp.f32 %v6538_v5  ;;  %v14386_v61 = vadd.f32 %v15428_v25, %v13960_v3  ;;  %vm7160_vm2 = vcmp.ge.f32.partialorder %v14195_v48, 0.0  ;;  %v14401_v5 = vpop.f32.mrb[82].mxu1 }
 0xae9   : > { %v14390_v29 = vpop.eup %10173  ;;  %v6495_v44 = vadd.f32 1.0, %v14377_v12  ;;  %10189 = vpow2.f32 %v6187_v56  ;;  %v6113_v49 = vmul.f32 1.442695, %v5836_v17  ;;  %v5670_v60 = vand.u32 2147483647, %v14375_v31  ;;  %15431 = vst [vmem:[#allocation29_spill] sm:$0xff] %v14401_v5 }
 0xaea   : > { %v10176_v4 = vpop.eup %10175  ;;  %v7651_v8 = vsel %vm7203_vm1, %v10170_v21, %v7427_v45  ;;  %v6524_v57 = vadd.f32 1.0, %v14390_v29  ;;  %v5613_v9 = vand.u32 2147483647, %v14382_v16  ;;  %vm7189_vm3 = vcmp.ge.f32.partialorder %v14230_v62, 0.0  ;;  %v14408_v39 = vpop.f32.mrb[83].mxu1 }
 0xaeb   : > { %v14403_v58 = vpop.eup %10177  ;;  %7875 = vst [vmem:[%s12206_s26 + $0x260] sm:$0xff] %v7651_v8  ;;  %v7384_v56 = vmul.f32 %v10176_v4, %v14309_v15  ;;  %10191 = vrcp.f32 %v6495_v44  ;;  %v5894_v17 = vsub.f32 0.0, %v5670_v60  ;;  %15432 = vst [vmem:[#allocation30_spill] sm:$0xff] %v14408_v39  ;;  %v5656_v45 = vand.u32 2147483647, %v14386_v61  ;;  %v15433_v44 = vld [vmem:[#allocation10_spill] sm:$0xff] }
 0xaec   : > { %10193 = vrcp.f32 %v6524_v57  ;;  %v6501_v48 = vadd.f32 1.0, %v14403_v58  ;;  %v5837_v21 = vsub.f32 0.0, %v5613_v9  ;;  %vm7166_vm4 = vcmp.ge.f32.partialorder %v14234_v42, 0.0 }
 0xaed   : > { %v7608_v55 = vsel %vm7160_vm2, %v10176_v4, %v7384_v56  ;;  %10195 = vpow2.f32 %v6113_v49  ;;  %v6229_v25 = vmul.f32 1.442695, %v5894_v17  ;;  %v5880_v5 = vsub.f32 0.0, %v5656_v45  ;;  %v15434_v4 = vld [vmem:[#allocation11_spill] sm:$0xff]  ;;  %v15435_v49 = vld [vmem:[#allocation12_spill] sm:$0xff] }
 0xaee   : > { %v10180_v8 = vpop.eup %10179  ;;  %7832 = vst [vmem:[%s12206_s26 + $0x108] sm:$0xff] %v7608_v55  ;;  %10197 = vrcp.f32 %v6501_v48  ;;  %v6115_v15 = vmul.f32 1.442695, %v5837_v21  ;;  %v14416_v60 = vadd.f32 %v15433_v44, %v13941_v50  ;;  %v14423_v56 = vadd.f32 %v15434_v4, %v13960_v3 }
 0xaef   : > { %v14418_v57 = vpop.eup %10181  ;;  %v7413_v9 = vmul.f32 %v10180_v8, %v14339_v54  ;;  %10199 = vpow2.f32 %v6229_v25  ;;  %v14427_v17 = vadd.f32 %v15435_v49, %v13982_v51  ;;  %v6201_v45 = vmul.f32 1.442695, %v5880_v5  ;;  %v14438_v49 = vpop.f32.mrb[84].mxu1 }
 0xaf0   : > { %v14429_v48 = vpop.eup %10183  ;;  %v6559_v21 = vadd.f32 1.0, %v14418_v57  ;;  %10201 = vpow2.f32 %v6115_v15  ;;  %v5619_v55 = vand.u32 2147483647, %v14416_v60  ;;  %vm7210_vm5 = vcmp.ge.f32.partialorder %v14240_v18, 0.0  ;;  %15436 = vst [vmem:[#allocation31_spill] sm:$0xff] %v14438_v49  ;;  %v14443_v15 = vpop.f32.mrb[85].mxu1 }
 0xaf1   : > { %v10186_v44 = vpop.eup %10185  ;;  %v7637_v54 = vsel %vm7189_vm3, %v10180_v8, %v7413_v9  ;;  %v6502_v25 = vadd.f32 1.0, %v14429_v48  ;;  %v5691_v4 = vand.u32 2147483647, %v14423_v56  ;;  %vm7167_vm6 = vcmp.ge.f32.partialorder %v14268_v20, 0.0  ;;  %15437 = vst [vmem:[#allocation32_spill] sm:$0xff] %v14443_v15  ;;  %v14449_v1 = vpop.f32.mrb[86].mxu1 }
 0xaf2   : > { %v10188_v39 = vpop.eup %10187  ;;  %7861 = vst [vmem:[%s12206_s26 + $0x1f0] sm:$0xff] %v7637_v54  ;;  %v7390_v26 = vmul.f32 %v10186_v44, %v14357_v19  ;;  %10203 = vrcp.f32 %v6559_v21  ;;  %v5843_v5 = vsub.f32 0.0, %v5619_v55  ;;  %v5620_v49 = vand.u32 2147483647, %v14427_v17 }
 0xaf3   : > { %v14445_v62 = vpop.eup %10189  ;;  %v7434_v8 = vmul.f32 %v10188_v39, %v14361_v14  ;;  %10205 = vrcp.f32 %v6502_v25  ;;  %v5915_v9 = vsub.f32 0.0, %v5691_v4  ;;  %vm7196_vm7 = vcmp.ge.f32.partialorder %v14278_v10, 0.0  ;;  %v14458_v4 = vpop.f32.mrb[87].mxu1 }
 0xaf4   : > { %v7614_v19 = vsel %vm7166_vm4, %v10186_v44, %v7390_v26  ;;  %v6545_v54 = vadd.f32 1.0, %v14445_v62  ;;  %10207 = vpow2.f32 %v6201_v45  ;;  %v6127_v21 = vmul.f32 1.442695, %v5843_v5  ;;  %v15438_v26 = vld [vmem:[#allocation34_spill] sm:$0xff] }
 0xaf5   : > { %v10192_v55 = vpop.eup %10191  ;;  %7838 = vst [vmem:[%s12206_s26 + $0x138] sm:$0xff] %v7614_v19  ;;  %v7658_v15 = vsel %vm7210_vm5, %v10188_v39, %v7434_v8  ;;  %v6271_v14 = vmul.f32 1.442695, %v5915_v9  ;;  %v5844_v25 = vsub.f32 0.0, %v5620_v49  ;;  %v14464_v45 = vadd.f32 %v15438_v26, %v13960_v3 }
 0xaf6   : > { %v10194_v43 = vpop.eup %10193  ;;  %7882 = vst [vmem:[%s12206_s26 + $0x298] sm:$0xff] %v7658_v15  ;;  %v7391_v42 = vmul.f32 %v10192_v55, %v14377_v12  ;;  %10209 = vrcp.f32 %v6545_v54  ;;  %v14468_v18 = vadd.f32 %v13717_v0, %v13941_v50  ;;  %v14475_v5 = vadd.f32 %v13722_v24, %v13960_v3 }
 0xaf7   : > { %v14470_v39 = vpop.eup %10195  ;;  %v7420_v44 = vmul.f32 %v10194_v43, %v14390_v29  ;;  %10211 = vpow2.f32 %v6127_v21  ;;  %v6129_v49 = vmul.f32 1.442695, %v5844_v25  ;;  %v5677_v0 = vand.u32 2147483647, %v14464_v45 }
 0xaf8   : > { %v10198_v12 = vpop.eup %10197  ;;  %v7615_v15 = vsel %vm7167_vm6, %v10192_v55, %v7391_v42  ;;  %v6508_v8 = vadd.f32 1.0, %v14470_v39  ;;  %10213 = vpow2.f32 %v6271_v14  ;;  %vm7173_vm8 = vcmp.ge.f32.partialorder %v14282_v52, 0.0 }
 0xaf9   : > { %v14481_v9 = vpop.eup %10199  ;;  %7839 = vst [vmem:[%s12206_s26 + $0x140] sm:$0xff] %v7615_v15  ;;  %v7644_v29 = vsel %vm7196_vm7, %v10194_v43, %v7420_v44  ;;  %v7397_v24 = vmul.f32 %v10198_v12, %v14403_v58  ;;  %10215 = vpow2.f32 %v6129_v49  ;;  %v5901_v54 = vsub.f32 0.0, %v5677_v0  ;;  %v14503_v49 = vpop.f32.mrb[88].mxu1 }
 0xafa   : > { %v14488_v19 = vpop.eup %10201  ;;  %7868 = vst [vmem:[%s12206_s26 + $0x228] sm:$0xff] %v7644_v29  ;;  %10217 = vrcp.f32 %v6508_v8  ;;  %v6566_v20 = vadd.f32 1.0, %v14481_v9  ;;  %v5626_v21 = vand.u32 2147483647, %v14468_v18  ;;  %vm7231_vm9 = vcmp.ge.f32.partialorder %v14314_v37, 0.0 }
 0xafb   : > { %v7621_v55 = vsel %vm7173_vm8, %v10198_v12, %v7397_v24  ;;  %v6509_v10 = vadd.f32 1.0, %v14488_v19  ;;  %v5698_v43 = vand.u32 2147483647, %v14475_v5  ;;  %vm7174_vm10 = vcmp.ge.f32.partialorder %v14321_v63, 0.0 }
 0xafc   : > { %v10204_v52 = vpop.eup %10203  ;;  %7845 = vst [vmem:[%s12206_s26 + $0x170] sm:$0xff] %v7621_v55  ;;  %10219 = vrcp.f32 %v6566_v20  ;;  %v6243_v58 = vmul.f32 1.442695, %v5901_v54  ;;  %v5850_v14 = vsub.f32 0.0, %v5626_v21  ;;  %v14501_v44 = vadd.f32 %v13733_v46, %v13982_v51 }
 0xafd   : > { %v10206_v25 = vpop.eup %10205  ;;  %v7455_v42 = vmul.f32 %v10204_v52, %v14418_v57  ;;  %10221 = vrcp.f32 %v6509_v10  ;;  %v5922_v26 = vsub.f32 0.0, %v5698_v43  ;;  %v14510_v0 = vadd.f32 %v13755_v41, %v13960_v3  ;;  %v14512_v57 = vpop.f32.mrb[89].mxu1 }
 0xafe   : > { %v14505_v12 = vpop.eup %10207  ;;  %v7398_v15 = vmul.f32 %v10206_v25, %v14429_v48  ;;  %10223 = vpow2.f32 %v6243_v58  ;;  %v6141_v8 = vmul.f32 1.442695, %v5850_v14  ;;  %v5627_v20 = vand.u32 2147483647, %v14501_v44  ;;  %v14518_v54 = vpop.f32.mrb[90].mxu1  ;;  %v15440_v14 = vld [vmem:[#allocation13_spill] sm:$0xff] }
 0xaff   : > { %v7679_v29 = vsel %vm7231_vm9, %v10204_v52, %v7455_v42  ;;  %v6552_v46 = vadd.f32 1.0, %v14505_v12  ;;  %v6285_v24 = vmul.f32 1.442695, %v5922_v26  ;;  %vm7217_vm11 = vcmp.ge.f32.partialorder %v14335_v2, 0.0  ;;  %v14525_v55 = vpop.f32.mrb[91].mxu1 }
 0xb00   : > { %v10210_v48 = vpop.eup %10209  ;;  %7903 = vst [vmem:[%s12206_s26 + $0x340] sm:$0xff] %v7679_v29  ;;  %v7622_v21 = vsel %vm7174_vm10, %v10206_v25, %v7398_v15  ;;  %10225 = vpow2.f32 %v6141_v8  ;;  %v5684_v41 = vand.u32 2147483647, %v14510_v0  ;;  %15439 = vst [vmem:[#allocation9_spill] sm:$0xff] %v14525_v55  ;;  %vm7180_vm12 = vcmp.ge.f32.partialorder %v14355_v6, 0.0  ;;  %v15441_v8 = vld [vmem:[#allocation35_spill] sm:$0xff] }
 0xb01   : > { %v14527_v37 = vpop.eup %10211  ;;  %7846 = vst [vmem:[%s12206_s26 + $0x178] sm:$0xff] %v7622_v21  ;;  %v7441_v10 = vmul.f32 %v10210_v48, %v14445_v62  ;;  %10227 = vrcp.f32 %v6552_v46  ;;  %v5851_v43 = vsub.f32 0.0, %v5627_v20  ;;  %v14537_v25 = vadd.f32 %v15440_v14, %v13941_v50 }
 0xb02   : > { %v14532_v52 = vpop.eup %10213  ;;  %v6515_v63 = vadd.f32 1.0, %v14527_v37  ;;  %10229 = vpow2.f32 %v6285_v24  ;;  %v5908_v58 = vsub.f32 0.0, %v5684_v41  ;;  %v14546_v29 = vadd.f32 %v15441_v8, %v13960_v3 }
 0xb03   : > { %v14539_v42 = vpop.eup %10215  ;;  %v7665_v26 = vsel %vm7217_vm11, %v10210_v48, %v7441_v10  ;;  %v6587_v62 = vadd.f32 1.0, %v14532_v52  ;;  %v6143_v15 = vmul.f32 1.442695, %v5851_v43  ;;  %v5633_v21 = vand.u32 2147483647, %v14537_v25  ;;  %v15442_v43 = vld [vmem:[#allocation14_spill] sm:$0xff] }
 0xb04   : > { %v10218_v46 = vpop.eup %10217  ;;  %7889 = vst [vmem:[%s12206_s26 + $0x2d0] sm:$0xff] %v7665_v26  ;;  %10231 = vrcp.f32 %v6515_v63  ;;  %v6516_v24 = vadd.f32 1.0, %v14539_v42  ;;  %v6257_v20 = vmul.f32 1.442695, %v5908_v58  ;;  %vm7238_vm13 = vcmp.ge.f32.partialorder %v14375_v31, 0.0  ;;  %v14559_v58 = vpop.f32.mrb[92].mxu1 }
 0xb05   : > { %v7404_v41 = vmul.f32 %v10218_v46, %v14470_v39  ;;  %10233 = vrcp.f32 %v6587_v62  ;;  %v5719_v2 = vand.u32 2147483647, %v14546_v29  ;;  %vm7181_vm14 = vcmp.ge.f32.partialorder %v14382_v16, 0.0  ;;  %15443 = vst [vmem:[#allocation33_spill] sm:$0xff] %v14559_v58  ;;  %v14564_v8 = vpop.f32.mrb[93].mxu1 }
 0xb06   : > { %v10220_v48 = vpop.eup %10219  ;;  %10235 = vrcp.f32 %v6516_v24  ;;  %v5857_v10 = vsub.f32 0.0, %v5633_v21  ;;  %v14557_v63 = vadd.f32 %v15442_v43, %v13982_v51  ;;  %v14571_v58 = vpop.f32.mrb[94].mxu1  ;;  %vm7224_vm15 = vcmp.ge.f32.partialorder %v14386_v61, 0.0 }
 0xb07   : > { %v10222_v14 = vpop.eup %10221  ;;  %v7628_v39 = vsel %vm7180_vm12, %v10218_v46, %v7404_v41  ;;  %v7462_v26 = vmul.f32 %v10220_v48, %v14481_v9  ;;  %10237 = vpow2.f32 %v6143_v15  ;;  %v5943_v62 = vsub.f32 0.0, %v5719_v2  ;;  %v14586_v2 = vpop.f32.mrb[95].mxu1 }
 0xb08   : > { %v14566_v55 = vpop.eup %10223  ;;  %7852 = vst [vmem:[%s12206_s26 + $0x1a8] sm:$0xff] %v7628_v39  ;;  %v7405_v24 = vmul.f32 %v10222_v14, %v14488_v19  ;;  %10239 = vpow2.f32 %v6257_v20  ;;  %v6155_v21 = vmul.f32 1.442695, %v5857_v10  ;;  %v5634_v43 = vand.u32 2147483647, %v14557_v63 }
 0xb09   : > { %v7686_v6 = vsel %vm7238_vm13, %v10220_v48, %v7462_v26  ;;  %v6573_v9 = vadd.f32 1.0, %v14566_v55  ;;  %v6327_v15 = vmul.f32 1.442695, %v5943_v62  ;;  %v14584_v41 = vadd.f32 %v13810_v13, %v13960_v3 }
 0xb0a   : > { %v14577_v46 = vpop.eup %10225  ;;  %7910 = vst [vmem:[%s12206_s26 + $0x378] sm:$0xff] %v7686_v6  ;;  %v7629_v19 = vsel %vm7181_vm14, %v10222_v14, %v7405_v24  ;;  %10241 = vpow2.f32 %v6155_v21  ;;  %v5858_v20 = vsub.f32 0.0, %v5634_v43  ;;  %v14592_v10 = vadd.f32 %v13836_v27, %v13941_v50 }
 0xb0b   : > { %v10228_v31 = vpop.eup %10227  ;;  %7853 = vst [vmem:[%s12206_s26 + $0x1b0] sm:$0xff] %v7629_v19  ;;  %10243 = vrcp.f32 %v6573_v9  ;;  %v6522_v48 = vadd.f32 1.0, %v14577_v46  ;;  %v14596_v16 = vadd.f32 %v13838_v38, %v13960_v3  ;;  %v5705_v26 = vand.u32 2147483647, %v14584_v41 }
 0xb0c   : > { %v14598_v14 = vpop.eup %10229  ;;  %v7448_v13 = vmul.f32 %v10228_v31, %v14505_v12  ;;  %10245 = vpow2.f32 %v6327_v15  ;;  %v6157_v39 = vmul.f32 1.442695, %v5858_v20  ;;  %vm7187_vm0 = vcmp.ge.f32.partialorder %v14416_v60, 0.0 }
 0xb0d   : > { %10247 = vrcp.f32 %v6522_v48  ;;  %v6594_v62 = vadd.f32 1.0, %v14598_v14  ;;  %v5640_v27 = vand.u32 2147483647, %v14592_v10  ;;  %vm7259_vm1 = vcmp.ge.f32.partialorder %v14423_v56, 0.0 }
 0xb0e   : > { %v10232_v24 = vpop.eup %10231  ;;  %v7672_v38 = vsel %vm7224_vm15, %v10228_v31, %v7448_v13  ;;  %10249 = vpow2.f32 %v6157_v39  ;;  %v5929_v21 = vsub.f32 0.0, %v5705_v26  ;;  %v5726_v9 = vand.u32 2147483647, %v14596_v16 }
 0xb0f   : > { %v10234_v12 = vpop.eup %10233  ;;  %7896 = vst [vmem:[%s12206_s26 + $0x308] sm:$0xff] %v7672_v38  ;;  %v7411_v43 = vmul.f32 %v10232_v24, %v14527_v37  ;;  %10251 = vrcp.f32 %v6594_v62  ;;  %v5864_v6 = vsub.f32 0.0, %v5640_v27  ;;  %vm7188_vm2 = vcmp.ge.f32.partialorder %v14427_v17, 0.0 }
 0xb10   : > { %v10236_v15 = vpop.eup %10235  ;;  %v7483_v19 = vmul.f32 %v10234_v12, %v14532_v52  ;;  %v6299_v61 = vmul.f32 1.442695, %v5929_v21  ;;  %v14615_v20 = vadd.f32 %v13856_v34, %v13982_v51  ;;  %v5950_v39 = vsub.f32 0.0, %v5726_v9 }
 0xb11   : > { %v14617_v31 = vpop.eup %10237  ;;  %v7635_v37 = vsel %vm7187_vm0, %v10232_v24, %v7411_v43  ;;  %v7412_v48 = vmul.f32 %v10236_v15, %v14539_v42  ;;  %v6169_v13 = vmul.f32 1.442695, %v5864_v6  ;;  %vm7245_vm3 = vcmp.ge.f32.partialorder %v14464_v45, 0.0  ;;  %v15445_v6 = vld [vmem:[#allocation16_spill] sm:$0xff] }
 0xb12   : > { %v14622_v26 = vpop.eup %10239  ;;  %7859 = vst [vmem:[%s12206_s26 + $0x1e0] sm:$0xff] %v7635_v37  ;;  %v7707_v17 = vsel %vm7259_vm1, %v10234_v12, %v7483_v19  ;;  %v6523_v52 = vadd.f32 1.0, %v14617_v31  ;;  %10253 = vpow2.f32 %v6299_v61  ;;  %v5641_v34 = vand.u32 2147483647, %v14615_v20  ;;  %v15444_v12 = vld [vmem:[#allocation15_spill] sm:$0xff] }
 0xb13   : > { %7931 = vst [vmem:[%s12206_s26 + $0x420] sm:$0xff] %v7707_v17  ;;  %v7636_v62 = vsel %vm7188_vm2, %v10236_v15, %v7412_v48  ;;  %v6580_v60 = vadd.f32 1.0, %v14622_v26  ;;  %10255 = vpow2.f32 %v6169_v13  ;;  %v6341_v27 = vmul.f32 1.442695, %v5950_v39 }
 0xb14   : > { %v14631_v42 = vpop.eup %10241  ;;  %7860 = vst [vmem:[%s12206_s26 + $0x1e8] sm:$0xff] %v7636_v62  ;;  %10257 = vrcp.f32 %v6523_v52  ;;  %v5865_v24 = vsub.f32 0.0, %v5641_v34  ;;  %v14637_v56 = vadd.f32 %v13873_v53, %v13960_v3  ;;  %v14642_v43 = vadd.f32 %v15444_v12, %v13941_v50 }
 0xb15   : > { %v10244_v38 = vpop.eup %10243  ;;  %10259 = vrcp.f32 %v6580_v60  ;;  %v6529_v21 = vadd.f32 1.0, %v14631_v42  ;;  %v14646_v9 = vadd.f32 %v15445_v6, %v13960_v3  ;;  %vm7194_vm4 = vcmp.ge.f32.partialorder %v14468_v18, 0.0 }
 0xb16   : > { %v14648_v15 = vpop.eup %10245  ;;  %v7469_v19 = vmul.f32 %v10244_v38, %v14566_v55  ;;  %10261 = vpow2.f32 %v6341_v27  ;;  %v6171_v53 = vmul.f32 1.442695, %v5865_v24  ;;  %v5712_v61 = vand.u32 2147483647, %v14637_v56 }
 0xb17   : > { %v10248_v37 = vpop.eup %10247  ;;  %10263 = vrcp.f32 %v6529_v21  ;;  %v6615_v48 = vadd.f32 1.0, %v14648_v15  ;;  %v5647_v13 = vand.u32 2147483647, %v14642_v43  ;;  %vm7266_vm5 = vcmp.ge.f32.partialorder %v14475_v5, 0.0 }
 0xb18   : > { %v14655_v39 = vpop.eup %10249  ;;  %v7693_v17 = vsel %vm7245_vm3, %v10244_v38, %v7469_v19  ;;  %v7418_v55 = vmul.f32 %v10248_v37, %v14577_v46  ;;  %10265 = vpow2.f32 %v6171_v53  ;;  %v5936_v52 = vsub.f32 0.0, %v5712_v61  ;;  %v15446_v38 = vld [vmem:[#allocation17_spill] sm:$0xff]  ;;  %v15447_v19 = vld [vmem:[#allocation3_spill] sm:$0xff] }
 0xb19   : > { %v10252_v34 = vpop.eup %10251  ;;  %7917 = vst [vmem:[%s12206_s26 + $0x3b0] sm:$0xff] %v7693_v17  ;;  %10267 = vrcp.f32 %v6615_v48  ;;  %v6530_v18 = vadd.f32 1.0, %v14655_v39  ;;  %v5871_v62 = vsub.f32 0.0, %v5647_v13  ;;  %v5747_v45 = vand.u32 2147483647, %v14646_v9 }
 0xb1a   : > { %v7642_v60 = vsel %vm7194_vm4, %v10248_v37, %v7418_v55  ;;  %v7490_v27 = vmul.f32 %v10252_v34, %v14598_v14  ;;  %v6313_v24 = vmul.f32 1.442695, %v5936_v52  ;;  %vm7195_vm6 = vcmp.ge.f32.partialorder %v14501_v44, 0.0 }
 0xb1b   : > { %7866 = vst [vmem:[%s12206_s26 + $0x218] sm:$0xff] %v7642_v60  ;;  %10269 = vrcp.f32 %v6530_v18  ;;  %v6183_v46 = vmul.f32 1.442695, %v5871_v62  ;;  %v14669_v21 = vadd.f32 %v15446_v38, %v13982_v51  ;;  %v5971_v6 = vsub.f32 0.0, %v5747_v45  ;;  %v15448_v62 = vld [vmem:[#allocation18_spill] sm:$0xff] }
 0xb1c   : > { %v14671_v5 = vpop.eup %10253  ;;  %v7714_v12 = vsel %vm7266_vm5, %v10252_v34, %v7490_v27  ;;  %10271 = vpow2.f32 %v6313_v24  ;;  %v14675_v14 = vadd.f32 %v15447_v19, %v13960_v3  ;;  %vm7252_vm7 = vcmp.ge.f32.partialorder %v14510_v0, 0.0 }
 0xb1d   : > { %v14677_v53 = vpop.eup %10255  ;;  %7938 = vst [vmem:[%s12206_s26 + $0x458] sm:$0xff] %v7714_v12  ;;  %v6601_v61 = vadd.f32 1.0, %v14671_v5  ;;  %10273 = vpow2.f32 %v6183_v46  ;;  %v5648_v37 = vand.u32 2147483647, %v14669_v21  ;;  %vm7201_vm8 = vcmp.ge.f32.partialorder %v14537_v25, 0.0 }
 0xb1e   : > { %v10258_v48 = vpop.eup %10257  ;;  %v6536_v13 = vadd.f32 1.0, %v14677_v53  ;;  %v6383_v17 = vmul.f32 1.442695, %v5971_v6  ;;  %v5733_v55 = vand.u32 2147483647, %v14675_v14  ;;  %v14689_v60 = vadd.f32 %v15448_v62, %v13941_v50 }
 0xb1f   : > { %v10260_v52 = vpop.eup %10259  ;;  %v7419_v34 = vmul.f32 %v10258_v48, %v14617_v31  ;;  %10275 = vrcp.f32 %v6601_v61  ;;  %v5872_v18 = vsub.f32 0.0, %v5648_v37  ;;  %v14696_v46 = vadd.f32 %v13965_v7, %v13960_v3 }
 0xb20   : > { %v14691_v27 = vpop.eup %10261  ;;  %v7476_v24 = vmul.f32 %v10260_v52, %v14622_v26  ;;  %10277 = vrcp.f32 %v6536_v13  ;;  %v5957_v45 = vsub.f32 0.0, %v5733_v55  ;;  %v5654_v7 = vand.u32 2147483647, %v14689_v60 }
 0xb21   : > { %v10264_v38 = vpop.eup %10263  ;;  %v7643_v31 = vsel %vm7195_vm6, %v10258_v48, %v7419_v34  ;;  %v6622_v12 = vadd.f32 1.0, %v14691_v27  ;;  %10279 = vpow2.f32 %v6383_v17  ;;  %v6185_v6 = vmul.f32 1.442695, %v5872_v18 }
 0xb22   : > { %v14701_v19 = vpop.eup %10265  ;;  %7867 = vst [vmem:[%s12206_s26 + $0x220] sm:$0xff] %v7643_v31  ;;  %v7700_v26 = vsel %vm7252_vm7, %v10260_v52, %v7476_v24  ;;  %v7425_v61 = vmul.f32 %v10264_v38, %v14631_v42  ;;  %v6355_v37 = vmul.f32 1.442695, %v5957_v45  ;;  %vm7287_vm9 = vcmp.ge.f32.partialorder %v14546_v29, 0.0 }
 0xb23   : > { %v10268_v13 = vpop.eup %10267  ;;  %7924 = vst [vmem:[%s12206_s26 + $0x3e8] sm:$0xff] %v7700_v26  ;;  %10281 = vrcp.f32 %v6622_v12  ;;  %v6537_v44 = vadd.f32 1.0, %v14701_v19  ;;  %v5754_v48 = vand.u32 2147483647, %v14696_v46  ;;  %v5878_v42 = vsub.f32 0.0, %v5654_v7 }
 0xb24   : > { %v7649_v17 = vsel %vm7201_vm8, %v10264_v38, %v7425_v61  ;;  %v7511_v0 = vmul.f32 %v10268_v13, %v14648_v15  ;;  %10283 = vpow2.f32 %v6185_v6  ;;  %vm7202_vm10 = vcmp.ge.f32.partialorder %v14557_v63, 0.0 }
 0xb25   : > { %v10270_v55 = vpop.eup %10269  ;;  %7873 = vst [vmem:[%s12206_s26 + $0x250] sm:$0xff] %v7649_v17  ;;  %10285 = vrcp.f32 %v6537_v44  ;;  %v5978_v52 = vsub.f32 0.0, %v5754_v48  ;;  %v14719_v29 = vadd.f32 %v13984_v59, %v13982_v51  ;;  %v6197_v15 = vmul.f32 1.442695, %v5878_v42 }
 0xb26   : > { %v14721_v34 = vpop.eup %10271  ;;  %v7735_v25 = vsel %vm7287_vm9, %v10268_v13, %v7511_v0  ;;  %v7426_v18 = vmul.f32 %v10270_v55, %v14655_v39  ;;  %10287 = vpow2.f32 %v6355_v37  ;;  %vm7273_vm11 = vcmp.ge.f32.partialorder %v14584_v41, 0.0 }
 0xb27   : > { %v14724_v62 = vpop.eup %10273  ;;  %7959 = vst [vmem:[%s12206_s26 + $0x500] sm:$0xff] %v7735_v25  ;;  %v6608_v63 = vadd.f32 1.0, %v14721_v34  ;;  %v6397_v24 = vmul.f32 1.442695, %v5978_v52  ;;  %v5655_v45 = vand.u32 2147483647, %v14719_v29  ;;  %10289 = vpow2.f32 %v6197_v15 }
 0xb28   : > { %v7650_v59 = vsel %vm7202_vm10, %v10270_v55, %v7426_v18  ;;  %v6543_v38 = vadd.f32 1.0, %v14724_v62  ;;  %v14733_v31 = vadd.f32 %v13991_v32, %v13960_v3  ;;  %v14738_v6 = vadd.f32 %v14038_v22, %v13941_v50 }
 0xb29   : > { %v10276_v39 = vpop.eup %10275  ;;  %7874 = vst [vmem:[%s12206_s26 + $0x258] sm:$0xff] %v7650_v59  ;;  %10291 = vrcp.f32 %v6608_v63  ;;  %v5879_v12 = vsub.f32 0.0, %v5655_v45  ;;  %v14742_v26 = vadd.f32 %v14040_v33, %v13960_v3  ;;  %vm7208_vm12 = vcmp.ge.f32.partialorder %v14592_v10, 0.0 }
 0xb2a   : > { %v10278_v61 = vpop.eup %10277  ;;  %v7497_v37 = vmul.f32 %v10276_v39, %v14671_v5  ;;  %10293 = vrcp.f32 %v6543_v38  ;;  %v5740_v32 = vand.u32 2147483647, %v14733_v31  ;;  %v5661_v44 = vand.u32 2147483647, %v14738_v6 }
 0xb2b   : > { %v14747_v7 = vpop.eup %10279  ;;  %v7432_v13 = vmul.f32 %v10278_v61, %v14677_v53  ;;  %10295 = vpow2.f32 %v6397_v24  ;;  %v6199_v22 = vmul.f32 1.442695, %v5879_v12  ;;  %vm7294_vm13 = vcmp.ge.f32.partialorder %v14596_v16, 0.0 }
 0xb2c   : > { %v7721_v33 = vsel %vm7273_vm11, %v10276_v39, %v7497_v37  ;;  %v6643_v5 = vadd.f32 1.0, %v14747_v7  ;;  %v5964_v10 = vsub.f32 0.0, %v5740_v32  ;;  %v5885_v0 = vsub.f32 0.0, %v5661_v44 }
 0xb2d   : > { %v10282_v48 = vpop.eup %10281  ;;  %7945 = vst [vmem:[%s12206_s26 + $0x490] sm:$0xff] %v7721_v33  ;;  %v7656_v17 = vsel %vm7208_vm12, %v10278_v61, %v7432_v13  ;;  %10297 = vpow2.f32 %v6199_v22  ;;  %v5775_v42 = vand.u32 2147483647, %v14742_v26  ;;  %vm7209_vm14 = vcmp.ge.f32.partialorder %v14615_v20, 0.0  ;;  %v15449_v22 = vld [vmem:[#allocation19_spill] sm:$0xff] }
 0xb2e   : > { %v14757_v53 = vpop.eup %10283  ;;  %7880 = vst [vmem:[%s12206_s26 + $0x288] sm:$0xff] %v7656_v17  ;;  %v7518_v55 = vmul.f32 %v10282_v48, %v14691_v27  ;;  %10299 = vrcp.f32 %v6643_v5  ;;  %v6369_v41 = vmul.f32 1.442695, %v5964_v10  ;;  %v6211_v18 = vmul.f32 1.442695, %v5885_v0 }
 0xb2f   : > { %v10286_v52 = vpop.eup %10285  ;;  %v6544_v25 = vadd.f32 1.0, %v14757_v53  ;;  %v5999_v15 = vsub.f32 0.0, %v5775_v42  ;;  %v14765_v63 = vadd.f32 %v14045_v28, %v13982_v51  ;;  %v14774_v59 = vadd.f32 %v14050_v11, %v13960_v3 }
 0xb30   : > { %v14767_v24 = vpop.eup %10287  ;;  %v7742_v45 = vsel %vm7294_vm13, %v10282_v48, %v7518_v55  ;;  %v7433_v27 = vmul.f32 %v10286_v52, %v14701_v19  ;;  %10301 = vpow2.f32 %v6369_v41  ;;  %vm7280_vm15 = vcmp.ge.f32.partialorder %v14637_v56, 0.0  ;;  %v15450_v48 = vld [vmem:[#allocation20_spill] sm:$0xff] }
 0xb31   : > { %7966 = vst [vmem:[%s12206_s26 + $0x538] sm:$0xff] %v7742_v45  ;;  %10303 = vrcp.f32 %v6544_v25  ;;  %v6629_v38 = vadd.f32 1.0, %v14767_v24  ;;  %v6439_v39 = vmul.f32 1.442695, %v5999_v15  ;;  %v5662_v28 = vand.u32 2147483647, %v14765_v63  ;;  %v14779_v12 = vpop.eup %10289 }
 0xb32   : > { %v7657_v16 = vsel %vm7209_vm14, %v10286_v52, %v7433_v27  ;;  %10305 = vpow2.f32 %v6211_v18  ;;  %v5761_v19 = vand.u32 2147483647, %v14774_v59  ;;  %vm7215_vm0 = vcmp.ge.f32.partialorder %v14642_v43, 0.0  ;;  %v15451_v27 = vld [vmem:[#allocation21_spill] sm:$0xff] }
 0xb33   : > { %v10292_v61 = vpop.eup %10291  ;;  %7881 = vst [vmem:[%s12206_s26 + $0x290] sm:$0xff] %v7657_v16  ;;  %10307 = vrcp.f32 %v6629_v38  ;;  %v6550_v11 = vadd.f32 1.0, %v14779_v12  ;;  %v5886_v37 = vsub.f32 0.0, %v5662_v28  ;;  %v14791_v44 = vadd.f32 %v15449_v22, %v13941_v50  ;;  %v15452_v28 = vld [vmem:[#allocation2_spill] sm:$0xff]  ;;  %v15453_v16 = vld [vmem:[#allocation4_spill] sm:$0xff] }
 0xb34   : > { %v10294_v32 = vpop.eup %10293  ;;  %v7504_v13 = vmul.f32 %v10292_v61, %v14721_v34  ;;  %10309 = vpow2.f32 %v6439_v39  ;;  %v5985_v20 = vsub.f32 0.0, %v5761_v19  ;;  %v14798_v17 = vadd.f32 %v15450_v48, %v13960_v3 }
 0xb35   : > { %v14793_v33 = vpop.eup %10295  ;;  %v7439_v5 = vmul.f32 %v10294_v32, %v14724_v62  ;;  %10311 = vrcp.f32 %v6550_v11  ;;  %v6213_v10 = vmul.f32 1.442695, %v5886_v37  ;;  %v5668_v55 = vand.u32 2147483647, %v14791_v44 }
 0xb36   : > { %v7728_v34 = vsel %vm7280_vm15, %v10292_v61, %v7504_v13  ;;  %v6650_v0 = vadd.f32 1.0, %v14793_v33  ;;  %v6411_v42 = vmul.f32 1.442695, %v5985_v20  ;;  %v5782_v52 = vand.u32 2147483647, %v14798_v17 }
 0xb37   : > { %v14804_v41 = vpop.eup %10297  ;;  %7952 = vst [vmem:[%s12206_s26 + $0x4c8] sm:$0xff] %v7728_v34  ;;  %v7663_v62 = vsel %vm7215_vm0, %v10294_v32, %v7439_v5  ;;  %10313 = vpow2.f32 %v6213_v10  ;;  %vm7315_vm1 = vcmp.ge.f32.partialorder %v14646_v9, 0.0  ;;  %v5892_v18 = vsub.f32 0.0, %v5668_v55 }
 0xb38   : > { %v10300_v25 = vpop.eup %10299  ;;  %7887 = vst [vmem:[%s12206_s26 + $0x2c0] sm:$0xff] %v7663_v62  ;;  %10315 = vrcp.f32 %v6650_v0  ;;  %v6551_v56 = vadd.f32 1.0, %v14804_v41  ;;  %v6006_v45 = vsub.f32 0.0, %v5782_v52  ;;  %v14816_v43 = vadd.f32 %v15451_v27, %v13982_v51 }
 0xb39   : > { %v7539_v15 = vmul.f32 %v10300_v25, %v14747_v7  ;;  %10317 = vpow2.f32 %v6411_v42  ;;  %v6225_v39 = vmul.f32 1.442695, %v5892_v18  ;;  %v14822_v9 = vadd.f32 %v15452_v28, %v13960_v3  ;;  %v15454_v18 = vld [vmem:[#allocation5_spill] sm:$0xff] }
 0xb3a   : > { %v14818_v38 = vpop.eup %10301  ;;  %10319 = vrcp.f32 %v6551_v56  ;;  %v14826_v19 = vadd.f32 %v15453_v16, %v13941_v50  ;;  %v6453_v37 = vmul.f32 1.442695, %v6006_v45  ;;  %v5669_v32 = vand.u32 2147483647, %v14816_v43  ;;  %v15455_v45 = vld [vmem:[#allocation6_spill] sm:$0xff] }
 0xb3b   : > { %v10304_v61 = vpop.eup %10303  ;;  %v7763_v7 = vsel %vm7315_vm1, %v10300_v25, %v7539_v15  ;;  %v6636_v11 = vadd.f32 1.0, %v14818_v38  ;;  %vm7216_vm2 = vcmp.ge.f32.partialorder %v14669_v21, 0.0  ;;  %10321 = vpow2.f32 %v6225_v39 }
 0xb3c   : > { %v14830_v13 = vpop.eup %10305  ;;  %7987 = vst [vmem:[%s12206_s26 + $0x5e0] sm:$0xff] %v7763_v7  ;;  %v7440_v3 = vmul.f32 %v10304_v61, %v14757_v53  ;;  %v5768_v20 = vand.u32 2147483647, %v14822_v9  ;;  %vm7301_vm3 = vcmp.ge.f32.partialorder %v14675_v14, 0.0  ;;  %v5893_v10 = vsub.f32 0.0, %v5669_v32 }
 0xb3d   : > { %v10308_v22 = vpop.eup %10307  ;;  %10323 = vrcp.f32 %v6636_v11  ;;  %v6557_v5 = vadd.f32 1.0, %v14830_v13  ;;  %v5675_v14 = vand.u32 2147483647, %v14826_v19  ;;  %vm7222_vm4 = vcmp.ge.f32.partialorder %v14689_v60, 0.0 }
 0xb3e   : > { %v14838_v48 = vpop.eup %10309  ;;  %v7664_v34 = vsel %vm7216_vm2, %v10304_v61, %v7440_v3  ;;  %v7525_v0 = vmul.f32 %v10308_v22, %v14767_v24  ;;  %10325 = vpow2.f32 %v6453_v37  ;;  %v5992_v21 = vsub.f32 0.0, %v5768_v20 }
 0xb3f   : > { %v10312_v42 = vpop.eup %10311  ;;  %7888 = vst [vmem:[%s12206_s26 + $0x2c8] sm:$0xff] %v7664_v34  ;;  %10327 = vrcp.f32 %v6557_v5  ;;  %v6671_v53 = vadd.f32 1.0, %v14838_v48  ;;  %v6227_v55 = vmul.f32 1.442695, %v5893_v10  ;;  %v5899_v24 = vsub.f32 0.0, %v5675_v14 }
 0xb40   : > { %v7749_v62 = vsel %vm7301_vm3, %v10308_v22, %v7525_v0  ;;  %v7446_v52 = vmul.f32 %v10312_v42, %v14779_v12  ;;  %v6425_v25 = vmul.f32 1.442695, %v5992_v21  ;;  %v14851_v15 = vadd.f32 %v15454_v18, %v13982_v51  ;;  %v15456_v12 = vld [vmem:[#allocation22_spill] sm:$0xff]  ;;  %v15458_v18 = vld [vmem:[#allocation24_spill] sm:$0xff] }
 0xb41   : > { %v14846_v56 = vpop.eup %10313  ;;  %7973 = vst [vmem:[%s12206_s26 + $0x570] sm:$0xff] %v7749_v62  ;;  %10329 = vrcp.f32 %v6671_v53  ;;  %v14855_v27 = vadd.f32 %v15455_v45, %v13941_v50  ;;  %v14860_v16 = vadd.f32 %v15456_v12, %v13982_v51  ;;  %v6239_v11 = vmul.f32 1.442695, %v5899_v24 }
 0xb42   : > { %v10316_v39 = vpop.eup %10315  ;;  %v7670_v28 = vsel %vm7222_vm4, %v10312_v42, %v7446_v52  ;;  %v6558_v60 = vadd.f32 1.0, %v14846_v56  ;;  %10331 = vpow2.f32 %v6227_v55  ;;  %v5676_v37 = vand.u32 2147483647, %v14851_v15 }
 0xb43   : > { %v14862_v61 = vpop.eup %10317  ;;  %7894 = vst [vmem:[%s12206_s26 + $0x2f8] sm:$0xff] %v7670_v28  ;;  %v7546_v7 = vmul.f32 %v10316_v39, %v14793_v33  ;;  %10333 = vpow2.f32 %v6425_v25  ;;  %vm7322_vm5 = vcmp.ge.f32.partialorder %v14696_v46, 0.0  ;;  %v5682_v20 = vand.u32 2147483647, %v14855_v27 }
 0xb44   : > { %v10320_v32 = vpop.eup %10319  ;;  %10335 = vrcp.f32 %v6558_v60  ;;  %v6657_v3 = vadd.f32 1.0, %v14862_v61  ;;  %v5900_v10 = vsub.f32 0.0, %v5676_v37  ;;  %vm7223_vm6 = vcmp.ge.f32.partialorder %v14719_v29, 0.0 }
 0xb45   : > { %v7770_v22 = vsel %vm7322_vm5, %v10316_v39, %v7546_v7  ;;  %v7447_v5 = vmul.f32 %v10320_v32, %v14804_v41  ;;  %10337 = vpow2.f32 %v6239_v11  ;;  %v14871_v34 = vpop.eup %10321  ;;  %v5906_v33 = vsub.f32 0.0, %v5682_v20 }
 0xb46   : > { %7994 = vst [vmem:[%s12206_s26 + $0x618] sm:$0xff] %v7770_v22  ;;  %10339 = vrcp.f32 %v6657_v3  ;;  %v5683_v46 = vand.u32 2147483647, %v14860_v16  ;;  %vm7308_vm7 = vcmp.ge.f32.partialorder %v14733_v31, 0.0  ;;  %v6564_v42 = vadd.f32 1.0, %v14871_v34  ;;  %v15457_v31 = vld [vmem:[#allocation23_spill] sm:$0xff] }
 0xb47   : > { %v10324_v0 = vpop.eup %10323  ;;  %v7671_v21 = vsel %vm7223_vm6, %v10320_v32, %v7447_v5  ;;  %v6241_v53 = vmul.f32 1.442695, %v5900_v10  ;;  %v6253_v14 = vmul.f32 1.442695, %v5906_v33  ;;  %v14884_v29 = vadd.f32 %v14197_v40, %v13941_v50 }
 0xb48   : > { %v14878_v55 = vpop.eup %10325  ;;  %7895 = vst [vmem:[%s12206_s26 + $0x300] sm:$0xff] %v7671_v21  ;;  %v7532_v41 = vmul.f32 %v10324_v0, %v14818_v38  ;;  %v5907_v62 = vsub.f32 0.0, %v5683_v46  ;;  %10341 = vrcp.f32 %v6564_v42  ;;  %v14889_v24 = vadd.f32 %v15457_v31, %v13982_v51 }
 0xb49   : > { %v10328_v52 = vpop.eup %10327  ;;  %v6678_v25 = vadd.f32 1.0, %v14878_v55  ;;  %v14893_v45 = vadd.f32 %v15458_v18, %v13941_v50  ;;  %10343 = vpow2.f32 %v6241_v53  ;;  %vm7229_vm8 = vcmp.ge.f32.partialorder %v14738_v6, 0.0 }
 0xb4a   : > { %v7756_v39 = vsel %vm7308_vm7, %v10324_v0, %v7532_v41  ;;  %v7453_v38 = vmul.f32 %v10328_v52, %v14830_v13  ;;  %v6255_v28 = vmul.f32 1.442695, %v5907_v62  ;;  %v5689_v60 = vand.u32 2147483647, %v14884_v29 }
 0xb4b   : > { %v10330_v40 = vpop.eup %10329  ;;  %7980 = vst [vmem:[%s12206_s26 + $0x5a8] sm:$0xff] %v7756_v39  ;;  %10345 = vrcp.f32 %v6678_v25  ;;  %v5690_v12 = vand.u32 2147483647, %v14889_v24  ;;  %vm7343_vm9 = vcmp.ge.f32.partialorder %v14742_v26, 0.0  ;;  %vm7230_vm10 = vcmp.ge.f32.partialorder %v14765_v63, 0.0  ;;  %v15459_v63 = vld [vmem:[#allocation7_spill] sm:$0xff] }
 0xb4c   : > { %v14900_v7 = vpop.eup %10331  ;;  %v7677_v11 = vsel %vm7229_vm8, %v10328_v52, %v7453_v38  ;;  %v7567_v37 = vmul.f32 %v10330_v40, %v14838_v48  ;;  %10347 = vpow2.f32 %v6253_v14  ;;  %v5913_v6 = vsub.f32 0.0, %v5689_v60 }
 0xb4d   : > { %v14904_v13 = vpop.eup %10333  ;;  %7901 = vst [vmem:[%s12206_s26 + $0x330] sm:$0xff] %v7677_v11  ;;  %v6565_v32 = vadd.f32 1.0, %v14900_v7  ;;  %10349 = vpow2.f32 %v6255_v28  ;;  %v5914_v3 = vsub.f32 0.0, %v5690_v12  ;;  %v5696_v10 = vand.u32 2147483647, %v14893_v45  ;;  %v15461_v12 = vld [vmem:[#allocation8_spill] sm:$0xff] }
 0xb4e   : > { %v10336_v20 = vpop.eup %10335  ;;  %v7791_v22 = vsel %vm7343_vm9, %v10330_v40, %v7567_v37  ;;  %v6664_v5 = vadd.f32 1.0, %v14904_v13  ;;  %v6267_v33 = vmul.f32 1.442695, %v5913_v6  ;;  %v14918_v53 = vadd.f32 %v15459_v63, %v13982_v51 }
 0xb4f   : > { %v14911_v26 = vpop.eup %10337  ;;  %8015 = vst [vmem:[%s12206_s26 + $0x6c0] sm:$0xff] %v7791_v22  ;;  %v7454_v48 = vmul.f32 %v10336_v20, %v14846_v56  ;;  %10351 = vrcp.f32 %v6565_v32  ;;  %v6269_v46 = vmul.f32 1.442695, %v5914_v3  ;;  %v5920_v42 = vsub.f32 0.0, %v5696_v10 }
 0xb50   : > { %v10340_v0 = vpop.eup %10339  ;;  %10353 = vrcp.f32 %v6664_v5  ;;  %v6571_v21 = vadd.f32 1.0, %v14911_v26  ;;  %v14923_v56 = vadd.f32 %v14259_v23, %v13941_v50  ;;  %vm7329_vm11 = vcmp.ge.f32.partialorder %v14774_v59, 0.0 }
 0xb51   : > { %v7678_v41 = vsel %vm7230_vm10, %v10336_v20, %v7454_v48  ;;  %v7553_v14 = vmul.f32 %v10340_v0, %v14862_v61  ;;  %10355 = vpow2.f32 %v6267_v33  ;;  %v6281_v62 = vmul.f32 1.442695, %v5920_v42 }
 0xb52   : > { %7902 = vst [vmem:[%s12206_s26 + $0x338] sm:$0xff] %v7678_v41  ;;  %10357 = vrcp.f32 %v6571_v21  ;;  %v5697_v52 = vand.u32 2147483647, %v14918_v53  ;;  %v10342_v25 = vpop.eup %10341  ;;  %vm7236_vm12 = vcmp.ge.f32.partialorder %v14791_v44, 0.0  ;;  %v5703_v18 = vand.u32 2147483647, %v14923_v56 }
 0xb53   : > { %v7777_v31 = vsel %vm7329_vm11, %v10340_v0, %v7553_v14  ;;  %10359 = vpow2.f32 %v6269_v46  ;;  %v14930_v61 = vpop.eup %10343  ;;  %v7460_v23 = vmul.f32 %v10342_v25, %v14871_v34  ;;  %v14936_v59 = vadd.f32 %v14270_v35, %v13982_v51  ;;  %v15460_v44 = vld [vmem:[#allocation25_spill] sm:$0xff] }
 0xb54   : > { %8001 = vst [vmem:[%s12206_s26 + $0x650] sm:$0xff] %v7777_v31  ;;  %10361 = vpow2.f32 %v6281_v62  ;;  %v5921_v39 = vsub.f32 0.0, %v5697_v52  ;;  %v6572_v28 = vadd.f32 1.0, %v14930_v61  ;;  %v5927_v40 = vsub.f32 0.0, %v5703_v18 }
 0xb55   : > { %v10346_v38 = vpop.eup %10345  ;;  %v14941_v60 = vadd.f32 %v15460_v44, %v13941_v50  ;;  %v14945_v11 = vadd.f32 %v15461_v12, %v13982_v51  ;;  %v7684_v34 = vsel %vm7236_vm12, %v10342_v25, %v7460_v23  ;;  %v5704_v6 = vand.u32 2147483647, %v14936_v59  ;;  %v15462_v44 = vld [vmem:[#allocation26_spill] sm:$0xff] }
 0xb56   : > { %v14947_v37 = vpop.eup %10347  ;;  %v7574_v32 = vmul.f32 %v10346_v38, %v14878_v55  ;;  %v6283_v35 = vmul.f32 1.442695, %v5921_v39  ;;  %7908 = vst [vmem:[%s12206_s26 + $0x368] sm:$0xff] %v7684_v34  ;;  %vm7350_vm13 = vcmp.ge.f32.partialorder %v14798_v17, 0.0  ;;  %10363 = vrcp.f32 %v6572_v28 }
 0xb57   : > { %v14951_v3 = vpop.eup %10349  ;;  %v6578_v20 = vadd.f32 1.0, %v14947_v37  ;;  %v6295_v22 = vmul.f32 1.442695, %v5927_v40  ;;  %v5928_v48 = vsub.f32 0.0, %v5704_v6  ;;  %vm7237_vm14 = vcmp.ge.f32.partialorder %v14816_v43, 0.0 }
 0xb58   : > { %v7798_v5 = vsel %vm7350_vm13, %v10346_v38, %v7574_v32  ;;  %v6579_v10 = vadd.f32 1.0, %v14951_v3  ;;  %10365 = vpow2.f32 %v6283_v35  ;;  %v5710_v55 = vand.u32 2147483647, %v14941_v60 }
 0xb59   : > { %v10352_v33 = vpop.eup %10351  ;;  %8022 = vst [vmem:[%s12206_s26 + $0x6f8] sm:$0xff] %v7798_v5  ;;  %10367 = vrcp.f32 %v6578_v20  ;;  %v5711_v46 = vand.u32 2147483647, %v14945_v11  ;;  %vm7336_vm15 = vcmp.ge.f32.partialorder %v14822_v9, 0.0  ;;  %v6297_v21 = vmul.f32 1.442695, %v5928_v48 }
 0xb5a   : > { %v10354_v0 = vpop.eup %10353  ;;  %v7461_v17 = vmul.f32 %v10352_v33, %v14900_v7  ;;  %10369 = vrcp.f32 %v6579_v10  ;;  %v5934_v43 = vsub.f32 0.0, %v5710_v55  ;;  %v14969_v7 = vadd.f32 %v14323_v47, %v13941_v50  ;;  %v15463_v10 = vld [vmem:[#allocation27_spill] sm:$0xff] }
 0xb5b   : > { %v14963_v42 = vpop.eup %10355  ;;  %v7560_v63 = vmul.f32 %v10354_v0, %v14904_v13  ;;  %10371 = vpow2.f32 %v6295_v22  ;;  %v5935_v41 = vsub.f32 0.0, %v5711_v46  ;;  %vm7243_vm0 = vcmp.ge.f32.partialorder %v14826_v19, 0.0 }
 0xb5c   : > { %v10358_v14 = vpop.eup %10357  ;;  %v7685_v62 = vsel %vm7237_vm14, %v10352_v33, %v7461_v17  ;;  %v6585_v52 = vadd.f32 1.0, %v14963_v42  ;;  %10373 = vpow2.f32 %v6297_v21  ;;  %v6309_v31 = vmul.f32 1.442695, %v5934_v43 }
 0xb5d   : > { %v14971_v9 = vpop.eup %10359  ;;  %7909 = vst [vmem:[%s12206_s26 + $0x370] sm:$0xff] %v7685_v62  ;;  %v7784_v25 = vsel %vm7336_vm15, %v10354_v0, %v7560_v63  ;;  %v7467_v13 = vmul.f32 %v10358_v14, %v14911_v26  ;;  %v6311_v39 = vmul.f32 1.442695, %v5935_v41  ;;  %v5717_v47 = vand.u32 2147483647, %v14969_v7 }
 0xb5e   : > { %v14976_v18 = vpop.eup %10361  ;;  %8008 = vst [vmem:[%s12206_s26 + $0x688] sm:$0xff] %v7784_v25  ;;  %10375 = vrcp.f32 %v6585_v52  ;;  %v6586_v23 = vadd.f32 1.0, %v14971_v9  ;;  %v14984_v40 = vadd.f32 %v14329_v30, %v13982_v51  ;;  %v14989_v26 = vadd.f32 %v14337_v36, %v13941_v50 }
 0xb5f   : > { %v7691_v38 = vsel %vm7243_vm0, %v10358_v14, %v7467_v13  ;;  %v6592_v28 = vadd.f32 1.0, %v14976_v18  ;;  %10377 = vpow2.f32 %v6309_v31  ;;  %v5941_v19 = vsub.f32 0.0, %v5717_v47 }
 0xb60   : > { %7915 = vst [vmem:[%s12206_s26 + $0x3a0] sm:$0xff] %v7691_v38  ;;  %10379 = vrcp.f32 %v6586_v23  ;;  %v14993_v12 = vadd.f32 %v15462_v44, %v13982_v51  ;;  %v10364_v34 = vpop.eup %10363  ;;  %vm7244_vm1 = vcmp.ge.f32.partialorder %v14851_v15, 0.0  ;;  %vm7250_vm2 = vcmp.ge.f32.partialorder %v14855_v27, 0.0  ;;  %v15464_v27 = vld [vmem:[#allocation28_spill] sm:$0xff]  ;;  %v15466_v38 = vld [vmem:[#allocation30_spill] sm:$0xff] }
 0xb61   : > { %10381 = vrcp.f32 %v6592_v28  ;;  %v5718_v30 = vand.u32 2147483647, %v14984_v40  ;;  %v7468_v35 = vmul.f32 %v10364_v34, %v14930_v61  ;;  %v6323_v36 = vmul.f32 1.442695, %v5941_v19 }
 0xb62   : > { %v14998_v32 = vpop.eup %10365  ;;  %10383 = vpow2.f32 %v6311_v39  ;;  %v5724_v6 = vand.u32 2147483647, %v14989_v26  ;;  %v5725_v15 = vand.u32 2147483647, %v14993_v12  ;;  %v15006_v48 = vadd.f32 %v15463_v10, %v13941_v50  ;;  %v15465_v39 = vld [vmem:[#allocation29_spill] sm:$0xff] }
 0xb63   : > { %v10368_v20 = vpop.eup %10367  ;;  %v6593_v22 = vadd.f32 1.0, %v14998_v32  ;;  %v5942_v5 = vsub.f32 0.0, %v5718_v30  ;;  %v7692_v55 = vsel %vm7244_vm1, %v10364_v34, %v7468_v35  ;;  %10385 = vpow2.f32 %v6323_v36 }
 0xb64   : > { %v10370_v33 = vpop.eup %10369  ;;  %v7474_v46 = vmul.f32 %v10368_v20, %v14947_v37  ;;  %v5948_v61 = vsub.f32 0.0, %v5724_v6  ;;  %7916 = vst [vmem:[%s12206_s26 + $0x3a8] sm:$0xff] %v7692_v55  ;;  %v5949_v63 = vsub.f32 0.0, %v5725_v15  ;;  %vm7251_vm3 = vcmp.ge.f32.partialorder %v14860_v16, 0.0 }
 0xb65   : > { %v15009_v0 = vpop.eup %10371  ;;  %v7475_v17 = vmul.f32 %v10370_v33, %v14951_v3  ;;  %10387 = vrcp.f32 %v6593_v22  ;;  %v6325_v21 = vmul.f32 1.442695, %v5942_v5  ;;  %vm7257_vm4 = vcmp.ge.f32.partialorder %v14884_v29, 0.0 }
 0xb66   : > { %v15013_v43 = vpop.eup %10373  ;;  %v7698_v41 = vsel %vm7250_vm2, %v10368_v20, %v7474_v46  ;;  %v6599_v37 = vadd.f32 1.0, %v15009_v0  ;;  %v6337_v14 = vmul.f32 1.442695, %v5948_v61  ;;  %v6339_v25 = vmul.f32 1.442695, %v5949_v63 }
 0xb67   : > { %7922 = vst [vmem:[%s12206_s26 + $0x3d8] sm:$0xff] %v7698_v41  ;;  %v7699_v62 = vsel %vm7251_vm3, %v10370_v33, %v7475_v17  ;;  %v6600_v52 = vadd.f32 1.0, %v15013_v43  ;;  %10389 = vpow2.f32 %v6325_v21  ;;  %v5731_v13 = vand.u32 2147483647, %v15006_v48  ;;  %v15467_v21 = vld [vmem:[#allocation31_spill] sm:$0xff] }
 0xb68   : > { %v10376_v3 = vpop.eup %10375  ;;  %7923 = vst [vmem:[%s12206_s26 + $0x3e0] sm:$0xff] %v7699_v62  ;;  %10391 = vrcp.f32 %v6599_v37  ;;  %v15026_v31 = vadd.f32 %v15464_v27, %v13982_v51  ;;  %v15033_v47 = vadd.f32 %v15465_v39, %v13941_v50  ;;  %v15037_v29 = vadd.f32 %v15466_v38, %v13982_v51 }
 0xb69   : > { %v15028_v16 = vpop.eup %10377  ;;  %v7481_v23 = vmul.f32 %v10376_v3, %v14963_v42  ;;  %10393 = vrcp.f32 %v6600_v52  ;;  %v5955_v44 = vsub.f32 0.0, %v5731_v13  ;;  %vm7258_vm5 = vcmp.ge.f32.partialorder %v14889_v24, 0.0 }
 0xb6a   : > { %v10380_v28 = vpop.eup %10379  ;;  %v6606_v19 = vadd.f32 1.0, %v15028_v16  ;;  %10395 = vpow2.f32 %v6337_v14  ;;  %v5732_v34 = vand.u32 2147483647, %v15026_v31  ;;  %vm7264_vm6 = vcmp.ge.f32.partialorder %v14893_v45, 0.0  ;;  %v15468_v14 = vld [vmem:[#allocation32_spill] sm:$0xff] }
 0xb6b   : > { %v10382_v30 = vpop.eup %10381  ;;  %v7705_v35 = vsel %vm7257_vm4, %v10376_v3, %v7481_v23  ;;  %v7482_v42 = vmul.f32 %v10380_v28, %v14971_v9  ;;  %10397 = vpow2.f32 %v6339_v25  ;;  %v6351_v20 = vmul.f32 1.442695, %v5955_v44 }
 0xb6c   : > { %v15043_v36 = vpop.eup %10383  ;;  %7929 = vst [vmem:[%s12206_s26 + $0x410] sm:$0xff] %v7705_v35  ;;  %v7488_v6 = vmul.f32 %v10382_v30, %v14976_v18  ;;  %10399 = vrcp.f32 %v6606_v19  ;;  %v5956_v22 = vsub.f32 0.0, %v5732_v34  ;;  %v5738_v10 = vand.u32 2147483647, %v15033_v47 }
 0xb6d   : > { %v7706_v5 = vsel %vm7258_vm5, %v10380_v28, %v7482_v42  ;;  %v6607_v15 = vadd.f32 1.0, %v15043_v36  ;;  %v15050_v24 = vpop.eup %10385  ;;  %10401 = vpow2.f32 %v6351_v20  ;;  %v5739_v55 = vand.u32 2147483647, %v15037_v29 }
 0xb6e   : > { %7930 = vst [vmem:[%s12206_s26 + $0x418] sm:$0xff] %v7706_v5  ;;  %v7712_v9 = vsel %vm7264_vm6, %v10382_v30, %v7488_v6  ;;  %v6353_v33 = vmul.f32 1.442695, %v5956_v22  ;;  %vm7265_vm7 = vcmp.ge.f32.partialorder %v14918_v53, 0.0  ;;  %v6613_v18 = vadd.f32 1.0, %v15050_v24 }
 0xb6f   : > { %v10388_v46 = vpop.eup %10387  ;;  %7936 = vst [vmem:[%s12206_s26 + $0x448] sm:$0xff] %v7712_v9  ;;  %10403 = vrcp.f32 %v6607_v15  ;;  %v5962_v45 = vsub.f32 0.0, %v5738_v10  ;;  %v5963_v17 = vsub.f32 0.0, %v5739_v55  ;;  %v15060_v63 = vadd.f32 %v15467_v21, %v13941_v50 }
 0xb70   : > { %v7489_v61 = vmul.f32 %v10388_v46, %v14998_v32  ;;  %10405 = vpow2.f32 %v6353_v33  ;;  %v15066_v53 = vadd.f32 %v15468_v14, %v13982_v51  ;;  %v15070_v62 = vadd.f32 %v14449_v1, %v13941_v50 }
 0xb71   : > { %v15062_v41 = vpop.eup %10389  ;;  %10407 = vrcp.f32 %v6613_v18  ;;  %v6365_v37 = vmul.f32 1.442695, %v5962_v45  ;;  %v6367_v3 = vmul.f32 1.442695, %v5963_v17  ;;  %v5745_v13 = vand.u32 2147483647, %v15060_v63 }
 0xb72   : > { %v10392_v52 = vpop.eup %10391  ;;  %v7713_v32 = vsel %vm7265_vm7, %v10388_v46, %v7489_v61  ;;  %v6614_v25 = vadd.f32 1.0, %v15062_v41  ;;  %vm7271_vm8 = vcmp.ge.f32.partialorder %v14923_v56, 0.0  ;;  %v5746_v39 = vand.u32 2147483647, %v15066_v53 }
 0xb73   : > { %v10394_v27 = vpop.eup %10393  ;;  %7937 = vst [vmem:[%s12206_s26 + $0x450] sm:$0xff] %v7713_v32  ;;  %v7495_v23 = vmul.f32 %v10392_v52, %v15009_v0  ;;  %10409 = vpow2.f32 %v6365_v37  ;;  %vm7272_vm9 = vcmp.ge.f32.partialorder %v14936_v59, 0.0  ;;  %v5969_v28 = vsub.f32 0.0, %v5745_v13 }
 0xb74   : > { %v15078_v38 = vpop.eup %10395  ;;  %v7496_v1 = vmul.f32 %v10394_v27, %v15013_v43  ;;  %10411 = vrcp.f32 %v6614_v25  ;;  %v5970_v56 = vsub.f32 0.0, %v5746_v39  ;;  %v5752_v6 = vand.u32 2147483647, %v15070_v62  ;;  %v15470_v39 = vld [vmem:[#allocation33_spill] sm:$0xff] }
 0xb75   : > { %v15082_v19 = vpop.eup %10397  ;;  %v7719_v44 = vsel %vm7271_vm8, %v10392_v52, %v7495_v23  ;;  %v6620_v34 = vadd.f32 1.0, %v15078_v38  ;;  %10413 = vpow2.f32 %v6367_v3  ;;  %v6379_v42 = vmul.f32 1.442695, %v5969_v28 }
 0xb76   : > { %v10400_v0 = vpop.eup %10399  ;;  %7943 = vst [vmem:[%s12206_s26 + $0x480] sm:$0xff] %v7719_v44  ;;  %v7720_v30 = vsel %vm7272_vm9, %v10394_v27, %v7496_v1  ;;  %v6621_v35 = vadd.f32 1.0, %v15082_v19  ;;  %vm7278_vm10 = vcmp.ge.f32.partialorder %v14941_v60, 0.0  ;;  %v6381_v43 = vmul.f32 1.442695, %v5970_v56 }
 0xb77   : > { %7944 = vst [vmem:[%s12206_s26 + $0x488] sm:$0xff] %v7720_v30  ;;  %v7502_v59 = vmul.f32 %v10400_v0, %v15028_v16  ;;  %10415 = vrcp.f32 %v6620_v34  ;;  %v15091_v20 = vpop.eup %10401  ;;  %v5976_v22 = vsub.f32 0.0, %v5752_v6  ;;  %v15095_v5 = vadd.f32 %v14458_v4, %v13982_v51 }
 0xb78   : > { %10417 = vrcp.f32 %v6621_v35  ;;  %v15099_v15 = vadd.f32 %v14503_v49, %v13941_v50  ;;  %v6627_v60 = vadd.f32 1.0, %v15091_v20  ;;  %v15104_v16 = vadd.f32 %v14512_v57, %v13982_v51 }
 0xb79   : > { %v10404_v10 = vpop.eup %10403  ;;  %v7726_v9 = vsel %vm7278_vm10, %v10400_v0, %v7502_v59  ;;  %10419 = vpow2.f32 %v6379_v42  ;;  %v6393_v55 = vmul.f32 1.442695, %v5976_v22  ;;  %v5753_v49 = vand.u32 2147483647, %v15095_v5 }
 0xb7a   : > { %v15106_v33 = vpop.eup %10405  ;;  %7950 = vst [vmem:[%s12206_s26 + $0x4b8] sm:$0xff] %v7726_v9  ;;  %v7503_v4 = vmul.f32 %v10404_v10, %v15043_v36  ;;  %10421 = vpow2.f32 %v6381_v43  ;;  %vm7279_vm11 = vcmp.ge.f32.partialorder %v14945_v11, 0.0  ;;  %v5759_v45 = vand.u32 2147483647, %v15099_v15 }
 0xb7b   : > { %v10408_v46 = vpop.eup %10407  ;;  %10423 = vrcp.f32 %v6627_v60  ;;  %v6628_v18 = vadd.f32 1.0, %v15106_v33  ;;  %v5977_v17 = vsub.f32 0.0, %v5753_v49  ;;  %vm7285_vm12 = vcmp.ge.f32.partialorder %v14969_v7, 0.0 }
 0xb7c   : > { %v7727_v57 = vsel %vm7279_vm11, %v10404_v10, %v7503_v4  ;;  %v7509_v61 = vmul.f32 %v10408_v46, %v15050_v24  ;;  %10425 = vpow2.f32 %v6393_v55  ;;  %v5983_v36 = vsub.f32 0.0, %v5759_v45 }
 0xb7d   : > { %v15115_v21 = vpop.eup %10409  ;;  %7951 = vst [vmem:[%s12206_s26 + $0x4c0] sm:$0xff] %v7727_v57  ;;  %10427 = vrcp.f32 %v6628_v18  ;;  %v5760_v11 = vand.u32 2147483647, %v15104_v16  ;;  %vm7286_vm13 = vcmp.ge.f32.partialorder %v14984_v40, 0.0  ;;  %v6395_v32 = vmul.f32 1.442695, %v5977_v17 }
 0xb7e   : > { %v10412_v37 = vpop.eup %10411  ;;  %v7733_v14 = vsel %vm7285_vm12, %v10408_v46, %v7509_v61  ;;  %v6634_v52 = vadd.f32 1.0, %v15115_v21  ;;  %v6407_v3 = vmul.f32 1.442695, %v5983_v36  ;;  %v15128_v7 = vadd.f32 %v14518_v54, %v13941_v50  ;;  %v15469_v40 = vld [vmem:[#allocation9_spill] sm:$0xff] }
 0xb7f   : > { %v15122_v25 = vpop.eup %10413  ;;  %7957 = vst [vmem:[%s12206_s26 + $0x4f0] sm:$0xff] %v7733_v14  ;;  %v7510_v24 = vmul.f32 %v10412_v37, %v15062_v41  ;;  %v5984_v13 = vsub.f32 0.0, %v5760_v11  ;;  %v15133_v23 = vadd.f32 %v15469_v40, %v13982_v51  ;;  %v15137_v1 = vadd.f32 %v15470_v39, %v13941_v50 }
 0xb80   : > { %10429 = vrcp.f32 %v6634_v52  ;;  %v6635_v27 = vadd.f32 1.0, %v15122_v25  ;;  %v5766_v34 = vand.u32 2147483647, %v15128_v7  ;;  %vm7292_vm14 = vcmp.ge.f32.partialorder %v14989_v26, 0.0 }
 0xb81   : > { %v10416_v28 = vpop.eup %10415  ;;  %v7734_v44 = vsel %vm7286_vm13, %v10412_v37, %v7510_v24  ;;  %10431 = vpow2.f32 %v6395_v32  ;;  %v6409_v41 = vmul.f32 1.442695, %v5984_v13  ;;  %v5767_v0 = vand.u32 2147483647, %v15133_v23 }
 0xb82   : > { %v10418_v56 = vpop.eup %10417  ;;  %7958 = vst [vmem:[%s12206_s26 + $0x4f8] sm:$0xff] %v7734_v44  ;;  %v7516_v54 = vmul.f32 %v10416_v28, %v15078_v38  ;;  %10433 = vrcp.f32 %v6635_v27  ;;  %vm7293_vm15 = vcmp.ge.f32.partialorder %v14993_v12, 0.0  ;;  %v5990_v42 = vsub.f32 0.0, %v5766_v34 }
 0xb83   : > { %v15144_v30 = vpop.eup %10419  ;;  %v7517_v35 = vmul.f32 %v10418_v56, %v15082_v19  ;;  %10435 = vpow2.f32 %v6407_v3  ;;  %v5991_v26 = vsub.f32 0.0, %v5767_v0  ;;  %v5773_v12 = vand.u32 2147483647, %v15137_v1 }
 0xb84   : > { %v15148_v6 = vpop.eup %10421  ;;  %v7740_v59 = vsel %vm7292_vm14, %v10416_v28, %v7516_v54  ;;  %v6641_v43 = vadd.f32 1.0, %v15144_v30  ;;  %10437 = vpow2.f32 %v6409_v41  ;;  %v6421_v9 = vmul.f32 1.442695, %v5990_v42 }
 0xb85   : > { %v10424_v38 = vpop.eup %10423  ;;  %7964 = vst [vmem:[%s12206_s26 + $0x528] sm:$0xff] %v7740_v59  ;;  %v7741_v22 = vsel %vm7293_vm15, %v10418_v56, %v7517_v35  ;;  %v6642_v10 = vadd.f32 1.0, %v15148_v6  ;;  %vm7299_vm0 = vcmp.ge.f32.partialorder %v15006_v48, 0.0  ;;  %v6423_v4 = vmul.f32 1.442695, %v5991_v26 }
 0xb86   : > { %v15154_v60 = vpop.eup %10425  ;;  %7965 = vst [vmem:[%s12206_s26 + $0x530] sm:$0xff] %v7741_v22  ;;  %v7523_v19 = vmul.f32 %v10424_v38, %v15091_v20  ;;  %10439 = vrcp.f32 %v6641_v43  ;;  %v5997_v46 = vsub.f32 0.0, %v5773_v12  ;;  %v15162_v18 = vadd.f32 %v14564_v8, %v13982_v51 }
 0xb87   : > { %v10428_v55 = vpop.eup %10427  ;;  %10441 = vrcp.f32 %v6642_v10  ;;  %v6648_v49 = vadd.f32 1.0, %v15154_v60  ;;  %v15167_v48 = vadd.f32 %v14571_v58, %v13941_v50  ;;  %vm7300_vm1 = vcmp.ge.f32.partialorder %v15026_v31, 0.0 }
 0xb88   : > { %v7747_v45 = vsel %vm7299_vm0, %v10424_v38, %v7523_v19  ;;  %v7524_v57 = vmul.f32 %v10428_v55, %v15106_v33  ;;  %10443 = vpow2.f32 %v6421_v9  ;;  %v6435_v20 = vmul.f32 1.442695, %v5997_v46 }
 0xb89   : > { %7971 = vst [vmem:[%s12206_s26 + $0x560] sm:$0xff] %v7747_v45  ;;  %10445 = vrcp.f32 %v6648_v49  ;;  %v5774_v61 = vand.u32 2147483647, %v15162_v18  ;;  %v5780_v8 = vand.u32 2147483647, %v15167_v48  ;;  %v15177_v58 = vadd.f32 %v14586_v2, %v13982_v51 }
 0xb8a   : > { %v10430_v17 = vpop.eup %10429  ;;  %v7748_v36 = vsel %vm7300_vm1, %v10428_v55, %v7524_v57  ;;  %10447 = vpow2.f32 %v6423_v4  ;;  %vm7306_vm2 = vcmp.ge.f32.partialorder %v15033_v47, 0.0  ;;  %vm7307_vm3 = vcmp.ge.f32.partialorder %v15037_v29, 0.0 }
 0xb8b   : > { %v10432_v11 = vpop.eup %10431  ;;  %7972 = vst [vmem:[%s12206_s26 + $0x568] sm:$0xff] %v7748_v36  ;;  %v7530_v33 = vmul.f32 %v10430_v17, %v15115_v21  ;;  %10449 = vpow2.f32 %v6435_v20  ;;  %v5998_v50 = vsub.f32 0.0, %v5774_v61  ;;  %v6004_v14 = vsub.f32 0.0, %v5780_v8 }
 0xb8c   : > { %v10434_v31 = vpop.eup %10433  ;;  %v6649_v37 = vadd.f32 1.0, %v10432_v11  ;;  %v5781_v13 = vand.u32 2147483647, %v15177_v58  ;;  %vm7313_vm4 = vcmp.ge.f32.partialorder %v15060_v63, 0.0  ;;  %vm7314_vm5 = vcmp.ge.f32.partialorder %v15066_v53, 0.0 }
 0xb8d   : > { %v10436_v52 = vpop.eup %10435  ;;  %v7754_v32 = vsel %vm7306_vm2, %v10430_v17, %v7530_v33  ;;  %v7531_v24 = vmul.f32 %v10434_v31, %v15122_v25  ;;  %v6437_v3 = vmul.f32 1.442695, %v5998_v50  ;;  %v6449_v2 = vmul.f32 1.442695, %v6004_v14 }
 0xb8e   : > { %v10438_v21 = vpop.eup %10437  ;;  %7978 = vst [vmem:[%s12206_s26 + $0x598] sm:$0xff] %v7754_v32  ;;  %10451 = vrcp.f32 %v6649_v37  ;;  %v6655_v51 = vadd.f32 1.0, %v10436_v52  ;;  %v6005_v47 = vsub.f32 0.0, %v5781_v13  ;;  %vm7320_vm6 = vcmp.ge.f32.partialorder %v15070_v62, 0.0 }
 0xb8f   : > { %v7755_v27 = vsel %vm7307_vm3, %v10434_v31, %v7531_v24  ;;  %v6656_v40 = vadd.f32 1.0, %v10438_v21  ;;  %10453 = vpow2.f32 %v6437_v3  ;;  %vm7321_vm7 = vcmp.ge.f32.partialorder %v15095_v5, 0.0 }
 0xb90   : > { %v10440_v39 = vpop.eup %10439  ;;  %7979 = vst [vmem:[%s12206_s26 + $0x5a0] sm:$0xff] %v7755_v27  ;;  %10455 = vrcp.f32 %v6655_v51  ;;  %v6451_v44 = vmul.f32 1.442695, %v6005_v47  ;;  %vm7327_vm8 = vcmp.ge.f32.partialorder %v15099_v15, 0.0  ;;  %vm7328_vm9 = vcmp.ge.f32.partialorder %v15104_v16, 0.0 }
 0xb91   : > { %v10442_v28 = vpop.eup %10441  ;;  %v7537_v25 = vmul.f32 %v10440_v39, %v15144_v30  ;;  %10457 = vrcp.f32 %v6656_v40  ;;  %vm7334_vm10 = vcmp.ge.f32.partialorder %v15128_v7, 0.0  ;;  %vm7335_vm11 = vcmp.ge.f32.partialorder %v15133_v23, 0.0 }
 0xb92   : > { %v10444_v41 = vpop.eup %10443  ;;  %v7538_v29 = vmul.f32 %v10442_v28, %v15148_v6  ;;  %10459 = vpow2.f32 %v6449_v2  ;;  %vm7341_vm12 = vcmp.ge.f32.partialorder %v15137_v1, 0.0  ;;  %vm7342_vm13 = vcmp.ge.f32.partialorder %v15162_v18, 0.0 }
 0xb93   : > { %v10446_v34 = vpop.eup %10445  ;;  %v7761_v56 = vsel %vm7313_vm4, %v10440_v39, %v7537_v25  ;;  %v6662_v54 = vadd.f32 1.0, %v10444_v41  ;;  %10461 = vpow2.f32 %v6451_v44  ;;  %vm7348_vm14 = vcmp.ge.f32.partialorder %v15167_v48, 0.0 }
 0xb94   : > { %v10448_v0 = vpop.eup %10447  ;;  %7985 = vst [vmem:[%s12206_s26 + $0x5d0] sm:$0xff] %v7761_v56  ;;  %v7762_v35 = vsel %vm7314_vm5, %v10442_v28, %v7538_v29  ;;  %v7544_v30 = vmul.f32 %v10446_v34, %v15154_v60  ;;  %vm7349_vm15 = vcmp.ge.f32.partialorder %v15177_v58, 0.0 }
 0xb95   : > { %v10450_v42 = vpop.eup %10449  ;;  %7986 = vst [vmem:[%s12206_s26 + $0x5d8] sm:$0xff] %v7762_v35  ;;  %10463 = vrcp.f32 %v6662_v54  ;;  %v6663_v63 = vadd.f32 1.0, %v10448_v0 }
 0xb96   : > { %v7768_v6 = vsel %vm7320_vm6, %v10446_v34, %v7544_v30  ;;  %v6669_v59 = vadd.f32 1.0, %v10450_v42 }
 0xb97   : > { %7992 = vst [vmem:[%s12206_s26 + $0x608] sm:$0xff] %v7768_v6  ;;  %10465 = vrcp.f32 %v6663_v63 }
 0xb98   : > { %v10452_v43 = vpop.eup %10451  ;;  %10467 = vrcp.f32 %v6669_v59 }
 0xb99   : > { %v10454_v53 = vpop.eup %10453  ;;  %v7545_v26 = vmul.f32 %v10452_v43, %v10432_v11 }
 0xb9a   : > { %v10456_v38 = vpop.eup %10455  ;;  %v6670_v22 = vadd.f32 1.0, %v10454_v53 }
 0xb9b   : > { %v10458_v10 = vpop.eup %10457  ;;  %v7769_v9 = vsel %vm7321_vm7, %v10452_v43, %v7545_v26  ;;  %v7551_v62 = vmul.f32 %v10456_v38, %v10436_v52 }
 0xb9c   : > { %v10460_v12 = vpop.eup %10459  ;;  %7993 = vst [vmem:[%s12206_s26 + $0x610] sm:$0xff] %v7769_v9  ;;  %v7552_v60 = vmul.f32 %v10458_v10, %v10438_v21  ;;  %10469 = vrcp.f32 %v6670_v22 }
 0xb9d   : > { %v10462_v19 = vpop.eup %10461  ;;  %v7775_v4 = vsel %vm7327_vm8, %v10456_v38, %v7551_v62  ;;  %v6676_v55 = vadd.f32 1.0, %v10460_v12 }
 0xb9e   : > { %7999 = vst [vmem:[%s12206_s26 + $0x640] sm:$0xff] %v7775_v4  ;;  %v7776_v49 = vsel %vm7328_vm9, %v10458_v10, %v7552_v60  ;;  %v6677_v5 = vadd.f32 1.0, %v10462_v19 }
 0xb9f   : > { %v10464_v46 = vpop.eup %10463  ;;  %8000 = vst [vmem:[%s12206_s26 + $0x648] sm:$0xff] %v7776_v49  ;;  %10471 = vrcp.f32 %v6676_v55 }
 0xba0   : > { %v7558_v45 = vmul.f32 %v10464_v46, %v10444_v41  ;;  %10473 = vrcp.f32 %v6677_v5 }
 0xba1   : > { %v10466_v57 = vpop.eup %10465 }
 0xba2   : > { %v10468_v15 = vpop.eup %10467  ;;  %v7782_v20 = vsel %vm7334_vm10, %v10464_v46, %v7558_v45  ;;  %v7559_v61 = vmul.f32 %v10466_v57, %v10448_v0 }
 0xba3   : > { %8006 = vst [vmem:[%s12206_s26 + $0x678] sm:$0xff] %v7782_v20  ;;  %v7565_v16 = vmul.f32 %v10468_v15, %v10450_v42 }
 0xba4   : > { %v7783_v17 = vsel %vm7335_vm11, %v10466_v57, %v7559_v61 }
 0xba5   : > { %8007 = vst [vmem:[%s12206_s26 + $0x680] sm:$0xff] %v7783_v17  ;;  %v7789_v36 = vsel %vm7341_vm12, %v10468_v15, %v7565_v16 }
 0xba6   : > { %v10470_v8 = vpop.eup %10469  ;;  %8013 = vst [vmem:[%s12206_s26 + $0x6b0] sm:$0xff] %v7789_v36 }
 0xba7   : > { %v7566_v11 = vmul.f32 %v10470_v8, %v10454_v53 }
 0xba9   : > { %v10472_v7 = vpop.eup %10471  ;;  %v7790_v33 = vsel %vm7342_vm13, %v10470_v8, %v7566_v11 }
 0xbaa   : > { %v10474_v50 = vpop.eup %10473  ;;  %8014 = vst [vmem:[%s12206_s26 + $0x6b8] sm:$0xff] %v7790_v33  ;;  %v7572_v31 = vmul.f32 %v10472_v7, %v10460_v12 }
 0xbab   : > { %v7573_v23 = vmul.f32 %v10474_v50, %v10462_v19 }
 0xbac   : > { %v7796_v37 = vsel %vm7348_vm14, %v10472_v7, %v7572_v31 }
 0xbad   : > { %8020 = vst [vmem:[%s12206_s26 + $0x6e8] sm:$0xff] %v7796_v37  ;;  %v7797_v1 = vsel %vm7349_vm15, %v10474_v50, %v7573_v23 }
 0xbae   : > { %8021 = vst [vmem:[%s12206_s26 + $0x6f0] sm:$0xff] %v7797_v1 }
 0xbaf PF: > { %s33_s3 = sadd.s32 1, %s10482_s3  }
 0xbb0   : > { %p30_p4 = scmp.ge.s32.totalorder %s33_s3, 4  }
 0xbb2   :  { %32 = sbr.rel (!%p30_p4) target bundleno = 8 (0x8), region = 146 }

</bundles_post_ra>
